<compile_context>
chip_gen: v6e
topology: v6e:2x2x1
jax: 0.10.0
libtpu: 0.0.40
codegen_flags: <defaults>
</compile_context>

<pallas_src>
import jax
import jax.numpy as jnp
from jax.experimental import pallas as pl
from jax.experimental.pallas import tpu as pltpu


# ---------------------------------------------------------------------------
# Fused whole-network kernel
# ---------------------------------------------------------------------------
def _net_kernel(x_ref, w1_ref, b1_ref, w2_ref, b2_ref,
                wf1_ref, bf1_ref, wf2_ref, bf2_ref, o_ref, y1_ref):
    """Full forward pass for a batch tile of TB images.

    x_ref  : (TB, 1792) bf16   image rows padded to 64 lanes (lane = row*64+col)
    w1_ref : (384, 512) bf16   conv1 block-Toeplitz, 4 pool-window blocks on N
    b1_ref : (1, 128)   f32    conv1 bias packed as pw*10+oc (pad lanes 0)
    w2_ref : (768, 512) bf16   conv2 block-Toeplitz
    b2_ref : (1, 128)   f32    conv2 bias packed as pw*20+oc (pad lanes 0)
    wf1_ref: (512, 64)  bf16   fc1 weight in y2 lane order (pad cols 0)
    bf1_ref: (1, 64)    f32
    wf2_ref: (64, 128)  bf16   fc2 weight, out lanes 10..127 zero
    bf2_ref: (1, 128)   f32    fc2 bias, -1e9 on pad lanes (killed by softmax)
    o_ref  : (TB, 128)  f32    log-probs in lanes 0..9 (wrapper slices)
    y1_ref : (TB, 1536) bf16   VMEM scratch: pooled conv1 output
    """
    def pool4(z):   # max over the 4 pool-window blocks packed along lanes
        return jnp.maximum(jnp.maximum(z[:, 0:128], z[:, 128:256]),
                           jnp.maximum(z[:, 256:384], z[:, 384:512]))

    w1 = w1_ref[...]
    b1 = b1_ref[...]
    # conv1 + bias + ReLU + 2x2 maxpool -> y1 scratch (never leaves VMEM).
    for q in range(12):                      # pooled output row
        z = jnp.dot(x_ref[:, 128 * q:128 * q + 384], w1,
                    preferred_element_type=jnp.float32)          # (TB, 512)
        y1_ref[:, 128 * q:128 * (q + 1)] = jnp.maximum(
            pool4(z) + b1, 0.0).astype(y1_ref.dtype)

    # TODO(synk): nn.Dropout2d(p=0.2) treated as identity (inference mode).

    # conv2 + bias + ReLU + 2x2 maxpool, fused directly into fc1 partial sums.
    w2 = w2_ref[...]
    b2 = b2_ref[...]
    h = jnp.zeros((o_ref.shape[0], wf1_ref.shape[1]), jnp.float32)
    for q in range(4):                       # pooled output row
        z = jnp.dot(y1_ref[:, 256 * q:256 * q + 768], w2,
                    preferred_element_type=jnp.float32)          # (TB, 512)
        y2_blk = jnp.maximum(pool4(z) + b2, 0.0).astype(jnp.bfloat16)
        h = h + jnp.dot(y2_blk, wf1_ref[128 * q:128 * (q + 1), :],
                        preferred_element_type=jnp.float32)
    h = jnp.maximum(h + bf1_ref[...], 0.0).astype(jnp.bfloat16)  # (TB, 64)

    # TODO(synk): F.dropout(training=self.training) treated as identity (eval).

    logits = jnp.dot(h, wf2_ref[...],
                     preferred_element_type=jnp.float32) + bf2_ref[...]
    m = jnp.max(logits, axis=-1, keepdims=True)
    s = logits - m
    lse = jnp.log(jnp.sum(jnp.exp(s), axis=-1, keepdims=True))
    o_ref[...] = (s - lse).astype(o_ref.dtype)


# ---------------------------------------------------------------------------
# pallas_call wrapper (single fused launch, batch-tiled grid)
# ---------------------------------------------------------------------------
def _round_up(v, m):
    return ((v + m - 1) // m) * m


def forward(prep, x_nchw):
    n = x_nchw.shape[0]
    # (N,1,28,28) -> rows padded to 64 lanes -> flat (N, 1792) bf16.
    x = jnp.pad(x_nchw.reshape(n, 28, 28), ((0, 0), (0, 0), (0, 36)))
    x = x.reshape(n, 28 * 64).astype(jnp.bfloat16)

    # Batch tile: >=2 grid steps when possible (v7x megacore), capped at 256.
    tb = n if n <= 8 else min(256, _round_up((n + 1) // 2, 8))

    out = pl.pallas_call(
        _net_kernel,
        out_shape=jax.ShapeDtypeStruct((n, 128), jnp.float32),
        grid=(pl.cdiv(n, tb),),
        in_specs=[
            pl.BlockSpec((tb, 28 * 64), lambda i: (i, 0)),
            pl.BlockSpec(prep["w1"].shape, lambda i: (0, 0)),
            pl.BlockSpec(prep["b1"].shape, lambda i: (0, 0)),
            pl.BlockSpec(prep["w2"].shape, lambda i: (0, 0)),
            pl.BlockSpec(prep["b2"].shape, lambda i: (0, 0)),
            pl.BlockSpec(prep["wf1"].shape, lambda i: (0, 0)),
            pl.BlockSpec(prep["bf1"].shape, lambda i: (0, 0)),
            pl.BlockSpec(prep["wf2"].shape, lambda i: (0, 0)),
            pl.BlockSpec(prep["bf2"].shape, lambda i: (0, 0)),
        ],
        out_specs=pl.BlockSpec((tb, 128), lambda i: (i, 0)),
        scratch_shapes=[pltpu.VMEM((tb, 12 * 128), jnp.bfloat16)],
        compiler_params=pltpu.CompilerParams(
            dimension_semantics=("parallel",)),
    )(x, prep["w1"], prep["b1"], prep["w2"], prep["b2"],
      prep["wf1"], prep["bf1"], prep["wf2"], prep["bf2"])
    return out[:, :10]                                  # (N, 10) log-probs


# ---------------------------------------------------------------------------
# One-time weight preprocessing (hoisted out of forward)
# ---------------------------------------------------------------------------
def _build_conv1_weights(conv1_w, conv1_b):
    """conv1 (10,1,5,5) -> (384,512) bf16 block-Toeplitz + (1,128) f32 bias.

    Input lane (within the per-q 384 window): drow*64 + jcol (cols 28..63 zero).
    Output lane: rc*128 + pw*10 + oc  (rc = pool-window offset r*2+c).
    """
    w = jnp.transpose(conv1_w[:, 0], (1, 2, 0))                  # (di, dj, oc)
    drow, jcol = jnp.arange(6), jnp.arange(64)
    rc = jnp.arange(4)
    r, c = rc // 2, rc % 2
    pw = jnp.arange(12)
    di = drow[:, None] - r[None, :]                                    # (6,4)
    dj = jcol[:, None, None] - 2 * pw[None, None, :] - c[None, :, None]  # (64,4,12)
    vi, vj = (di >= 0) & (di <= 4), (dj >= 0) & (dj <= 4)
    dic, djc = jnp.clip(di, 0, 4), jnp.clip(dj, 0, 4)
    core = w[dic[:, None, :, None], djc[None, :, :, :], :]       # (6,64,4,12,10)
    mask = vi[:, None, :, None, None] & vj[None, :, :, :, None]
    core = jnp.where(mask, core, 0.0)
    core = core.reshape(6, 64, 4, 120)
    core = jnp.pad(core, ((0, 0), (0, 0), (0, 0), (0, 8)))       # (6,64,4,128)
    w1 = core.reshape(384, 512).astype(jnp.bfloat16)
    b1 = jnp.pad(jnp.tile(conv1_b, 12), (0, 8)).reshape(1, 128).astype(jnp.float32)
    return w1, b1


def _build_conv2_weights(conv2_w, conv2_b):
    """conv2 (20,10,5,5) -> (768,512) bf16 block-Toeplitz + (1,128) f32 bias.

    Input lane: dr*128 + pw1*10 + ic (y1 layout).  Output: rc*128 + pw2*20 + oc.
    """
    w = jnp.transpose(conv2_w, (2, 3, 1, 0))                     # (di, dj, ic, oc)
    dr, pw1 = jnp.arange(6), jnp.arange(12)
    rc = jnp.arange(4)
    r, c = rc // 2, rc % 2
    pw2 = jnp.arange(4)
    di = dr[:, None] - r[None, :]                                      # (6,4)
    dj = pw1[:, None, None] - 2 * pw2[None, None, :] - c[None, :, None]  # (12,4,4)
    vi, vj = (di >= 0) & (di <= 4), (dj >= 0) & (dj <= 4)
    dic, djc = jnp.clip(di, 0, 4), jnp.clip(dj, 0, 4)
    core = w[dic[:, None, :, None], djc[None, :, :, :], :, :]    # (6,12,4,4,10,20)
    mask = (vi[:, None, :, None, None, None]
            & vj[None, :, :, :, None, None])
    core = jnp.where(mask, core, 0.0)
    core = jnp.transpose(core, (0, 1, 4, 2, 3, 5))               # (dr,pw1,ic,rc,pw2,oc)
    core = core.reshape(6, 120, 4, 80)
    core = jnp.pad(core, ((0, 0), (0, 8), (0, 0), (0, 48)))      # (6,128,4,128)
    w2 = core.reshape(768, 512).astype(jnp.bfloat16)
    b2 = jnp.pad(jnp.tile(conv2_b, 4), (0, 48)).reshape(1, 128).astype(jnp.float32)
    return w2, b2


def _build_fc_weights(fc1_w, fc1_b, fc2_w, fc2_b):
    """fc1/fc2 permuted to the kernel's packed lane layouts, zero/neg-inf pads."""
    w1 = fc1_w.reshape(50, 20, 4, 4)             # (o, c2, h, w)  NCHW flatten
    w1 = jnp.transpose(w1, (2, 3, 1, 0))         # (h, w, c2, o)
    w1 = w1.reshape(4, 80, 50)
    w1 = jnp.pad(w1, ((0, 0), (0, 48), (0, 14))).reshape(512, 64)
    wf1 = w1.astype(jnp.bfloat16)
    bf1 = jnp.pad(fc1_b, (0, 14)).reshape(1, 64).astype(jnp.float32)
    wf2 = jnp.pad(fc2_w.T, ((0, 14), (0, 118))).astype(jnp.bfloat16)   # (64,128)
    bf2 = jnp.concatenate(
        [fc2_b.astype(jnp.float32),
         jnp.full((118,), -1e9, jnp.float32)]).reshape(1, 128)
    return wf1, bf1, wf2, bf2


def prepare_params(params):
    w1, b1 = _build_conv1_weights(params["conv1_w"], params["conv1_b"])
    w2, b2 = _build_conv2_weights(params["conv2_w"], params["conv2_b"])
    wf1, bf1, wf2, bf2 = _build_fc_weights(
        params["fc1_w"], params["fc1_b"], params["fc2_w"], params["fc2_b"])
    return {"w1": w1, "b1": b1, "w2": w2, "b2": b2,
            "wf1": wf1, "bf1": bf1, "wf2": wf2, "bf2": bf2}


# ---------------------------------------------------------------------------
# Parameters (deterministic, PyTorch-default-style uniform init)
# ---------------------------------------------------------------------------
def init_params(key):
    def uni(k, shape, fan_in):
        bound = 1.0 / float(fan_in) ** 0.5
        return jax.random.uniform(k, shape, jnp.float32, -bound, bound)

    ks = jax.random.split(key, 8)
    return {
        "conv1_w": uni(ks[0], (10, 1, 5, 5), 1 * 5 * 5),
        "conv1_b": uni(ks[1], (10,), 1 * 5 * 5),
        "conv2_w": uni(ks[2], (20, 10, 5, 5), 10 * 5 * 5),
        "conv2_b": uni(ks[3], (20,), 10 * 5 * 5),
        "fc1_w": uni(ks[4], (50, 320), 320),
        "fc1_b": uni(ks[5], (50,), 320),
        "fc2_w": uni(ks[6], (10, 50), 50),
        "fc2_b": uni(ks[7], (10,), 50),
    }


# ---------------------------------------------------------------------------
# Pure-JAX reference (XLA ops only, f32) for correctness checking
# ---------------------------------------------------------------------------
def _pool2x2_nchw(t):
    return jnp.maximum(
        jnp.maximum(t[:, :, 0::2, 0::2], t[:, :, 0::2, 1::2]),
        jnp.maximum(t[:, :, 1::2, 0::2], t[:, :, 1::2, 1::2]))


def reference_forward(params, x):
    dn = ("NCHW", "OIHW", "NCHW")
    hp = jax.lax.Precision.HIGHEST
    y = jax.lax.conv_general_dilated(x, params["conv1_w"], (1, 1), "VALID",
                                     dimension_numbers=dn, precision=hp)
    y = _pool2x2_nchw(jnp.maximum(y + params["conv1_b"][None, :, None, None], 0.0))
    z = jax.lax.conv_general_dilated(y, params["conv2_w"], (1, 1), "VALID",
                                     dimension_numbers=dn, precision=hp)
    z = _pool2x2_nchw(jnp.maximum(z + params["conv2_b"][None, :, None, None], 0.0))
    flat = z.reshape(x.shape[0], 320)
    h = jnp.maximum(jnp.dot(flat, params["fc1_w"].T, precision=hp)
                    + params["fc1_b"], 0.0)
    logits = jnp.dot(h, params["fc2_w"].T, precision=hp) + params["fc2_b"]
    return jax.nn.log_softmax(logits, axis=-1)


if __name__ == "__main__":
    key = jax.random.PRNGKey(0)
    pkey, xkey = jax.random.split(key)
    params = init_params(pkey)
    # Input shape is forced to (N, 1, 28, 28) by fc1's 320 = 20*4*4 features.
    x = jax.random.normal(xkey, (2, 1, 28, 28), jnp.float32)

    prep = prepare_params(params)                 # hoisted weight preprocessing
    out = jax.jit(forward)(prep, x)
    out = jax.block_until_ready(out)

    assert out.shape == (2, 10), out.shape
    # log-softmax rows should sum (in prob space) to ~1
    assert bool(jnp.all(jnp.abs(jnp.sum(jnp.exp(out), axis=-1) - 1.0) < 1e-3))
    # compare against a pure-XLA f32 reference (kernel uses bf16 MXU inputs)
    ref = reference_forward(params, x)
    err = float(jnp.max(jnp.abs(out - ref)))
    assert err < 5e-2, f"mismatch vs reference: {err}"
    print("KERNEL_OK")
</pallas_src>

<mosaic_0001>
module attributes {stable_mosaic.version = 11 : i64} {
  func.func @_net_kernel(%arg0: i32, %arg1: memref<2x1792xbf16, #tpu.memory_space<vmem>>, %arg2: memref<384x512xbf16, #tpu.memory_space<vmem>>, %arg3: memref<1x128xf32, #tpu.memory_space<vmem>>, %arg4: memref<768x512xbf16, #tpu.memory_space<vmem>>, %arg5: memref<1x128xf32, #tpu.memory_space<vmem>>, %arg6: memref<512x64xbf16, #tpu.memory_space<vmem>>, %arg7: memref<1x64xf32, #tpu.memory_space<vmem>>, %arg8: memref<64x128xbf16, #tpu.memory_space<vmem>>, %arg9: memref<1x128xf32, #tpu.memory_space<vmem>>, %arg10: memref<2x128xf32, #tpu.memory_space<vmem>>, %arg11: memref<2x1536xbf16, #tpu.memory_space<vmem>>) attributes {dimension_semantics = [#tpu.dimension_semantics<parallel>], iteration_bounds = array<i64: 1>, scalar_prefetch = 0 : i64, scratch_operands = 1 : i64, tpu.core_type = #tpu.core_type<tc>, window_params = [{transform_indices = @transform_0, window_bounds = array<i64: 2, 1792>}, {pipeline_mode = #tpu.pipeline_mode<synchronous>, transform_indices = @transform_1, window_bounds = array<i64: 384, 512>}, {pipeline_mode = #tpu.pipeline_mode<synchronous>, transform_indices = @transform_2, window_bounds = array<i64: 1, 128>}, {pipeline_mode = #tpu.pipeline_mode<synchronous>, transform_indices = @transform_3, window_bounds = array<i64: 768, 512>}, {pipeline_mode = #tpu.pipeline_mode<synchronous>, transform_indices = @transform_4, window_bounds = array<i64: 1, 128>}, {pipeline_mode = #tpu.pipeline_mode<synchronous>, transform_indices = @transform_5, window_bounds = array<i64: 512, 64>}, {pipeline_mode = #tpu.pipeline_mode<synchronous>, transform_indices = @transform_6, window_bounds = array<i64: 1, 64>}, {pipeline_mode = #tpu.pipeline_mode<synchronous>, transform_indices = @transform_7, window_bounds = array<i64: 64, 128>}, {pipeline_mode = #tpu.pipeline_mode<synchronous>, transform_indices = @transform_8, window_bounds = array<i64: 1, 128>}, {transform_indices = @transform_9, window_bounds = array<i64: 2, 128>}]} {
    %c0 = arith.constant 0 : index
    %c0_0 = arith.constant 0 : index
    %0 = vector.load %arg2[%c0, %c0_0] : memref<384x512xbf16, #tpu.memory_space<vmem>>, vector<384x512xbf16>
    %c0_1 = arith.constant 0 : index
    %c0_2 = arith.constant 0 : index
    %1 = vector.load %arg3[%c0_1, %c0_2] : memref<1x128xf32, #tpu.memory_space<vmem>>, vector<1x128xf32>
    %c0_3 = arith.constant 0 : index
    %c0_4 = arith.constant 0 : index
    %2 = vector.load %arg1[%c0_3, %c0_4] : memref<2x1792xbf16, #tpu.memory_space<vmem>>, vector<2x384xbf16>
    %cst = arith.constant dense<0.000000e+00> : vector<2x512xf32>
    %3 = tpu.matmul %2, %0, %cst {dimension_numbers = #tpu.dot_dimension_numbers<[1], [0], [0], [1], [0, 0, 1, 1], [], []>} : vector<2x384xbf16>, vector<384x512xbf16>, vector<2x512xf32> -> vector<2x512xf32>
    %4 = vector.extract_strided_slice %3 {offsets = [0, 0], sizes = [2, 128], strides = [1, 1]} : vector<2x512xf32> to vector<2x128xf32>
    %5 = vector.extract_strided_slice %3 {offsets = [0, 128], sizes = [2, 128], strides = [1, 1]} : vector<2x512xf32> to vector<2x128xf32>
    %6 = arith.maximumf %4, %5 : vector<2x128xf32>
    %7 = vector.extract_strided_slice %3 {offsets = [0, 256], sizes = [2, 128], strides = [1, 1]} : vector<2x512xf32> to vector<2x128xf32>
    %8 = vector.extract_strided_slice %3 {offsets = [0, 384], sizes = [2, 128], strides = [1, 1]} : vector<2x512xf32> to vector<2x128xf32>
    %9 = arith.maximumf %7, %8 : vector<2x128xf32>
    %10 = arith.maximumf %6, %9 : vector<2x128xf32>
    %11 = vector.broadcast %1 : vector<1x128xf32> to vector<2x128xf32>
    %12 = arith.addf %10, %11 : vector<2x128xf32>
    %cst_5 = arith.constant 0.000000e+00 : f32
    %13 = vector.broadcast %cst_5 : f32 to vector<2x128xf32>
    %14 = arith.maximumf %12, %13 : vector<2x128xf32>
    %15 = arith.truncf %14 : vector<2x128xf32> to vector<2x128xbf16>
    %c0_6 = arith.constant 0 : index
    %c0_7 = arith.constant 0 : index
    %16 = vector.load %arg11[%c0_6, %c0_7] : memref<2x1536xbf16, #tpu.memory_space<vmem>>, vector<2x128xbf16>
    tpu.vector_store %arg11[%c0_6, %c0_7], %15 {strides = array<i32>} : memref<2x1536xbf16, #tpu.memory_space<vmem>>, vector<2x128xbf16>,
    %c0_8 = arith.constant 0 : index
    %c128 = arith.constant 128 : index
    %17 = vector.load %arg1[%c0_8, %c128] : memref<2x1792xbf16, #tpu.memory_space<vmem>>, vector<2x384xbf16>
    %cst_9 = arith.constant dense<0.000000e+00> : vector<2x512xf32>
    %18 = tpu.matmul %17, %0, %cst_9 {dimension_numbers = #tpu.dot_dimension_numbers<[1], [0], [0], [1], [0, 0, 1, 1], [], []>} : vector<2x384xbf16>, vector<384x512xbf16>, vector<2x512xf32> -> vector<2x512xf32>
    %19 = vector.extract_strided_slice %18 {offsets = [0, 0], sizes = [2, 128], strides = [1, 1]} : vector<2x512xf32> to vector<2x128xf32>
    %20 = vector.extract_strided_slice %18 {offsets = [0, 128], sizes = [2, 128], strides = [1, 1]} : vector<2x512xf32> to vector<2x128xf32>
    %21 = arith.maximumf %19, %20 : vector<2x128xf32>
    %22 = vector.extract_strided_slice %18 {offsets = [0, 256], sizes = [2, 128], strides = [1, 1]} : vector<2x512xf32> to vector<2x128xf32>
    %23 = vector.extract_strided_slice %18 {offsets = [0, 384], sizes = [2, 128], strides = [1, 1]} : vector<2x512xf32> to vector<2x128xf32>
    %24 = arith.maximumf %22, %23 : vector<2x128xf32>
    %25 = arith.maximumf %21, %24 : vector<2x128xf32>
    %26 = vector.broadcast %1 : vector<1x128xf32> to vector<2x128xf32>
    %27 = arith.addf %25, %26 : vector<2x128xf32>
    %cst_10 = arith.constant 0.000000e+00 : f32
    %28 = vector.broadcast %cst_10 : f32 to vector<2x128xf32>
    %29 = arith.maximumf %27, %28 : vector<2x128xf32>
    %30 = arith.truncf %29 : vector<2x128xf32> to vector<2x128xbf16>
    %c0_11 = arith.constant 0 : index
    %c128_12 = arith.constant 128 : index
    %31 = vector.load %arg11[%c0_11, %c128_12] : memref<2x1536xbf16, #tpu.memory_space<vmem>>, vector<2x128xbf16>
    tpu.vector_store %arg11[%c0_11, %c128_12], %30 {strides = array<i32>} : memref<2x1536xbf16, #tpu.memory_space<vmem>>, vector<2x128xbf16>,
    %c0_13 = arith.constant 0 : index
    %c256 = arith.constant 256 : index
    %32 = vector.load %arg1[%c0_13, %c256] : memref<2x1792xbf16, #tpu.memory_space<vmem>>, vector<2x384xbf16>
    %cst_14 = arith.constant dense<0.000000e+00> : vector<2x512xf32>
    %33 = tpu.matmul %32, %0, %cst_14 {dimension_numbers = #tpu.dot_dimension_numbers<[1], [0], [0], [1], [0, 0, 1, 1], [], []>} : vector<2x384xbf16>, vector<384x512xbf16>, vector<2x512xf32> -> vector<2x512xf32>
    %34 = vector.extract_strided_slice %33 {offsets = [0, 0], sizes = [2, 128], strides = [1, 1]} : vector<2x512xf32> to vector<2x128xf32>
    %35 = vector.extract_strided_slice %33 {offsets = [0, 128], sizes = [2, 128], strides = [1, 1]} : vector<2x512xf32> to vector<2x128xf32>
    %36 = arith.maximumf %34, %35 : vector<2x128xf32>
    %37 = vector.extract_strided_slice %33 {offsets = [0, 256], sizes = [2, 128], strides = [1, 1]} : vector<2x512xf32> to vector<2x128xf32>
    %38 = vector.extract_strided_slice %33 {offsets = [0, 384], sizes = [2, 128], strides = [1, 1]} : vector<2x512xf32> to vector<2x128xf32>
    %39 = arith.maximumf %37, %38 : vector<2x128xf32>
    %40 = arith.maximumf %36, %39 : vector<2x128xf32>
    %41 = vector.broadcast %1 : vector<1x128xf32> to vector<2x128xf32>
    %42 = arith.addf %40, %41 : vector<2x128xf32>
    %cst_15 = arith.constant 0.000000e+00 : f32
    %43 = vector.broadcast %cst_15 : f32 to vector<2x128xf32>
    %44 = arith.maximumf %42, %43 : vector<2x128xf32>
    %45 = arith.truncf %44 : vector<2x128xf32> to vector<2x128xbf16>
    %c0_16 = arith.constant 0 : index
    %c256_17 = arith.constant 256 : index
    %46 = vector.load %arg11[%c0_16, %c256_17] : memref<2x1536xbf16, #tpu.memory_space<vmem>>, vector<2x128xbf16>
    tpu.vector_store %arg11[%c0_16, %c256_17], %45 {strides = array<i32>} : memref<2x1536xbf16, #tpu.memory_space<vmem>>, vector<2x128xbf16>,
    %c0_18 = arith.constant 0 : index
    %c384 = arith.constant 384 : index
    %47 = vector.load %arg1[%c0_18, %c384] : memref<2x1792xbf16, #tpu.memory_space<vmem>>, vector<2x384xbf16>
    %cst_19 = arith.constant dense<0.000000e+00> : vector<2x512xf32>
    %48 = tpu.matmul %47, %0, %cst_19 {dimension_numbers = #tpu.dot_dimension_numbers<[1], [0], [0], [1], [0, 0, 1, 1], [], []>} : vector<2x384xbf16>, vector<384x512xbf16>, vector<2x512xf32> -> vector<2x512xf32>
    %49 = vector.extract_strided_slice %48 {offsets = [0, 0], sizes = [2, 128], strides = [1, 1]} : vector<2x512xf32> to vector<2x128xf32>
    %50 = vector.extract_strided_slice %48 {offsets = [0, 128], sizes = [2, 128], strides = [1, 1]} : vector<2x512xf32> to vector<2x128xf32>
    %51 = arith.maximumf %49, %50 : vector<2x128xf32>
    %52 = vector.extract_strided_slice %48 {offsets = [0, 256], sizes = [2, 128], strides = [1, 1]} : vector<2x512xf32> to vector<2x128xf32>
    %53 = vector.extract_strided_slice %48 {offsets = [0, 384], sizes = [2, 128], strides = [1, 1]} : vector<2x512xf32> to vector<2x128xf32>
    %54 = arith.maximumf %52, %53 : vector<2x128xf32>
    %55 = arith.maximumf %51, %54 : vector<2x128xf32>
    %56 = vector.broadcast %1 : vector<1x128xf32> to vector<2x128xf32>
    %57 = arith.addf %55, %56 : vector<2x128xf32>
    %cst_20 = arith.constant 0.000000e+00 : f32
    %58 = vector.broadcast %cst_20 : f32 to vector<2x128xf32>
    %59 = arith.maximumf %57, %58 : vector<2x128xf32>
    %60 = arith.truncf %59 : vector<2x128xf32> to vector<2x128xbf16>
    %c0_21 = arith.constant 0 : index
    %c384_22 = arith.constant 384 : index
    %61 = vector.load %arg11[%c0_21, %c384_22] : memref<2x1536xbf16, #tpu.memory_space<vmem>>, vector<2x128xbf16>
    tpu.vector_store %arg11[%c0_21, %c384_22], %60 {strides = array<i32>} : memref<2x1536xbf16, #tpu.memory_space<vmem>>, vector<2x128xbf16>,
    %c0_23 = arith.constant 0 : index
    %c512 = arith.constant 512 : index
    %62 = vector.load %arg1[%c0_23, %c512] : memref<2x1792xbf16, #tpu.memory_space<vmem>>, vector<2x384xbf16>
    %cst_24 = arith.constant dense<0.000000e+00> : vector<2x512xf32>
    %63 = tpu.matmul %62, %0, %cst_24 {dimension_numbers = #tpu.dot_dimension_numbers<[1], [0], [0], [1], [0, 0, 1, 1], [], []>} : vector<2x384xbf16>, vector<384x512xbf16>, vector<2x512xf32> -> vector<2x512xf32>
    %64 = vector.extract_strided_slice %63 {offsets = [0, 0], sizes = [2, 128], strides = [1, 1]} : vector<2x512xf32> to vector<2x128xf32>
    %65 = vector.extract_strided_slice %63 {offsets = [0, 128], sizes = [2, 128], strides = [1, 1]} : vector<2x512xf32> to vector<2x128xf32>
    %66 = arith.maximumf %64, %65 : vector<2x128xf32>
    %67 = vector.extract_strided_slice %63 {offsets = [0, 256], sizes = [2, 128], strides = [1, 1]} : vector<2x512xf32> to vector<2x128xf32>
    %68 = vector.extract_strided_slice %63 {offsets = [0, 384], sizes = [2, 128], strides = [1, 1]} : vector<2x512xf32> to vector<2x128xf32>
    %69 = arith.maximumf %67, %68 : vector<2x128xf32>
    %70 = arith.maximumf %66, %69 : vector<2x128xf32>
    %71 = vector.broadcast %1 : vector<1x128xf32> to vector<2x128xf32>
    %72 = arith.addf %70, %71 : vector<2x128xf32>
    %cst_25 = arith.constant 0.000000e+00 : f32
    %73 = vector.broadcast %cst_25 : f32 to vector<2x128xf32>
    %74 = arith.maximumf %72, %73 : vector<2x128xf32>
    %75 = arith.truncf %74 : vector<2x128xf32> to vector<2x128xbf16>
    %c0_26 = arith.constant 0 : index
    %c512_27 = arith.constant 512 : index
    %76 = vector.load %arg11[%c0_26, %c512_27] : memref<2x1536xbf16, #tpu.memory_space<vmem>>, vector<2x128xbf16>
    tpu.vector_store %arg11[%c0_26, %c512_27], %75 {strides = array<i32>} : memref<2x1536xbf16, #tpu.memory_space<vmem>>, vector<2x128xbf16>,
    %c0_28 = arith.constant 0 : index
    %c640 = arith.constant 640 : index
    %77 = vector.load %arg1[%c0_28, %c640] : memref<2x1792xbf16, #tpu.memory_space<vmem>>, vector<2x384xbf16>
    %cst_29 = arith.constant dense<0.000000e+00> : vector<2x512xf32>
    %78 = tpu.matmul %77, %0, %cst_29 {dimension_numbers = #tpu.dot_dimension_numbers<[1], [0], [0], [1], [0, 0, 1, 1], [], []>} : vector<2x384xbf16>, vector<384x512xbf16>, vector<2x512xf32> -> vector<2x512xf32>
    %79 = vector.extract_strided_slice %78 {offsets = [0, 0], sizes = [2, 128], strides = [1, 1]} : vector<2x512xf32> to vector<2x128xf32>
    %80 = vector.extract_strided_slice %78 {offsets = [0, 128], sizes = [2, 128], strides = [1, 1]} : vector<2x512xf32> to vector<2x128xf32>
    %81 = arith.maximumf %79, %80 : vector<2x128xf32>
    %82 = vector.extract_strided_slice %78 {offsets = [0, 256], sizes = [2, 128], strides = [1, 1]} : vector<2x512xf32> to vector<2x128xf32>
    %83 = vector.extract_strided_slice %78 {offsets = [0, 384], sizes = [2, 128], strides = [1, 1]} : vector<2x512xf32> to vector<2x128xf32>
    %84 = arith.maximumf %82, %83 : vector<2x128xf32>
    %85 = arith.maximumf %81, %84 : vector<2x128xf32>
    %86 = vector.broadcast %1 : vector<1x128xf32> to vector<2x128xf32>
    %87 = arith.addf %85, %86 : vector<2x128xf32>
    %cst_30 = arith.constant 0.000000e+00 : f32
    %88 = vector.broadcast %cst_30 : f32 to vector<2x128xf32>
    %89 = arith.maximumf %87, %88 : vector<2x128xf32>
    %90 = arith.truncf %89 : vector<2x128xf32> to vector<2x128xbf16>
    %c0_31 = arith.constant 0 : index
    %c640_32 = arith.constant 640 : index
    %91 = vector.load %arg11[%c0_31, %c640_32] : memref<2x1536xbf16, #tpu.memory_space<vmem>>, vector<2x128xbf16>
    tpu.vector_store %arg11[%c0_31, %c640_32], %90 {strides = array<i32>} : memref<2x1536xbf16, #tpu.memory_space<vmem>>, vector<2x128xbf16>,
    %c0_33 = arith.constant 0 : index
    %c768 = arith.constant 768 : index
    %92 = vector.load %arg1[%c0_33, %c768] : memref<2x1792xbf16, #tpu.memory_space<vmem>>, vector<2x384xbf16>
    %cst_34 = arith.constant dense<0.000000e+00> : vector<2x512xf32>
    %93 = tpu.matmul %92, %0, %cst_34 {dimension_numbers = #tpu.dot_dimension_numbers<[1], [0], [0], [1], [0, 0, 1, 1], [], []>} : vector<2x384xbf16>, vector<384x512xbf16>, vector<2x512xf32> -> vector<2x512xf32>
    %94 = vector.extract_strided_slice %93 {offsets = [0, 0], sizes = [2, 128], strides = [1, 1]} : vector<2x512xf32> to vector<2x128xf32>
    %95 = vector.extract_strided_slice %93 {offsets = [0, 128], sizes = [2, 128], strides = [1, 1]} : vector<2x512xf32> to vector<2x128xf32>
    %96 = arith.maximumf %94, %95 : vector<2x128xf32>
    %97 = vector.extract_strided_slice %93 {offsets = [0, 256], sizes = [2, 128], strides = [1, 1]} : vector<2x512xf32> to vector<2x128xf32>
    %98 = vector.extract_strided_slice %93 {offsets = [0, 384], sizes = [2, 128], strides = [1, 1]} : vector<2x512xf32> to vector<2x128xf32>
    %99 = arith.maximumf %97, %98 : vector<2x128xf32>
    %100 = arith.maximumf %96, %99 : vector<2x128xf32>
    %101 = vector.broadcast %1 : vector<1x128xf32> to vector<2x128xf32>
    %102 = arith.addf %100, %101 : vector<2x128xf32>
    %cst_35 = arith.constant 0.000000e+00 : f32
    %103 = vector.broadcast %cst_35 : f32 to vector<2x128xf32>
    %104 = arith.maximumf %102, %103 : vector<2x128xf32>
    %105 = arith.truncf %104 : vector<2x128xf32> to vector<2x128xbf16>
    %c0_36 = arith.constant 0 : index
    %c768_37 = arith.constant 768 : index
    %106 = vector.load %arg11[%c0_36, %c768_37] : memref<2x1536xbf16, #tpu.memory_space<vmem>>, vector<2x128xbf16>
    tpu.vector_store %arg11[%c0_36, %c768_37], %105 {strides = array<i32>} : memref<2x1536xbf16, #tpu.memory_space<vmem>>, vector<2x128xbf16>,
    %c0_38 = arith.constant 0 : index
    %c896 = arith.constant 896 : index
    %107 = vector.load %arg1[%c0_38, %c896] : memref<2x1792xbf16, #tpu.memory_space<vmem>>, vector<2x384xbf16>
    %cst_39 = arith.constant dense<0.000000e+00> : vector<2x512xf32>
    %108 = tpu.matmul %107, %0, %cst_39 {dimension_numbers = #tpu.dot_dimension_numbers<[1], [0], [0], [1], [0, 0, 1, 1], [], []>} : vector<2x384xbf16>, vector<384x512xbf16>, vector<2x512xf32> -> vector<2x512xf32>
    %109 = vector.extract_strided_slice %108 {offsets = [0, 0], sizes = [2, 128], strides = [1, 1]} : vector<2x512xf32> to vector<2x128xf32>
    %110 = vector.extract_strided_slice %108 {offsets = [0, 128], sizes = [2, 128], strides = [1, 1]} : vector<2x512xf32> to vector<2x128xf32>
    %111 = arith.maximumf %109, %110 : vector<2x128xf32>
    %112 = vector.extract_strided_slice %108 {offsets = [0, 256], sizes = [2, 128], strides = [1, 1]} : vector<2x512xf32> to vector<2x128xf32>
    %113 = vector.extract_strided_slice %108 {offsets = [0, 384], sizes = [2, 128], strides = [1, 1]} : vector<2x512xf32> to vector<2x128xf32>
    %114 = arith.maximumf %112, %113 : vector<2x128xf32>
    %115 = arith.maximumf %111, %114 : vector<2x128xf32>
    %116 = vector.broadcast %1 : vector<1x128xf32> to vector<2x128xf32>
    %117 = arith.addf %115, %116 : vector<2x128xf32>
    %cst_40 = arith.constant 0.000000e+00 : f32
    %118 = vector.broadcast %cst_40 : f32 to vector<2x128xf32>
    %119 = arith.maximumf %117, %118 : vector<2x128xf32>
    %120 = arith.truncf %119 : vector<2x128xf32> to vector<2x128xbf16>
    %c0_41 = arith.constant 0 : index
    %c896_42 = arith.constant 896 : index
    %121 = vector.load %arg11[%c0_41, %c896_42] : memref<2x1536xbf16, #tpu.memory_space<vmem>>, vector<2x128xbf16>
    tpu.vector_store %arg11[%c0_41, %c896_42], %120 {strides = array<i32>} : memref<2x1536xbf16, #tpu.memory_space<vmem>>, vector<2x128xbf16>,
    %c0_43 = arith.constant 0 : index
    %c1024 = arith.constant 1024 : index
    %122 = vector.load %arg1[%c0_43, %c1024] : memref<2x1792xbf16, #tpu.memory_space<vmem>>, vector<2x384xbf16>
    %cst_44 = arith.constant dense<0.000000e+00> : vector<2x512xf32>
    %123 = tpu.matmul %122, %0, %cst_44 {dimension_numbers = #tpu.dot_dimension_numbers<[1], [0], [0], [1], [0, 0, 1, 1], [], []>} : vector<2x384xbf16>, vector<384x512xbf16>, vector<2x512xf32> -> vector<2x512xf32>
    %124 = vector.extract_strided_slice %123 {offsets = [0, 0], sizes = [2, 128], strides = [1, 1]} : vector<2x512xf32> to vector<2x128xf32>
    %125 = vector.extract_strided_slice %123 {offsets = [0, 128], sizes = [2, 128], strides = [1, 1]} : vector<2x512xf32> to vector<2x128xf32>
    %126 = arith.maximumf %124, %125 : vector<2x128xf32>
    %127 = vector.extract_strided_slice %123 {offsets = [0, 256], sizes = [2, 128], strides = [1, 1]} : vector<2x512xf32> to vector<2x128xf32>
    %128 = vector.extract_strided_slice %123 {offsets = [0, 384], sizes = [2, 128], strides = [1, 1]} : vector<2x512xf32> to vector<2x128xf32>
    %129 = arith.maximumf %127, %128 : vector<2x128xf32>
    %130 = arith.maximumf %126, %129 : vector<2x128xf32>
    %131 = vector.broadcast %1 : vector<1x128xf32> to vector<2x128xf32>
    %132 = arith.addf %130, %131 : vector<2x128xf32>
    %cst_45 = arith.constant 0.000000e+00 : f32
    %133 = vector.broadcast %cst_45 : f32 to vector<2x128xf32>
    %134 = arith.maximumf %132, %133 : vector<2x128xf32>
    %135 = arith.truncf %134 : vector<2x128xf32> to vector<2x128xbf16>
    %c0_46 = arith.constant 0 : index
    %c1024_47 = arith.constant 1024 : index
    %136 = vector.load %arg11[%c0_46, %c1024_47] : memref<2x1536xbf16, #tpu.memory_space<vmem>>, vector<2x128xbf16>
    tpu.vector_store %arg11[%c0_46, %c1024_47], %135 {strides = array<i32>} : memref<2x1536xbf16, #tpu.memory_space<vmem>>, vector<2x128xbf16>,
    %c0_48 = arith.constant 0 : index
    %c1152 = arith.constant 1152 : index
    %137 = vector.load %arg1[%c0_48, %c1152] : memref<2x1792xbf16, #tpu.memory_space<vmem>>, vector<2x384xbf16>
    %cst_49 = arith.constant dense<0.000000e+00> : vector<2x512xf32>
    %138 = tpu.matmul %137, %0, %cst_49 {dimension_numbers = #tpu.dot_dimension_numbers<[1], [0], [0], [1], [0, 0, 1, 1], [], []>} : vector<2x384xbf16>, vector<384x512xbf16>, vector<2x512xf32> -> vector<2x512xf32>
    %139 = vector.extract_strided_slice %138 {offsets = [0, 0], sizes = [2, 128], strides = [1, 1]} : vector<2x512xf32> to vector<2x128xf32>
    %140 = vector.extract_strided_slice %138 {offsets = [0, 128], sizes = [2, 128], strides = [1, 1]} : vector<2x512xf32> to vector<2x128xf32>
    %141 = arith.maximumf %139, %140 : vector<2x128xf32>
    %142 = vector.extract_strided_slice %138 {offsets = [0, 256], sizes = [2, 128], strides = [1, 1]} : vector<2x512xf32> to vector<2x128xf32>
    %143 = vector.extract_strided_slice %138 {offsets = [0, 384], sizes = [2, 128], strides = [1, 1]} : vector<2x512xf32> to vector<2x128xf32>
    %144 = arith.maximumf %142, %143 : vector<2x128xf32>
    %145 = arith.maximumf %141, %144 : vector<2x128xf32>
    %146 = vector.broadcast %1 : vector<1x128xf32> to vector<2x128xf32>
    %147 = arith.addf %145, %146 : vector<2x128xf32>
    %cst_50 = arith.constant 0.000000e+00 : f32
    %148 = vector.broadcast %cst_50 : f32 to vector<2x128xf32>
    %149 = arith.maximumf %147, %148 : vector<2x128xf32>
    %150 = arith.truncf %149 : vector<2x128xf32> to vector<2x128xbf16>
    %c0_51 = arith.constant 0 : index
    %c1152_52 = arith.constant 1152 : index
    %151 = vector.load %arg11[%c0_51, %c1152_52] : memref<2x1536xbf16, #tpu.memory_space<vmem>>, vector<2x128xbf16>
    tpu.vector_store %arg11[%c0_51, %c1152_52], %150 {strides = array<i32>} : memref<2x1536xbf16, #tpu.memory_space<vmem>>, vector<2x128xbf16>,
    %c0_53 = arith.constant 0 : index
    %c1280 = arith.constant 1280 : index
    %152 = vector.load %arg1[%c0_53, %c1280] : memref<2x1792xbf16, #tpu.memory_space<vmem>>, vector<2x384xbf16>
    %cst_54 = arith.constant dense<0.000000e+00> : vector<2x512xf32>
    %153 = tpu.matmul %152, %0, %cst_54 {dimension_numbers = #tpu.dot_dimension_numbers<[1], [0], [0], [1], [0, 0, 1, 1], [], []>} : vector<2x384xbf16>, vector<384x512xbf16>, vector<2x512xf32> -> vector<2x512xf32>
    %154 = vector.extract_strided_slice %153 {offsets = [0, 0], sizes = [2, 128], strides = [1, 1]} : vector<2x512xf32> to vector<2x128xf32>
    %155 = vector.extract_strided_slice %153 {offsets = [0, 128], sizes = [2, 128], strides = [1, 1]} : vector<2x512xf32> to vector<2x128xf32>
    %156 = arith.maximumf %154, %155 : vector<2x128xf32>
    %157 = vector.extract_strided_slice %153 {offsets = [0, 256], sizes = [2, 128], strides = [1, 1]} : vector<2x512xf32> to vector<2x128xf32>
    %158 = vector.extract_strided_slice %153 {offsets = [0, 384], sizes = [2, 128], strides = [1, 1]} : vector<2x512xf32> to vector<2x128xf32>
    %159 = arith.maximumf %157, %158 : vector<2x128xf32>
    %160 = arith.maximumf %156, %159 : vector<2x128xf32>
    %161 = vector.broadcast %1 : vector<1x128xf32> to vector<2x128xf32>
    %162 = arith.addf %160, %161 : vector<2x128xf32>
    %cst_55 = arith.constant 0.000000e+00 : f32
    %163 = vector.broadcast %cst_55 : f32 to vector<2x128xf32>
    %164 = arith.maximumf %162, %163 : vector<2x128xf32>
    %165 = arith.truncf %164 : vector<2x128xf32> to vector<2x128xbf16>
    %c0_56 = arith.constant 0 : index
    %c1280_57 = arith.constant 1280 : index
    %166 = vector.load %arg11[%c0_56, %c1280_57] : memref<2x1536xbf16, #tpu.memory_space<vmem>>, vector<2x128xbf16>
    tpu.vector_store %arg11[%c0_56, %c1280_57], %165 {strides = array<i32>} : memref<2x1536xbf16, #tpu.memory_space<vmem>>, vector<2x128xbf16>,
    %c0_58 = arith.constant 0 : index
    %c1408 = arith.constant 1408 : index
    %167 = vector.load %arg1[%c0_58, %c1408] : memref<2x1792xbf16, #tpu.memory_space<vmem>>, vector<2x384xbf16>
    %cst_59 = arith.constant dense<0.000000e+00> : vector<2x512xf32>
    %168 = tpu.matmul %167, %0, %cst_59 {dimension_numbers = #tpu.dot_dimension_numbers<[1], [0], [0], [1], [0, 0, 1, 1], [], []>} : vector<2x384xbf16>, vector<384x512xbf16>, vector<2x512xf32> -> vector<2x512xf32>
    %169 = vector.extract_strided_slice %168 {offsets = [0, 0], sizes = [2, 128], strides = [1, 1]} : vector<2x512xf32> to vector<2x128xf32>
    %170 = vector.extract_strided_slice %168 {offsets = [0, 128], sizes = [2, 128], strides = [1, 1]} : vector<2x512xf32> to vector<2x128xf32>
    %171 = arith.maximumf %169, %170 : vector<2x128xf32>
    %172 = vector.extract_strided_slice %168 {offsets = [0, 256], sizes = [2, 128], strides = [1, 1]} : vector<2x512xf32> to vector<2x128xf32>
    %173 = vector.extract_strided_slice %168 {offsets = [0, 384], sizes = [2, 128], strides = [1, 1]} : vector<2x512xf32> to vector<2x128xf32>
    %174 = arith.maximumf %172, %173 : vector<2x128xf32>
    %175 = arith.maximumf %171, %174 : vector<2x128xf32>
    %176 = vector.broadcast %1 : vector<1x128xf32> to vector<2x128xf32>
    %177 = arith.addf %175, %176 : vector<2x128xf32>
    %cst_60 = arith.constant 0.000000e+00 : f32
    %178 = vector.broadcast %cst_60 : f32 to vector<2x128xf32>
    %179 = arith.maximumf %177, %178 : vector<2x128xf32>
    %180 = arith.truncf %179 : vector<2x128xf32> to vector<2x128xbf16>
    %c0_61 = arith.constant 0 : index
    %c1408_62 = arith.constant 1408 : index
    %181 = vector.load %arg11[%c0_61, %c1408_62] : memref<2x1536xbf16, #tpu.memory_space<vmem>>, vector<2x128xbf16>
    tpu.vector_store %arg11[%c0_61, %c1408_62], %180 {strides = array<i32>} : memref<2x1536xbf16, #tpu.memory_space<vmem>>, vector<2x128xbf16>,
    %c0_63 = arith.constant 0 : index
    %c0_64 = arith.constant 0 : index
    %182 = vector.load %arg4[%c0_63, %c0_64] : memref<768x512xbf16, #tpu.memory_space<vmem>>, vector<768x512xbf16>
    %c0_65 = arith.constant 0 : index
    %c0_66 = arith.constant 0 : index
    %183 = vector.load %arg5[%c0_65, %c0_66] : memref<1x128xf32, #tpu.memory_space<vmem>>, vector<1x128xf32>
    %cst_67 = arith.constant 0.000000e+00 : f32
    %184 = vector.broadcast %cst_67 : f32 to vector<2x64xf32>
    %c0_68 = arith.constant 0 : index
    %c0_69 = arith.constant 0 : index
    %185 = vector.load %arg11[%c0_68, %c0_69] : memref<2x1536xbf16, #tpu.memory_space<vmem>>, vector<2x768xbf16>
    %cst_70 = arith.constant dense<0.000000e+00> : vector<2x512xf32>
    %186 = tpu.matmul %185, %182, %cst_70 {dimension_numbers = #tpu.dot_dimension_numbers<[1], [0], [0], [1], [0, 0, 1, 1], [], []>} : vector<2x768xbf16>, vector<768x512xbf16>, vector<2x512xf32> -> vector<2x512xf32>
    %187 = vector.extract_strided_slice %186 {offsets = [0, 0], sizes = [2, 128], strides = [1, 1]} : vector<2x512xf32> to vector<2x128xf32>
    %188 = vector.extract_strided_slice %186 {offsets = [0, 128], sizes = [2, 128], strides = [1, 1]} : vector<2x512xf32> to vector<2x128xf32>
    %189 = arith.maximumf %187, %188 : vector<2x128xf32>
    %190 = vector.extract_strided_slice %186 {offsets = [0, 256], sizes = [2, 128], strides = [1, 1]} : vector<2x512xf32> to vector<2x128xf32>
    %191 = vector.extract_strided_slice %186 {offsets = [0, 384], sizes = [2, 128], strides = [1, 1]} : vector<2x512xf32> to vector<2x128xf32>
    %192 = arith.maximumf %190, %191 : vector<2x128xf32>
    %193 = arith.maximumf %189, %192 : vector<2x128xf32>
    %194 = vector.broadcast %183 : vector<1x128xf32> to vector<2x128xf32>
    %195 = arith.addf %193, %194 : vector<2x128xf32>
    %cst_71 = arith.constant 0.000000e+00 : f32
    %196 = vector.broadcast %cst_71 : f32 to vector<2x128xf32>
    %197 = arith.maximumf %195, %196 : vector<2x128xf32>
    %198 = arith.truncf %197 : vector<2x128xf32> to vector<2x128xbf16>
    %c0_72 = arith.constant 0 : index
    %c0_73 = arith.constant 0 : index
    %199 = vector.load %arg6[%c0_72, %c0_73] : memref<512x64xbf16, #tpu.memory_space<vmem>>, vector<128x64xbf16>
    %cst_74 = arith.constant dense<0.000000e+00> : vector<2x64xf32>
    %200 = tpu.matmul %198, %199, %cst_74 {dimension_numbers = #tpu.dot_dimension_numbers<[1], [0], [0], [1], [0, 0, 1, 1], [], []>} : vector<2x128xbf16>, vector<128x64xbf16>, vector<2x64xf32> -> vector<2x64xf32>
    %201 = arith.addf %184, %200 : vector<2x64xf32>
    %c0_75 = arith.constant 0 : index
    %c256_76 = arith.constant 256 : index
    %202 = vector.load %arg11[%c0_75, %c256_76] : memref<2x1536xbf16, #tpu.memory_space<vmem>>, vector<2x768xbf16>
    %cst_77 = arith.constant dense<0.000000e+00> : vector<2x512xf32>
    %203 = tpu.matmul %202, %182, %cst_77 {dimension_numbers = #tpu.dot_dimension_numbers<[1], [0], [0], [1], [0, 0, 1, 1], [], []>} : vector<2x768xbf16>, vector<768x512xbf16>, vector<2x512xf32> -> vector<2x512xf32>
    %204 = vector.extract_strided_slice %203 {offsets = [0, 0], sizes = [2, 128], strides = [1, 1]} : vector<2x512xf32> to vector<2x128xf32>
    %205 = vector.extract_strided_slice %203 {offsets = [0, 128], sizes = [2, 128], strides = [1, 1]} : vector<2x512xf32> to vector<2x128xf32>
    %206 = arith.maximumf %204, %205 : vector<2x128xf32>
    %207 = vector.extract_strided_slice %203 {offsets = [0, 256], sizes = [2, 128], strides = [1, 1]} : vector<2x512xf32> to vector<2x128xf32>
    %208 = vector.extract_strided_slice %203 {offsets = [0, 384], sizes = [2, 128], strides = [1, 1]} : vector<2x512xf32> to vector<2x128xf32>
    %209 = arith.maximumf %207, %208 : vector<2x128xf32>
    %210 = arith.maximumf %206, %209 : vector<2x128xf32>
    %211 = vector.broadcast %183 : vector<1x128xf32> to vector<2x128xf32>
    %212 = arith.addf %210, %211 : vector<2x128xf32>
    %cst_78 = arith.constant 0.000000e+00 : f32
    %213 = vector.broadcast %cst_78 : f32 to vector<2x128xf32>
    %214 = arith.maximumf %212, %213 : vector<2x128xf32>
    %215 = arith.truncf %214 : vector<2x128xf32> to vector<2x128xbf16>
    %c128_79 = arith.constant 128 : index
    %c0_80 = arith.constant 0 : index
    %216 = vector.load %arg6[%c128_79, %c0_80] : memref<512x64xbf16, #tpu.memory_space<vmem>>, vector<128x64xbf16>
    %cst_81 = arith.constant dense<0.000000e+00> : vector<2x64xf32>
    %217 = tpu.matmul %215, %216, %cst_81 {dimension_numbers = #tpu.dot_dimension_numbers<[1], [0], [0], [1], [0, 0, 1, 1], [], []>} : vector<2x128xbf16>, vector<128x64xbf16>, vector<2x64xf32> -> vector<2x64xf32>
    %218 = arith.addf %201, %217 : vector<2x64xf32>
    %c0_82 = arith.constant 0 : index
    %c512_83 = arith.constant 512 : index
    %219 = vector.load %arg11[%c0_82, %c512_83] : memref<2x1536xbf16, #tpu.memory_space<vmem>>, vector<2x768xbf16>
    %cst_84 = arith.constant dense<0.000000e+00> : vector<2x512xf32>
    %220 = tpu.matmul %219, %182, %cst_84 {dimension_numbers = #tpu.dot_dimension_numbers<[1], [0], [0], [1], [0, 0, 1, 1], [], []>} : vector<2x768xbf16>, vector<768x512xbf16>, vector<2x512xf32> -> vector<2x512xf32>
    %221 = vector.extract_strided_slice %220 {offsets = [0, 0], sizes = [2, 128], strides = [1, 1]} : vector<2x512xf32> to vector<2x128xf32>
    %222 = vector.extract_strided_slice %220 {offsets = [0, 128], sizes = [2, 128], strides = [1, 1]} : vector<2x512xf32> to vector<2x128xf32>
    %223 = arith.maximumf %221, %222 : vector<2x128xf32>
    %224 = vector.extract_strided_slice %220 {offsets = [0, 256], sizes = [2, 128], strides = [1, 1]} : vector<2x512xf32> to vector<2x128xf32>
    %225 = vector.extract_strided_slice %220 {offsets = [0, 384], sizes = [2, 128], strides = [1, 1]} : vector<2x512xf32> to vector<2x128xf32>
    %226 = arith.maximumf %224, %225 : vector<2x128xf32>
    %227 = arith.maximumf %223, %226 : vector<2x128xf32>
    %228 = vector.broadcast %183 : vector<1x128xf32> to vector<2x128xf32>
    %229 = arith.addf %227, %228 : vector<2x128xf32>
    %cst_85 = arith.constant 0.000000e+00 : f32
    %230 = vector.broadcast %cst_85 : f32 to vector<2x128xf32>
    %231 = arith.maximumf %229, %230 : vector<2x128xf32>
    %232 = arith.truncf %231 : vector<2x128xf32> to vector<2x128xbf16>
    %c256_86 = arith.constant 256 : index
    %c0_87 = arith.constant 0 : index
    %233 = vector.load %arg6[%c256_86, %c0_87] : memref<512x64xbf16, #tpu.memory_space<vmem>>, vector<128x64xbf16>
    %cst_88 = arith.constant dense<0.000000e+00> : vector<2x64xf32>
    %234 = tpu.matmul %232, %233, %cst_88 {dimension_numbers = #tpu.dot_dimension_numbers<[1], [0], [0], [1], [0, 0, 1, 1], [], []>} : vector<2x128xbf16>, vector<128x64xbf16>, vector<2x64xf32> -> vector<2x64xf32>
    %235 = arith.addf %218, %234 : vector<2x64xf32>
    %c0_89 = arith.constant 0 : index
    %c768_90 = arith.constant 768 : index
    %236 = vector.load %arg11[%c0_89, %c768_90] : memref<2x1536xbf16, #tpu.memory_space<vmem>>, vector<2x768xbf16>
    %cst_91 = arith.constant dense<0.000000e+00> : vector<2x512xf32>
    %237 = tpu.matmul %236, %182, %cst_91 {dimension_numbers = #tpu.dot_dimension_numbers<[1], [0], [0], [1], [0, 0, 1, 1], [], []>} : vector<2x768xbf16>, vector<768x512xbf16>, vector<2x512xf32> -> vector<2x512xf32>
    %238 = vector.extract_strided_slice %237 {offsets = [0, 0], sizes = [2, 128], strides = [1, 1]} : vector<2x512xf32> to vector<2x128xf32>
    %239 = vector.extract_strided_slice %237 {offsets = [0, 128], sizes = [2, 128], strides = [1, 1]} : vector<2x512xf32> to vector<2x128xf32>
    %240 = arith.maximumf %238, %239 : vector<2x128xf32>
    %241 = vector.extract_strided_slice %237 {offsets = [0, 256], sizes = [2, 128], strides = [1, 1]} : vector<2x512xf32> to vector<2x128xf32>
    %242 = vector.extract_strided_slice %237 {offsets = [0, 384], sizes = [2, 128], strides = [1, 1]} : vector<2x512xf32> to vector<2x128xf32>
    %243 = arith.maximumf %241, %242 : vector<2x128xf32>
    %244 = arith.maximumf %240, %243 : vector<2x128xf32>
    %245 = vector.broadcast %183 : vector<1x128xf32> to vector<2x128xf32>
    %246 = arith.addf %244, %245 : vector<2x128xf32>
    %cst_92 = arith.constant 0.000000e+00 : f32
    %247 = vector.broadcast %cst_92 : f32 to vector<2x128xf32>
    %248 = arith.maximumf %246, %247 : vector<2x128xf32>
    %249 = arith.truncf %248 : vector<2x128xf32> to vector<2x128xbf16>
    %c384_93 = arith.constant 384 : index
    %c0_94 = arith.constant 0 : index
    %250 = vector.load %arg6[%c384_93, %c0_94] : memref<512x64xbf16, #tpu.memory_space<vmem>>, vector<128x64xbf16>
    %cst_95 = arith.constant dense<0.000000e+00> : vector<2x64xf32>
    %251 = tpu.matmul %249, %250, %cst_95 {dimension_numbers = #tpu.dot_dimension_numbers<[1], [0], [0], [1], [0, 0, 1, 1], [], []>} : vector<2x128xbf16>, vector<128x64xbf16>, vector<2x64xf32> -> vector<2x64xf32>
    %252 = arith.addf %235, %251 : vector<2x64xf32>
    %c0_96 = arith.constant 0 : index
    %c0_97 = arith.constant 0 : index
    %253 = vector.load %arg7[%c0_96, %c0_97] : memref<1x64xf32, #tpu.memory_space<vmem>>, vector<1x64xf32>
    %254 = vector.broadcast %253 : vector<1x64xf32> to vector<2x64xf32>
    %255 = arith.addf %252, %254 : vector<2x64xf32>
    %cst_98 = arith.constant 0.000000e+00 : f32
    %256 = vector.broadcast %cst_98 : f32 to vector<2x64xf32>
    %257 = arith.maximumf %255, %256 : vector<2x64xf32>
    %258 = arith.truncf %257 : vector<2x64xf32> to vector<2x64xbf16>
    %c0_99 = arith.constant 0 : index
    %c0_100 = arith.constant 0 : index
    %259 = vector.load %arg8[%c0_99, %c0_100] : memref<64x128xbf16, #tpu.memory_space<vmem>>, vector<64x128xbf16>
    %cst_101 = arith.constant dense<0.000000e+00> : vector<2x128xf32>
    %260 = tpu.matmul %258, %259, %cst_101 {dimension_numbers = #tpu.dot_dimension_numbers<[1], [0], [0], [1], [0, 0, 1, 1], [], []>} : vector<2x64xbf16>, vector<64x128xbf16>, vector<2x128xf32> -> vector<2x128xf32>
    %c0_102 = arith.constant 0 : index
    %c0_103 = arith.constant 0 : index
    %261 = vector.load %arg9[%c0_102, %c0_103] : memref<1x128xf32, #tpu.memory_space<vmem>>, vector<1x128xf32>
    %262 = vector.broadcast %261 : vector<1x128xf32> to vector<2x128xf32>
    %263 = arith.addf %260, %262 : vector<2x128xf32>
    %cst_104 = arith.constant dense<0xFF800000> : vector<2xf32>
    %264 = vector.multi_reduction <maximumf>, %263, %cst_104 [1] : vector<2x128xf32> to vector<2xf32>
    %265 = vector.shape_cast %264 : vector<2xf32> to vector<2x1xf32>
    %266 = vector.broadcast %265 : vector<2x1xf32> to vector<2x128xf32>
    %267 = arith.subf %263, %266 : vector<2x128xf32>
    %268 = math.exp %267 : vector<2x128xf32>
    %cst_105 = arith.constant dense<0.000000e+00> : vector<2xf32>
    %269 = vector.multi_reduction <add>, %268, %cst_105 [1] : vector<2x128xf32> to vector<2xf32>
    %270 = vector.shape_cast %269 : vector<2xf32> to vector<2x1xf32>
    %271 = math.log %270 : vector<2x1xf32>
    %272 = vector.broadcast %271 : vector<2x1xf32> to vector<2x128xf32>
    %273 = arith.subf %267, %272 : vector<2x128xf32>
    %c0_106 = arith.constant 0 : index
    %c0_107 = arith.constant 0 : index
    %274 = vector.load %arg10[%c0_106, %c0_107] : memref<2x128xf32, #tpu.memory_space<vmem>>, vector<2x128xf32>
    tpu.vector_store %arg10[%c0_106, %c0_107], %273 {strides = array<i32>} : memref<2x128xf32, #tpu.memory_space<vmem>>, vector<2x128xf32>,
    return
  }
  func.func @transform_0(%arg0: i32) -> (i32, i32) {
    %c0_i32 = arith.constant 0 : i32
    %c0_i32_0 = arith.constant 0 : i32
    return %arg0, %c0_i32 : i32, i32
  }
  func.func @transform_1(%arg0: i32) -> (i32, i32) {
    %c0_i32 = arith.constant 0 : i32
    %c0_i32_0 = arith.constant 0 : i32
    %c0_i32_1 = arith.constant 0 : i32
    return %c0_i32, %c0_i32_0 : i32, i32
  }
  func.func @transform_2(%arg0: i32) -> (i32, i32) {
    %c0_i32 = arith.constant 0 : i32
    %c0_i32_0 = arith.constant 0 : i32
    %c0_i32_1 = arith.constant 0 : i32
    return %c0_i32, %c0_i32_0 : i32, i32
  }
  func.func @transform_3(%arg0: i32) -> (i32, i32) {
    %c0_i32 = arith.constant 0 : i32
    %c0_i32_0 = arith.constant 0 : i32
    %c0_i32_1 = arith.constant 0 : i32
    return %c0_i32, %c0_i32_0 : i32, i32
  }
  func.func @transform_4(%arg0: i32) -> (i32, i32) {
    %c0_i32 = arith.constant 0 : i32
    %c0_i32_0 = arith.constant 0 : i32
    %c0_i32_1 = arith.constant 0 : i32
    return %c0_i32, %c0_i32_0 : i32, i32
  }
  func.func @transform_5(%arg0: i32) -> (i32, i32) {
    %c0_i32 = arith.constant 0 : i32
    %c0_i32_0 = arith.constant 0 : i32
    %c0_i32_1 = arith.constant 0 : i32
    return %c0_i32, %c0_i32_0 : i32, i32
  }
  func.func @transform_6(%arg0: i32) -> (i32, i32) {
    %c0_i32 = arith.constant 0 : i32
    %c0_i32_0 = arith.constant 0 : i32
    %c0_i32_1 = arith.constant 0 : i32
    return %c0_i32, %c0_i32_0 : i32, i32
  }
  func.func @transform_7(%arg0: i32) -> (i32, i32) {
    %c0_i32 = arith.constant 0 : i32
    %c0_i32_0 = arith.constant 0 : i32
    %c0_i32_1 = arith.constant 0 : i32
    return %c0_i32, %c0_i32_0 : i32, i32
  }
  func.func @transform_8(%arg0: i32) -> (i32, i32) {
    %c0_i32 = arith.constant 0 : i32
    %c0_i32_0 = arith.constant 0 : i32
    %c0_i32_1 = arith.constant 0 : i32
    return %c0_i32, %c0_i32_0 : i32, i32
  }
  func.func @transform_9(%arg0: i32) -> (i32, i32) {
    %c0_i32 = arith.constant 0 : i32
    %c0_i32_0 = arith.constant 0 : i32
    return %arg0, %c0_i32 : i32, i32
  }
}

</mosaic_0001>

<bundles_post_ra>
// kernel: forward.1
= control target key start
LH: loop header
LB: loop body
LE: loop exit
PB: predicated region body
PF: predicated region fallthrough
CT: control target
= control target key end

     0   :  { %14 = vsyncpa [#allocation4], 0  ;;  %s11331_s0 = inlined_call_operand.vmem [shape: bf16[2,1792], index: 0, kind: input, shape index: {}]   ;;  %s11332_s1 = inlined_call_operand.hbm [shape: bf16[384,512], index: 1, kind: input, shape index: {}]   ;;  %s11333_s2 = inlined_call_operand.vmem [shape: f32[1,128], index: 2, kind: input, shape index: {}]   ;;  %s11334_s3 = inlined_call_operand.hbm [shape: bf16[768,512], index: 3, kind: input, shape index: {}]   ;;  %s11335_s4 = inlined_call_operand.vmem [shape: f32[1,128], index: 4, kind: input, shape index: {}]   ;;  %s11336_s5 = inlined_call_operand.vmem [shape: bf16[512,64], index: 5, kind: input, shape index: {}]   ;;  %s11337_s6 = inlined_call_operand.vmem [shape: f32[1,64], index: 6, kind: input, shape index: {}]   ;;  %s11338_s7 = inlined_call_operand.vmem [shape: bf16[64,128], index: 7, kind: input, shape index: {}]   ;;  %s11339_s8 = inlined_call_operand.vmem [shape: f32[1,128], index: 8, kind: input, shape index: {}]   ;;  %s11340_s9 = inlined_call_operand.hbm [shape: f32[2,128], index: 9, kind: output, shape index: {}]  }
   0x1   :  { %15 = vsyncpa [#allocation7], 0 }
   0x2   :  { %16 = vsyncpa [#allocation5], 0  ;;  %s7470_s30 = smov [#allocation3]  }
   0x3   :  { %s24_s10 = sshll.u32 %s7470_s30, 4  ;;  %s25_s10 = int_to_ptr.vmem [resolvable:$true] %s24_s10 }
   0x4   :  { %s7412_s11 = scalar_lea.vmem %s25_s10, 12288  ;;  %p7417_p1 = scmp.lt.s32.totalorder %s25_s10, %s25_s10 }
   0x5   :  { %p7413_p0 = scmp.ne.s32.totalorder %s25_s10, %s7412_s11  ;;  %p7418_p2 = scmp.lt.s32.totalorder %s7412_s11, %s7412_s11 }
   0x7   :  { %p7419_p3 = por %p7418_p2, %p7417_p1 }
   0x9   :  { %p7420_p4 = pnand %p7419_p3, %p7413_p0 }
   0xb   :  { %7423 = shalt.err (!%p7420_p4)
}
   0xc   :  { %s7471_s12 = smov 256   ;;  %s7472_s13 = smov 16  }
   0xd   :  { %30 = dma.hbm_to_vmem [thread:$0]  %s11332_s1, 12288, %s25_s10, [#allocation4], %s7471_s12, %s7471_s12, %s7472_s13  }
   0xe   :  { %s7473_s16 = smov [#allocation6]  }
   0xf   :  { %s38_s17 = sshll.u32 %s7473_s16, 4  ;;  %s39_s17 = int_to_ptr.vmem [resolvable:$true] %s38_s17 }
  0x10   :  { %s7432_s18 = scalar_lea.vmem %s39_s17, 24576  ;;  %p7437_p6 = scmp.lt.s32.totalorder %s39_s17, %s39_s17 }
  0x11   :  { %p7433_p5 = scmp.ne.s32.totalorder %s39_s17, %s7432_s18  ;;  %p7438_p7 = scmp.lt.s32.totalorder %s7432_s18, %s7432_s18 }
  0x13   :  { %p7439_p8 = por %p7438_p7, %p7437_p6 }
  0x15   :  { %p7440_p9 = pnand %p7439_p8, %p7433_p5 }
  0x17   :  { %7443 = shalt.err (!%p7440_p9)
}
  0x18   :  { %44 = dma.hbm_to_vmem [thread:$0]  %s11334_s3, 24576, %s39_s17, [#allocation7], %s7471_s12, %s7471_s12, %s7472_s13  }
  0x19   :  { %7464 = dma.done.wait [#allocation4], 12288  }
  0x1a   :  { %7465 = vsyncadd [#allocation4], 4294955008 }
  0x1b   :  { %7466 = dma.done.wait [#allocation7], 24576  }
  0x1c   :  { %7467 = vsyncadd [#allocation7], 4294942720  ;;  %v11341_v0 = vmov 0   ;;  %v7536_v1 = vld [vmem:[#allocation3 + $0xe4] ss:$16 sps:$4 sm:$0xff]   ;;  %v172_v23 = vlaneseq  ;;  %vm7477_vm0 = vmmov 0  }
  0x1d   :  { %740 = vmatprep.mubr.bf16.mxu1 %v11341_v0  ;;  %v7538_v2 = vld [vmem:[#allocation3 + $0x2e4] ss:$16 sps:$4 sm:$0xff]   ;;  %667 = vmatprep.subr.bf16.mxu0 %v7536_v1  ;;  %v7541_v3 = vld [vmem:[#allocation3 + $0xe0] ss:$16 sps:$4 sm:$0xff]   ;;  %v7475_v21 = vmov 1966171168  }
  0x1e   :  { %v7543_v4 = vld [vmem:[#allocation3 + $0x2e0] ss:$16 sps:$4 sm:$0xff]   ;;  %708 = vmatprep.subr.bf16.mxu1 %v7538_v2  ;;  %v7546_v5 = vld [vmem:[#allocation3 + $0xc4] ss:$16 sps:$4 sm:$0xff]   ;;  %668 = vmatpush1.bf16.msra.mxu0 %v7541_v3  ;;  %v170_v22 = vunpack.c.l.s4 %v7475_v21  ;;  %v173_v28 = vshrl.u32 %v172_v23, 7  ;;  %vm5887_vm1 = vcmask 523264  }
  0x1f   :  { %709 = vmatpush1.bf16.msra.mxu1 %v7543_v4  ;;  %v7550_v6 = vld [vmem:[#allocation3 + $0x2c4] ss:$16 sps:$4 sm:$0xff]   ;;  %v7552_v7 = vld [vmem:[#allocation3 + $0xc0] ss:$16 sps:$4 sm:$0xff]   ;;  %669 = vmatprep.subr.bf16.mxu0 %v7546_v5  ;;  %v7641_v44 = vld [vmem:[#allocation3 + $0xec] ss:$16 sps:$4 sm:$0xff]  }
  0x20   :  { %v7555_v8 = vld [vmem:[#allocation3 + $0x2c0] ss:$16 sps:$4 sm:$0xff]   ;;  %710 = vmatprep.subr.bf16.mxu1 %v7550_v6  ;;  %v7558_v9 = vld [vmem:[#allocation3 + $0xa4] ss:$16 sps:$4 sm:$0xff]   ;;  %v171_v27 = vunpack.c.0.s8 %v170_v22  ;;  %v7651_v47 = vld [vmem:[#allocation3 + $0xe8] ss:$16 sps:$4 sm:$0xff]  }
  0x21   :  { %v7560_v10 = vld [vmem:[#allocation3 + $0x2a4] ss:$16 sps:$4 sm:$0xff]   ;;  %v7562_v11 = vld [vmem:[#allocation3 + $0xa0] ss:$16 sps:$4 sm:$0xff]   ;;  %v7657_v49 = vld [vmem:[#allocation3 + $0xcc] ss:$16 sps:$4 sm:$0xff]  }
  0x22   :  { %v7564_v12 = vld [vmem:[#allocation3 + $0x2a0] ss:$16 sps:$4 sm:$0xff]   ;;  %670 = vmatpush1.bf16.msra.mxu0 %v7552_v7  ;;  %v7568_v13 = vld [vmem:[#allocation3 + $0x84] ss:$16 sps:$4 sm:$0xff]   ;;  %v7615_v34 = vsub.s32 %v171_v27, %v173_v28  ;;  %v7664_v51 = vld [vmem:[#allocation3 + $0xc8] ss:$16 sps:$4 sm:$0xff]  }
  0x23   :  { %711 = vmatpush1.bf16.msra.mxu1 %v7555_v8  ;;  %671 = vmatprep.subr.bf16.mxu0 %v7558_v9  ;;  %v7572_v14 = vld [vmem:[#allocation3 + $0x284] ss:$16 sps:$4 sm:$0xff]   ;;  %v7574_v15 = vld [vmem:[#allocation3 + $0x80] ss:$16 sps:$4 sm:$0xff]   ;;  %v7670_v53 = vld [vmem:[#allocation3 + $0xac] ss:$16 sps:$4 sm:$0xff]  }
  0x24   :  { %712 = vmatprep.subr.bf16.mxu1 %v7560_v10  ;;  %v7578_v16 = vld [vmem:[#allocation3 + $0x280] ss:$16 sps:$4 sm:$0xff]   ;;  %v7580_v17 = vld [vmem:[#allocation3 + $0x64] ss:$16 sps:$4 sm:$0xff]   ;;  %v7676_v55 = vld [vmem:[#allocation3 + $0xa8] ss:$16 sps:$4 sm:$0xff]  }
  0x25   :  { %v7584_v18 = vld [vmem:[#allocation3 + $0x264] ss:$16 sps:$4 sm:$0xff]   ;;  %v7586_v19 = vld [vmem:[#allocation3 + $0x60] ss:$16 sps:$4 sm:$0xff]   ;;  %v7682_v57 = vld [vmem:[#allocation3 + $0x8c] ss:$16 sps:$4 sm:$0xff]  }
  0x26   :  { %672 = vmatpush1.bf16.msra.mxu0 %v7562_v11  ;;  %v7588_v20 = vld [vmem:[#allocation3 + $0x260] ss:$16 sps:$4 sm:$0xff]   ;;  %v7592_v24 = vld [vmem:[#allocation3 + $0x44] ss:$16 sps:$4 sm:$0xff]   ;;  %v7688_v59 = vld [vmem:[#allocation3 + $0x88] ss:$16 sps:$4 sm:$0xff]  }
  0x27   :  { %713 = vmatpush1.bf16.msra.mxu1 %v7564_v12  ;;  %673 = vmatprep.subr.bf16.mxu0 %v7568_v13  ;;  %v7596_v25 = vld [vmem:[#allocation3 + $0x244] ss:$16 sps:$4 sm:$0xff]   ;;  %v7598_v26 = vld [vmem:[#allocation3 + $0x40] ss:$16 sps:$4 sm:$0xff]   ;;  %v7694_v61 = vld [vmem:[#allocation3 + $0x6c] ss:$16 sps:$4 sm:$0xff]  }
  0x28   :  { %714 = vmatprep.subr.bf16.mxu1 %v7572_v14  ;;  %v7602_v29 = vld [vmem:[#allocation3 + $0x240] ss:$16 sps:$4 sm:$0xff]   ;;  %v7604_v30 = vld [vmem:[#allocation3 + $0x24] ss:$16 sps:$4 sm:$0xff]   ;;  %11920 = vst [vmem:[#allocation13_spill] sm:$0xff] %v7694_v61  ;;  %vm5931_vm2 = vcmask 1041408  }
  0x29   :  { %v7608_v31 = vld [vmem:[#allocation3 + $0x224] ss:$16 sps:$4 sm:$0xff]   ;;  %v7613_v33 = vld [vmem:[#allocation3 + $0x20] ss:$16 sps:$4 sm:$0xff]   ;;  %v7700_v63 = vld [vmem:[#allocation3 + $0x68] ss:$16 sps:$4 sm:$0xff]  }
  0x2a   :  { %674 = vmatpush1.bf16.msra.mxu0 %v7574_v15  ;;  %v5961_v32 = vld.sshfl [vmem:[%s11331_s0] sm:$0x13 pattern:$0x75316420]  ;;  %v7619_v36 = vld [vmem:[#allocation3 + $0x220] ss:$16 sps:$4 sm:$0xff]  }
  0x2b   :  { %715 = vmatpush1.bf16.msra.mxu1 %v7578_v16  ;;  %675 = vmatprep.subr.bf16.mxu0 %v7580_v17  ;;  %v168_v35 = vcombine.high %v5961_v32, %v5961_v32  ;;  %v7621_v37 = vld [vmem:[#allocation3 + $0x4] ss:$16 sps:$4 sm:$0xff]   ;;  %v7628_v40 = vld [vmem:[#allocation3] ss:$16 sps:$4 sm:$0xff]   ;;  %v7631_v41 = vrot.slane %v5961_v32, %v7615_v34  ;;  %11922 = vst [vmem:[#allocation15_spill] sm:$0xff] %v7700_v63 }
  0x2c   :  { %716 = vmatprep.subr.bf16.mxu1 %v7584_v18  ;;  %v7625_v38 = vld [vmem:[#allocation3 + $0x204] ss:$16 sps:$4 sm:$0xff]   ;;  %v7635_v42 = vld [vmem:[#allocation3 + $0x200] ss:$16 sps:$4 sm:$0xff]   ;;  %v7706_v22 = vld [vmem:[#allocation3 + $0x4c] ss:$16 sps:$4 sm:$0xff]  }
  0x2d   :  { %v182_v39 = vrot.slane %v168_v35, %v7615_v34  ;;  %v7639_v43 = vld [vmem:[#allocation3 + $0x1e4] ss:$16 sps:$4 sm:$0xff]   ;;  %v7645_v45 = vcombine.high %v7631_v41, %v7631_v41  ;;  %v7647_v46 = vld [vmem:[#allocation3 + $0x1e0] ss:$16 sps:$4 sm:$0xff]   ;;  %11924 = vst [vmem:[#allocation17_spill] sm:$0xff] %v7706_v22 }
  0x2e   :  { %676 = vmatpush1.bf16.msra.mxu0 %v7586_v19  ;;  %v7653_v48 = vld [vmem:[#allocation3 + $0x1c4] ss:$16 sps:$4 sm:$0xff]   ;;  %v7660_v50 = vld [vmem:[#allocation3 + $0x1c0] ss:$16 sps:$4 sm:$0xff]   ;;  %v7712_v27 = vld [vmem:[#allocation3 + $0x48] ss:$16 sps:$4 sm:$0xff]  }
  0x2f   :  { %717 = vmatpush1.bf16.msra.mxu1 %v7588_v20  ;;  %677 = vmatprep.subr.bf16.mxu0 %v7592_v24  ;;  %v7668_v52 = vld [vmem:[#allocation3 + $0x1a4] ss:$16 sps:$4 sm:$0xff]   ;;  %v7672_v54 = vld [vmem:[#allocation3 + $0x1a0] ss:$16 sps:$4 sm:$0xff]   ;;  %11926 = vst [vmem:[#allocation19_spill] sm:$0xff] %v7712_v27 }
  0x30   :  { %718 = vmatprep.subr.bf16.mxu1 %v7596_v25  ;;  %699 = vmatprep.mubr.bf16.mxu0 %v182_v39  ;;  %v7678_v56 = vld [vmem:[#allocation3 + $0x184] ss:$16 sps:$4 sm:$0xff]   ;;  %v7684_v58 = vld [vmem:[#allocation3 + $0x180] ss:$16 sps:$4 sm:$0xff]   ;;  %v7718_v32 = vld [vmem:[#allocation3 + $0x2c] ss:$16 sps:$4 sm:$0xff]  }
  0x31   :  { %v7692_v60 = vld [vmem:[#allocation3 + $0x164] ss:$16 sps:$4 sm:$0xff]   ;;  %v7696_v62 = vld [vmem:[#allocation3 + $0x160] ss:$16 sps:$4 sm:$0xff]   ;;  %11928 = vst [vmem:[#allocation21_spill] sm:$0xff] %v7718_v32 }
  0x32   :  { %678 = vmatpush1.bf16.msra.mxu0 %v7598_v26  ;;  %11919 = vst [vmem:[#allocation12_spill] sm:$0xff] %v7692_v60  ;;  %11921 = vst [vmem:[#allocation14_spill] sm:$0xff] %v7696_v62  ;;  %v7702_v21 = vld [vmem:[#allocation3 + $0x144] ss:$16 sps:$4 sm:$0xff]   ;;  %v7708_v23 = vld [vmem:[#allocation3 + $0x140] ss:$16 sps:$4 sm:$0xff]  }
  0x33   :  { %719 = vmatpush1.bf16.msra.mxu1 %v7602_v29  ;;  %679 = vmatprep.subr.bf16.mxu0 %v7604_v30  ;;  %11923 = vst [vmem:[#allocation16_spill] sm:$0xff] %v7702_v21  ;;  %11925 = vst [vmem:[#allocation18_spill] sm:$0xff] %v7708_v23  ;;  %v7716_v28 = vld [vmem:[#allocation3 + $0x124] ss:$16 sps:$4 sm:$0xff]   ;;  %v7720_v35 = vld [vmem:[#allocation3 + $0x120] ss:$16 sps:$4 sm:$0xff]  }
  0x34   :  { %720 = vmatprep.subr.bf16.mxu1 %v7608_v31  ;;  %11927 = vst [vmem:[#allocation20_spill] sm:$0xff] %v7716_v28  ;;  %11929 = vst [vmem:[#allocation22_spill] sm:$0xff] %v7720_v35  ;;  %v7726_v0 = vld [vmem:[#allocation3 + $0x104] ss:$16 sps:$4 sm:$0xff]  }
  0x35   :  { %11931 = vst [vmem:[#allocation24_spill] sm:$0xff] %v7726_v0 }
  0x36   :  { %680 = vmatpush1.bf16.msra.mxu0 %v7613_v33 }
  0x37   :  { %721 = vmatpush1.bf16.msra.mxu1 %v7619_v36  ;;  %681 = vmatprep.subr.bf16.mxu0 %v7621_v37 }
  0x38   :  { %722 = vmatprep.subr.bf16.mxu1 %v7625_v38 }
  0x3a   :  { %682 = vmatpush1.bf16.msra.mxu0 %v7628_v40 }
  0x3b   :  { %723 = vmatpush1.bf16.msra.mxu1 %v7635_v42  ;;  %683 = vmatprep.subr.bf16.mxu0 %v7639_v43 }
  0x3c   :  { %749 = vmatprep.subr.bf16.mxu1 %v7641_v44 }
  0x3e   :  { %741 = vmatmul.mubr.bf16.vlgmr.msra.gmra.mxu1 %v7645_v45  ;;  %684 = vmatpush2.bf16.msra.mxu0 %v7647_v46 }
  0x3f   :  { %750 = vmatpush1.bf16.msra.mxu1 %v7651_v47  ;;  %685 = vmatprep.subr.bf16.mxu0 %v7653_v48 }
  0x40   :  { %751 = vmatprep.subr.bf16.mxu1 %v7657_v49  ;;  %781 = vmatprep.mubr.bf16.mxu1 %v182_v39  ;;  %v7724_v39 = vld [vmem:[#allocation3 + $0x28] ss:$16 sps:$4 sm:$0xff]  }
  0x41   :  { %11930 = vst [vmem:[#allocation23_spill] sm:$0xff] %v7724_v39 }
  0x42   :  { %686 = vmatpush2.bf16.msra.mxu0 %v7660_v50 }
  0x43   :  { %752 = vmatpush1.bf16.msra.mxu1 %v7664_v51  ;;  %687 = vmatprep.subr.bf16.mxu0 %v7668_v52 }
  0x44   :  { %753 = vmatprep.subr.bf16.mxu1 %v7670_v53 }
  0x46   :  { %688 = vmatpush2.bf16.msra.mxu0 %v7672_v54 }
  0x47   :  { %754 = vmatpush1.bf16.msra.mxu1 %v7676_v55  ;;  %689 = vmatprep.subr.bf16.mxu0 %v7678_v56 }
  0x48   :  { %755 = vmatprep.subr.bf16.mxu1 %v7682_v57 }
  0x4a   :  { %690 = vmatpush2.bf16.msra.mxu0 %v7684_v58 }
  0x4b   :  { %756 = vmatpush1.bf16.msra.mxu1 %v7688_v59  ;;  %691 = vmatprep.subr.bf16.mxu0 %v7692_v60  ;;  %v7776_v60 = vld [vmem:[#allocation3 + $0x28c] ss:$16 sps:$4 sm:$0xff]  }
  0x4c   :  { %757 = vmatprep.subr.bf16.mxu1 %v7694_v61  ;;  %v7774_v61 = vld [vmem:[#allocation3 + $0x18c] ss:$16 sps:$4 sm:$0xff]   ;;  %11949 = vst [vmem:[#allocation41_spill] sm:$0xff] %v7776_v60 }
  0x4d   :  { %11948 = vst [vmem:[#allocation40_spill] sm:$0xff] %v7774_v61 }
  0x4e   :  { %692 = vmatpush2.bf16.msra.mxu0 %v7696_v62  ;;  %v7761_v62 = vld [vmem:[#allocation3 + $0x1ac] ss:$16 sps:$4 sm:$0xff]  }
  0x4f   :  { %758 = vmatpush1.bf16.msra.mxu1 %v7700_v63  ;;  %693 = vmatprep.subr.bf16.mxu0 %v7702_v21  ;;  %v7730_v21 = vld [vmem:[#allocation3 + $0xc] ss:$16 sps:$4 sm:$0xff]   ;;  %v7736_v63 = vld [vmem:[#allocation3 + $0x8] ss:$16 sps:$4 sm:$0xff]   ;;  %11943 = vst [vmem:[#allocation36_spill] sm:$0xff] %v7761_v62 }
  0x50   :  { %759 = vmatprep.subr.bf16.mxu1 %v7706_v22  ;;  %11932 = vst [vmem:[#allocation25_spill] sm:$0xff] %v7730_v21  ;;  %v7732_v22 = vld [vmem:[#allocation3 + $0x100] ss:$16 sps:$4 sm:$0xff]   ;;  %11934 = vst [vmem:[#allocation27_spill] sm:$0xff] %v7736_v63 }
  0x51   :  { %11933 = vst [vmem:[#allocation26_spill] sm:$0xff] %v7732_v22 }
  0x52   :  { %694 = vmatpush2.bf16.msra.mxu0 %v7708_v23  ;;  %v7742_v23 = vld [vmem:[#allocation3 + $0x2ec] ss:$16 sps:$4 sm:$0xff]  }
  0x53   :  { %760 = vmatpush1.bf16.msra.mxu1 %v7712_v27  ;;  %695 = vmatprep.subr.bf16.mxu0 %v7716_v28  ;;  %v7740_v27 = vld [vmem:[#allocation3 + $0x1ec] ss:$16 sps:$4 sm:$0xff]   ;;  %11936 = vst [vmem:[#allocation29_spill] sm:$0xff] %v7742_v23  ;;  %v7744_v28 = vld [vmem:[#allocation3 + $0x1e8] ss:$16 sps:$4 sm:$0xff]  }
  0x54   :  { %761 = vmatprep.subr.bf16.mxu1 %v7718_v32  ;;  %11935 = vst [vmem:[#allocation28_spill] sm:$0xff] %v7740_v27  ;;  %11937 = vst [vmem:[#allocation30_spill] sm:$0xff] %v7744_v28  ;;  %v7748_v32 = vld [vmem:[#allocation3 + $0x2e8] ss:$16 sps:$4 sm:$0xff]  }
  0x55   :  { %11938 = vst [vmem:[#allocation31_spill] sm:$0xff] %v7748_v32 }
  0x56   :  { %696 = vmatpush2.bf16.msra.mxu0 %v7720_v35  ;;  %v7750_v35 = vld [vmem:[#allocation3 + $0x1cc] ss:$16 sps:$4 sm:$0xff]  }
  0x57   :  { %762 = vmatpush1.bf16.msra.mxu1 %v7724_v39  ;;  %697 = vmatprep.subr.bf16.mxu0 %v7726_v0  ;;  %11939 = vst [vmem:[#allocation32_spill] sm:$0xff] %v7750_v35  ;;  %v7754_v0 = vld [vmem:[#allocation3 + $0x2cc] ss:$16 sps:$4 sm:$0xff]   ;;  %v7758_v39 = vld [vmem:[#allocation3 + $0x2c8] ss:$16 sps:$4 sm:$0xff]  }
  0x58   :  { %763 = vmatprep.subr.bf16.mxu1 %v7730_v21  ;;  %11940 = vst [vmem:[#allocation33_spill] sm:$0xff] %v7754_v0  ;;  %v7756_v21 = vld [vmem:[#allocation3 + $0x1c8] ss:$16 sps:$4 sm:$0xff]   ;;  %11942 = vst [vmem:[#allocation35_spill] sm:$0xff] %v7758_v39 }
  0x59   :  { %11941 = vst [vmem:[#allocation34_spill] sm:$0xff] %v7756_v21 }
  0x5a   :  { %698 = vmatpush2.bf16.msra.mxu0 %v7732_v22  ;;  %v7763_v22 = vld [vmem:[#allocation3 + $0x2ac] ss:$16 sps:$4 sm:$0xff]  }
  0x5b   :  { %764 = vmatpush1.bf16.msra.mxu1 %v7736_v63  ;;  %790 = vmatprep.subr.bf16.mxu0 %v7742_v23  ;;  %11944 = vst [vmem:[#allocation37_spill] sm:$0xff] %v7763_v22  ;;  %v7769_v23 = vld [vmem:[#allocation3 + $0x1a8] ss:$16 sps:$4 sm:$0xff]   ;;  %v11947_v63 = vmov 0  }
  0x5c   :  { %765 = vmatprep.subr.bf16.mxu1 %v7740_v27  ;;  %11945 = vst [vmem:[#allocation38_spill] sm:$0xff] %v7769_v23  ;;  %v7771_v27 = vld [vmem:[#allocation3 + $0x2a8] ss:$16 sps:$4 sm:$0xff]  }
  0x5d   :  { %700 = vmatmul.mubr.bf16.vlgmr.msra.gmra.mxu0 %v7631_v41  ;;  %11946 = vst [vmem:[#allocation39_spill] sm:$0xff] %v7771_v27 }
  0x5e   :  { %791 = vmatpush1.bf16.msra.mxu0 %v7748_v32  ;;  %822 = vmatprep.mubr.bf16.mxu0 %v11947_v63  ;;  %v7786_v32 = vld [vmem:[#allocation3 + $0x16c] ss:$16 sps:$4 sm:$0xff]  }
  0x5f   :  { %766 = vmatpush2.bf16.msra.mxu1 %v7744_v28  ;;  %792 = vmatprep.subr.bf16.mxu0 %v7754_v0  ;;  %v7784_v0 = vld [vmem:[#allocation3 + $0x288] ss:$16 sps:$4 sm:$0xff]   ;;  %11952 = vst [vmem:[#allocation44_spill] sm:$0xff] %v7786_v32  ;;  %v7788_v28 = vld [vmem:[#allocation3 + $0x26c] ss:$16 sps:$4 sm:$0xff]  }
  0x60   :  { %767 = vmatprep.subr.bf16.mxu1 %v7750_v35  ;;  %v7782_v35 = vld [vmem:[#allocation3 + $0x188] ss:$16 sps:$4 sm:$0xff]   ;;  %11951 = vst [vmem:[#allocation43_spill] sm:$0xff] %v7784_v0  ;;  %11953 = vst [vmem:[#allocation45_spill] sm:$0xff] %v7788_v28 }
  0x61   :  { %11950 = vst [vmem:[#allocation42_spill] sm:$0xff] %v7782_v35 }
  0x62   :  { %793 = vmatpush1.bf16.msra.mxu0 %v7758_v39  ;;  %v7794_v39 = vld [vmem:[#allocation3 + $0x168] ss:$16 sps:$4 sm:$0xff]  }
  0x63   :  { %768 = vmatpush2.bf16.msra.mxu1 %v7756_v21  ;;  %794 = vmatprep.subr.bf16.mxu0 %v7763_v22  ;;  %v7798_v22 = vld [vmem:[#allocation3 + $0x14c] ss:$16 sps:$4 sm:$0xff]  }
  0x64   :  { %769 = vmatprep.subr.bf16.mxu1 %v7761_v62  ;;  %v7796_v62 = vld [vmem:[#allocation3 + $0x268] ss:$16 sps:$4 sm:$0xff]   ;;  %11955 = vst [vmem:[#allocation47_spill] sm:$0xff] %v7798_v22  ;;  %v7800_v21 = vld [vmem:[#allocation3 + $0x24c] ss:$16 sps:$4 sm:$0xff]  }
  0x65   :  { %11954 = vst [vmem:[#allocation46_spill] sm:$0xff] %v7796_v62  ;;  %11956 = vst [vmem:[#allocation48_spill] sm:$0xff] %v7800_v21 }
  0x66   :  { %795 = vmatpush1.bf16.msra.mxu0 %v7771_v27  ;;  %v7806_v27 = vld [vmem:[#allocation3 + $0x148] ss:$16 sps:$4 sm:$0xff]  }
  0x67   :  { %770 = vmatpush2.bf16.msra.mxu1 %v7769_v23  ;;  %796 = vmatprep.subr.bf16.mxu0 %v7776_v60  ;;  %v7810_v60 = vld [vmem:[#allocation3 + $0x12c] ss:$16 sps:$4 sm:$0xff]  }
  0x68   :  { %771 = vmatprep.subr.bf16.mxu1 %v7774_v61  ;;  %v7808_v61 = vld [vmem:[#allocation3 + $0x248] ss:$16 sps:$4 sm:$0xff]   ;;  %v7812_v23 = vld [vmem:[#allocation3 + $0x22c] ss:$16 sps:$4 sm:$0xff]  }
  0x69   :  { %11957 = vst [vmem:[#allocation49_spill] sm:$0xff] %v7808_v61  ;;  %11958 = vst [vmem:[#allocation50_spill] sm:$0xff] %v7812_v23 }
  0x6a   :  { %797 = vmatpush1.bf16.msra.mxu0 %v7784_v0  ;;  %v7818_v0 = vld [vmem:[#allocation3 + $0x128] ss:$16 sps:$4 sm:$0xff]  }
  0x6b   :  { %772 = vmatpush2.bf16.msra.mxu1 %v7782_v35  ;;  %798 = vmatprep.subr.bf16.mxu0 %v7788_v28  ;;  %v7822_v28 = vld [vmem:[#allocation3 + $0x10c] ss:$16 sps:$4 sm:$0xff]  }
  0x6c   :  { %773 = vmatprep.subr.bf16.mxu1 %v7786_v32  ;;  %v7820_v32 = vld [vmem:[#allocation3 + $0x228] ss:$16 sps:$4 sm:$0xff]   ;;  %v7824_v35 = vld [vmem:[#allocation3 + $0x20c] ss:$16 sps:$4 sm:$0xff]  }
  0x6e   :  { %799 = vmatpush1.bf16.msra.mxu0 %v7796_v62  ;;  %v7830_v62 = vld [vmem:[#allocation3 + $0x108] ss:$16 sps:$4 sm:$0xff]  }
  0x6f   :  { %774 = vmatpush2.bf16.msra.mxu1 %v7794_v39  ;;  %800 = vmatprep.subr.bf16.mxu0 %v7800_v21  ;;  %v6059_v21 = vld.sshfl [vmem:[%s11331_s0 + $0x1] sm:$0x13 pattern:$0x75316420] }
  0x70   :  { %775 = vmatprep.subr.bf16.mxu1 %v7798_v22  ;;  %v7832_v22 = vld [vmem:[#allocation3 + $0x208] ss:$16 sps:$4 sm:$0xff]  }
  0x72   :  { %801 = vmatpush1.bf16.msra.mxu0 %v7808_v61  ;;  %v853_v61 = vcombine.high %v6059_v21, %v6059_v21 }
  0x73   :  { %776 = vmatpush2.bf16.msra.mxu1 %v7806_v27  ;;  %802 = vmatprep.subr.bf16.mxu0 %v7812_v23 }
  0x74   :  { %777 = vmatprep.subr.bf16.mxu1 %v7810_v60  ;;  %v867_v23 = vrot.slane %v853_v61, %v7615_v34  ;;  %v7981_v61 = vld [vmem:[#allocation3 + $0xc0] ss:$16 sps:$4 sm:$0xff]  }
  0x76   :  { %803 = vmatpush1.bf16.msra.mxu0 %v7820_v32 }
  0x77   :  { %778 = vmatpush2.bf16.msra.mxu1 %v7818_v0  ;;  %804 = vmatprep.subr.bf16.mxu0 %v7824_v35 }
  0x78   :  { %779 = vmatprep.subr.bf16.mxu1 %v7822_v28 }
  0x7a   :  { %805 = vmatpush1.bf16.msra.mxu0 %v7832_v22 }
  0x7b   :  { %780 = vmatpush2.bf16.msra.mxu1 %v7830_v62  ;;  %872 = vmatprep.subr.bf16.mxu0 %v7536_v1  ;;  %v7874_v1 = vrot.slane %v6059_v21, %v7615_v34  ;;  %v7984_v21 = vld [vmem:[#allocation3 + $0x2c0] ss:$16 sps:$4 sm:$0xff]  }
  0x7c   :  { %913 = vmatprep.subr.bf16.mxu1 %v7538_v2 }
  0x7d   :  { %823 = vmatmul.mubr.bf16.vlgmr.msra.gmra.mxu0 %v7645_v45  ;;  %v7882_v2 = vcombine.high %v7874_v1, %v7874_v1  ;;  %v11992_v45 = vld [vmem:[#allocation45_spill] sm:$0xff] }
  0x7e   :  { %782 = vmatmul.mubr.bf16.vlgmr.msra.gmra.mxu1 %v7631_v41  ;;  %873 = vmatpush1.bf16.msra.mxu0 %v7541_v3  ;;  %v11959_v3 = vld [vmem:[#allocation12_spill] sm:$0xff]  ;;  %v11988_v41 = vld [vmem:[#allocation41_spill] sm:$0xff] }
  0x7f   :  { %914 = vmatpush1.bf16.msra.mxu1 %v7543_v4  ;;  %874 = vmatprep.subr.bf16.mxu0 %v7546_v5  ;;  %v11960_v4 = vld [vmem:[#allocation13_spill] sm:$0xff]  ;;  %v11961_v5 = vld [vmem:[#allocation14_spill] sm:$0xff] }
  0x80   :  { %915 = vmatprep.subr.bf16.mxu1 %v7550_v6  ;;  %945 = vmatprep.mubr.bf16.mxu1 %v11947_v63  ;;  %v11962_v6 = vld [vmem:[#allocation15_spill] sm:$0xff] }
  0x81   :  { %904 = vmatprep.mubr.bf16.mxu0 %v867_v23 }
  0x82   :  { %875 = vmatpush1.bf16.msra.mxu0 %v7552_v7  ;;  %v11963_v7 = vld [vmem:[#allocation16_spill] sm:$0xff] }
  0x83   :  { %916 = vmatpush1.bf16.msra.mxu1 %v7555_v8  ;;  %876 = vmatprep.subr.bf16.mxu0 %v7558_v9  ;;  %v11964_v8 = vld [vmem:[#allocation17_spill] sm:$0xff]  ;;  %v11965_v9 = vld [vmem:[#allocation18_spill] sm:$0xff] }
  0x84   :  { %917 = vmatprep.subr.bf16.mxu1 %v7560_v10  ;;  %v11966_v10 = vld [vmem:[#allocation19_spill] sm:$0xff] }
  0x86   :  { %877 = vmatpush1.bf16.msra.mxu0 %v7562_v11  ;;  %v11967_v11 = vld [vmem:[#allocation20_spill] sm:$0xff] }
  0x87   :  { %918 = vmatpush1.bf16.msra.mxu1 %v7564_v12  ;;  %878 = vmatprep.subr.bf16.mxu0 %v7568_v13  ;;  %v11968_v12 = vld [vmem:[#allocation21_spill] sm:$0xff]  ;;  %v11969_v13 = vld [vmem:[#allocation22_spill] sm:$0xff] }
  0x88   :  { %919 = vmatprep.subr.bf16.mxu1 %v7572_v14  ;;  %v11970_v14 = vld [vmem:[#allocation23_spill] sm:$0xff] }
  0x8a   :  { %879 = vmatpush1.bf16.msra.mxu0 %v7574_v15  ;;  %v11971_v15 = vld [vmem:[#allocation24_spill] sm:$0xff] }
  0x8b   :  { %920 = vmatpush1.bf16.msra.mxu1 %v7578_v16  ;;  %880 = vmatprep.subr.bf16.mxu0 %v7580_v17  ;;  %v11972_v16 = vld [vmem:[#allocation25_spill] sm:$0xff]  ;;  %v11973_v17 = vld [vmem:[#allocation26_spill] sm:$0xff] }
  0x8c   :  { %921 = vmatprep.subr.bf16.mxu1 %v7584_v18  ;;  %v11974_v18 = vld [vmem:[#allocation27_spill] sm:$0xff] }
  0x8e   :  { %881 = vmatpush1.bf16.msra.mxu0 %v7586_v19  ;;  %v11975_v19 = vld [vmem:[#allocation28_spill] sm:$0xff] }
  0x8f   :  { %922 = vmatpush1.bf16.msra.mxu1 %v7588_v20  ;;  %882 = vmatprep.subr.bf16.mxu0 %v7592_v24  ;;  %v11976_v20 = vld [vmem:[#allocation29_spill] sm:$0xff]  ;;  %v11977_v24 = vld [vmem:[#allocation30_spill] sm:$0xff] }
  0x90   :  { %923 = vmatprep.subr.bf16.mxu1 %v7596_v25  ;;  %v11978_v25 = vld [vmem:[#allocation31_spill] sm:$0xff] }
  0x92   :  { %883 = vmatpush1.bf16.msra.mxu0 %v7598_v26  ;;  %v11979_v26 = vld [vmem:[#allocation32_spill] sm:$0xff] }
  0x93   :  { %924 = vmatpush1.bf16.msra.mxu1 %v7602_v29  ;;  %884 = vmatprep.subr.bf16.mxu0 %v7604_v30  ;;  %v11980_v29 = vld [vmem:[#allocation33_spill] sm:$0xff]  ;;  %v11981_v30 = vld [vmem:[#allocation34_spill] sm:$0xff] }
  0x94   :  { %925 = vmatprep.subr.bf16.mxu1 %v7608_v31  ;;  %v11982_v31 = vld [vmem:[#allocation35_spill] sm:$0xff] }
  0x96   :  { %885 = vmatpush1.bf16.msra.mxu0 %v7613_v33  ;;  %v11983_v33 = vld [vmem:[#allocation36_spill] sm:$0xff] }
  0x97   :  { %926 = vmatpush1.bf16.msra.mxu1 %v7619_v36  ;;  %886 = vmatprep.subr.bf16.mxu0 %v7621_v37  ;;  %v11984_v36 = vld [vmem:[#allocation37_spill] sm:$0xff]  ;;  %v11985_v37 = vld [vmem:[#allocation38_spill] sm:$0xff] }
  0x98   :  { %927 = vmatprep.subr.bf16.mxu1 %v7625_v38  ;;  %v11986_v38 = vld [vmem:[#allocation39_spill] sm:$0xff] }
  0x9a   :  { %887 = vmatpush1.bf16.msra.mxu0 %v7628_v40  ;;  %v11987_v40 = vld [vmem:[#allocation40_spill] sm:$0xff] }
  0x9b   :  { %928 = vmatpush1.bf16.msra.mxu1 %v7635_v42  ;;  %888 = vmatprep.subr.bf16.mxu0 %v7639_v43  ;;  %v11989_v42 = vld [vmem:[#allocation42_spill] sm:$0xff]  ;;  %v11990_v43 = vld [vmem:[#allocation43_spill] sm:$0xff] }
  0x9c   :  { %954 = vmatprep.subr.bf16.mxu1 %v7641_v44  ;;  %v11991_v44 = vld [vmem:[#allocation44_spill] sm:$0xff] }
  0x9e   :  { %946 = vmatmul.mubr.bf16.vlgmr.msra.gmra.mxu1 %v7882_v2  ;;  %889 = vmatpush2.bf16.msra.mxu0 %v7647_v46  ;;  %v11993_v46 = vld [vmem:[#allocation46_spill] sm:$0xff] }
  0x9f   :  { %955 = vmatpush1.bf16.msra.mxu1 %v7651_v47  ;;  %890 = vmatprep.subr.bf16.mxu0 %v7653_v48  ;;  %v11994_v47 = vld [vmem:[#allocation47_spill] sm:$0xff]  ;;  %v11995_v48 = vld [vmem:[#allocation48_spill] sm:$0xff] }
  0xa0   :  { %956 = vmatprep.subr.bf16.mxu1 %v7657_v49  ;;  %986 = vmatprep.mubr.bf16.mxu1 %v867_v23  ;;  %v11996_v49 = vld [vmem:[#allocation49_spill] sm:$0xff]  ;;  %v7987_v23 = vld [vmem:[#allocation3 + $0xa4] ss:$16 sps:$4 sm:$0xff]  }
  0xa2   :  { %891 = vmatpush2.bf16.msra.mxu0 %v7660_v50  ;;  %v11997_v50 = vld [vmem:[#allocation50_spill] sm:$0xff] }
  0xa3   :  { %957 = vmatpush1.bf16.msra.mxu1 %v7664_v51  ;;  %892 = vmatprep.subr.bf16.mxu0 %v7668_v52  ;;  %v6060_v51 = vld.sshfl [vmem:[%s11331_s0 + $0x2] sm:$0x13 pattern:$0x75316420] }
  0xa4   :  { %958 = vmatprep.subr.bf16.mxu1 %v7670_v53  ;;  %v1052_v52 = vcombine.high %v6060_v51, %v6060_v51  ;;  %v7956_v53 = vld [vmem:[#allocation3 + $0xe4] ss:$16 sps:$4 sm:$0xff]  }
  0xa5   :  { %11998 = vst [vmem:[#allocation12_spill] sm:$0xff] %v7956_v53 }
  0xa6   :  { %893 = vmatpush2.bf16.msra.mxu0 %v7672_v54  ;;  %v7959_v54 = vld [vmem:[#allocation3 + $0x2e4] ss:$16 sps:$4 sm:$0xff]  }
  0xa7   :  { %959 = vmatpush1.bf16.msra.mxu1 %v7676_v55  ;;  %894 = vmatprep.subr.bf16.mxu0 %v7678_v56  ;;  %11999 = vst [vmem:[#allocation13_spill] sm:$0xff] %v7959_v54  ;;  %v7963_v55 = vrot.slane %v1052_v52, %v7615_v34  ;;  %v7967_v56 = vld [vmem:[#allocation3 + $0xe0] ss:$16 sps:$4 sm:$0xff]   ;;  %v8078_v52 = vld [vmem:[#allocation3 + $0xe8] ss:$16 sps:$4 sm:$0xff]  }
  0xa8   :  { %960 = vmatprep.subr.bf16.mxu1 %v7682_v57  ;;  %v7970_v57 = vld [vmem:[#allocation3 + $0x2e0] ss:$16 sps:$4 sm:$0xff]   ;;  %12008 = vst [vmem:[#allocation22_spill] sm:$0xff] %v8078_v52 }
  0xaa   :  { %895 = vmatpush2.bf16.msra.mxu0 %v7684_v58  ;;  %v7973_v58 = vld [vmem:[#allocation3 + $0xc4] ss:$16 sps:$4 sm:$0xff]  }
  0xab   :  { %961 = vmatpush1.bf16.msra.mxu1 %v7688_v59  ;;  %896 = vmatprep.subr.bf16.mxu0 %v11959_v3  ;;  %v7976_v59 = vld [vmem:[#allocation3 + $0x2c4] ss:$16 sps:$4 sm:$0xff]   ;;  %v7996_v3 = vld [vmem:[#allocation3 + $0x2a0] ss:$16 sps:$4 sm:$0xff]  }
  0xac   :  { %962 = vmatprep.subr.bf16.mxu1 %v11960_v4  ;;  %v7999_v4 = vld [vmem:[#allocation3 + $0x84] ss:$16 sps:$4 sm:$0xff]  }
  0xae   :  { %897 = vmatpush2.bf16.msra.mxu0 %v11961_v5  ;;  %v8002_v5 = vld [vmem:[#allocation3 + $0x284] ss:$16 sps:$4 sm:$0xff]  }
  0xaf   :  { %963 = vmatpush1.bf16.msra.mxu1 %v11962_v6  ;;  %898 = vmatprep.subr.bf16.mxu0 %v11963_v7  ;;  %v8005_v6 = vld [vmem:[#allocation3 + $0x80] ss:$16 sps:$4 sm:$0xff]  }
  0xb0   :  { %964 = vmatprep.subr.bf16.mxu1 %v11964_v8  ;;  %v8008_v7 = vld [vmem:[#allocation3 + $0x280] ss:$16 sps:$4 sm:$0xff]   ;;  %v8011_v8 = vld [vmem:[#allocation3 + $0x64] ss:$16 sps:$4 sm:$0xff]  }
  0xb2   :  { %899 = vmatpush2.bf16.msra.mxu0 %v11965_v9  ;;  %v8014_v9 = vld [vmem:[#allocation3 + $0x264] ss:$16 sps:$4 sm:$0xff]  }
  0xb3   :  { %965 = vmatpush1.bf16.msra.mxu1 %v11966_v10  ;;  %900 = vmatprep.subr.bf16.mxu0 %v11967_v11  ;;  %v8017_v10 = vld [vmem:[#allocation3 + $0x60] ss:$16 sps:$4 sm:$0xff]  }
  0xb4   :  { %966 = vmatprep.subr.bf16.mxu1 %v11968_v12  ;;  %v8020_v11 = vld [vmem:[#allocation3 + $0x260] ss:$16 sps:$4 sm:$0xff]   ;;  %v8023_v12 = vld [vmem:[#allocation3 + $0x44] ss:$16 sps:$4 sm:$0xff]  }
  0xb6   :  { %901 = vmatpush2.bf16.msra.mxu0 %v11969_v13  ;;  %v8026_v13 = vld [vmem:[#allocation3 + $0x244] ss:$16 sps:$4 sm:$0xff]  }
  0xb7   :  { %967 = vmatpush1.bf16.msra.mxu1 %v11970_v14  ;;  %902 = vmatprep.subr.bf16.mxu0 %v11971_v15  ;;  %v8029_v14 = vld [vmem:[#allocation3 + $0x40] ss:$16 sps:$4 sm:$0xff]  }
  0xb8   :  { %968 = vmatprep.subr.bf16.mxu1 %v11972_v16  ;;  %v8032_v15 = vld [vmem:[#allocation3 + $0x240] ss:$16 sps:$4 sm:$0xff]   ;;  %v8035_v16 = vld [vmem:[#allocation3 + $0x24] ss:$16 sps:$4 sm:$0xff]  }
  0xba   :  { %903 = vmatpush2.bf16.msra.mxu0 %v11973_v17  ;;  %v8038_v17 = vld [vmem:[#allocation3 + $0x224] ss:$16 sps:$4 sm:$0xff]  }
  0xbb   :  { %969 = vmatpush1.bf16.msra.mxu1 %v11974_v18  ;;  %995 = vmatprep.subr.bf16.mxu0 %v11976_v20  ;;  %v8042_v18 = vrot.slane %v6060_v51, %v7615_v34  ;;  %v8047_v20 = vld [vmem:[#allocation3 + $0x220] ss:$16 sps:$4 sm:$0xff]  }
  0xbc   :  { %970 = vmatprep.subr.bf16.mxu1 %v11975_v19  ;;  %v8044_v19 = vld [vmem:[#allocation3 + $0x20] ss:$16 sps:$4 sm:$0xff]   ;;  %12000 = vst [vmem:[#allocation14_spill] sm:$0xff] %v8047_v20 }
  0xbd   :  { %905 = vmatmul.mubr.bf16.vlgmr.msra.gmra.mxu0 %v7874_v1  ;;  %v8075_v51 = vld [vmem:[#allocation3 + $0x1e0] ss:$16 sps:$4 sm:$0xff]  }
  0xbe   :  { %996 = vmatpush1.bf16.msra.mxu0 %v11978_v25  ;;  %1027 = vmatprep.mubr.bf16.mxu0 %v11947_v63  ;;  %v8053_v25 = vld [vmem:[#allocation3 + $0x204] ss:$16 sps:$4 sm:$0xff]   ;;  %12007 = vst [vmem:[#allocation21_spill] sm:$0xff] %v8075_v51 }
  0xbf   :  { %971 = vmatpush2.bf16.msra.mxu1 %v11977_v24  ;;  %997 = vmatprep.subr.bf16.mxu0 %v11980_v29  ;;  %v8050_v24 = vld [vmem:[#allocation3 + $0x4] ss:$16 sps:$4 sm:$0xff]   ;;  %12002 = vst [vmem:[#allocation16_spill] sm:$0xff] %v8053_v25  ;;  %v8060_v29 = vld [vmem:[#allocation3] ss:$16 sps:$4 sm:$0xff]  }
  0xc0   :  { %972 = vmatprep.subr.bf16.mxu1 %v11979_v26  ;;  %12001 = vst [vmem:[#allocation15_spill] sm:$0xff] %v8050_v24  ;;  %v8058_v26 = vcombine.high %v8042_v18, %v8042_v18  ;;  %12003 = vst [vmem:[#allocation17_spill] sm:$0xff] %v8060_v29 }
  0xc2   :  { %998 = vmatpush1.bf16.msra.mxu0 %v11982_v31  ;;  %v8066_v31 = vld [vmem:[#allocation3 + $0x1e4] ss:$16 sps:$4 sm:$0xff]  }
  0xc3   :  { %973 = vmatpush2.bf16.msra.mxu1 %v11981_v30  ;;  %999 = vmatprep.subr.bf16.mxu0 %v11984_v36  ;;  %v8063_v30 = vld [vmem:[#allocation3 + $0x200] ss:$16 sps:$4 sm:$0xff]   ;;  %12005 = vst [vmem:[#allocation19_spill] sm:$0xff] %v8066_v31 }
  0xc4   :  { %974 = vmatprep.subr.bf16.mxu1 %v11983_v33  ;;  %12004 = vst [vmem:[#allocation18_spill] sm:$0xff] %v8063_v30  ;;  %v8069_v33 = vld [vmem:[#allocation3 + $0xec] ss:$16 sps:$4 sm:$0xff]  }
  0xc5   :  { %12006 = vst [vmem:[#allocation20_spill] sm:$0xff] %v8069_v33 }
  0xc6   :  { %1000 = vmatpush1.bf16.msra.mxu0 %v11986_v38 }
  0xc7   :  { %975 = vmatpush2.bf16.msra.mxu1 %v11985_v37  ;;  %1001 = vmatprep.subr.bf16.mxu0 %v11988_v41 }
  0xc8   :  { %976 = vmatprep.subr.bf16.mxu1 %v11987_v40 }
  0xca   :  { %1002 = vmatpush1.bf16.msra.mxu0 %v11990_v43 }
  0xcb   :  { %977 = vmatpush2.bf16.msra.mxu1 %v11989_v42  ;;  %1003 = vmatprep.subr.bf16.mxu0 %v11992_v45 }
  0xcc   :  { %978 = vmatprep.subr.bf16.mxu1 %v11991_v44 }
  0xce   :  { %1004 = vmatpush1.bf16.msra.mxu0 %v11993_v46 }
  0xcf   :  { %979 = vmatpush2.bf16.msra.mxu1 %v7794_v39  ;;  %1005 = vmatprep.subr.bf16.mxu0 %v11995_v48 }
  0xd0   :  { %980 = vmatprep.subr.bf16.mxu1 %v11994_v47 }
  0xd2   :  { %1006 = vmatpush1.bf16.msra.mxu0 %v11996_v49 }
  0xd3   :  { %981 = vmatpush2.bf16.msra.mxu1 %v7806_v27  ;;  %1007 = vmatprep.subr.bf16.mxu0 %v11997_v50 }
  0xd4   :  { %982 = vmatprep.subr.bf16.mxu1 %v7810_v60 }
  0xd6   :  { %1008 = vmatpush1.bf16.msra.mxu0 %v7820_v32 }
  0xd7   :  { %983 = vmatpush2.bf16.msra.mxu1 %v7818_v0  ;;  %1009 = vmatprep.subr.bf16.mxu0 %v7824_v35 }
  0xd8   :  { %984 = vmatprep.subr.bf16.mxu1 %v7822_v28 }
  0xda   :  { %1010 = vmatpush1.bf16.msra.mxu0 %v7832_v22 }
  0xdb   :  { %985 = vmatpush2.bf16.msra.mxu1 %v7830_v62  ;;  %1071 = vmatprep.subr.bf16.mxu0 %v7956_v53 }
  0xdc   :  { %1112 = vmatprep.subr.bf16.mxu1 %v7959_v54 }
  0xdd   :  { %1028 = vmatmul.mubr.bf16.vlgmr.msra.gmra.mxu0 %v7882_v2  ;;  %v7993_v2 = vld [vmem:[#allocation3 + $0xa0] ss:$16 sps:$4 sm:$0xff]  }
  0xde   :  { %987 = vmatmul.mubr.bf16.vlgmr.msra.gmra.mxu1 %v7874_v1  ;;  %1072 = vmatpush1.bf16.msra.mxu0 %v7967_v56  ;;  %v7990_v1 = vld [vmem:[#allocation3 + $0x2a4] ss:$16 sps:$4 sm:$0xff]  }
  0xdf   :  { %1113 = vmatpush1.bf16.msra.mxu1 %v7970_v57  ;;  %1073 = vmatprep.subr.bf16.mxu0 %v7973_v58 }
  0xe0   :  { %1114 = vmatprep.subr.bf16.mxu1 %v7976_v59  ;;  %1144 = vmatprep.mubr.bf16.mxu1 %v11947_v63 }
  0xe1   :  { %1103 = vmatprep.mubr.bf16.mxu0 %v7963_v55 }
  0xe2   :  { %1074 = vmatpush1.bf16.msra.mxu0 %v7981_v61 }
  0xe3   :  { %1115 = vmatpush1.bf16.msra.mxu1 %v7984_v21  ;;  %1075 = vmatprep.subr.bf16.mxu0 %v7987_v23 }
  0xe4   :  { %1116 = vmatprep.subr.bf16.mxu1 %v7990_v1 }
  0xe6   :  { %1076 = vmatpush1.bf16.msra.mxu0 %v7993_v2 }
  0xe7   :  { %1117 = vmatpush1.bf16.msra.mxu1 %v7996_v3  ;;  %1077 = vmatprep.subr.bf16.mxu0 %v7999_v4 }
  0xe8   :  { %1118 = vmatprep.subr.bf16.mxu1 %v8002_v5 }
  0xea   :  { %1078 = vmatpush1.bf16.msra.mxu0 %v8005_v6 }
  0xeb   :  { %1119 = vmatpush1.bf16.msra.mxu1 %v8008_v7  ;;  %1079 = vmatprep.subr.bf16.mxu0 %v8011_v8 }
  0xec   :  { %1120 = vmatprep.subr.bf16.mxu1 %v8014_v9 }
  0xee   :  { %1080 = vmatpush1.bf16.msra.mxu0 %v8017_v10 }
  0xef   :  { %1121 = vmatpush1.bf16.msra.mxu1 %v8020_v11  ;;  %1081 = vmatprep.subr.bf16.mxu0 %v8023_v12 }
  0xf0   :  { %1122 = vmatprep.subr.bf16.mxu1 %v8026_v13 }
  0xf2   :  { %1082 = vmatpush1.bf16.msra.mxu0 %v8029_v14 }
  0xf3   :  { %1123 = vmatpush1.bf16.msra.mxu1 %v8032_v15  ;;  %1083 = vmatprep.subr.bf16.mxu0 %v8035_v16 }
  0xf4   :  { %1124 = vmatprep.subr.bf16.mxu1 %v8038_v17 }
  0xf6   :  { %1084 = vmatpush1.bf16.msra.mxu0 %v8044_v19 }
  0xf7   :  { %1125 = vmatpush1.bf16.msra.mxu1 %v8047_v20  ;;  %1085 = vmatprep.subr.bf16.mxu0 %v8050_v24  ;;  %v8096_v24 = vld [vmem:[#allocation3 + $0x1a4] ss:$16 sps:$4 sm:$0xff]   ;;  %v8196_v20 = vld [vmem:[#allocation3 + $0x1c8] ss:$16 sps:$4 sm:$0xff]  }
  0xf8   :  { %1126 = vmatprep.subr.bf16.mxu1 %v8053_v25  ;;  %v8090_v25 = vld [vmem:[#allocation3 + $0x1c0] ss:$16 sps:$4 sm:$0xff]   ;;  %12013 = vst [vmem:[#allocation27_spill] sm:$0xff] %v8096_v24 }
  0xf9   :  { %12011 = vst [vmem:[#allocation25_spill] sm:$0xff] %v8090_v25 }
  0xfa   :  { %1086 = vmatpush1.bf16.msra.mxu0 %v8060_v29  ;;  %v8083_v29 = vld [vmem:[#allocation3 + $0x1c4] ss:$16 sps:$4 sm:$0xff]  }
  0xfb   :  { %1127 = vmatpush1.bf16.msra.mxu1 %v8063_v30  ;;  %1087 = vmatprep.subr.bf16.mxu0 %v8066_v31  ;;  %12009 = vst [vmem:[#allocation23_spill] sm:$0xff] %v8083_v29  ;;  %v8086_v31 = vld [vmem:[#allocation3 + $0xcc] ss:$16 sps:$4 sm:$0xff]  }
  0xfc   :  { %1153 = vmatprep.subr.bf16.mxu1 %v8069_v33  ;;  %12010 = vst [vmem:[#allocation24_spill] sm:$0xff] %v8086_v31 }
  0xfe   :  { %v8072_v36 = vpop.f32.mrf.mxu1  ;;  %1145 = vmatmul.mubr.bf16.vlgmr.msra.gmra.mxu1 %v8058_v26  ;;  %1088 = vmatpush2.bf16.msra.mxu0 %v8075_v51  ;;  %v8093_v51 = vld [vmem:[#allocation3 + $0xc8] ss:$16 sps:$4 sm:$0xff]  }
  0xff   :  { %1154 = vmatpush1.bf16.msra.mxu1 %v8078_v52  ;;  %1089 = vmatprep.subr.bf16.mxu0 %v8083_v29  ;;  %12012 = vst [vmem:[#allocation26_spill] sm:$0xff] %v8093_v51  ;;  %v8099_v29 = vld [vmem:[#allocation3 + $0xac] ss:$16 sps:$4 sm:$0xff]  }
 0x100   :  { %v8081_v30 = vpop.f32.mrf.mxu1  ;;  %1155 = vmatprep.subr.bf16.mxu1 %v8086_v31  ;;  %1185 = vmatprep.mubr.bf16.mxu1 %v7963_v55  ;;  %12014 = vst [vmem:[#allocation28_spill] sm:$0xff] %v8099_v29  ;;  %v8102_v31 = vld [vmem:[#allocation3 + $0x1a0] ss:$16 sps:$4 sm:$0xff]   ;;  %v8105_v55 = vld [vmem:[#allocation3 + $0xa8] ss:$16 sps:$4 sm:$0xff]  }
 0x101   :  { %12015 = vst [vmem:[#allocation29_spill] sm:$0xff] %v8102_v31  ;;  %12016 = vst [vmem:[#allocation30_spill] sm:$0xff] %v8105_v55 }
 0x102   :  { %v746_v33 = vpop.f32.mrf.mxu1  ;;  %1090 = vmatpush2.bf16.msra.mxu0 %v8090_v25 }
 0x103   :  { %1156 = vmatpush1.bf16.msra.mxu1 %v8093_v51  ;;  %1091 = vmatprep.subr.bf16.mxu0 %v8096_v24  ;;  %v8108_v33 = vld [vmem:[#allocation3 + $0x184] ss:$16 sps:$4 sm:$0xff]   ;;  %v8114_v24 = vld [vmem:[#allocation3 + $0x180] ss:$16 sps:$4 sm:$0xff]   ;;  %v8181_v51 = vld [vmem:[#allocation3 + $0x1cc] ss:$16 sps:$4 sm:$0xff]  }
 0x104   :  { %v747_v52 = vpop.f32.mrf.mxu1  ;;  %1157 = vmatprep.subr.bf16.mxu1 %v8099_v29  ;;  %12017 = vst [vmem:[#allocation31_spill] sm:$0xff] %v8108_v33  ;;  %12019 = vst [vmem:[#allocation33_spill] sm:$0xff] %v8114_v24  ;;  %v8117_v29 = vld [vmem:[#allocation3 + $0x88] ss:$16 sps:$4 sm:$0xff]  }
 0x105   :  { %v8111_v52 = vld [vmem:[#allocation3 + $0x8c] ss:$16 sps:$4 sm:$0xff]   ;;  %12020 = vst [vmem:[#allocation34_spill] sm:$0xff] %v8117_v29  ;;  %12041 = vst [vmem:[#allocation55_spill] sm:$0xff] %v8181_v51 }
 0x106   :  { %1092 = vmatpush2.bf16.msra.mxu0 %v8102_v31  ;;  %12018 = vst [vmem:[#allocation32_spill] sm:$0xff] %v8111_v52  ;;  %v8120_v31 = vld [vmem:[#allocation3 + $0x164] ss:$16 sps:$4 sm:$0xff]  }
 0x107   :  { %1158 = vmatpush1.bf16.msra.mxu1 %v8105_v55  ;;  %1093 = vmatprep.subr.bf16.mxu0 %v8108_v33  ;;  %12021 = vst [vmem:[#allocation35_spill] sm:$0xff] %v8120_v31  ;;  %v8123_v55 = vld [vmem:[#allocation3 + $0x6c] ss:$16 sps:$4 sm:$0xff]   ;;  %v8126_v33 = vld [vmem:[#allocation3 + $0x160] ss:$16 sps:$4 sm:$0xff]  }
 0x108   :  { %1159 = vmatprep.subr.bf16.mxu1 %v8111_v52  ;;  %12022 = vst [vmem:[#allocation36_spill] sm:$0xff] %v8123_v55  ;;  %12023 = vst [vmem:[#allocation37_spill] sm:$0xff] %v8126_v33  ;;  %v8129_v52 = vld [vmem:[#allocation3 + $0x68] ss:$16 sps:$4 sm:$0xff]  }
 0x109   :  { %12024 = vst [vmem:[#allocation38_spill] sm:$0xff] %v8129_v52 }
 0x10a   :  { %1094 = vmatpush2.bf16.msra.mxu0 %v8114_v24  ;;  %v8132_v24 = vld [vmem:[#allocation3 + $0x144] ss:$16 sps:$4 sm:$0xff]  }
 0x10b   :  { %1160 = vmatpush1.bf16.msra.mxu1 %v8117_v29  ;;  %1095 = vmatprep.subr.bf16.mxu0 %v8120_v31  ;;  %12025 = vst [vmem:[#allocation39_spill] sm:$0xff] %v8132_v24  ;;  %v8135_v29 = vld [vmem:[#allocation3 + $0x4c] ss:$16 sps:$4 sm:$0xff]   ;;  %v8138_v31 = vld [vmem:[#allocation3 + $0x140] ss:$16 sps:$4 sm:$0xff]  }
 0x10c   :  { %1161 = vmatprep.subr.bf16.mxu1 %v8123_v55  ;;  %12026 = vst [vmem:[#allocation40_spill] sm:$0xff] %v8135_v29  ;;  %12027 = vst [vmem:[#allocation41_spill] sm:$0xff] %v8138_v31  ;;  %v8141_v55 = vld [vmem:[#allocation3 + $0x48] ss:$16 sps:$4 sm:$0xff]  }
 0x10d   :  { %12028 = vst [vmem:[#allocation42_spill] sm:$0xff] %v8141_v55 }
 0x10e   :  { %1096 = vmatpush2.bf16.msra.mxu0 %v8126_v33  ;;  %v8144_v33 = vld [vmem:[#allocation3 + $0x124] ss:$16 sps:$4 sm:$0xff]  }
 0x10f   :  { %1162 = vmatpush1.bf16.msra.mxu1 %v8129_v52  ;;  %1097 = vmatprep.subr.bf16.mxu0 %v8132_v24  ;;  %12029 = vst [vmem:[#allocation43_spill] sm:$0xff] %v8144_v33  ;;  %v8147_v52 = vld [vmem:[#allocation3 + $0x2c] ss:$16 sps:$4 sm:$0xff]   ;;  %v8150_v24 = vld [vmem:[#allocation3 + $0x120] ss:$16 sps:$4 sm:$0xff]  }
 0x110   :  { %1163 = vmatprep.subr.bf16.mxu1 %v8135_v29  ;;  %12030 = vst [vmem:[#allocation44_spill] sm:$0xff] %v8147_v52  ;;  %12031 = vst [vmem:[#allocation45_spill] sm:$0xff] %v8150_v24  ;;  %v8153_v29 = vld [vmem:[#allocation3 + $0x28] ss:$16 sps:$4 sm:$0xff]  }
 0x111   :  { %12032 = vst [vmem:[#allocation46_spill] sm:$0xff] %v8153_v29 }
 0x112   :  { %1098 = vmatpush2.bf16.msra.mxu0 %v8138_v31  ;;  %v8156_v31 = vld [vmem:[#allocation3 + $0x104] ss:$16 sps:$4 sm:$0xff]  }
 0x113   :  { %1164 = vmatpush1.bf16.msra.mxu1 %v8141_v55  ;;  %1099 = vmatprep.subr.bf16.mxu0 %v8144_v33  ;;  %12033 = vst [vmem:[#allocation47_spill] sm:$0xff] %v8156_v31  ;;  %v8159_v55 = vld [vmem:[#allocation3 + $0xc] ss:$16 sps:$4 sm:$0xff]   ;;  %v8162_v33 = vld [vmem:[#allocation3 + $0x100] ss:$16 sps:$4 sm:$0xff]  }
 0x114   :  { %1165 = vmatprep.subr.bf16.mxu1 %v8147_v52  ;;  %12034 = vst [vmem:[#allocation48_spill] sm:$0xff] %v8159_v55  ;;  %12035 = vst [vmem:[#allocation49_spill] sm:$0xff] %v8162_v33  ;;  %v8165_v52 = vld [vmem:[#allocation3 + $0x8] ss:$16 sps:$4 sm:$0xff]  }
 0x115   :  { %12036 = vst [vmem:[#allocation50_spill] sm:$0xff] %v8165_v52 }
 0x116   :  { %1100 = vmatpush2.bf16.msra.mxu0 %v8150_v24  ;;  %v8168_v24 = vld [vmem:[#allocation3 + $0x1ec] ss:$16 sps:$4 sm:$0xff]  }
 0x117   :  { %1166 = vmatpush1.bf16.msra.mxu1 %v8153_v29  ;;  %1101 = vmatprep.subr.bf16.mxu0 %v8156_v31  ;;  %12037 = vst [vmem:[#allocation51_spill] sm:$0xff] %v8168_v24  ;;  %v8171_v29 = vld [vmem:[#allocation3 + $0x2ec] ss:$16 sps:$4 sm:$0xff]  }
 0x118   :  { %1167 = vmatprep.subr.bf16.mxu1 %v8159_v55  ;;  %12038 = vst [vmem:[#allocation52_spill] sm:$0xff] %v8171_v29  ;;  %v8175_v55 = vld [vmem:[#allocation3 + $0x1e8] ss:$16 sps:$4 sm:$0xff]  }
 0x119   :  { %12039 = vst [vmem:[#allocation53_spill] sm:$0xff] %v8175_v55 }
 0x11a   :  { %1102 = vmatpush2.bf16.msra.mxu0 %v8162_v33  ;;  %v8178_v33 = vld [vmem:[#allocation3 + $0x2e8] ss:$16 sps:$4 sm:$0xff]  }
 0x11b   :  { %1168 = vmatpush1.bf16.msra.mxu1 %v8165_v52  ;;  %1194 = vmatprep.subr.bf16.mxu0 %v8171_v29  ;;  %12040 = vst [vmem:[#allocation54_spill] sm:$0xff] %v8178_v33 }
 0x11c   :  { %1169 = vmatprep.subr.bf16.mxu1 %v8168_v24  ;;  %v8184_v24 = vld [vmem:[#allocation3 + $0x2cc] ss:$16 sps:$4 sm:$0xff]  }
 0x11d   :  { %v701_v31 = vpop.f32.mrf.mxu0  ;;  %1104 = vmatmul.mubr.bf16.vlgmr.msra.gmra.mxu0 %v8042_v18  ;;  %12042 = vst [vmem:[#allocation56_spill] sm:$0xff] %v8184_v24 }
 0x11e   :  { %1195 = vmatpush1.bf16.msra.mxu0 %v8178_v33  ;;  %v8188_v29 = vadd.f32 %v8072_v36, %v701_v31  ;;  %1226 = vmatprep.mubr.bf16.mxu0 %v11947_v63  ;;  %v8202_v31 = vld [vmem:[#allocation3 + $0x1ac] ss:$16 sps:$4 sm:$0xff]   ;;  %v12050_v36 = vld [vmem:[#allocation20_spill] sm:$0xff] }
 0x11f   :  { %1170 = vmatpush2.bf16.msra.mxu1 %v8175_v55  ;;  %v703_v52 = vpop.f32.mrf.mxu0  ;;  %1196 = vmatprep.subr.bf16.mxu0 %v8184_v24 }
 0x120   :  { %1171 = vmatprep.subr.bf16.mxu1 %v8181_v51  ;;  %v8191_v25 = vadd.f32 %v8081_v30, %v703_v52  ;;  %v8199_v51 = vld [vmem:[#allocation3 + $0x2c8] ss:$16 sps:$4 sm:$0xff]   ;;  %v8205_v30 = vld [vmem:[#allocation3 + $0x2ac] ss:$16 sps:$4 sm:$0xff]  }
 0x121   :  { %v705_v55 = vpop.f32.mrf.mxu0  ;;  %12043 = vst [vmem:[#allocation57_spill] sm:$0xff] %v8205_v30  ;;  %v12052_v52 = vld [vmem:[#allocation22_spill] sm:$0xff] }
 0x122   :  { %v831_v33 = vmax.f32 %v8188_v29, %v8191_v25  ;;  %1197 = vmatpush1.bf16.msra.mxu0 %v8199_v51  ;;  %v12047_v25 = vld [vmem:[#allocation17_spill] sm:$0xff]  ;;  %v12049_v29 = vld [vmem:[#allocation19_spill] sm:$0xff] }
 0x123   :  { %1172 = vmatpush2.bf16.msra.mxu1 %v8196_v20  ;;  %v706_v24 = vpop.f32.mrf.mxu0  ;;  %1198 = vmatprep.subr.bf16.mxu0 %v8205_v30 }
 0x124   :  { %1173 = vmatprep.subr.bf16.mxu1 %v8202_v31 }
 0x126   :  { %1199 = vmatpush1.bf16.msra.mxu0 %v11986_v38 }
 0x127   :  { %1174 = vmatpush2.bf16.msra.mxu1 %v11985_v37  ;;  %1200 = vmatprep.subr.bf16.mxu0 %v11988_v41  ;;  %v8248_v41 = vld [vmem:[%s11333_s2] ss:$0 sm:$0xff] }
 0x128   :  { %1175 = vmatprep.subr.bf16.mxu1 %v11987_v40 }
 0x12a   :  { %1201 = vmatpush1.bf16.msra.mxu0 %v11990_v43 }
 0x12b   :  { %1176 = vmatpush2.bf16.msra.mxu1 %v11989_v42  ;;  %1202 = vmatprep.subr.bf16.mxu0 %v11992_v45 }
 0x12c   :  { %1177 = vmatprep.subr.bf16.mxu1 %v11991_v44 }
 0x12e   :  { %1203 = vmatpush1.bf16.msra.mxu0 %v11993_v46 }
 0x12f   :  { %1178 = vmatpush2.bf16.msra.mxu1 %v7794_v39  ;;  %1204 = vmatprep.subr.bf16.mxu0 %v11995_v48  ;;  %v6061_v39 = vld.sshfl [vmem:[%s11331_s0 + $0x3] sm:$0x13 pattern:$0x75316420] }
 0x130   :  { %1179 = vmatprep.subr.bf16.mxu1 %v11994_v47  ;;  %v1251_v37 = vcombine.high %v6061_v39, %v6061_v39  ;;  %v8270_v48 = vrot.slane %v6061_v39, %v7615_v34 }
 0x132   :  { %1205 = vmatpush1.bf16.msra.mxu0 %v11996_v49  ;;  %v12044_v49 = vld [vmem:[#allocation14_spill] sm:$0xff]  ;;  %v8278_v24 = vcombine.high %v8270_v48, %v8270_v48 }
 0x133   :  { %1180 = vmatpush2.bf16.msra.mxu1 %v7806_v27  ;;  %1206 = vmatprep.subr.bf16.mxu0 %v11997_v50  ;;  %v12045_v50 = vld [vmem:[#allocation15_spill] sm:$0xff] }
 0x134   :  { %1181 = vmatprep.subr.bf16.mxu1 %v7810_v60 }
 0x136   :  { %1207 = vmatpush1.bf16.msra.mxu0 %v7820_v32 }
 0x137   :  { %1182 = vmatpush2.bf16.msra.mxu1 %v7818_v0  ;;  %1208 = vmatprep.subr.bf16.mxu0 %v7824_v35  ;;  %v1265_v0 = vrot.slane %v1251_v37, %v7615_v34  ;;  %v12053_v37 = vld [vmem:[#allocation23_spill] sm:$0xff] }
 0x138   :  { %1183 = vmatprep.subr.bf16.mxu1 %v7822_v28 }
 0x13a   :  { %1209 = vmatpush1.bf16.msra.mxu0 %v7832_v22 }
 0x13b   :  { %1184 = vmatpush2.bf16.msra.mxu1 %v7830_v62  ;;  %1270 = vmatprep.subr.bf16.mxu0 %v7956_v53 }
 0x13c   :  { %1311 = vmatprep.subr.bf16.mxu1 %v7959_v54 }
 0x13d   :  { %v824_v27 = vpop.f32.mrf.mxu0  ;;  %1227 = vmatmul.mubr.bf16.vlgmr.msra.gmra.mxu0 %v8058_v26  ;;  %v12048_v26 = vld [vmem:[#allocation18_spill] sm:$0xff] }
 0x13e   :  { %v783_v60 = vpop.f32.mrf.mxu1  ;;  %1186 = vmatmul.mubr.bf16.vlgmr.msra.gmra.mxu1 %v8042_v18  ;;  %1271 = vmatpush1.bf16.msra.mxu0 %v7967_v56  ;;  %v12046_v18 = vld [vmem:[#allocation16_spill] sm:$0xff] }
 0x13f   :  { %v825_v28 = vadd.f32 %v824_v27, %v783_v60  ;;  %1312 = vmatpush1.bf16.msra.mxu1 %v7970_v57  ;;  %v826_v32 = vpop.f32.mrf.mxu0  ;;  %1272 = vmatprep.subr.bf16.mxu0 %v7973_v58  ;;  %v12054_v60 = vld [vmem:[#allocation24_spill] sm:$0xff] }
 0x140   :  { %v785_v62 = vpop.f32.mrf.mxu1  ;;  %1313 = vmatprep.subr.bf16.mxu1 %v7976_v59  ;;  %1343 = vmatprep.mubr.bf16.mxu1 %v11947_v63 }
 0x141   :  { %v827_v22 = vadd.f32 %v826_v32, %v785_v62  ;;  %1302 = vmatprep.mubr.bf16.mxu0 %v1265_v0  ;;  %v828_v38 = vpop.f32.mrf.mxu0  ;;  %v12056_v62 = vld [vmem:[#allocation26_spill] sm:$0xff] }
 0x142   :  { %v787_v35 = vpop.f32.mrf.mxu1  ;;  %1273 = vmatpush1.bf16.msra.mxu0 %v7981_v61  ;;  %v12059_v38 = vld [vmem:[#allocation29_spill] sm:$0xff] }
 0x143   :  { %v832_v40 = vmax.f32 %v825_v28, %v827_v22  ;;  %1314 = vmatpush1.bf16.msra.mxu1 %v7984_v21  ;;  %v829_v43 = vpop.f32.mrf.mxu0  ;;  %1274 = vmatprep.subr.bf16.mxu0 %v7987_v23  ;;  %v12055_v28 = vld [vmem:[#allocation25_spill] sm:$0xff]  ;;  %v12057_v22 = vld [vmem:[#allocation27_spill] sm:$0xff]  ;;  %v12058_v35 = vld [vmem:[#allocation28_spill] sm:$0xff] }
 0x144   :  { %v788_v42 = vpop.f32.mrf.mxu1  ;;  %1315 = vmatprep.subr.bf16.mxu1 %v7990_v1  ;;  %v12062_v43 = vld [vmem:[#allocation32_spill] sm:$0xff] }
 0x145   :  { %v833_v44 = vmax.f32 %v831_v33, %v832_v40  ;;  %v12051_v33 = vld [vmem:[#allocation21_spill] sm:$0xff]  ;;  %v12060_v40 = vld [vmem:[#allocation30_spill] sm:$0xff]  ;;  %v12061_v42 = vld [vmem:[#allocation31_spill] sm:$0xff] }
 0x146   :  { %1275 = vmatpush1.bf16.msra.mxu0 %v7993_v2 }
 0x147   :  { %v840_v45 = vadd.f32 %v8248_v41, %v833_v44  ;;  %1316 = vmatpush1.bf16.msra.mxu1 %v7996_v3  ;;  %1276 = vmatprep.subr.bf16.mxu0 %v7999_v4  ;;  %v12063_v44 = vld [vmem:[#allocation33_spill] sm:$0xff] }
 0x148   :  { %1317 = vmatprep.subr.bf16.mxu1 %v8002_v5 }
 0x149   :  { %v841_v46 = vmax.f32 %v840_v45, 0.0  ;;  %v12065_v45 = vld [vmem:[#allocation35_spill] sm:$0xff] }
 0x14a   :  { %1277 = vmatpush1.bf16.msra.mxu0 %v8005_v6 }
 0x14b   :  { %v842_v47 = vpack.c.bf16 %v841_v46, %v841_v46  ;;  %1318 = vmatpush1.bf16.msra.mxu1 %v8008_v7  ;;  %1278 = vmatprep.subr.bf16.mxu0 %v8011_v8  ;;  %v12066_v46 = vld [vmem:[#allocation36_spill] sm:$0xff] }
 0x14c   :  { %1319 = vmatprep.subr.bf16.mxu1 %v8014_v9 }
 0x14d   :  { %843 = vst [vmem:[#allocation2] sm:$0x1] %v842_v47  ;;  %v12067_v47 = vld [vmem:[#allocation37_spill] sm:$0xff] }
 0x14e   :  { %1279 = vmatpush1.bf16.msra.mxu0 %v8017_v10 }
 0x14f   :  { %1320 = vmatpush1.bf16.msra.mxu1 %v8020_v11  ;;  %1280 = vmatprep.subr.bf16.mxu0 %v8023_v12 }
 0x150   :  { %1321 = vmatprep.subr.bf16.mxu1 %v8026_v13 }
 0x152   :  { %1281 = vmatpush1.bf16.msra.mxu0 %v8029_v14 }
 0x153   :  { %1322 = vmatpush1.bf16.msra.mxu1 %v8032_v15  ;;  %1282 = vmatprep.subr.bf16.mxu0 %v8035_v16 }
 0x154   :  { %1323 = vmatprep.subr.bf16.mxu1 %v8038_v17 }
 0x156   :  { %1283 = vmatpush1.bf16.msra.mxu0 %v8044_v19 }
 0x157   :  { %1324 = vmatpush1.bf16.msra.mxu1 %v12044_v49  ;;  %1284 = vmatprep.subr.bf16.mxu0 %v12045_v50 }
 0x158   :  { %1325 = vmatprep.subr.bf16.mxu1 %v12046_v18 }
 0x15a   :  { %1285 = vmatpush1.bf16.msra.mxu0 %v12047_v25 }
 0x15b   :  { %1326 = vmatpush1.bf16.msra.mxu1 %v12048_v26  ;;  %1286 = vmatprep.subr.bf16.mxu0 %v12049_v29 }
 0x15c   :  { %1352 = vmatprep.subr.bf16.mxu1 %v12050_v36 }
 0x15e   :  { %v947_v55 = vpop.f32.mrf.mxu1  ;;  %1344 = vmatmul.mubr.bf16.vlgmr.msra.gmra.mxu1 %v8278_v24  ;;  %1287 = vmatpush2.bf16.msra.mxu0 %v12051_v33 }
 0x15f   :  { %1353 = vmatpush1.bf16.msra.mxu1 %v12052_v52  ;;  %1288 = vmatprep.subr.bf16.mxu0 %v12053_v37 }
 0x160   :  { %v949_v39 = vpop.f32.mrf.mxu1  ;;  %1354 = vmatprep.subr.bf16.mxu1 %v12054_v60  ;;  %1384 = vmatprep.mubr.bf16.mxu1 %v1265_v0  ;;  %v12064_v0 = vld [vmem:[#allocation34_spill] sm:$0xff] }
 0x162   :  { %v951_v27 = vpop.f32.mrf.mxu1  ;;  %1289 = vmatpush2.bf16.msra.mxu0 %v12055_v28 }
 0x163   :  { %1355 = vmatpush1.bf16.msra.mxu1 %v12056_v62  ;;  %1290 = vmatprep.subr.bf16.mxu0 %v12057_v22  ;;  %v12068_v27 = vld [vmem:[#allocation38_spill] sm:$0xff] }
 0x164   :  { %v952_v32 = vpop.f32.mrf.mxu1  ;;  %1356 = vmatprep.subr.bf16.mxu1 %v12058_v35 }
 0x165   :  { %v12069_v32 = vld [vmem:[#allocation39_spill] sm:$0xff] }
 0x166   :  { %1291 = vmatpush2.bf16.msra.mxu0 %v12059_v38  ;;  %v12070_v38 = vld [vmem:[#allocation40_spill] sm:$0xff] }
 0x167   :  { %1357 = vmatpush1.bf16.msra.mxu1 %v12060_v40  ;;  %1292 = vmatprep.subr.bf16.mxu0 %v12061_v42  ;;  %v12071_v40 = vld [vmem:[#allocation41_spill] sm:$0xff]  ;;  %v12072_v42 = vld [vmem:[#allocation42_spill] sm:$0xff] }
 0x168   :  { %1358 = vmatprep.subr.bf16.mxu1 %v12062_v43  ;;  %v12073_v43 = vld [vmem:[#allocation43_spill] sm:$0xff] }
 0x16a   :  { %1293 = vmatpush2.bf16.msra.mxu0 %v12063_v44  ;;  %v12074_v44 = vld [vmem:[#allocation44_spill] sm:$0xff] }
 0x16b   :  { %1359 = vmatpush1.bf16.msra.mxu1 %v12064_v0  ;;  %1294 = vmatprep.subr.bf16.mxu0 %v12065_v45  ;;  %v12075_v0 = vld [vmem:[#allocation45_spill] sm:$0xff]  ;;  %v12076_v45 = vld [vmem:[#allocation46_spill] sm:$0xff] }
 0x16c   :  { %1360 = vmatprep.subr.bf16.mxu1 %v12066_v46  ;;  %v12077_v46 = vld [vmem:[#allocation47_spill] sm:$0xff] }
 0x16e   :  { %1295 = vmatpush2.bf16.msra.mxu0 %v12067_v47  ;;  %v12078_v47 = vld [vmem:[#allocation48_spill] sm:$0xff] }
 0x16f   :  { %1361 = vmatpush1.bf16.msra.mxu1 %v12068_v27  ;;  %1296 = vmatprep.subr.bf16.mxu0 %v12069_v32  ;;  %v12079_v27 = vld [vmem:[#allocation49_spill] sm:$0xff]  ;;  %v12080_v32 = vld [vmem:[#allocation50_spill] sm:$0xff] }
 0x170   :  { %1362 = vmatprep.subr.bf16.mxu1 %v12070_v38  ;;  %v12081_v38 = vld [vmem:[#allocation51_spill] sm:$0xff] }
 0x172   :  { %1297 = vmatpush2.bf16.msra.mxu0 %v12071_v40  ;;  %v12082_v40 = vld [vmem:[#allocation52_spill] sm:$0xff] }
 0x173   :  { %1363 = vmatpush1.bf16.msra.mxu1 %v12072_v42  ;;  %1298 = vmatprep.subr.bf16.mxu0 %v12073_v43  ;;  %v12085_v43 = vld [vmem:[#allocation55_spill] sm:$0xff] }
 0x174   :  { %1364 = vmatprep.subr.bf16.mxu1 %v12074_v44  ;;  %v12083_v44 = vld [vmem:[#allocation53_spill] sm:$0xff] }
 0x176   :  { %1299 = vmatpush2.bf16.msra.mxu0 %v12075_v0  ;;  %v12084_v0 = vld [vmem:[#allocation54_spill] sm:$0xff] }
 0x177   :  { %1365 = vmatpush1.bf16.msra.mxu1 %v12076_v45  ;;  %1300 = vmatprep.subr.bf16.mxu0 %v12077_v46  ;;  %v12086_v46 = vld [vmem:[#allocation56_spill] sm:$0xff] }
 0x178   :  { %1366 = vmatprep.subr.bf16.mxu1 %v12078_v47 }
 0x17a   :  { %1301 = vmatpush2.bf16.msra.mxu0 %v12079_v27 }
 0x17b   :  { %1367 = vmatpush1.bf16.msra.mxu1 %v12080_v32  ;;  %1393 = vmatprep.subr.bf16.mxu0 %v12082_v40  ;;  %v8354_v40 = vld [vmem:[#allocation3 + $0x26c] ss:$16 sps:$4 sm:$0xff]  }
 0x17c   :  { %1368 = vmatprep.subr.bf16.mxu1 %v12081_v38  ;;  %12094 = vst [vmem:[#allocation21_spill] sm:$0xff] %v8354_v40 }
 0x17d   :  { %v906_v42 = vpop.f32.mrf.mxu0  ;;  %1303 = vmatmul.mubr.bf16.vlgmr.msra.gmra.mxu0 %v8270_v48 }
 0x17e   :  { %1394 = vmatpush1.bf16.msra.mxu0 %v12084_v0  ;;  %v8322_v47 = vadd.f32 %v947_v55, %v906_v42  ;;  %1425 = vmatprep.mubr.bf16.mxu0 %v11947_v63  ;;  %v8336_v55 = vld [vmem:[#allocation3 + $0x2a8] ss:$16 sps:$4 sm:$0xff]  }
 0x17f   :  { %1369 = vmatpush2.bf16.msra.mxu1 %v12083_v44  ;;  %v908_v45 = vpop.f32.mrf.mxu0  ;;  %1395 = vmatprep.subr.bf16.mxu0 %v12086_v46  ;;  %v8333_v46 = vld [vmem:[#allocation3 + $0x1a8] ss:$16 sps:$4 sm:$0xff]   ;;  %12088 = vst [vmem:[#allocation15_spill] sm:$0xff] %v8336_v55 }
 0x180   :  { %1370 = vmatprep.subr.bf16.mxu1 %v12085_v43  ;;  %v8324_v27 = vadd.f32 %v949_v39, %v908_v45  ;;  %12087 = vst [vmem:[#allocation14_spill] sm:$0xff] %v8333_v46  ;;  %v8339_v39 = vld [vmem:[#allocation3 + $0x18c] ss:$16 sps:$4 sm:$0xff]   ;;  %v8345_v42 = vld [vmem:[#allocation3 + $0x188] ss:$16 sps:$4 sm:$0xff]  }
 0x181   :  { %v910_v38 = vpop.f32.mrf.mxu0  ;;  %12089 = vst [vmem:[#allocation16_spill] sm:$0xff] %v8339_v39  ;;  %12091 = vst [vmem:[#allocation18_spill] sm:$0xff] %v8345_v42  ;;  %v8351_v45 = vld [vmem:[#allocation3 + $0x16c] ss:$16 sps:$4 sm:$0xff]  }
 0x182   :  { %1396 = vmatpush1.bf16.msra.mxu0 %v8199_v51  ;;  %v8342_v38 = vld [vmem:[#allocation3 + $0x28c] ss:$16 sps:$4 sm:$0xff]   ;;  %12093 = vst [vmem:[#allocation20_spill] sm:$0xff] %v8351_v45 }
 0x183   :  { %1371 = vmatpush2.bf16.msra.mxu1 %v8196_v20  ;;  %v911_v0 = vpop.f32.mrf.mxu0  ;;  %1397 = vmatprep.subr.bf16.mxu0 %v8205_v30  ;;  %12090 = vst [vmem:[#allocation17_spill] sm:$0xff] %v8342_v38 }
 0x184   :  { %1372 = vmatprep.subr.bf16.mxu1 %v8202_v31  ;;  %v8348_v0 = vld [vmem:[#allocation3 + $0x288] ss:$16 sps:$4 sm:$0xff]  }
 0x185   :  { %12092 = vst [vmem:[#allocation19_spill] sm:$0xff] %v8348_v0 }
 0x186   :  { %1398 = vmatpush1.bf16.msra.mxu0 %v8336_v55  ;;  %v8396_v55 = vld [vmem:[#allocation3 + $0x108] ss:$16 sps:$4 sm:$0xff]  }
 0x187   :  { %1373 = vmatpush2.bf16.msra.mxu1 %v8333_v46  ;;  %1399 = vmatprep.subr.bf16.mxu0 %v8342_v38  ;;  %v8360_v38 = vld [vmem:[#allocation3 + $0x268] ss:$16 sps:$4 sm:$0xff]   ;;  %12107 = vst [vmem:[#allocation64_spill] sm:$0xff] %v8396_v55 }
 0x188   :  { %1374 = vmatprep.subr.bf16.mxu1 %v8339_v39  ;;  %v8357_v39 = vld [vmem:[#allocation3 + $0x168] ss:$16 sps:$4 sm:$0xff]   ;;  %12096 = vst [vmem:[#allocation23_spill] sm:$0xff] %v8360_v38 }
 0x189   :  { %12095 = vst [vmem:[#allocation22_spill] sm:$0xff] %v8357_v39 }
 0x18a   :  { %1400 = vmatpush1.bf16.msra.mxu0 %v8348_v0  ;;  %v8366_v0 = vld [vmem:[#allocation3 + $0x24c] ss:$16 sps:$4 sm:$0xff]  }
 0x18b   :  { %1375 = vmatpush2.bf16.msra.mxu1 %v8345_v42  ;;  %1401 = vmatprep.subr.bf16.mxu0 %v8354_v40  ;;  %v8363_v42 = vld [vmem:[#allocation3 + $0x14c] ss:$16 sps:$4 sm:$0xff]   ;;  %12098 = vst [vmem:[#allocation25_spill] sm:$0xff] %v8366_v0  ;;  %v8372_v40 = vld [vmem:[#allocation3 + $0x248] ss:$16 sps:$4 sm:$0xff]  }
 0x18c   :  { %1376 = vmatprep.subr.bf16.mxu1 %v8351_v45  ;;  %12097 = vst [vmem:[#allocation24_spill] sm:$0xff] %v8363_v42  ;;  %v8369_v45 = vld [vmem:[#allocation3 + $0x148] ss:$16 sps:$4 sm:$0xff]   ;;  %12100 = vst [vmem:[#allocation27_spill] sm:$0xff] %v8372_v40 }
 0x18d   :  { %12099 = vst [vmem:[#allocation26_spill] sm:$0xff] %v8369_v45 }
 0x18e   :  { %1402 = vmatpush1.bf16.msra.mxu0 %v8360_v38  ;;  %v8378_v38 = vld [vmem:[#allocation3 + $0x22c] ss:$16 sps:$4 sm:$0xff]  }
 0x18f   :  { %1377 = vmatpush2.bf16.msra.mxu1 %v8357_v39  ;;  %1403 = vmatprep.subr.bf16.mxu0 %v8366_v0  ;;  %v8375_v39 = vld [vmem:[#allocation3 + $0x12c] ss:$16 sps:$4 sm:$0xff]   ;;  %12102 = vst [vmem:[#allocation59_spill] sm:$0xff] %v8378_v38  ;;  %v8384_v0 = vld [vmem:[#allocation3 + $0x228] ss:$16 sps:$4 sm:$0xff]  }
 0x190   :  { %1378 = vmatprep.subr.bf16.mxu1 %v8363_v42  ;;  %12101 = vst [vmem:[#allocation58_spill] sm:$0xff] %v8375_v39  ;;  %v8381_v42 = vld [vmem:[#allocation3 + $0x128] ss:$16 sps:$4 sm:$0xff]   ;;  %12104 = vst [vmem:[#allocation61_spill] sm:$0xff] %v8384_v0 }
 0x191   :  { %12103 = vst [vmem:[#allocation60_spill] sm:$0xff] %v8381_v42 }
 0x192   :  { %1404 = vmatpush1.bf16.msra.mxu0 %v8372_v40  ;;  %v8390_v40 = vld [vmem:[#allocation3 + $0x20c] ss:$16 sps:$4 sm:$0xff]  }
 0x193   :  { %1379 = vmatpush2.bf16.msra.mxu1 %v8369_v45  ;;  %1405 = vmatprep.subr.bf16.mxu0 %v8378_v38  ;;  %v8387_v45 = vld [vmem:[#allocation3 + $0x10c] ss:$16 sps:$4 sm:$0xff]   ;;  %12106 = vst [vmem:[#allocation63_spill] sm:$0xff] %v8390_v40 }
 0x194   :  { %1380 = vmatprep.subr.bf16.mxu1 %v8375_v39  ;;  %12105 = vst [vmem:[#allocation62_spill] sm:$0xff] %v8387_v45  ;;  %v6062_v38 = vld.sshfl [vmem:[%s11331_s0 + $0x4] sm:$0x13 pattern:$0x75316420] }
 0x195   :  { %v1450_v39 = vcombine.high %v6062_v38, %v6062_v38 }
 0x196   :  { %1406 = vmatpush1.bf16.msra.mxu0 %v8384_v0 }
 0x197   :  { %1381 = vmatpush2.bf16.msra.mxu1 %v8381_v42  ;;  %1407 = vmatprep.subr.bf16.mxu0 %v8390_v40  ;;  %v8399_v42 = vld [vmem:[#allocation3 + $0x208] ss:$16 sps:$4 sm:$0xff]  }
 0x198   :  { %1382 = vmatprep.subr.bf16.mxu1 %v8387_v45  ;;  %v1464_v45 = vrot.slane %v1450_v39, %v7615_v34 }
 0x19a   :  { %1408 = vmatpush1.bf16.msra.mxu0 %v8399_v42 }
 0x19b   :  { %1383 = vmatpush2.bf16.msra.mxu1 %v8396_v55  ;;  %1469 = vmatprep.subr.bf16.mxu0 %v7956_v53 }
 0x19c   :  { %1510 = vmatprep.subr.bf16.mxu1 %v7959_v54 }
 0x19d   :  { %v1029_v0 = vpop.f32.mrf.mxu0  ;;  %1426 = vmatmul.mubr.bf16.vlgmr.msra.gmra.mxu0 %v8278_v24 }
 0x19e   :  { %v988_v40 = vpop.f32.mrf.mxu1  ;;  %1385 = vmatmul.mubr.bf16.vlgmr.msra.gmra.mxu1 %v8270_v48  ;;  %1470 = vmatpush1.bf16.msra.mxu0 %v7967_v56 }
 0x19f   :  { %v1030_v46 = vadd.f32 %v1029_v0, %v988_v40  ;;  %1511 = vmatpush1.bf16.msra.mxu1 %v7970_v57  ;;  %v1031_v30 = vpop.f32.mrf.mxu0  ;;  %1471 = vmatprep.subr.bf16.mxu0 %v7973_v58  ;;  %v12108_v0 = vmax.f32 %v8322_v47, %v8324_v27 }
 0x1a0   :  { %v990_v55 = vpop.f32.mrf.mxu1  ;;  %1512 = vmatprep.subr.bf16.mxu1 %v7976_v59  ;;  %1542 = vmatprep.mubr.bf16.mxu1 %v11947_v63 }
 0x1a1   :  { %v1032_v54 = vadd.f32 %v1031_v30, %v990_v55  ;;  %1501 = vmatprep.mubr.bf16.mxu0 %v1464_v45  ;;  %v1033_v53 = vpop.f32.mrf.mxu0 }
 0x1a2   :  { %v992_v39 = vpop.f32.mrf.mxu1  ;;  %1472 = vmatpush1.bf16.msra.mxu0 %v7981_v61 }
 0x1a3   :  { %v1037_v48 = vmax.f32 %v1030_v46, %v1032_v54  ;;  %1513 = vmatpush1.bf16.msra.mxu1 %v7984_v21  ;;  %v1034_v40 = vpop.f32.mrf.mxu0  ;;  %1473 = vmatprep.subr.bf16.mxu0 %v7987_v23  ;;  %v8437_v46 = vrot.slane %v6062_v38, %v7615_v34 }
 0x1a4   :  { %v993_v24 = vpop.f32.mrf.mxu1  ;;  %1514 = vmatprep.subr.bf16.mxu1 %v7990_v1  ;;  %v12110_v40 = vld [vmem:[#allocation30_spill] sm:$0xff] }
 0x1a5   :  { %v1038_v30 = vmax.f32 %v12108_v0, %v1037_v48  ;;  %v8445_v47 = vcombine.high %v8437_v46, %v8437_v46  ;;  %v12109_v24 = vld [vmem:[#allocation29_spill] sm:$0xff]  ;;  %v12111_v0 = vld [vmem:[#allocation31_spill] sm:$0xff] }
 0x1a6   :  { %1474 = vmatpush1.bf16.msra.mxu0 %v7993_v2 }
 0x1a7   :  { %v1039_v55 = vadd.f32 %v8248_v41, %v1038_v30  ;;  %1515 = vmatpush1.bf16.msra.mxu1 %v7996_v3  ;;  %1475 = vmatprep.subr.bf16.mxu0 %v7999_v4  ;;  %v12112_v30 = vld [vmem:[#allocation32_spill] sm:$0xff] }
 0x1a8   :  { %1516 = vmatprep.subr.bf16.mxu1 %v8002_v5 }
 0x1a9   :  { %v1040_v53 = vmax.f32 %v1039_v55, 0.0  ;;  %v12113_v55 = vld [vmem:[#allocation33_spill] sm:$0xff] }
 0x1aa   :  { %1476 = vmatpush1.bf16.msra.mxu0 %v8005_v6 }
 0x1ab   :  { %v1041_v54 = vpack.c.bf16 %v1040_v53, %v1040_v53  ;;  %1517 = vmatpush1.bf16.msra.mxu1 %v8008_v7  ;;  %1477 = vmatprep.subr.bf16.mxu0 %v8011_v8  ;;  %v12115_v53 = vld [vmem:[#allocation35_spill] sm:$0xff] }
 0x1ac   :  { %1518 = vmatprep.subr.bf16.mxu1 %v8014_v9 }
 0x1ad   :  { %1042 = vst [vmem:[#allocation2 + $0x1] sm:$0x1] %v1041_v54  ;;  %v12116_v54 = vld [vmem:[#allocation36_spill] sm:$0xff] }
 0x1ae   :  { %1478 = vmatpush1.bf16.msra.mxu0 %v8017_v10 }
 0x1af   :  { %1519 = vmatpush1.bf16.msra.mxu1 %v8020_v11  ;;  %1479 = vmatprep.subr.bf16.mxu0 %v8023_v12 }
 0x1b0   :  { %1520 = vmatprep.subr.bf16.mxu1 %v8026_v13 }
 0x1b2   :  { %1480 = vmatpush1.bf16.msra.mxu0 %v8029_v14 }
 0x1b3   :  { %1521 = vmatpush1.bf16.msra.mxu1 %v8032_v15  ;;  %1481 = vmatprep.subr.bf16.mxu0 %v8035_v16 }
 0x1b4   :  { %1522 = vmatprep.subr.bf16.mxu1 %v8038_v17 }
 0x1b6   :  { %1482 = vmatpush1.bf16.msra.mxu0 %v8044_v19 }
 0x1b7   :  { %1523 = vmatpush1.bf16.msra.mxu1 %v12044_v49  ;;  %1483 = vmatprep.subr.bf16.mxu0 %v12045_v50 }
 0x1b8   :  { %1524 = vmatprep.subr.bf16.mxu1 %v12046_v18 }
 0x1ba   :  { %1484 = vmatpush1.bf16.msra.mxu0 %v12047_v25 }
 0x1bb   :  { %1525 = vmatpush1.bf16.msra.mxu1 %v12048_v26  ;;  %1485 = vmatprep.subr.bf16.mxu0 %v12049_v29 }
 0x1bc   :  { %1551 = vmatprep.subr.bf16.mxu1 %v12050_v36 }
 0x1be   :  { %v1146_v27 = vpop.f32.mrf.mxu1  ;;  %1543 = vmatmul.mubr.bf16.vlgmr.msra.gmra.mxu1 %v8445_v47  ;;  %1486 = vmatpush2.bf16.msra.mxu0 %v12051_v33 }
 0x1bf   :  { %1552 = vmatpush1.bf16.msra.mxu1 %v12052_v52  ;;  %1487 = vmatprep.subr.bf16.mxu0 %v12053_v37 }
 0x1c0   :  { %v1148_v38 = vpop.f32.mrf.mxu1  ;;  %1553 = vmatprep.subr.bf16.mxu1 %v12054_v60  ;;  %1583 = vmatprep.mubr.bf16.mxu1 %v1464_v45  ;;  %v12114_v45 = vld [vmem:[#allocation34_spill] sm:$0xff] }
 0x1c2   :  { %v1150_v39 = vpop.f32.mrf.mxu1  ;;  %1488 = vmatpush2.bf16.msra.mxu0 %v12055_v28 }
 0x1c3   :  { %1554 = vmatpush1.bf16.msra.mxu1 %v12056_v62  ;;  %1489 = vmatprep.subr.bf16.mxu0 %v12057_v22  ;;  %v12117_v39 = vld [vmem:[#allocation37_spill] sm:$0xff] }
 0x1c4   :  { %v1151_v48 = vpop.f32.mrf.mxu1  ;;  %1555 = vmatprep.subr.bf16.mxu1 %v12058_v35  ;;  %v12119_v35 = vld [vmem:[#allocation39_spill] sm:$0xff] }
 0x1c5   :  { %v12118_v48 = vld [vmem:[#allocation38_spill] sm:$0xff] }
 0x1c6   :  { %1490 = vmatpush2.bf16.msra.mxu0 %v12109_v24  ;;  %v12120_v24 = vld [vmem:[#allocation40_spill] sm:$0xff] }
 0x1c7   :  { %1556 = vmatpush1.bf16.msra.mxu1 %v12110_v40  ;;  %1491 = vmatprep.subr.bf16.mxu0 %v12111_v0  ;;  %v12121_v40 = vld [vmem:[#allocation41_spill] sm:$0xff]  ;;  %v12122_v0 = vld [vmem:[#allocation42_spill] sm:$0xff] }
 0x1c8   :  { %1557 = vmatprep.subr.bf16.mxu1 %v12112_v30  ;;  %v12123_v30 = vld [vmem:[#allocation43_spill] sm:$0xff] }
 0x1ca   :  { %1492 = vmatpush2.bf16.msra.mxu0 %v12113_v55  ;;  %v12124_v55 = vld [vmem:[#allocation44_spill] sm:$0xff] }
 0x1cb   :  { %1558 = vmatpush1.bf16.msra.mxu1 %v12114_v45  ;;  %1493 = vmatprep.subr.bf16.mxu0 %v12115_v53  ;;  %v12125_v45 = vld [vmem:[#allocation45_spill] sm:$0xff]  ;;  %v12126_v53 = vld [vmem:[#allocation46_spill] sm:$0xff] }
 0x1cc   :  { %1559 = vmatprep.subr.bf16.mxu1 %v12116_v54  ;;  %v12127_v54 = vld [vmem:[#allocation47_spill] sm:$0xff] }
 0x1ce   :  { %1494 = vmatpush2.bf16.msra.mxu0 %v12117_v39  ;;  %v12128_v39 = vld [vmem:[#allocation48_spill] sm:$0xff] }
 0x1cf   :  { %1560 = vmatpush1.bf16.msra.mxu1 %v12118_v48  ;;  %1495 = vmatprep.subr.bf16.mxu0 %v12119_v35  ;;  %v12129_v48 = vld [vmem:[#allocation49_spill] sm:$0xff] }
 0x1d0   :  { %1561 = vmatprep.subr.bf16.mxu1 %v12120_v24  ;;  %v12130_v24 = vld [vmem:[#allocation51_spill] sm:$0xff] }
 0x1d2   :  { %1496 = vmatpush2.bf16.msra.mxu0 %v12121_v40  ;;  %v12131_v40 = vld [vmem:[#allocation52_spill] sm:$0xff] }
 0x1d3   :  { %1562 = vmatpush1.bf16.msra.mxu1 %v12122_v0  ;;  %1497 = vmatprep.subr.bf16.mxu0 %v12123_v30 }
 0x1d4   :  { %1563 = vmatprep.subr.bf16.mxu1 %v12124_v55 }
 0x1d6   :  { %1498 = vmatpush2.bf16.msra.mxu0 %v12125_v45  ;;  %v12132_v45 = vld [vmem:[#allocation54_spill] sm:$0xff] }
 0x1d7   :  { %1564 = vmatpush1.bf16.msra.mxu1 %v12126_v53  ;;  %1499 = vmatprep.subr.bf16.mxu0 %v12127_v54  ;;  %v12133_v54 = vld [vmem:[#allocation56_spill] sm:$0xff] }
 0x1d8   :  { %1565 = vmatprep.subr.bf16.mxu1 %v12128_v39 }
 0x1da   :  { %1500 = vmatpush2.bf16.msra.mxu0 %v12129_v48 }
 0x1db   :  { %1566 = vmatpush1.bf16.msra.mxu1 %v12080_v32  ;;  %1592 = vmatprep.subr.bf16.mxu0 %v12131_v40 }
 0x1dc   :  { %1567 = vmatprep.subr.bf16.mxu1 %v12130_v24 }
 0x1dd   :  { %v1105_v0 = vpop.f32.mrf.mxu0  ;;  %1502 = vmatmul.mubr.bf16.vlgmr.msra.gmra.mxu0 %v8437_v46 }
 0x1de   :  { %1593 = vmatpush1.bf16.msra.mxu0 %v12132_v45  ;;  %v1147_v39 = vadd.f32 %v1146_v27, %v1105_v0  ;;  %1624 = vmatprep.mubr.bf16.mxu0 %v11947_v63  ;;  %v12135_v45 = vld [vmem:[#allocation14_spill] sm:$0xff]  ;;  %v12138_v27 = vld [vmem:[#allocation17_spill] sm:$0xff]  ;;  %v12141_v0 = vld [vmem:[#allocation20_spill] sm:$0xff] }
 0x1df   :  { %1568 = vmatpush2.bf16.msra.mxu1 %v12083_v44  ;;  %v1107_v53 = vpop.f32.mrf.mxu0  ;;  %1594 = vmatprep.subr.bf16.mxu0 %v12133_v54  ;;  %v12134_v44 = vld [vmem:[#allocation57_spill] sm:$0xff]  ;;  %v12137_v54 = vld [vmem:[#allocation16_spill] sm:$0xff] }
 0x1e0   :  { %1569 = vmatprep.subr.bf16.mxu1 %v12085_v43  ;;  %v1149_v48 = vadd.f32 %v1148_v38, %v1107_v53  ;;  %v12136_v43 = vld [vmem:[#allocation15_spill] sm:$0xff]  ;;  %v12139_v38 = vld [vmem:[#allocation18_spill] sm:$0xff]  ;;  %v12142_v53 = vld [vmem:[#allocation21_spill] sm:$0xff] }
 0x1e1   :  { %v1109_v32 = vpop.f32.mrf.mxu0 }
 0x1e2   :  { %v1235_v24 = vmax.f32 %v1147_v39, %v1149_v48  ;;  %1595 = vmatpush1.bf16.msra.mxu0 %v8199_v51  ;;  %v12140_v32 = vld [vmem:[#allocation19_spill] sm:$0xff]  ;;  %v12145_v48 = vld [vmem:[#allocation24_spill] sm:$0xff] }
 0x1e3   :  { %1570 = vmatpush2.bf16.msra.mxu1 %v8196_v20  ;;  %v1110_v40 = vpop.f32.mrf.mxu0  ;;  %1596 = vmatprep.subr.bf16.mxu0 %v12134_v44  ;;  %v12144_v39 = vld [vmem:[#allocation23_spill] sm:$0xff] }
 0x1e4   :  { %1571 = vmatprep.subr.bf16.mxu1 %v8202_v31  ;;  %v12143_v40 = vld [vmem:[#allocation22_spill] sm:$0xff] }
 0x1e6   :  { %1597 = vmatpush1.bf16.msra.mxu0 %v12136_v43  ;;  %v12147_v43 = vld [vmem:[#allocation26_spill] sm:$0xff] }
 0x1e7   :  { %1572 = vmatpush2.bf16.msra.mxu1 %v12135_v45  ;;  %1598 = vmatprep.subr.bf16.mxu0 %v12138_v27  ;;  %v12146_v45 = vld [vmem:[#allocation25_spill] sm:$0xff]  ;;  %v12149_v27 = vld [vmem:[#allocation58_spill] sm:$0xff] }
 0x1e8   :  { %1573 = vmatprep.subr.bf16.mxu1 %v12137_v54  ;;  %v12148_v54 = vld [vmem:[#allocation27_spill] sm:$0xff] }
 0x1ea   :  { %1599 = vmatpush1.bf16.msra.mxu0 %v12140_v32  ;;  %v12151_v32 = vld [vmem:[#allocation60_spill] sm:$0xff] }
 0x1eb   :  { %1574 = vmatpush2.bf16.msra.mxu1 %v12139_v38  ;;  %1600 = vmatprep.subr.bf16.mxu0 %v12142_v53  ;;  %v12150_v38 = vld [vmem:[#allocation59_spill] sm:$0xff]  ;;  %v12153_v53 = vld [vmem:[#allocation62_spill] sm:$0xff] }
 0x1ec   :  { %1575 = vmatprep.subr.bf16.mxu1 %v12141_v0  ;;  %v12152_v0 = vld [vmem:[#allocation61_spill] sm:$0xff] }
 0x1ee   :  { %1601 = vmatpush1.bf16.msra.mxu0 %v12144_v39 }
 0x1ef   :  { %1576 = vmatpush2.bf16.msra.mxu1 %v12143_v40  ;;  %1602 = vmatprep.subr.bf16.mxu0 %v12146_v45  ;;  %v12154_v40 = vld [vmem:[#allocation63_spill] sm:$0xff] }
 0x1f0   :  { %1577 = vmatprep.subr.bf16.mxu1 %v12145_v48  ;;  %v6063_v45 = vld.sshfl [vmem:[%s11331_s0 + $0x5] sm:$0x13 pattern:$0x75316420] }
 0x1f1   :  { %v1649_v48 = vcombine.high %v6063_v45, %v6063_v45 }
 0x1f2   :  { %1603 = vmatpush1.bf16.msra.mxu0 %v12148_v54 }
 0x1f3   :  { %1578 = vmatpush2.bf16.msra.mxu1 %v12147_v43  ;;  %1604 = vmatprep.subr.bf16.mxu0 %v12150_v38  ;;  %v12155_v43 = vld [vmem:[#allocation64_spill] sm:$0xff]  ;;  %v12157_v38 = vld [vmem:[#allocation13_spill] sm:$0xff] }
 0x1f4   :  { %1579 = vmatprep.subr.bf16.mxu1 %v12149_v27  ;;  %v12156_v27 = vld [vmem:[#allocation12_spill] sm:$0xff] }
 0x1f6   :  { %1605 = vmatpush1.bf16.msra.mxu0 %v12152_v0 }
 0x1f7   :  { %1580 = vmatpush2.bf16.msra.mxu1 %v12151_v32  ;;  %1606 = vmatprep.subr.bf16.mxu0 %v12154_v40  ;;  %v1663_v32 = vrot.slane %v1649_v48, %v7615_v34 }
 0x1f8   :  { %1581 = vmatprep.subr.bf16.mxu1 %v12153_v53 }
 0x1fa   :  { %1607 = vmatpush1.bf16.msra.mxu0 %v8399_v42 }
 0x1fb   :  { %1582 = vmatpush2.bf16.msra.mxu1 %v12155_v43  ;;  %1668 = vmatprep.subr.bf16.mxu0 %v12156_v27 }
 0x1fc   :  { %1709 = vmatprep.subr.bf16.mxu1 %v12157_v38 }
 0x1fd   :  { %v1228_v54 = vpop.f32.mrf.mxu0  ;;  %1625 = vmatmul.mubr.bf16.vlgmr.msra.gmra.mxu0 %v8445_v47 }
 0x1fe   :  { %v1187_v0 = vpop.f32.mrf.mxu1  ;;  %1584 = vmatmul.mubr.bf16.vlgmr.msra.gmra.mxu1 %v8437_v46  ;;  %1669 = vmatpush1.bf16.msra.mxu0 %v7967_v56 }
 0x1ff   :  { %v1229_v40 = vadd.f32 %v1228_v54, %v1187_v0  ;;  %1710 = vmatpush1.bf16.msra.mxu1 %v7970_v57  ;;  %v1230_v53 = vpop.f32.mrf.mxu0  ;;  %1670 = vmatprep.subr.bf16.mxu0 %v7973_v58  ;;  %v12185_v54 = vld [vmem:[#allocation15_spill] sm:$0xff]  ;;  %v12187_v0 = vld [vmem:[#allocation17_spill] sm:$0xff] }
 0x200   :  { %v1189_v43 = vpop.f32.mrf.mxu1  ;;  %1711 = vmatprep.subr.bf16.mxu1 %v7976_v59  ;;  %1741 = vmatprep.mubr.bf16.mxu1 %v11947_v63 }
 0x201   :  { %v1231_v27 = vadd.f32 %v1230_v53, %v1189_v43  ;;  %1700 = vmatprep.mubr.bf16.mxu0 %v1663_v32  ;;  %v1232_v48 = vpop.f32.mrf.mxu0  ;;  %v12188_v53 = vld [vmem:[#allocation18_spill] sm:$0xff] }
 0x202   :  { %v1191_v38 = vpop.f32.mrf.mxu1  ;;  %1671 = vmatpush1.bf16.msra.mxu0 %v7981_v61  ;;  %v12196_v48 = vld [vmem:[#allocation27_spill] sm:$0xff] }
 0x203   :  { %v1236_v46 = vmax.f32 %v1229_v40, %v1231_v27  ;;  %1712 = vmatpush1.bf16.msra.mxu1 %v7984_v21  ;;  %v1233_v47 = vpop.f32.mrf.mxu0  ;;  %1672 = vmatprep.subr.bf16.mxu0 %v7987_v23  ;;  %v8551_v21 = vrot.slane %v6063_v45, %v7615_v34  ;;  %v12184_v45 = vld [vmem:[#allocation14_spill] sm:$0xff]  ;;  %v12189_v40 = vld [vmem:[#allocation19_spill] sm:$0xff] }
 0x204   :  { %v1192_v56 = vpop.f32.mrf.mxu1  ;;  %1713 = vmatprep.subr.bf16.mxu1 %v7990_v1  ;;  %v12192_v27 = vld [vmem:[#allocation22_spill] sm:$0xff]  ;;  %v12199_v47 = vld [vmem:[#allocation60_spill] sm:$0xff] }
 0x205   :  { %v1237_v57 = vmax.f32 %v1235_v24, %v1236_v46  ;;  %v8559_v23 = vcombine.high %v8551_v21, %v8551_v21  ;;  %v12195_v38 = vld [vmem:[#allocation26_spill] sm:$0xff]  ;;  %v12198_v56 = vld [vmem:[#allocation59_spill] sm:$0xff] }
 0x206   :  { %1673 = vmatpush1.bf16.msra.mxu0 %v7993_v2  ;;  %v12197_v46 = vld [vmem:[#allocation58_spill] sm:$0xff] }
 0x207   :  { %v1238_v58 = vadd.f32 %v8248_v41, %v1237_v57  ;;  %1714 = vmatpush1.bf16.msra.mxu1 %v7996_v3  ;;  %1674 = vmatprep.subr.bf16.mxu0 %v7999_v4  ;;  %v12200_v57 = vld [vmem:[#allocation61_spill] sm:$0xff] }
 0x208   :  { %1715 = vmatprep.subr.bf16.mxu1 %v8002_v5  ;;  %v12158_v5 = vld [vmem:[#allocation28_spill] sm:$0xff] }
 0x209   :  { %v1239_v59 = vmax.f32 %v1238_v58, 0.0  ;;  %v12201_v58 = vld [vmem:[#allocation62_spill] sm:$0xff] }
 0x20a   :  { %1675 = vmatpush1.bf16.msra.mxu0 %v8005_v6  ;;  %v12159_v6 = vld [vmem:[#allocation29_spill] sm:$0xff] }
 0x20b   :  { %v1240_v61 = vpack.c.bf16 %v1239_v59, %v1239_v59  ;;  %1716 = vmatpush1.bf16.msra.mxu1 %v8008_v7  ;;  %1676 = vmatprep.subr.bf16.mxu0 %v8011_v8  ;;  %v12160_v7 = vld [vmem:[#allocation30_spill] sm:$0xff]  ;;  %v12161_v8 = vld [vmem:[#allocation31_spill] sm:$0xff] }
 0x20c   :  { %1717 = vmatprep.subr.bf16.mxu1 %v8014_v9  ;;  %v12162_v9 = vld [vmem:[#allocation32_spill] sm:$0xff]  ;;  %v12202_v59 = vld [vmem:[#allocation63_spill] sm:$0xff] }
 0x20d   :  { %1241 = vst [vmem:[#allocation2 + $0x2] sm:$0x1] %v1240_v61  ;;  %v8637_v61 = vld.sshfl [vmem:[%s11331_s0 + $0x6] sm:$0x13 pattern:$0x75316420] }
 0x20e   :  { %1677 = vmatpush1.bf16.msra.mxu0 %v8017_v10  ;;  %v12163_v10 = vld [vmem:[#allocation33_spill] sm:$0xff] }
 0x20f   :  { %1718 = vmatpush1.bf16.msra.mxu1 %v8020_v11  ;;  %1678 = vmatprep.subr.bf16.mxu0 %v8023_v12  ;;  %v12164_v11 = vld [vmem:[#allocation34_spill] sm:$0xff]  ;;  %v12165_v12 = vld [vmem:[#allocation35_spill] sm:$0xff] }
 0x210   :  { %1719 = vmatprep.subr.bf16.mxu1 %v8026_v13  ;;  %v12166_v13 = vld [vmem:[#allocation36_spill] sm:$0xff] }
 0x212   :  { %1679 = vmatpush1.bf16.msra.mxu0 %v8029_v14  ;;  %v12167_v14 = vld [vmem:[#allocation37_spill] sm:$0xff] }
 0x213   :  { %1720 = vmatpush1.bf16.msra.mxu1 %v8032_v15  ;;  %1680 = vmatprep.subr.bf16.mxu0 %v8035_v16  ;;  %v12168_v15 = vld [vmem:[#allocation38_spill] sm:$0xff]  ;;  %v12169_v16 = vld [vmem:[#allocation40_spill] sm:$0xff] }
 0x214   :  { %1721 = vmatprep.subr.bf16.mxu1 %v8038_v17  ;;  %v12170_v17 = vld [vmem:[#allocation41_spill] sm:$0xff] }
 0x216   :  { %1681 = vmatpush1.bf16.msra.mxu0 %v8044_v19  ;;  %v12171_v19 = vld [vmem:[#allocation42_spill] sm:$0xff] }
 0x217   :  { %1722 = vmatpush1.bf16.msra.mxu1 %v12044_v49  ;;  %1682 = vmatprep.subr.bf16.mxu0 %v12045_v50  ;;  %v12172_v49 = vld [vmem:[#allocation45_spill] sm:$0xff]  ;;  %v12173_v50 = vld [vmem:[#allocation46_spill] sm:$0xff] }
 0x218   :  { %1723 = vmatprep.subr.bf16.mxu1 %v12046_v18  ;;  %v12174_v18 = vld [vmem:[#allocation47_spill] sm:$0xff] }
 0x21a   :  { %1683 = vmatpush1.bf16.msra.mxu0 %v12047_v25  ;;  %v12175_v25 = vld [vmem:[#allocation48_spill] sm:$0xff] }
 0x21b   :  { %1724 = vmatpush1.bf16.msra.mxu1 %v12048_v26  ;;  %1684 = vmatprep.subr.bf16.mxu0 %v12049_v29  ;;  %v12176_v26 = vld [vmem:[#allocation49_spill] sm:$0xff]  ;;  %v12177_v29 = vld [vmem:[#allocation50_spill] sm:$0xff] }
 0x21c   :  { %1750 = vmatprep.subr.bf16.mxu1 %v12050_v36  ;;  %v12178_v36 = vld [vmem:[#allocation51_spill] sm:$0xff] }
 0x21e   :  { %v1345_v1 = vpop.f32.mrf.mxu1  ;;  %1742 = vmatmul.mubr.bf16.vlgmr.msra.gmra.mxu1 %v8559_v23  ;;  %1685 = vmatpush2.bf16.msra.mxu0 %v12051_v33  ;;  %v12179_v33 = vld [vmem:[#allocation52_spill] sm:$0xff] }
 0x21f   :  { %1751 = vmatpush1.bf16.msra.mxu1 %v12052_v52  ;;  %1686 = vmatprep.subr.bf16.mxu0 %v12053_v37  ;;  %v12180_v37 = vld [vmem:[#allocation53_spill] sm:$0xff] }
 0x220   :  { %v1347_v2 = vpop.f32.mrf.mxu1  ;;  %1752 = vmatprep.subr.bf16.mxu1 %v12054_v60  ;;  %1782 = vmatprep.mubr.bf16.mxu1 %v1663_v32  ;;  %v12181_v60 = vld [vmem:[#allocation54_spill] sm:$0xff]  ;;  %v12186_v32 = vld [vmem:[#allocation16_spill] sm:$0xff] }
 0x222   :  { %v1349_v3 = vpop.f32.mrf.mxu1  ;;  %1687 = vmatpush2.bf16.msra.mxu0 %v12055_v28 }
 0x223   :  { %1753 = vmatpush1.bf16.msra.mxu1 %v12056_v62  ;;  %1688 = vmatprep.subr.bf16.mxu0 %v12057_v22  ;;  %v12182_v62 = vld [vmem:[#allocation55_spill] sm:$0xff]  ;;  %v12183_v22 = vld [vmem:[#allocation56_spill] sm:$0xff] }
 0x224   :  { %v1350_v4 = vpop.f32.mrf.mxu1  ;;  %1754 = vmatprep.subr.bf16.mxu1 %v12158_v5  ;;  %v8643_v3 = vld [vmem:[#allocation3 + $0xe4] ss:$16 sps:$4 sm:$0xff]  }
 0x225   :  { %12204 = vst [vmem:[#allocation39_spill] sm:$0xff] %v8643_v3  ;;  %v8646_v4 = vld [vmem:[#allocation3 + $0x2e4] ss:$16 sps:$4 sm:$0xff]  }
 0x226   :  { %1689 = vmatpush2.bf16.msra.mxu0 %v12159_v6  ;;  %12205 = vst [vmem:[#allocation43_spill] sm:$0xff] %v8646_v4 }
 0x227   :  { %1755 = vmatpush1.bf16.msra.mxu1 %v12160_v7  ;;  %1690 = vmatprep.subr.bf16.mxu0 %v12161_v8 }
 0x228   :  { %1756 = vmatprep.subr.bf16.mxu1 %v12162_v9  ;;  %v8654_v9 = vld [vmem:[#allocation3 + $0xe0] ss:$16 sps:$4 sm:$0xff]  }
 0x22a   :  { %1691 = vmatpush2.bf16.msra.mxu0 %v12163_v10  ;;  %v8657_v10 = vld [vmem:[#allocation3 + $0x2e0] ss:$16 sps:$4 sm:$0xff]  }
 0x22b   :  { %1757 = vmatpush1.bf16.msra.mxu1 %v12164_v11  ;;  %1692 = vmatprep.subr.bf16.mxu0 %v12165_v12 }
 0x22c   :  { %1758 = vmatprep.subr.bf16.mxu1 %v12166_v13  ;;  %v8660_v13 = vld [vmem:[#allocation3 + $0xc4] ss:$16 sps:$4 sm:$0xff]  }
 0x22e   :  { %1693 = vmatpush2.bf16.msra.mxu0 %v12167_v14  ;;  %v8663_v14 = vld [vmem:[#allocation3 + $0x2c4] ss:$16 sps:$4 sm:$0xff]  }
 0x22f   :  { %1759 = vmatpush1.bf16.msra.mxu1 %v12168_v15  ;;  %1694 = vmatprep.subr.bf16.mxu0 %v12119_v35 }
 0x230   :  { %1760 = vmatprep.subr.bf16.mxu1 %v12169_v16 }
 0x232   :  { %1695 = vmatpush2.bf16.msra.mxu0 %v12170_v17  ;;  %v8668_v17 = vld [vmem:[#allocation3 + $0xc0] ss:$16 sps:$4 sm:$0xff]  }
 0x233   :  { %1761 = vmatpush1.bf16.msra.mxu1 %v12171_v19  ;;  %1696 = vmatprep.subr.bf16.mxu0 %v12123_v30  ;;  %v8671_v19 = vld [vmem:[#allocation3 + $0x2c0] ss:$16 sps:$4 sm:$0xff]  }
 0x234   :  { %1762 = vmatprep.subr.bf16.mxu1 %v12124_v55 }
 0x236   :  { %1697 = vmatpush2.bf16.msra.mxu0 %v12172_v49 }
 0x237   :  { %1763 = vmatpush1.bf16.msra.mxu1 %v12173_v50  ;;  %1698 = vmatprep.subr.bf16.mxu0 %v12174_v18  ;;  %v8674_v18 = vld [vmem:[#allocation3 + $0xa4] ss:$16 sps:$4 sm:$0xff]  }
 0x238   :  { %1764 = vmatprep.subr.bf16.mxu1 %v12175_v25  ;;  %v8677_v25 = vld [vmem:[#allocation3 + $0x2a4] ss:$16 sps:$4 sm:$0xff]  }
 0x23a   :  { %1699 = vmatpush2.bf16.msra.mxu0 %v12176_v26 }
 0x23b   :  { %1765 = vmatpush1.bf16.msra.mxu1 %v12177_v29  ;;  %1791 = vmatprep.subr.bf16.mxu0 %v12179_v33  ;;  %v8687_v33 = vld [vmem:[#allocation3 + $0x2a0] ss:$16 sps:$4 sm:$0xff]  }
 0x23c   :  { %1766 = vmatprep.subr.bf16.mxu1 %v12178_v36  ;;  %v8684_v36 = vld [vmem:[#allocation3 + $0xa0] ss:$16 sps:$4 sm:$0xff]  }
 0x23d   :  { %v1304_v52 = vpop.f32.mrf.mxu0  ;;  %1701 = vmatmul.mubr.bf16.vlgmr.msra.gmra.mxu0 %v8551_v21 }
 0x23e   :  { %1792 = vmatpush1.bf16.msra.mxu0 %v12181_v60  ;;  %v8603_v35 = vadd.f32 %v1345_v1, %v1304_v52  ;;  %1823 = vmatprep.mubr.bf16.mxu0 %v11947_v63  ;;  %v1848_v1 = vcombine.high %v8637_v61, %v8637_v61  ;;  %v8690_v52 = vld [vmem:[#allocation3 + $0x84] ss:$16 sps:$4 sm:$0xff]  }
 0x23f   :  { %1767 = vmatpush2.bf16.msra.mxu1 %v12180_v37  ;;  %v1306_v28 = vpop.f32.mrf.mxu0  ;;  %1793 = vmatprep.subr.bf16.mxu0 %v12183_v22  ;;  %v8693_v37 = vld [vmem:[#allocation3 + $0x284] ss:$16 sps:$4 sm:$0xff]  }
 0x240   :  { %1768 = vmatprep.subr.bf16.mxu1 %v12182_v62  ;;  %v8605_v43 = vadd.f32 %v1347_v2, %v1306_v28  ;;  %v12203_v2 = vld [vmem:[#allocation64_spill] sm:$0xff]  ;;  %v8650_v5 = vrot.slane %v1848_v1, %v7615_v34 }
 0x241   :  { %v1308_v24 = vpop.f32.mrf.mxu0  ;;  %v8696_v62 = vld [vmem:[#allocation3 + $0x80] ss:$16 sps:$4 sm:$0xff]   ;;  %v8702_v22 = vld [vmem:[#allocation3 + $0x64] ss:$16 sps:$4 sm:$0xff]  }
 0x242   :  { %v1434_v30 = vmax.f32 %v8603_v35, %v8605_v43  ;;  %1794 = vmatpush1.bf16.msra.mxu0 %v8199_v51  ;;  %v12191_v51 = vld [vmem:[#allocation21_spill] sm:$0xff]  ;;  %v8705_v35 = vld [vmem:[#allocation3 + $0x264] ss:$16 sps:$4 sm:$0xff]  }
 0x243   :  { %1769 = vmatpush2.bf16.msra.mxu1 %v8196_v20  ;;  %v1309_v55 = vpop.f32.mrf.mxu0  ;;  %1795 = vmatprep.subr.bf16.mxu0 %v12134_v44  ;;  %v12190_v20 = vld [vmem:[#allocation20_spill] sm:$0xff]  ;;  %v12194_v44 = vld [vmem:[#allocation25_spill] sm:$0xff] }
 0x244   :  { %1770 = vmatprep.subr.bf16.mxu1 %v8202_v31  ;;  %v12193_v31 = vld [vmem:[#allocation24_spill] sm:$0xff] }
 0x245   :  { %v8708_v43 = vld [vmem:[#allocation3 + $0x60] ss:$16 sps:$4 sm:$0xff]   ;;  %v8717_v55 = vld [vmem:[#allocation3 + $0x244] ss:$16 sps:$4 sm:$0xff]  }
 0x246   :  { %1796 = vmatpush1.bf16.msra.mxu0 %v12185_v54  ;;  %v8711_v24 = vld [vmem:[#allocation3 + $0x260] ss:$16 sps:$4 sm:$0xff]  }
 0x247   :  { %1771 = vmatpush2.bf16.msra.mxu1 %v12184_v45  ;;  %1797 = vmatprep.subr.bf16.mxu0 %v12187_v0  ;;  %v8720_v1 = vld [vmem:[#allocation3 + $0x40] ss:$16 sps:$4 sm:$0xff]  }
 0x248   :  { %1772 = vmatprep.subr.bf16.mxu1 %v12186_v32 }
 0x24a   :  { %1798 = vmatpush1.bf16.msra.mxu0 %v12189_v40 }
 0x24b   :  { %1773 = vmatpush2.bf16.msra.mxu1 %v12188_v53  ;;  %1799 = vmatprep.subr.bf16.mxu0 %v12191_v51 }
 0x24c   :  { %1774 = vmatprep.subr.bf16.mxu1 %v12190_v20 }
 0x24e   :  { %1800 = vmatpush1.bf16.msra.mxu0 %v12144_v39 }
 0x24f   :  { %1775 = vmatpush2.bf16.msra.mxu1 %v12192_v27  ;;  %1801 = vmatprep.subr.bf16.mxu0 %v12194_v44 }
 0x250   :  { %1776 = vmatprep.subr.bf16.mxu1 %v12193_v31 }
 0x252   :  { %1802 = vmatpush1.bf16.msra.mxu0 %v12196_v48 }
 0x253   :  { %1777 = vmatpush2.bf16.msra.mxu1 %v12195_v38  ;;  %1803 = vmatprep.subr.bf16.mxu0 %v12198_v56 }
 0x254   :  { %1778 = vmatprep.subr.bf16.mxu1 %v12197_v46 }
 0x256   :  { %1804 = vmatpush1.bf16.msra.mxu0 %v12200_v57 }
 0x257   :  { %1779 = vmatpush2.bf16.msra.mxu1 %v12199_v47  ;;  %1805 = vmatprep.subr.bf16.mxu0 %v12202_v59 }
 0x258   :  { %1780 = vmatprep.subr.bf16.mxu1 %v12201_v58 }
 0x25a   :  { %1806 = vmatpush1.bf16.msra.mxu0 %v8399_v42 }
 0x25b   :  { %1781 = vmatpush2.bf16.msra.mxu1 %v12203_v2  ;;  %1867 = vmatprep.subr.bf16.mxu0 %v8643_v3 }
 0x25c   :  { %1908 = vmatprep.subr.bf16.mxu1 %v8646_v4 }
 0x25d   :  { %v1427_v7 = vpop.f32.mrf.mxu0  ;;  %1824 = vmatmul.mubr.bf16.vlgmr.msra.gmra.mxu0 %v8559_v23 }
 0x25e   :  { %v1386_v6 = vpop.f32.mrf.mxu1  ;;  %1783 = vmatmul.mubr.bf16.vlgmr.msra.gmra.mxu1 %v8551_v21  ;;  %1868 = vmatpush1.bf16.msra.mxu0 %v8654_v9 }
 0x25f   :  { %v1428_v8 = vadd.f32 %v1427_v7, %v1386_v6  ;;  %1909 = vmatpush1.bf16.msra.mxu1 %v8657_v10  ;;  %v1429_v12 = vpop.f32.mrf.mxu0  ;;  %1869 = vmatprep.subr.bf16.mxu0 %v8660_v13  ;;  %v8723_v6 = vld [vmem:[#allocation3 + $0x240] ss:$16 sps:$4 sm:$0xff]   ;;  %v8726_v7 = vld [vmem:[#allocation3 + $0x24] ss:$16 sps:$4 sm:$0xff]  }
 0x260   :  { %v1388_v11 = vpop.f32.mrf.mxu1  ;;  %1910 = vmatprep.subr.bf16.mxu1 %v8663_v14  ;;  %1940 = vmatprep.mubr.bf16.mxu1 %v11947_v63 }
 0x261   :  { %v1430_v21 = vadd.f32 %v1429_v12, %v1388_v11  ;;  %1899 = vmatprep.mubr.bf16.mxu0 %v8650_v5  ;;  %v1431_v15 = vpop.f32.mrf.mxu0  ;;  %v8734_v11 = vrot.slane %v8637_v61, %v7615_v34  ;;  %v8736_v12 = vld [vmem:[#allocation3 + $0x20] ss:$16 sps:$4 sm:$0xff]  }
 0x262   :  { %v1390_v23 = vpop.f32.mrf.mxu1  ;;  %1870 = vmatpush1.bf16.msra.mxu0 %v8668_v17  ;;  %v8745_v15 = vld [vmem:[#allocation3 + $0x204] ss:$16 sps:$4 sm:$0xff]  }
 0x263   :  { %v1435_v16 = vmax.f32 %v1428_v8, %v1430_v21  ;;  %1911 = vmatpush1.bf16.msra.mxu1 %v8671_v19  ;;  %v1432_v50 = vpop.f32.mrf.mxu0  ;;  %1871 = vmatprep.subr.bf16.mxu0 %v8674_v18  ;;  %v8729_v8 = vld [vmem:[#allocation3 + $0x224] ss:$16 sps:$4 sm:$0xff]   ;;  %v8739_v21 = vld [vmem:[#allocation3 + $0x220] ss:$16 sps:$4 sm:$0xff]   ;;  %12208 = vst [vmem:[#allocation23_spill] sm:$0xff] %v8745_v15  ;;  %v8750_v61 = vcombine.high %v8734_v11, %v8734_v11 }
 0x264   :  { %v1391_v49 = vpop.f32.mrf.mxu1  ;;  %1912 = vmatprep.subr.bf16.mxu1 %v8677_v25  ;;  %12206 = vst [vmem:[#allocation44_spill] sm:$0xff] %v8739_v21  ;;  %v8742_v23 = vld [vmem:[#allocation3 + $0x4] ss:$16 sps:$4 sm:$0xff]  }
 0x265   :  { %v1436_v26 = vmax.f32 %v1434_v30, %v1435_v16  ;;  %v8714_v30 = vld [vmem:[#allocation3 + $0x44] ss:$16 sps:$4 sm:$0xff]   ;;  %12207 = vst [vmem:[#allocation57_spill] sm:$0xff] %v8742_v23  ;;  %v8752_v16 = vld [vmem:[#allocation3] ss:$16 sps:$4 sm:$0xff]  }
 0x266   :  { %1872 = vmatpush1.bf16.msra.mxu0 %v8684_v36  ;;  %12209 = vst [vmem:[#allocation12_spill] sm:$0xff] %v8752_v16  ;;  %v8755_v49 = vld [vmem:[#allocation3 + $0x200] ss:$16 sps:$4 sm:$0xff]   ;;  %v8758_v50 = vld [vmem:[#allocation3 + $0x1e4] ss:$16 sps:$4 sm:$0xff]  }
 0x267   :  { %v1437_v29 = vadd.f32 %v8248_v41, %v1436_v26  ;;  %1913 = vmatpush1.bf16.msra.mxu1 %v8687_v33  ;;  %1873 = vmatprep.subr.bf16.mxu0 %v8690_v52  ;;  %v8699_v41 = vld [vmem:[#allocation3 + $0x280] ss:$16 sps:$4 sm:$0xff]   ;;  %12210 = vst [vmem:[#allocation13_spill] sm:$0xff] %v8755_v49  ;;  %12211 = vst [vmem:[#allocation28_spill] sm:$0xff] %v8758_v50  ;;  %v8761_v26 = vld [vmem:[#allocation3 + $0xec] ss:$16 sps:$4 sm:$0xff]  }
 0x268   :  { %1914 = vmatprep.subr.bf16.mxu1 %v8693_v37  ;;  %12212 = vst [vmem:[#allocation29_spill] sm:$0xff] %v8761_v26 }
 0x269   :  { %v1438_v60 = vmax.f32 %v1437_v29, 0.0 }
 0x26a   :  { %1874 = vmatpush1.bf16.msra.mxu0 %v8696_v62 }
 0x26b   :  { %v1439_v28 = vpack.c.bf16 %v1438_v60, %v1438_v60  ;;  %1915 = vmatpush1.bf16.msra.mxu1 %v8699_v41  ;;  %1875 = vmatprep.subr.bf16.mxu0 %v8702_v22  ;;  %v8767_v60 = vld [vmem:[#allocation3 + $0x1e0] ss:$16 sps:$4 sm:$0xff]  }
 0x26c   :  { %1916 = vmatprep.subr.bf16.mxu1 %v8705_v35  ;;  %12213 = vst [vmem:[#allocation30_spill] sm:$0xff] %v8767_v60 }
 0x26d   :  { %1440 = vst [vmem:[#allocation2 + $0x3] sm:$0x1] %v1439_v28  ;;  %v8770_v28 = vld [vmem:[#allocation3 + $0xe8] ss:$16 sps:$4 sm:$0xff]  }
 0x26e   :  { %1876 = vmatpush1.bf16.msra.mxu0 %v8708_v43  ;;  %12214 = vst [vmem:[#allocation31_spill] sm:$0xff] %v8770_v28 }
 0x26f   :  { %1917 = vmatpush1.bf16.msra.mxu1 %v8711_v24  ;;  %1877 = vmatprep.subr.bf16.mxu0 %v8714_v30 }
 0x270   :  { %1918 = vmatprep.subr.bf16.mxu1 %v8717_v55 }
 0x272   :  { %1878 = vmatpush1.bf16.msra.mxu0 %v8720_v1 }
 0x273   :  { %1919 = vmatpush1.bf16.msra.mxu1 %v8723_v6  ;;  %1879 = vmatprep.subr.bf16.mxu0 %v8726_v7 }
 0x274   :  { %1920 = vmatprep.subr.bf16.mxu1 %v8729_v8 }
 0x276   :  { %1880 = vmatpush1.bf16.msra.mxu0 %v8736_v12 }
 0x277   :  { %1921 = vmatpush1.bf16.msra.mxu1 %v8739_v21  ;;  %1881 = vmatprep.subr.bf16.mxu0 %v8742_v23  ;;  %v8788_v23 = vld [vmem:[#allocation3 + $0x1a4] ss:$16 sps:$4 sm:$0xff]   ;;  %v8888_v21 = vld [vmem:[#allocation3 + $0x1c8] ss:$16 sps:$4 sm:$0xff]  }
 0x278   :  { %1922 = vmatprep.subr.bf16.mxu1 %v8745_v15  ;;  %v8782_v15 = vld [vmem:[#allocation3 + $0x1c0] ss:$16 sps:$4 sm:$0xff]   ;;  %12219 = vst [vmem:[#allocation36_spill] sm:$0xff] %v8788_v23 }
 0x279   :  { %12217 = vst [vmem:[#allocation34_spill] sm:$0xff] %v8782_v15 }
 0x27a   :  { %1882 = vmatpush1.bf16.msra.mxu0 %v8752_v16  ;;  %v8775_v16 = vld [vmem:[#allocation3 + $0x1c4] ss:$16 sps:$4 sm:$0xff]  }
 0x27b   :  { %1923 = vmatpush1.bf16.msra.mxu1 %v8755_v49  ;;  %1883 = vmatprep.subr.bf16.mxu0 %v8758_v50  ;;  %12215 = vst [vmem:[#allocation32_spill] sm:$0xff] %v8775_v16  ;;  %v8778_v50 = vld [vmem:[#allocation3 + $0xcc] ss:$16 sps:$4 sm:$0xff]  }
 0x27c   :  { %1949 = vmatprep.subr.bf16.mxu1 %v8761_v26  ;;  %12216 = vst [vmem:[#allocation33_spill] sm:$0xff] %v8778_v50 }
 0x27e   :  { %v8764_v29 = vpop.f32.mrf.mxu1  ;;  %1941 = vmatmul.mubr.bf16.vlgmr.msra.gmra.mxu1 %v8750_v61  ;;  %1884 = vmatpush2.bf16.msra.mxu0 %v8767_v60  ;;  %v8785_v60 = vld [vmem:[#allocation3 + $0xc8] ss:$16 sps:$4 sm:$0xff]  }
 0x27f   :  { %1950 = vmatpush1.bf16.msra.mxu1 %v8770_v28  ;;  %1885 = vmatprep.subr.bf16.mxu0 %v8775_v16  ;;  %12218 = vst [vmem:[#allocation35_spill] sm:$0xff] %v8785_v60  ;;  %v8791_v16 = vld [vmem:[#allocation3 + $0xac] ss:$16 sps:$4 sm:$0xff]  }
 0x280   :  { %v8773_v49 = vpop.f32.mrf.mxu1  ;;  %1951 = vmatprep.subr.bf16.mxu1 %v8778_v50  ;;  %1981 = vmatprep.mubr.bf16.mxu1 %v8650_v5  ;;  %12220 = vst [vmem:[#allocation37_spill] sm:$0xff] %v8791_v16  ;;  %v8794_v50 = vld [vmem:[#allocation3 + $0x1a0] ss:$16 sps:$4 sm:$0xff]   ;;  %v8797_v5 = vld [vmem:[#allocation3 + $0xa8] ss:$16 sps:$4 sm:$0xff]  }
 0x281   :  { %12221 = vst [vmem:[#allocation38_spill] sm:$0xff] %v8794_v50  ;;  %12222 = vst [vmem:[#allocation40_spill] sm:$0xff] %v8797_v5 }
 0x282   :  { %v1548_v26 = vpop.f32.mrf.mxu1  ;;  %1886 = vmatpush2.bf16.msra.mxu0 %v8782_v15 }
 0x283   :  { %1952 = vmatpush1.bf16.msra.mxu1 %v8785_v60  ;;  %1887 = vmatprep.subr.bf16.mxu0 %v8788_v23  ;;  %v8800_v26 = vld [vmem:[#allocation3 + $0x184] ss:$16 sps:$4 sm:$0xff]   ;;  %v8806_v23 = vld [vmem:[#allocation3 + $0x180] ss:$16 sps:$4 sm:$0xff]   ;;  %v8873_v60 = vld [vmem:[#allocation3 + $0x1cc] ss:$16 sps:$4 sm:$0xff]  }
 0x284   :  { %v1549_v28 = vpop.f32.mrf.mxu1  ;;  %1953 = vmatprep.subr.bf16.mxu1 %v8791_v16  ;;  %12223 = vst [vmem:[#allocation41_spill] sm:$0xff] %v8800_v26  ;;  %12225 = vst [vmem:[#allocation45_spill] sm:$0xff] %v8806_v23  ;;  %v8809_v16 = vld [vmem:[#allocation3 + $0x88] ss:$16 sps:$4 sm:$0xff]  }
 0x285   :  { %v8803_v28 = vld [vmem:[#allocation3 + $0x8c] ss:$16 sps:$4 sm:$0xff]   ;;  %12226 = vst [vmem:[#allocation46_spill] sm:$0xff] %v8809_v16  ;;  %12247 = vst [vmem:[#allocation25_spill] sm:$0xff] %v8873_v60 }
 0x286   :  { %1888 = vmatpush2.bf16.msra.mxu0 %v8794_v50  ;;  %12224 = vst [vmem:[#allocation42_spill] sm:$0xff] %v8803_v28  ;;  %v8812_v50 = vld [vmem:[#allocation3 + $0x164] ss:$16 sps:$4 sm:$0xff]  }
 0x287   :  { %1954 = vmatpush1.bf16.msra.mxu1 %v8797_v5  ;;  %1889 = vmatprep.subr.bf16.mxu0 %v8800_v26  ;;  %12227 = vst [vmem:[#allocation47_spill] sm:$0xff] %v8812_v50  ;;  %v8815_v5 = vld [vmem:[#allocation3 + $0x6c] ss:$16 sps:$4 sm:$0xff]   ;;  %v8818_v26 = vld [vmem:[#allocation3 + $0x160] ss:$16 sps:$4 sm:$0xff]  }
 0x288   :  { %1955 = vmatprep.subr.bf16.mxu1 %v8803_v28  ;;  %12228 = vst [vmem:[#allocation48_spill] sm:$0xff] %v8815_v5  ;;  %12229 = vst [vmem:[#allocation49_spill] sm:$0xff] %v8818_v26  ;;  %v8821_v28 = vld [vmem:[#allocation3 + $0x68] ss:$16 sps:$4 sm:$0xff]  }
 0x289   :  { %12230 = vst [vmem:[#allocation50_spill] sm:$0xff] %v8821_v28 }
 0x28a   :  { %1890 = vmatpush2.bf16.msra.mxu0 %v8806_v23  ;;  %v8824_v23 = vld [vmem:[#allocation3 + $0x144] ss:$16 sps:$4 sm:$0xff]  }
 0x28b   :  { %1956 = vmatpush1.bf16.msra.mxu1 %v8809_v16  ;;  %1891 = vmatprep.subr.bf16.mxu0 %v8812_v50  ;;  %12231 = vst [vmem:[#allocation51_spill] sm:$0xff] %v8824_v23  ;;  %v8827_v16 = vld [vmem:[#allocation3 + $0x4c] ss:$16 sps:$4 sm:$0xff]   ;;  %v8830_v50 = vld [vmem:[#allocation3 + $0x140] ss:$16 sps:$4 sm:$0xff]  }
 0x28c   :  { %1957 = vmatprep.subr.bf16.mxu1 %v8815_v5  ;;  %12232 = vst [vmem:[#allocation52_spill] sm:$0xff] %v8827_v16  ;;  %12233 = vst [vmem:[#allocation53_spill] sm:$0xff] %v8830_v50  ;;  %v8833_v5 = vld [vmem:[#allocation3 + $0x48] ss:$16 sps:$4 sm:$0xff]  }
 0x28d   :  { %12234 = vst [vmem:[#allocation54_spill] sm:$0xff] %v8833_v5 }
 0x28e   :  { %1892 = vmatpush2.bf16.msra.mxu0 %v8818_v26  ;;  %v8836_v26 = vld [vmem:[#allocation3 + $0x124] ss:$16 sps:$4 sm:$0xff]  }
 0x28f   :  { %1958 = vmatpush1.bf16.msra.mxu1 %v8821_v28  ;;  %1893 = vmatprep.subr.bf16.mxu0 %v8824_v23  ;;  %12235 = vst [vmem:[#allocation55_spill] sm:$0xff] %v8836_v26  ;;  %v8839_v28 = vld [vmem:[#allocation3 + $0x2c] ss:$16 sps:$4 sm:$0xff]   ;;  %v8842_v23 = vld [vmem:[#allocation3 + $0x120] ss:$16 sps:$4 sm:$0xff]  }
 0x290   :  { %1959 = vmatprep.subr.bf16.mxu1 %v8827_v16  ;;  %12236 = vst [vmem:[#allocation56_spill] sm:$0xff] %v8839_v28  ;;  %12237 = vst [vmem:[#allocation14_spill] sm:$0xff] %v8842_v23  ;;  %v8845_v16 = vld [vmem:[#allocation3 + $0x28] ss:$16 sps:$4 sm:$0xff]  }
 0x291   :  { %12238 = vst [vmem:[#allocation15_spill] sm:$0xff] %v8845_v16 }
 0x292   :  { %1894 = vmatpush2.bf16.msra.mxu0 %v8830_v50  ;;  %v8848_v50 = vld [vmem:[#allocation3 + $0x104] ss:$16 sps:$4 sm:$0xff]  }
 0x293   :  { %1960 = vmatpush1.bf16.msra.mxu1 %v8833_v5  ;;  %1895 = vmatprep.subr.bf16.mxu0 %v8836_v26  ;;  %12239 = vst [vmem:[#allocation16_spill] sm:$0xff] %v8848_v50  ;;  %v8851_v5 = vld [vmem:[#allocation3 + $0xc] ss:$16 sps:$4 sm:$0xff]   ;;  %v8854_v26 = vld [vmem:[#allocation3 + $0x100] ss:$16 sps:$4 sm:$0xff]  }
 0x294   :  { %1961 = vmatprep.subr.bf16.mxu1 %v8839_v28  ;;  %12240 = vst [vmem:[#allocation17_spill] sm:$0xff] %v8851_v5  ;;  %12241 = vst [vmem:[#allocation18_spill] sm:$0xff] %v8854_v26  ;;  %v8857_v28 = vld [vmem:[#allocation3 + $0x8] ss:$16 sps:$4 sm:$0xff]  }
 0x295   :  { %12242 = vst [vmem:[#allocation19_spill] sm:$0xff] %v8857_v28 }
 0x296   :  { %1896 = vmatpush2.bf16.msra.mxu0 %v8842_v23  ;;  %v8860_v23 = vld [vmem:[#allocation3 + $0x1ec] ss:$16 sps:$4 sm:$0xff]  }
 0x297   :  { %1962 = vmatpush1.bf16.msra.mxu1 %v8845_v16  ;;  %1897 = vmatprep.subr.bf16.mxu0 %v8848_v50  ;;  %12243 = vst [vmem:[#allocation20_spill] sm:$0xff] %v8860_v23  ;;  %v8863_v16 = vld [vmem:[#allocation3 + $0x2ec] ss:$16 sps:$4 sm:$0xff]  }
 0x298   :  { %1963 = vmatprep.subr.bf16.mxu1 %v8851_v5  ;;  %12244 = vst [vmem:[#allocation21_spill] sm:$0xff] %v8863_v16  ;;  %v8867_v5 = vld [vmem:[#allocation3 + $0x1e8] ss:$16 sps:$4 sm:$0xff]  }
 0x299   :  { %12245 = vst [vmem:[#allocation22_spill] sm:$0xff] %v8867_v5 }
 0x29a   :  { %1898 = vmatpush2.bf16.msra.mxu0 %v8854_v26  ;;  %v8870_v26 = vld [vmem:[#allocation3 + $0x2e8] ss:$16 sps:$4 sm:$0xff]  }
 0x29b   :  { %1964 = vmatpush1.bf16.msra.mxu1 %v8857_v28  ;;  %1990 = vmatprep.subr.bf16.mxu0 %v8863_v16  ;;  %12246 = vst [vmem:[#allocation24_spill] sm:$0xff] %v8870_v26 }
 0x29c   :  { %1965 = vmatprep.subr.bf16.mxu1 %v8860_v23  ;;  %v8876_v23 = vld [vmem:[#allocation3 + $0x2cc] ss:$16 sps:$4 sm:$0xff]  }
 0x29d   :  { %v1503_v50 = vpop.f32.mrf.mxu0  ;;  %1900 = vmatmul.mubr.bf16.vlgmr.msra.gmra.mxu0 %v8734_v11  ;;  %12248 = vst [vmem:[#allocation26_spill] sm:$0xff] %v8876_v23 }
 0x29e   :  { %1991 = vmatpush1.bf16.msra.mxu0 %v8870_v26  ;;  %v8880_v16 = vadd.f32 %v8764_v29, %v1503_v50  ;;  %2022 = vmatprep.mubr.bf16.mxu0 %v11947_v63  ;;  %v8894_v50 = vld [vmem:[#allocation3 + $0x1ac] ss:$16 sps:$4 sm:$0xff]  }
 0x29f   :  { %1966 = vmatpush2.bf16.msra.mxu1 %v8867_v5  ;;  %v1505_v28 = vpop.f32.mrf.mxu0  ;;  %1992 = vmatprep.subr.bf16.mxu0 %v8876_v23  ;;  %v12256_v29 = vld [vmem:[#allocation29_spill] sm:$0xff] }
 0x2a0   :  { %1967 = vmatprep.subr.bf16.mxu1 %v8873_v60  ;;  %v8883_v15 = vadd.f32 %v8773_v49, %v1505_v28  ;;  %v8891_v60 = vld [vmem:[#allocation3 + $0x2c8] ss:$16 sps:$4 sm:$0xff]   ;;  %v8897_v49 = vld [vmem:[#allocation3 + $0x2ac] ss:$16 sps:$4 sm:$0xff]  }
 0x2a1   :  { %v1507_v5 = vpop.f32.mrf.mxu0  ;;  %12249 = vst [vmem:[#allocation27_spill] sm:$0xff] %v8897_v49  ;;  %v12258_v28 = vld [vmem:[#allocation31_spill] sm:$0xff] }
 0x2a2   :  { %v1633_v26 = vmax.f32 %v8880_v16, %v8883_v15  ;;  %1993 = vmatpush1.bf16.msra.mxu0 %v8891_v60  ;;  %v12253_v15 = vld [vmem:[#allocation12_spill] sm:$0xff] }
 0x2a3   :  { %1968 = vmatpush2.bf16.msra.mxu1 %v8888_v21  ;;  %v1508_v23 = vpop.f32.mrf.mxu0  ;;  %1994 = vmatprep.subr.bf16.mxu0 %v8897_v49  ;;  %v12255_v16 = vld [vmem:[#allocation28_spill] sm:$0xff] }
 0x2a4   :  { %1969 = vmatprep.subr.bf16.mxu1 %v8894_v50 }
 0x2a6   :  { %1995 = vmatpush1.bf16.msra.mxu0 %v12185_v54 }
 0x2a7   :  { %1970 = vmatpush2.bf16.msra.mxu1 %v12184_v45  ;;  %1996 = vmatprep.subr.bf16.mxu0 %v12187_v0 }
 0x2a8   :  { %1971 = vmatprep.subr.bf16.mxu1 %v12186_v32 }
 0x2aa   :  { %1997 = vmatpush1.bf16.msra.mxu0 %v12189_v40 }
 0x2ab   :  { %1972 = vmatpush2.bf16.msra.mxu1 %v12188_v53  ;;  %1998 = vmatprep.subr.bf16.mxu0 %v12191_v51 }
 0x2ac   :  { %1973 = vmatprep.subr.bf16.mxu1 %v12190_v20 }
 0x2ae   :  { %1999 = vmatpush1.bf16.msra.mxu0 %v12144_v39  ;;  %v6065_v39 = vld.sshfl [vmem:[%s11331_s0 + $0x7] sm:$0x13 pattern:$0x75316420] }
 0x2af   :  { %1974 = vmatpush2.bf16.msra.mxu1 %v12192_v27  ;;  %2000 = vmatprep.subr.bf16.mxu0 %v12194_v44  ;;  %v2047_v45 = vcombine.high %v6065_v39, %v6065_v39 }
 0x2b0   :  { %1975 = vmatprep.subr.bf16.mxu1 %v12193_v31 }
 0x2b1   :  { %v2061_v54 = vrot.slane %v2047_v45, %v7615_v34  ;;  %v12259_v45 = vld [vmem:[#allocation32_spill] sm:$0xff] }
 0x2b2   :  { %2001 = vmatpush1.bf16.msra.mxu0 %v12196_v48 }
 0x2b3   :  { %1976 = vmatpush2.bf16.msra.mxu1 %v12195_v38  ;;  %2002 = vmatprep.subr.bf16.mxu0 %v12198_v56 }
 0x2b4   :  { %1977 = vmatprep.subr.bf16.mxu1 %v12197_v46  ;;  %v8942_v46 = vld [vmem:[%s11333_s2] ss:$0 sm:$0xff] }
 0x2b6   :  { %2003 = vmatpush1.bf16.msra.mxu0 %v12200_v57 }
 0x2b7   :  { %1978 = vmatpush2.bf16.msra.mxu1 %v12199_v47  ;;  %2004 = vmatprep.subr.bf16.mxu0 %v12202_v59  ;;  %v12250_v59 = vld [vmem:[#allocation44_spill] sm:$0xff] }
 0x2b8   :  { %1979 = vmatprep.subr.bf16.mxu1 %v12201_v58  ;;  %v8962_v58 = vrot.slane %v6065_v39, %v7615_v34 }
 0x2ba   :  { %2005 = vmatpush1.bf16.msra.mxu0 %v8399_v42  ;;  %v8970_v23 = vcombine.high %v8962_v58, %v8962_v58 }
 0x2bb   :  { %1980 = vmatpush2.bf16.msra.mxu1 %v12203_v2  ;;  %2066 = vmatprep.subr.bf16.mxu0 %v8643_v3  ;;  %v12251_v2 = vld [vmem:[#allocation57_spill] sm:$0xff] }
 0x2bc   :  { %2107 = vmatprep.subr.bf16.mxu1 %v8646_v4 }
 0x2bd   :  { %v1626_v0 = vpop.f32.mrf.mxu0  ;;  %2023 = vmatmul.mubr.bf16.vlgmr.msra.gmra.mxu0 %v8750_v61  ;;  %v12254_v61 = vld [vmem:[#allocation13_spill] sm:$0xff] }
 0x2be   :  { %v1585_v32 = vpop.f32.mrf.mxu1  ;;  %1982 = vmatmul.mubr.bf16.vlgmr.msra.gmra.mxu1 %v8734_v11  ;;  %2067 = vmatpush1.bf16.msra.mxu0 %v8654_v9  ;;  %v12252_v11 = vld [vmem:[#allocation23_spill] sm:$0xff] }
 0x2bf   :  { %v1627_v53 = vadd.f32 %v1626_v0, %v1585_v32  ;;  %2108 = vmatpush1.bf16.msra.mxu1 %v8657_v10  ;;  %v1628_v20 = vpop.f32.mrf.mxu0  ;;  %2068 = vmatprep.subr.bf16.mxu0 %v8660_v13  ;;  %v12260_v32 = vld [vmem:[#allocation33_spill] sm:$0xff] }
 0x2c0   :  { %v1587_v40 = vpop.f32.mrf.mxu1  ;;  %2109 = vmatprep.subr.bf16.mxu1 %v8663_v14  ;;  %2139 = vmatprep.mubr.bf16.mxu1 %v11947_v63 }
 0x2c1   :  { %v1629_v42 = vadd.f32 %v1628_v20, %v1587_v40  ;;  %2098 = vmatprep.mubr.bf16.mxu0 %v2061_v54  ;;  %v1630_v27 = vpop.f32.mrf.mxu0  ;;  %v12262_v40 = vld [vmem:[#allocation35_spill] sm:$0xff] }
 0x2c2   :  { %v1589_v51 = vpop.f32.mrf.mxu1  ;;  %2069 = vmatpush1.bf16.msra.mxu0 %v8668_v17  ;;  %v12265_v27 = vld [vmem:[#allocation38_spill] sm:$0xff] }
 0x2c3   :  { %v1634_v31 = vmax.f32 %v1627_v53, %v1629_v42  ;;  %2110 = vmatpush1.bf16.msra.mxu1 %v8671_v19  ;;  %v1631_v38 = vpop.f32.mrf.mxu0  ;;  %2070 = vmatprep.subr.bf16.mxu0 %v8674_v18  ;;  %v12261_v53 = vld [vmem:[#allocation34_spill] sm:$0xff]  ;;  %v12263_v42 = vld [vmem:[#allocation36_spill] sm:$0xff]  ;;  %v12264_v51 = vld [vmem:[#allocation37_spill] sm:$0xff] }
 0x2c4   :  { %v1590_v44 = vpop.f32.mrf.mxu1  ;;  %2111 = vmatprep.subr.bf16.mxu1 %v8677_v25  ;;  %v12268_v38 = vld [vmem:[#allocation42_spill] sm:$0xff] }
 0x2c5   :  { %v1635_v48 = vmax.f32 %v1633_v26, %v1634_v31  ;;  %v12257_v26 = vld [vmem:[#allocation30_spill] sm:$0xff]  ;;  %v12266_v31 = vld [vmem:[#allocation40_spill] sm:$0xff]  ;;  %v12267_v44 = vld [vmem:[#allocation41_spill] sm:$0xff] }
 0x2c6   :  { %2071 = vmatpush1.bf16.msra.mxu0 %v8684_v36 }
 0x2c7   :  { %v1636_v56 = vadd.f32 %v8942_v46, %v1635_v48  ;;  %2112 = vmatpush1.bf16.msra.mxu1 %v8687_v33  ;;  %2072 = vmatprep.subr.bf16.mxu0 %v8690_v52  ;;  %v12269_v48 = vld [vmem:[#allocation45_spill] sm:$0xff] }
 0x2c8   :  { %2113 = vmatprep.subr.bf16.mxu1 %v8693_v37 }
 0x2c9   :  { %v1637_v47 = vmax.f32 %v1636_v56, 0.0  ;;  %v12271_v56 = vld [vmem:[#allocation47_spill] sm:$0xff] }
 0x2ca   :  { %2073 = vmatpush1.bf16.msra.mxu0 %v8696_v62 }
 0x2cb   :  { %v1638_v57 = vpack.c.bf16 %v1637_v47, %v1637_v47  ;;  %2114 = vmatpush1.bf16.msra.mxu1 %v8699_v41  ;;  %2074 = vmatprep.subr.bf16.mxu0 %v8702_v22  ;;  %v12272_v47 = vld [vmem:[#allocation48_spill] sm:$0xff] }
 0x2cc   :  { %2115 = vmatprep.subr.bf16.mxu1 %v8705_v35 }
 0x2cd   :  { %1639 = vst [vmem:[#allocation2 + $0x4] sm:$0x1] %v1638_v57  ;;  %v12273_v57 = vld [vmem:[#allocation49_spill] sm:$0xff] }
 0x2ce   :  { %2075 = vmatpush1.bf16.msra.mxu0 %v8708_v43 }
 0x2cf   :  { %2116 = vmatpush1.bf16.msra.mxu1 %v8711_v24  ;;  %2076 = vmatprep.subr.bf16.mxu0 %v8714_v30 }
 0x2d0   :  { %2117 = vmatprep.subr.bf16.mxu1 %v8717_v55 }
 0x2d2   :  { %2077 = vmatpush1.bf16.msra.mxu0 %v8720_v1 }
 0x2d3   :  { %2118 = vmatpush1.bf16.msra.mxu1 %v8723_v6  ;;  %2078 = vmatprep.subr.bf16.mxu0 %v8726_v7 }
 0x2d4   :  { %2119 = vmatprep.subr.bf16.mxu1 %v8729_v8 }
 0x2d6   :  { %2079 = vmatpush1.bf16.msra.mxu0 %v8736_v12 }
 0x2d7   :  { %2120 = vmatpush1.bf16.msra.mxu1 %v12250_v59  ;;  %2080 = vmatprep.subr.bf16.mxu0 %v12251_v2 }
 0x2d8   :  { %2121 = vmatprep.subr.bf16.mxu1 %v12252_v11 }
 0x2da   :  { %2081 = vmatpush1.bf16.msra.mxu0 %v12253_v15 }
 0x2db   :  { %2122 = vmatpush1.bf16.msra.mxu1 %v12254_v61  ;;  %2082 = vmatprep.subr.bf16.mxu0 %v12255_v16 }
 0x2dc   :  { %2148 = vmatprep.subr.bf16.mxu1 %v12256_v29 }
 0x2de   :  { %v1743_v5 = vpop.f32.mrf.mxu1  ;;  %2140 = vmatmul.mubr.bf16.vlgmr.msra.gmra.mxu1 %v8970_v23  ;;  %2083 = vmatpush2.bf16.msra.mxu0 %v12257_v26 }
 0x2df   :  { %2149 = vmatpush1.bf16.msra.mxu1 %v12258_v28  ;;  %2084 = vmatprep.subr.bf16.mxu0 %v12259_v45 }
 0x2e0   :  { %v1745_v39 = vpop.f32.mrf.mxu1  ;;  %2150 = vmatprep.subr.bf16.mxu1 %v12260_v32  ;;  %2180 = vmatprep.mubr.bf16.mxu1 %v2061_v54  ;;  %v12270_v54 = vld [vmem:[#allocation46_spill] sm:$0xff] }
 0x2e2   :  { %v1747_v0 = vpop.f32.mrf.mxu1  ;;  %2085 = vmatpush2.bf16.msra.mxu0 %v12261_v53 }
 0x2e3   :  { %2151 = vmatpush1.bf16.msra.mxu1 %v12262_v40  ;;  %2086 = vmatprep.subr.bf16.mxu0 %v12263_v42  ;;  %v12274_v0 = vld [vmem:[#allocation50_spill] sm:$0xff] }
 0x2e4   :  { %v1748_v20 = vpop.f32.mrf.mxu1  ;;  %2152 = vmatprep.subr.bf16.mxu1 %v12264_v51 }
 0x2e5   :  { %v12275_v20 = vld [vmem:[#allocation51_spill] sm:$0xff] }
 0x2e6   :  { %2087 = vmatpush2.bf16.msra.mxu0 %v12265_v27  ;;  %v12276_v27 = vld [vmem:[#allocation52_spill] sm:$0xff] }
 0x2e7   :  { %2153 = vmatpush1.bf16.msra.mxu1 %v12266_v31  ;;  %2088 = vmatprep.subr.bf16.mxu0 %v12267_v44  ;;  %v12277_v31 = vld [vmem:[#allocation53_spill] sm:$0xff]  ;;  %v12278_v44 = vld [vmem:[#allocation54_spill] sm:$0xff] }
 0x2e8   :  { %2154 = vmatprep.subr.bf16.mxu1 %v12268_v38  ;;  %v12279_v38 = vld [vmem:[#allocation55_spill] sm:$0xff] }
 0x2ea   :  { %2089 = vmatpush2.bf16.msra.mxu0 %v12269_v48  ;;  %v12280_v48 = vld [vmem:[#allocation56_spill] sm:$0xff] }
 0x2eb   :  { %2155 = vmatpush1.bf16.msra.mxu1 %v12270_v54  ;;  %2090 = vmatprep.subr.bf16.mxu0 %v12271_v56  ;;  %v12281_v54 = vld [vmem:[#allocation14_spill] sm:$0xff]  ;;  %v12282_v56 = vld [vmem:[#allocation15_spill] sm:$0xff] }
 0x2ec   :  { %2156 = vmatprep.subr.bf16.mxu1 %v12272_v47  ;;  %v12283_v47 = vld [vmem:[#allocation16_spill] sm:$0xff] }
 0x2ee   :  { %2091 = vmatpush2.bf16.msra.mxu0 %v12273_v57  ;;  %v12284_v57 = vld [vmem:[#allocation17_spill] sm:$0xff] }
 0x2ef   :  { %2157 = vmatpush1.bf16.msra.mxu1 %v12274_v0  ;;  %2092 = vmatprep.subr.bf16.mxu0 %v12275_v20  ;;  %v12285_v0 = vld [vmem:[#allocation18_spill] sm:$0xff]  ;;  %v12286_v20 = vld [vmem:[#allocation19_spill] sm:$0xff] }
 0x2f0   :  { %2158 = vmatprep.subr.bf16.mxu1 %v12276_v27  ;;  %v12287_v27 = vld [vmem:[#allocation20_spill] sm:$0xff] }
 0x2f2   :  { %2093 = vmatpush2.bf16.msra.mxu0 %v12277_v31  ;;  %v12288_v31 = vld [vmem:[#allocation21_spill] sm:$0xff] }
 0x2f3   :  { %2159 = vmatpush1.bf16.msra.mxu1 %v12278_v44  ;;  %2094 = vmatprep.subr.bf16.mxu0 %v12279_v38  ;;  %v12291_v38 = vld [vmem:[#allocation25_spill] sm:$0xff] }
 0x2f4   :  { %2160 = vmatprep.subr.bf16.mxu1 %v12280_v48  ;;  %v12289_v48 = vld [vmem:[#allocation22_spill] sm:$0xff] }
 0x2f6   :  { %2095 = vmatpush2.bf16.msra.mxu0 %v12281_v54  ;;  %v12290_v54 = vld [vmem:[#allocation24_spill] sm:$0xff] }
 0x2f7   :  { %2161 = vmatpush1.bf16.msra.mxu1 %v12282_v56  ;;  %2096 = vmatprep.subr.bf16.mxu0 %v12283_v47  ;;  %v12292_v47 = vld [vmem:[#allocation26_spill] sm:$0xff] }
 0x2f8   :  { %2162 = vmatprep.subr.bf16.mxu1 %v12284_v57 }
 0x2fa   :  { %2097 = vmatpush2.bf16.msra.mxu0 %v12285_v0 }
 0x2fb   :  { %2163 = vmatpush1.bf16.msra.mxu1 %v12286_v20  ;;  %2189 = vmatprep.subr.bf16.mxu0 %v12288_v31  ;;  %v9046_v31 = vld [vmem:[#allocation3 + $0x26c] ss:$16 sps:$4 sm:$0xff]  }
 0x2fc   :  { %2164 = vmatprep.subr.bf16.mxu1 %v12287_v27  ;;  %12300 = vst [vmem:[#allocation44_spill] sm:$0xff] %v9046_v31 }
 0x2fd   :  { %v1702_v44 = vpop.f32.mrf.mxu0  ;;  %2099 = vmatmul.mubr.bf16.vlgmr.msra.gmra.mxu0 %v8962_v58 }
 0x2fe   :  { %2190 = vmatpush1.bf16.msra.mxu0 %v12290_v54  ;;  %v9014_v57 = vadd.f32 %v1743_v5, %v1702_v44  ;;  %2221 = vmatprep.mubr.bf16.mxu0 %v11947_v63  ;;  %v9028_v5 = vld [vmem:[#allocation3 + $0x2a8] ss:$16 sps:$4 sm:$0xff]  }
 0x2ff   :  { %2165 = vmatpush2.bf16.msra.mxu1 %v12289_v48  ;;  %v1704_v56 = vpop.f32.mrf.mxu0  ;;  %2191 = vmatprep.subr.bf16.mxu0 %v12292_v47  ;;  %v9025_v47 = vld [vmem:[#allocation3 + $0x1a8] ss:$16 sps:$4 sm:$0xff]   ;;  %12294 = vst [vmem:[#allocation59_spill] sm:$0xff] %v9028_v5 }
 0x300   :  { %2166 = vmatprep.subr.bf16.mxu1 %v12291_v38  ;;  %v9016_v0 = vadd.f32 %v1745_v39, %v1704_v56  ;;  %12293 = vst [vmem:[#allocation58_spill] sm:$0xff] %v9025_v47  ;;  %v9031_v39 = vld [vmem:[#allocation3 + $0x18c] ss:$16 sps:$4 sm:$0xff]   ;;  %v9037_v44 = vld [vmem:[#allocation3 + $0x188] ss:$16 sps:$4 sm:$0xff]  }
 0x301   :  { %v1706_v27 = vpop.f32.mrf.mxu0  ;;  %12295 = vst [vmem:[#allocation60_spill] sm:$0xff] %v9031_v39  ;;  %12297 = vst [vmem:[#allocation62_spill] sm:$0xff] %v9037_v44  ;;  %v9043_v56 = vld [vmem:[#allocation3 + $0x16c] ss:$16 sps:$4 sm:$0xff]  }
 0x302   :  { %2192 = vmatpush1.bf16.msra.mxu0 %v8891_v60  ;;  %v9034_v27 = vld [vmem:[#allocation3 + $0x28c] ss:$16 sps:$4 sm:$0xff]   ;;  %12299 = vst [vmem:[#allocation64_spill] sm:$0xff] %v9043_v56 }
 0x303   :  { %2167 = vmatpush2.bf16.msra.mxu1 %v8888_v21  ;;  %v1707_v54 = vpop.f32.mrf.mxu0  ;;  %2193 = vmatprep.subr.bf16.mxu0 %v8897_v49  ;;  %12296 = vst [vmem:[#allocation61_spill] sm:$0xff] %v9034_v27 }
 0x304   :  { %2168 = vmatprep.subr.bf16.mxu1 %v8894_v50  ;;  %v9040_v54 = vld [vmem:[#allocation3 + $0x288] ss:$16 sps:$4 sm:$0xff]  }
 0x305   :  { %12298 = vst [vmem:[#allocation63_spill] sm:$0xff] %v9040_v54 }
 0x306   :  { %2194 = vmatpush1.bf16.msra.mxu0 %v9028_v5  ;;  %v9088_v5 = vld [vmem:[#allocation3 + $0x108] ss:$16 sps:$4 sm:$0xff]  }
 0x307   :  { %2169 = vmatpush2.bf16.msra.mxu1 %v9025_v47  ;;  %2195 = vmatprep.subr.bf16.mxu0 %v9034_v27  ;;  %v9052_v27 = vld [vmem:[#allocation3 + $0x268] ss:$16 sps:$4 sm:$0xff]   ;;  %12313 = vst [vmem:[#allocation36_spill] sm:$0xff] %v9088_v5 }
 0x308   :  { %2170 = vmatprep.subr.bf16.mxu1 %v9031_v39  ;;  %v9049_v39 = vld [vmem:[#allocation3 + $0x168] ss:$16 sps:$4 sm:$0xff]   ;;  %12302 = vst [vmem:[#allocation23_spill] sm:$0xff] %v9052_v27 }
 0x309   :  { %12301 = vst [vmem:[#allocation57_spill] sm:$0xff] %v9049_v39 }
 0x30a   :  { %2196 = vmatpush1.bf16.msra.mxu0 %v9040_v54  ;;  %v9058_v54 = vld [vmem:[#allocation3 + $0x24c] ss:$16 sps:$4 sm:$0xff]  }
 0x30b   :  { %2171 = vmatpush2.bf16.msra.mxu1 %v9037_v44  ;;  %2197 = vmatprep.subr.bf16.mxu0 %v9046_v31  ;;  %v9055_v44 = vld [vmem:[#allocation3 + $0x14c] ss:$16 sps:$4 sm:$0xff]   ;;  %12304 = vst [vmem:[#allocation13_spill] sm:$0xff] %v9058_v54  ;;  %v9064_v31 = vld [vmem:[#allocation3 + $0x248] ss:$16 sps:$4 sm:$0xff]  }
 0x30c   :  { %2172 = vmatprep.subr.bf16.mxu1 %v9043_v56  ;;  %12303 = vst [vmem:[#allocation12_spill] sm:$0xff] %v9055_v44  ;;  %v9061_v56 = vld [vmem:[#allocation3 + $0x148] ss:$16 sps:$4 sm:$0xff]   ;;  %12306 = vst [vmem:[#allocation29_spill] sm:$0xff] %v9064_v31 }
 0x30d   :  { %12305 = vst [vmem:[#allocation28_spill] sm:$0xff] %v9061_v56 }
 0x30e   :  { %2198 = vmatpush1.bf16.msra.mxu0 %v9052_v27  ;;  %v9070_v27 = vld [vmem:[#allocation3 + $0x22c] ss:$16 sps:$4 sm:$0xff]  }
 0x30f   :  { %2173 = vmatpush2.bf16.msra.mxu1 %v9049_v39  ;;  %2199 = vmatprep.subr.bf16.mxu0 %v9058_v54  ;;  %v9067_v39 = vld [vmem:[#allocation3 + $0x12c] ss:$16 sps:$4 sm:$0xff]   ;;  %12308 = vst [vmem:[#allocation31_spill] sm:$0xff] %v9070_v27  ;;  %v9076_v54 = vld [vmem:[#allocation3 + $0x228] ss:$16 sps:$4 sm:$0xff]  }
 0x310   :  { %2174 = vmatprep.subr.bf16.mxu1 %v9055_v44  ;;  %12307 = vst [vmem:[#allocation30_spill] sm:$0xff] %v9067_v39  ;;  %v9073_v44 = vld [vmem:[#allocation3 + $0x128] ss:$16 sps:$4 sm:$0xff]   ;;  %12310 = vst [vmem:[#allocation33_spill] sm:$0xff] %v9076_v54 }
 0x311   :  { %12309 = vst [vmem:[#allocation32_spill] sm:$0xff] %v9073_v44 }
 0x312   :  { %2200 = vmatpush1.bf16.msra.mxu0 %v9064_v31  ;;  %v9082_v31 = vld [vmem:[#allocation3 + $0x20c] ss:$16 sps:$4 sm:$0xff]  }
 0x313   :  { %2175 = vmatpush2.bf16.msra.mxu1 %v9061_v56  ;;  %2201 = vmatprep.subr.bf16.mxu0 %v9070_v27  ;;  %v9079_v56 = vld [vmem:[#allocation3 + $0x10c] ss:$16 sps:$4 sm:$0xff]   ;;  %12312 = vst [vmem:[#allocation35_spill] sm:$0xff] %v9082_v31 }
 0x314   :  { %2176 = vmatprep.subr.bf16.mxu1 %v9067_v39  ;;  %12311 = vst [vmem:[#allocation34_spill] sm:$0xff] %v9079_v56  ;;  %v6066_v27 = vld.sshfl [vmem:[%s11331_s0 + $0x8] sm:$0x13 pattern:$0x75316420] }
 0x315   :  { %v2246_v39 = vcombine.high %v6066_v27, %v6066_v27 }
 0x316   :  { %2202 = vmatpush1.bf16.msra.mxu0 %v9076_v54 }
 0x317   :  { %2177 = vmatpush2.bf16.msra.mxu1 %v9073_v44  ;;  %2203 = vmatprep.subr.bf16.mxu0 %v9082_v31  ;;  %v9091_v44 = vld [vmem:[#allocation3 + $0x208] ss:$16 sps:$4 sm:$0xff]  }
 0x318   :  { %2178 = vmatprep.subr.bf16.mxu1 %v9079_v56  ;;  %v2260_v56 = vrot.slane %v2246_v39, %v7615_v34 }
 0x31a   :  { %2204 = vmatpush1.bf16.msra.mxu0 %v9091_v44 }
 0x31b   :  { %2179 = vmatpush2.bf16.msra.mxu1 %v9088_v5  ;;  %2265 = vmatprep.subr.bf16.mxu0 %v8643_v3 }
 0x31c   :  { %2306 = vmatprep.subr.bf16.mxu1 %v8646_v4 }
 0x31d   :  { %v1825_v54 = vpop.f32.mrf.mxu0  ;;  %2222 = vmatmul.mubr.bf16.vlgmr.msra.gmra.mxu0 %v8970_v23 }
 0x31e   :  { %v1784_v31 = vpop.f32.mrf.mxu1  ;;  %2181 = vmatmul.mubr.bf16.vlgmr.msra.gmra.mxu1 %v8962_v58  ;;  %2266 = vmatpush1.bf16.msra.mxu0 %v8654_v9 }
 0x31f   :  { %v1826_v47 = vadd.f32 %v1825_v54, %v1784_v31  ;;  %2307 = vmatpush1.bf16.msra.mxu1 %v8657_v10  ;;  %v1827_v49 = vpop.f32.mrf.mxu0  ;;  %2267 = vmatprep.subr.bf16.mxu0 %v8660_v13  ;;  %v12314_v54 = vmax.f32 %v9014_v57, %v9016_v0 }
 0x320   :  { %v1786_v5 = vpop.f32.mrf.mxu1  ;;  %2308 = vmatprep.subr.bf16.mxu1 %v8663_v14  ;;  %2338 = vmatprep.mubr.bf16.mxu1 %v11947_v63 }
 0x321   :  { %v1828_v4 = vadd.f32 %v1827_v49, %v1786_v5  ;;  %2297 = vmatprep.mubr.bf16.mxu0 %v2260_v56  ;;  %v1829_v3 = vpop.f32.mrf.mxu0 }
 0x322   :  { %v1788_v39 = vpop.f32.mrf.mxu1  ;;  %2268 = vmatpush1.bf16.msra.mxu0 %v8668_v17 }
 0x323   :  { %v1833_v58 = vmax.f32 %v1826_v47, %v1828_v4  ;;  %2309 = vmatpush1.bf16.msra.mxu1 %v8671_v19  ;;  %v1830_v31 = vpop.f32.mrf.mxu0  ;;  %2269 = vmatprep.subr.bf16.mxu0 %v8674_v18  ;;  %v9129_v47 = vrot.slane %v6066_v27, %v7615_v34 }
 0x324   :  { %v1789_v23 = vpop.f32.mrf.mxu1  ;;  %2310 = vmatprep.subr.bf16.mxu1 %v8677_v25  ;;  %v12316_v31 = vld [vmem:[#allocation40_spill] sm:$0xff] }
 0x325   :  { %v1834_v49 = vmax.f32 %v12314_v54, %v1833_v58  ;;  %v9137_v57 = vcombine.high %v9129_v47, %v9129_v47  ;;  %v12315_v23 = vld [vmem:[#allocation38_spill] sm:$0xff]  ;;  %v12317_v54 = vld [vmem:[#allocation41_spill] sm:$0xff] }
 0x326   :  { %2270 = vmatpush1.bf16.msra.mxu0 %v8684_v36 }
 0x327   :  { %v1835_v5 = vadd.f32 %v8942_v46, %v1834_v49  ;;  %2311 = vmatpush1.bf16.msra.mxu1 %v8687_v33  ;;  %2271 = vmatprep.subr.bf16.mxu0 %v8690_v52  ;;  %v12318_v49 = vld [vmem:[#allocation42_spill] sm:$0xff] }
 0x328   :  { %2312 = vmatprep.subr.bf16.mxu1 %v8693_v37 }
 0x329   :  { %v1836_v3 = vmax.f32 %v1835_v5, 0.0  ;;  %v12319_v5 = vld [vmem:[#allocation45_spill] sm:$0xff] }
 0x32a   :  { %2272 = vmatpush1.bf16.msra.mxu0 %v8696_v62 }
 0x32b   :  { %v1837_v4 = vpack.c.bf16 %v1836_v3, %v1836_v3  ;;  %2313 = vmatpush1.bf16.msra.mxu1 %v8699_v41  ;;  %2273 = vmatprep.subr.bf16.mxu0 %v8702_v22  ;;  %v12321_v3 = vld [vmem:[#allocation47_spill] sm:$0xff] }
 0x32c   :  { %2314 = vmatprep.subr.bf16.mxu1 %v8705_v35 }
 0x32d   :  { %1838 = vst [vmem:[#allocation2 + $0x5] sm:$0x1] %v1837_v4  ;;  %v12322_v4 = vld [vmem:[#allocation48_spill] sm:$0xff] }
 0x32e   :  { %2274 = vmatpush1.bf16.msra.mxu0 %v8708_v43 }
 0x32f   :  { %2315 = vmatpush1.bf16.msra.mxu1 %v8711_v24  ;;  %2275 = vmatprep.subr.bf16.mxu0 %v8714_v30 }
 0x330   :  { %2316 = vmatprep.subr.bf16.mxu1 %v8717_v55 }
 0x332   :  { %2276 = vmatpush1.bf16.msra.mxu0 %v8720_v1 }
 0x333   :  { %2317 = vmatpush1.bf16.msra.mxu1 %v8723_v6  ;;  %2277 = vmatprep.subr.bf16.mxu0 %v8726_v7 }
 0x334   :  { %2318 = vmatprep.subr.bf16.mxu1 %v8729_v8 }
 0x336   :  { %2278 = vmatpush1.bf16.msra.mxu0 %v8736_v12 }
 0x337   :  { %2319 = vmatpush1.bf16.msra.mxu1 %v12250_v59  ;;  %2279 = vmatprep.subr.bf16.mxu0 %v12251_v2 }
 0x338   :  { %2320 = vmatprep.subr.bf16.mxu1 %v12252_v11 }
 0x33a   :  { %2280 = vmatpush1.bf16.msra.mxu0 %v12253_v15 }
 0x33b   :  { %2321 = vmatpush1.bf16.msra.mxu1 %v12254_v61  ;;  %2281 = vmatprep.subr.bf16.mxu0 %v12255_v16 }
 0x33c   :  { %2347 = vmatprep.subr.bf16.mxu1 %v12256_v29 }
 0x33e   :  { %v1942_v0 = vpop.f32.mrf.mxu1  ;;  %2339 = vmatmul.mubr.bf16.vlgmr.msra.gmra.mxu1 %v9137_v57  ;;  %2282 = vmatpush2.bf16.msra.mxu0 %v12257_v26 }
 0x33f   :  { %2348 = vmatpush1.bf16.msra.mxu1 %v12258_v28  ;;  %2283 = vmatprep.subr.bf16.mxu0 %v12259_v45 }
 0x340   :  { %v1944_v27 = vpop.f32.mrf.mxu1  ;;  %2349 = vmatprep.subr.bf16.mxu1 %v12260_v32  ;;  %2379 = vmatprep.mubr.bf16.mxu1 %v2260_v56  ;;  %v12320_v56 = vld [vmem:[#allocation46_spill] sm:$0xff] }
 0x342   :  { %v1946_v39 = vpop.f32.mrf.mxu1  ;;  %2284 = vmatpush2.bf16.msra.mxu0 %v12261_v53 }
 0x343   :  { %2350 = vmatpush1.bf16.msra.mxu1 %v12262_v40  ;;  %2285 = vmatprep.subr.bf16.mxu0 %v12263_v42  ;;  %v12323_v39 = vld [vmem:[#allocation49_spill] sm:$0xff] }
 0x344   :  { %v1947_v58 = vpop.f32.mrf.mxu1  ;;  %2351 = vmatprep.subr.bf16.mxu1 %v12264_v51  ;;  %v12325_v51 = vld [vmem:[#allocation51_spill] sm:$0xff] }
 0x345   :  { %v12324_v58 = vld [vmem:[#allocation50_spill] sm:$0xff] }
 0x346   :  { %2286 = vmatpush2.bf16.msra.mxu0 %v12315_v23  ;;  %v12326_v23 = vld [vmem:[#allocation52_spill] sm:$0xff] }
 0x347   :  { %2352 = vmatpush1.bf16.msra.mxu1 %v12316_v31  ;;  %2287 = vmatprep.subr.bf16.mxu0 %v12317_v54  ;;  %v12327_v31 = vld [vmem:[#allocation53_spill] sm:$0xff]  ;;  %v12328_v54 = vld [vmem:[#allocation54_spill] sm:$0xff] }
 0x348   :  { %2353 = vmatprep.subr.bf16.mxu1 %v12318_v49  ;;  %v12329_v49 = vld [vmem:[#allocation55_spill] sm:$0xff] }
 0x34a   :  { %2288 = vmatpush2.bf16.msra.mxu0 %v12319_v5  ;;  %v12330_v5 = vld [vmem:[#allocation56_spill] sm:$0xff] }
 0x34b   :  { %2354 = vmatpush1.bf16.msra.mxu1 %v12320_v56  ;;  %2289 = vmatprep.subr.bf16.mxu0 %v12321_v3  ;;  %v12331_v56 = vld [vmem:[#allocation14_spill] sm:$0xff]  ;;  %v12332_v3 = vld [vmem:[#allocation15_spill] sm:$0xff] }
 0x34c   :  { %2355 = vmatprep.subr.bf16.mxu1 %v12322_v4  ;;  %v12333_v4 = vld [vmem:[#allocation16_spill] sm:$0xff] }
 0x34e   :  { %2290 = vmatpush2.bf16.msra.mxu0 %v12323_v39  ;;  %v12334_v39 = vld [vmem:[#allocation17_spill] sm:$0xff] }
 0x34f   :  { %2356 = vmatpush1.bf16.msra.mxu1 %v12324_v58  ;;  %2291 = vmatprep.subr.bf16.mxu0 %v12325_v51  ;;  %v12335_v58 = vld [vmem:[#allocation18_spill] sm:$0xff] }
 0x350   :  { %2357 = vmatprep.subr.bf16.mxu1 %v12326_v23  ;;  %v12336_v23 = vld [vmem:[#allocation20_spill] sm:$0xff] }
 0x352   :  { %2292 = vmatpush2.bf16.msra.mxu0 %v12327_v31  ;;  %v12337_v31 = vld [vmem:[#allocation21_spill] sm:$0xff] }
 0x353   :  { %2358 = vmatpush1.bf16.msra.mxu1 %v12328_v54  ;;  %2293 = vmatprep.subr.bf16.mxu0 %v12329_v49 }
 0x354   :  { %2359 = vmatprep.subr.bf16.mxu1 %v12330_v5 }
 0x356   :  { %2294 = vmatpush2.bf16.msra.mxu0 %v12331_v56  ;;  %v12338_v56 = vld [vmem:[#allocation24_spill] sm:$0xff] }
 0x357   :  { %2360 = vmatpush1.bf16.msra.mxu1 %v12332_v3  ;;  %2295 = vmatprep.subr.bf16.mxu0 %v12333_v4  ;;  %v12339_v4 = vld [vmem:[#allocation26_spill] sm:$0xff] }
 0x358   :  { %2361 = vmatprep.subr.bf16.mxu1 %v12334_v39 }
 0x35a   :  { %2296 = vmatpush2.bf16.msra.mxu0 %v12335_v58 }
 0x35b   :  { %2362 = vmatpush1.bf16.msra.mxu1 %v12286_v20  ;;  %2388 = vmatprep.subr.bf16.mxu0 %v12337_v31 }
 0x35c   :  { %2363 = vmatprep.subr.bf16.mxu1 %v12336_v23 }
 0x35d   :  { %v1901_v54 = vpop.f32.mrf.mxu0  ;;  %2298 = vmatmul.mubr.bf16.vlgmr.msra.gmra.mxu0 %v9129_v47 }
 0x35e   :  { %2389 = vmatpush1.bf16.msra.mxu0 %v12338_v56  ;;  %v1943_v39 = vadd.f32 %v1942_v0, %v1901_v54  ;;  %2420 = vmatprep.mubr.bf16.mxu0 %v11947_v63  ;;  %v12341_v56 = vld [vmem:[#allocation58_spill] sm:$0xff]  ;;  %v12344_v0 = vld [vmem:[#allocation61_spill] sm:$0xff]  ;;  %v12347_v54 = vld [vmem:[#allocation64_spill] sm:$0xff] }
 0x35f   :  { %2364 = vmatpush2.bf16.msra.mxu1 %v12289_v48  ;;  %v1903_v3 = vpop.f32.mrf.mxu0  ;;  %2390 = vmatprep.subr.bf16.mxu0 %v12339_v4  ;;  %v12340_v48 = vld [vmem:[#allocation27_spill] sm:$0xff]  ;;  %v12343_v4 = vld [vmem:[#allocation60_spill] sm:$0xff] }
 0x360   :  { %2365 = vmatprep.subr.bf16.mxu1 %v12291_v38  ;;  %v1945_v58 = vadd.f32 %v1944_v27, %v1903_v3  ;;  %v12342_v38 = vld [vmem:[#allocation59_spill] sm:$0xff]  ;;  %v12345_v27 = vld [vmem:[#allocation62_spill] sm:$0xff]  ;;  %v12348_v3 = vld [vmem:[#allocation44_spill] sm:$0xff] }
 0x361   :  { %v1905_v20 = vpop.f32.mrf.mxu0 }
 0x362   :  { %v2031_v23 = vmax.f32 %v1943_v39, %v1945_v58  ;;  %2391 = vmatpush1.bf16.msra.mxu0 %v8891_v60  ;;  %v12346_v20 = vld [vmem:[#allocation63_spill] sm:$0xff]  ;;  %v12351_v58 = vld [vmem:[#allocation12_spill] sm:$0xff] }
 0x363   :  { %2366 = vmatpush2.bf16.msra.mxu1 %v8888_v21  ;;  %v1906_v31 = vpop.f32.mrf.mxu0  ;;  %2392 = vmatprep.subr.bf16.mxu0 %v12340_v48  ;;  %v12350_v39 = vld [vmem:[#allocation23_spill] sm:$0xff] }
 0x364   :  { %2367 = vmatprep.subr.bf16.mxu1 %v8894_v50  ;;  %v12349_v31 = vld [vmem:[#allocation57_spill] sm:$0xff] }
 0x366   :  { %2393 = vmatpush1.bf16.msra.mxu0 %v12342_v38  ;;  %v12353_v38 = vld [vmem:[#allocation28_spill] sm:$0xff] }
 0x367   :  { %2368 = vmatpush2.bf16.msra.mxu1 %v12341_v56  ;;  %2394 = vmatprep.subr.bf16.mxu0 %v12344_v0  ;;  %v12352_v56 = vld [vmem:[#allocation13_spill] sm:$0xff]  ;;  %v12355_v0 = vld [vmem:[#allocation30_spill] sm:$0xff] }
 0x368   :  { %2369 = vmatprep.subr.bf16.mxu1 %v12343_v4  ;;  %v12354_v4 = vld [vmem:[#allocation29_spill] sm:$0xff] }
 0x36a   :  { %2395 = vmatpush1.bf16.msra.mxu0 %v12346_v20  ;;  %v12357_v20 = vld [vmem:[#allocation32_spill] sm:$0xff] }
 0x36b   :  { %2370 = vmatpush2.bf16.msra.mxu1 %v12345_v27  ;;  %2396 = vmatprep.subr.bf16.mxu0 %v12348_v3  ;;  %v12356_v27 = vld [vmem:[#allocation31_spill] sm:$0xff]  ;;  %v12359_v3 = vld [vmem:[#allocation34_spill] sm:$0xff] }
 0x36c   :  { %2371 = vmatprep.subr.bf16.mxu1 %v12347_v54  ;;  %v12358_v54 = vld [vmem:[#allocation33_spill] sm:$0xff] }
 0x36e   :  { %2397 = vmatpush1.bf16.msra.mxu0 %v12350_v39 }
 0x36f   :  { %2372 = vmatpush2.bf16.msra.mxu1 %v12349_v31  ;;  %2398 = vmatprep.subr.bf16.mxu0 %v12352_v56  ;;  %v12360_v31 = vld [vmem:[#allocation35_spill] sm:$0xff] }
 0x370   :  { %2373 = vmatprep.subr.bf16.mxu1 %v12351_v58  ;;  %v6067_v56 = vld.sshfl [vmem:[%s11331_s0 + $0x9] sm:$0x13 pattern:$0x75316420] }
 0x371   :  { %v2445_v58 = vcombine.high %v6067_v56, %v6067_v56 }
 0x372   :  { %2399 = vmatpush1.bf16.msra.mxu0 %v12354_v4 }
 0x373   :  { %2374 = vmatpush2.bf16.msra.mxu1 %v12353_v38  ;;  %2400 = vmatprep.subr.bf16.mxu0 %v12356_v27  ;;  %v12361_v38 = vld [vmem:[#allocation36_spill] sm:$0xff]  ;;  %v12363_v27 = vld [vmem:[#allocation43_spill] sm:$0xff] }
 0x374   :  { %2375 = vmatprep.subr.bf16.mxu1 %v12355_v0  ;;  %v12362_v0 = vld [vmem:[#allocation39_spill] sm:$0xff] }
 0x376   :  { %2401 = vmatpush1.bf16.msra.mxu0 %v12358_v54 }
 0x377   :  { %2376 = vmatpush2.bf16.msra.mxu1 %v12357_v20  ;;  %2402 = vmatprep.subr.bf16.mxu0 %v12360_v31  ;;  %v2459_v20 = vrot.slane %v2445_v58, %v7615_v34 }
 0x378   :  { %2377 = vmatprep.subr.bf16.mxu1 %v12359_v3 }
 0x37a   :  { %2403 = vmatpush1.bf16.msra.mxu0 %v9091_v44 }
 0x37b   :  { %2378 = vmatpush2.bf16.msra.mxu1 %v12361_v38  ;;  %2464 = vmatprep.subr.bf16.mxu0 %v12362_v0 }
 0x37c   :  { %2505 = vmatprep.subr.bf16.mxu1 %v12363_v27 }
 0x37d   :  { %v2024_v4 = vpop.f32.mrf.mxu0  ;;  %2421 = vmatmul.mubr.bf16.vlgmr.msra.gmra.mxu0 %v9137_v57 }
 0x37e   :  { %v1983_v54 = vpop.f32.mrf.mxu1  ;;  %2380 = vmatmul.mubr.bf16.vlgmr.msra.gmra.mxu1 %v9129_v47  ;;  %2465 = vmatpush1.bf16.msra.mxu0 %v8654_v9 }
 0x37f   :  { %v2025_v31 = vadd.f32 %v2024_v4, %v1983_v54  ;;  %2506 = vmatpush1.bf16.msra.mxu1 %v8657_v10  ;;  %v2026_v3 = vpop.f32.mrf.mxu0  ;;  %2466 = vmatprep.subr.bf16.mxu0 %v8660_v13  ;;  %v12391_v4 = vld [vmem:[#allocation59_spill] sm:$0xff]  ;;  %v12393_v54 = vld [vmem:[#allocation61_spill] sm:$0xff] }
 0x380   :  { %v1985_v38 = vpop.f32.mrf.mxu1  ;;  %2507 = vmatprep.subr.bf16.mxu1 %v8663_v14  ;;  %2537 = vmatprep.mubr.bf16.mxu1 %v11947_v63 }
 0x381   :  { %v2027_v0 = vadd.f32 %v2026_v3, %v1985_v38  ;;  %2496 = vmatprep.mubr.bf16.mxu0 %v2459_v20  ;;  %v2028_v58 = vpop.f32.mrf.mxu0  ;;  %v12394_v3 = vld [vmem:[#allocation62_spill] sm:$0xff] }
 0x382   :  { %v1987_v27 = vpop.f32.mrf.mxu1  ;;  %2467 = vmatpush1.bf16.msra.mxu0 %v8668_v17  ;;  %v12402_v58 = vld [vmem:[#allocation29_spill] sm:$0xff] }
 0x383   :  { %v2032_v47 = vmax.f32 %v2025_v31, %v2027_v0  ;;  %2508 = vmatpush1.bf16.msra.mxu1 %v8671_v19  ;;  %v2029_v57 = vpop.f32.mrf.mxu0  ;;  %2468 = vmatprep.subr.bf16.mxu0 %v8674_v18  ;;  %v9243_v19 = vrot.slane %v6067_v56, %v7615_v34  ;;  %v12390_v56 = vld [vmem:[#allocation58_spill] sm:$0xff]  ;;  %v12395_v31 = vld [vmem:[#allocation63_spill] sm:$0xff]  ;;  %v12398_v0 = vld [vmem:[#allocation57_spill] sm:$0xff] }
 0x384   :  { %v1988_v9 = vpop.f32.mrf.mxu1  ;;  %2509 = vmatprep.subr.bf16.mxu1 %v8677_v25  ;;  %v12401_v27 = vld [vmem:[#allocation28_spill] sm:$0xff] }
 0x385   :  { %v2033_v10 = vmax.f32 %v2031_v23, %v2032_v47  ;;  %v9251_v18 = vcombine.high %v9243_v19, %v9243_v19  ;;  %v12403_v47 = vld [vmem:[#allocation30_spill] sm:$0xff]  ;;  %v12404_v9 = vld [vmem:[#allocation31_spill] sm:$0xff]  ;;  %v12405_v57 = vld [vmem:[#allocation32_spill] sm:$0xff] }
 0x386   :  { %2469 = vmatpush1.bf16.msra.mxu0 %v8684_v36 }
 0x387   :  { %v2034_v13 = vadd.f32 %v8942_v46, %v2033_v10  ;;  %2510 = vmatpush1.bf16.msra.mxu1 %v8687_v33  ;;  %2470 = vmatprep.subr.bf16.mxu0 %v8690_v52  ;;  %v12406_v10 = vld [vmem:[#allocation33_spill] sm:$0xff] }
 0x388   :  { %2511 = vmatprep.subr.bf16.mxu1 %v8693_v37  ;;  %v12364_v37 = vld [vmem:[#allocation37_spill] sm:$0xff] }
 0x389   :  { %v2035_v14 = vmax.f32 %v2034_v13, 0.0  ;;  %v12407_v13 = vld [vmem:[#allocation34_spill] sm:$0xff] }
 0x38a   :  { %2471 = vmatpush1.bf16.msra.mxu0 %v8696_v62  ;;  %v12365_v62 = vld [vmem:[#allocation38_spill] sm:$0xff] }
 0x38b   :  { %v2036_v17 = vpack.c.bf16 %v2035_v14, %v2035_v14  ;;  %2512 = vmatpush1.bf16.msra.mxu1 %v8699_v41  ;;  %2472 = vmatprep.subr.bf16.mxu0 %v8702_v22  ;;  %v12366_v41 = vld [vmem:[#allocation40_spill] sm:$0xff]  ;;  %v12367_v22 = vld [vmem:[#allocation41_spill] sm:$0xff]  ;;  %v12408_v14 = vld [vmem:[#allocation35_spill] sm:$0xff] }
 0x38c   :  { %2513 = vmatprep.subr.bf16.mxu1 %v8705_v35  ;;  %v12368_v35 = vld [vmem:[#allocation42_spill] sm:$0xff] }
 0x38d   :  { %2037 = vst [vmem:[#allocation2 + $0x6] sm:$0x1] %v2036_v17  ;;  %v9329_v17 = vld.sshfl [vmem:[%s11331_s0 + $0xa] sm:$0x13 pattern:$0x75316420] }
 0x38e   :  { %2473 = vmatpush1.bf16.msra.mxu0 %v8708_v43  ;;  %v12369_v43 = vld [vmem:[#allocation45_spill] sm:$0xff] }
 0x38f   :  { %2514 = vmatpush1.bf16.msra.mxu1 %v8711_v24  ;;  %2474 = vmatprep.subr.bf16.mxu0 %v8714_v30  ;;  %v12370_v24 = vld [vmem:[#allocation46_spill] sm:$0xff]  ;;  %v12371_v30 = vld [vmem:[#allocation47_spill] sm:$0xff] }
 0x390   :  { %2515 = vmatprep.subr.bf16.mxu1 %v8717_v55  ;;  %v12372_v55 = vld [vmem:[#allocation48_spill] sm:$0xff] }
 0x392   :  { %2475 = vmatpush1.bf16.msra.mxu0 %v8720_v1  ;;  %v12373_v1 = vld [vmem:[#allocation49_spill] sm:$0xff] }
 0x393   :  { %2516 = vmatpush1.bf16.msra.mxu1 %v8723_v6  ;;  %2476 = vmatprep.subr.bf16.mxu0 %v8726_v7  ;;  %v12374_v6 = vld [vmem:[#allocation50_spill] sm:$0xff]  ;;  %v12375_v7 = vld [vmem:[#allocation52_spill] sm:$0xff] }
 0x394   :  { %2517 = vmatprep.subr.bf16.mxu1 %v8729_v8  ;;  %v12376_v8 = vld [vmem:[#allocation53_spill] sm:$0xff] }
 0x396   :  { %2477 = vmatpush1.bf16.msra.mxu0 %v8736_v12  ;;  %v12377_v12 = vld [vmem:[#allocation54_spill] sm:$0xff] }
 0x397   :  { %2518 = vmatpush1.bf16.msra.mxu1 %v12250_v59  ;;  %2478 = vmatprep.subr.bf16.mxu0 %v12251_v2  ;;  %v12378_v59 = vld [vmem:[#allocation14_spill] sm:$0xff]  ;;  %v12379_v2 = vld [vmem:[#allocation15_spill] sm:$0xff] }
 0x398   :  { %2519 = vmatprep.subr.bf16.mxu1 %v12252_v11  ;;  %v12380_v11 = vld [vmem:[#allocation16_spill] sm:$0xff] }
 0x39a   :  { %2479 = vmatpush1.bf16.msra.mxu0 %v12253_v15  ;;  %v12381_v15 = vld [vmem:[#allocation17_spill] sm:$0xff] }
 0x39b   :  { %2520 = vmatpush1.bf16.msra.mxu1 %v12254_v61  ;;  %2480 = vmatprep.subr.bf16.mxu0 %v12255_v16  ;;  %v12382_v61 = vld [vmem:[#allocation18_spill] sm:$0xff]  ;;  %v12383_v16 = vld [vmem:[#allocation19_spill] sm:$0xff] }
 0x39c   :  { %2546 = vmatprep.subr.bf16.mxu1 %v12256_v29  ;;  %v12384_v29 = vld [vmem:[#allocation20_spill] sm:$0xff] }
 0x39e   :  { %v2141_v25 = vpop.f32.mrf.mxu1  ;;  %2538 = vmatmul.mubr.bf16.vlgmr.msra.gmra.mxu1 %v9251_v18  ;;  %2481 = vmatpush2.bf16.msra.mxu0 %v12257_v26  ;;  %v12385_v26 = vld [vmem:[#allocation21_spill] sm:$0xff] }
 0x39f   :  { %2547 = vmatpush1.bf16.msra.mxu1 %v12258_v28  ;;  %2482 = vmatprep.subr.bf16.mxu0 %v12259_v45  ;;  %v12386_v45 = vld [vmem:[#allocation22_spill] sm:$0xff] }
 0x3a0   :  { %v2143_v36 = vpop.f32.mrf.mxu1  ;;  %2548 = vmatprep.subr.bf16.mxu1 %v12260_v32  ;;  %2578 = vmatprep.mubr.bf16.mxu1 %v2459_v20  ;;  %v12387_v32 = vld [vmem:[#allocation24_spill] sm:$0xff] }
 0x3a1   :  { %v12392_v20 = vld [vmem:[#allocation60_spill] sm:$0xff] }
 0x3a2   :  { %v2145_v33 = vpop.f32.mrf.mxu1  ;;  %2483 = vmatpush2.bf16.msra.mxu0 %v12261_v53 }
 0x3a3   :  { %2549 = vmatpush1.bf16.msra.mxu1 %v12262_v40  ;;  %2484 = vmatprep.subr.bf16.mxu0 %v12263_v42  ;;  %v12388_v40 = vld [vmem:[#allocation25_spill] sm:$0xff]  ;;  %v12389_v42 = vld [vmem:[#allocation26_spill] sm:$0xff] }
 0x3a4   :  { %v2146_v52 = vpop.f32.mrf.mxu1  ;;  %2550 = vmatprep.subr.bf16.mxu1 %v12364_v37  ;;  %v9335_v33 = vld [vmem:[#allocation3 + $0xe4] ss:$16 sps:$4 sm:$0xff]  }
 0x3a5   :  { %v9338_v52 = vld [vmem:[#allocation3 + $0x2e4] ss:$16 sps:$4 sm:$0xff]  }
 0x3a6   :  { %2485 = vmatpush2.bf16.msra.mxu0 %v12365_v62 }
 0x3a7   :  { %2551 = vmatpush1.bf16.msra.mxu1 %v12366_v41  ;;  %2486 = vmatprep.subr.bf16.mxu0 %v12367_v22 }
 0x3a8   :  { %2552 = vmatprep.subr.bf16.mxu1 %v12368_v35  ;;  %v9346_v35 = vld [vmem:[#allocation3 + $0xe0] ss:$16 sps:$4 sm:$0xff]  }
 0x3aa   :  { %2487 = vmatpush2.bf16.msra.mxu0 %v12369_v43  ;;  %v9349_v43 = vld [vmem:[#allocation3 + $0x2e0] ss:$16 sps:$4 sm:$0xff]  }
 0x3ab   :  { %2553 = vmatpush1.bf16.msra.mxu1 %v12370_v24  ;;  %2488 = vmatprep.subr.bf16.mxu0 %v12371_v30 }
 0x3ac   :  { %2554 = vmatprep.subr.bf16.mxu1 %v12372_v55  ;;  %v9352_v55 = vld [vmem:[#allocation3 + $0xc4] ss:$16 sps:$4 sm:$0xff]  }
 0x3ae   :  { %2489 = vmatpush2.bf16.msra.mxu0 %v12373_v1  ;;  %v9355_v1 = vld [vmem:[#allocation3 + $0x2c4] ss:$16 sps:$4 sm:$0xff]  }
 0x3af   :  { %2555 = vmatpush1.bf16.msra.mxu1 %v12374_v6  ;;  %2490 = vmatprep.subr.bf16.mxu0 %v12325_v51 }
 0x3b0   :  { %2556 = vmatprep.subr.bf16.mxu1 %v12375_v7 }
 0x3b2   :  { %2491 = vmatpush2.bf16.msra.mxu0 %v12376_v8  ;;  %v9360_v8 = vld [vmem:[#allocation3 + $0xc0] ss:$16 sps:$4 sm:$0xff]  }
 0x3b3   :  { %2557 = vmatpush1.bf16.msra.mxu1 %v12377_v12  ;;  %2492 = vmatprep.subr.bf16.mxu0 %v12329_v49  ;;  %v9363_v12 = vld [vmem:[#allocation3 + $0x2c0] ss:$16 sps:$4 sm:$0xff]  }
 0x3b4   :  { %2558 = vmatprep.subr.bf16.mxu1 %v12330_v5 }
 0x3b6   :  { %2493 = vmatpush2.bf16.msra.mxu0 %v12378_v59 }
 0x3b7   :  { %2559 = vmatpush1.bf16.msra.mxu1 %v12379_v2  ;;  %2494 = vmatprep.subr.bf16.mxu0 %v12380_v11  ;;  %v9366_v11 = vld [vmem:[#allocation3 + $0xa4] ss:$16 sps:$4 sm:$0xff]  }
 0x3b8   :  { %2560 = vmatprep.subr.bf16.mxu1 %v12381_v15  ;;  %v9369_v15 = vld [vmem:[#allocation3 + $0x2a4] ss:$16 sps:$4 sm:$0xff]  }
 0x3ba   :  { %2495 = vmatpush2.bf16.msra.mxu0 %v12382_v61 }
 0x3bb   :  { %2561 = vmatpush1.bf16.msra.mxu1 %v12383_v16  ;;  %2587 = vmatprep.subr.bf16.mxu0 %v12385_v26  ;;  %v9379_v26 = vld [vmem:[#allocation3 + $0x2a0] ss:$16 sps:$4 sm:$0xff]  }
 0x3bc   :  { %2562 = vmatprep.subr.bf16.mxu1 %v12384_v29  ;;  %v9376_v29 = vld [vmem:[#allocation3 + $0xa0] ss:$16 sps:$4 sm:$0xff]  }
 0x3bd   :  { %v2100_v28 = vpop.f32.mrf.mxu0  ;;  %2497 = vmatmul.mubr.bf16.vlgmr.msra.gmra.mxu0 %v9243_v19 }
 0x3be   :  { %2588 = vmatpush1.bf16.msra.mxu0 %v12387_v32  ;;  %v9295_v51 = vadd.f32 %v2141_v25, %v2100_v28  ;;  %2619 = vmatprep.mubr.bf16.mxu0 %v11947_v63  ;;  %v2644_v25 = vcombine.high %v9329_v17, %v9329_v17  ;;  %v9382_v28 = vld [vmem:[#allocation3 + $0x84] ss:$16 sps:$4 sm:$0xff]  }
 0x3bf   :  { %2563 = vmatpush2.bf16.msra.mxu1 %v12386_v45  ;;  %v2102_v53 = vpop.f32.mrf.mxu0  ;;  %2589 = vmatprep.subr.bf16.mxu0 %v12389_v42  ;;  %v9385_v45 = vld [vmem:[#allocation3 + $0x284] ss:$16 sps:$4 sm:$0xff]  }
 0x3c0   :  { %2564 = vmatprep.subr.bf16.mxu1 %v12388_v40  ;;  %v9297_v38 = vadd.f32 %v2143_v36, %v2102_v53  ;;  %v12409_v36 = vld [vmem:[#allocation36_spill] sm:$0xff]  ;;  %v9342_v37 = vrot.slane %v2644_v25, %v7615_v34 }
 0x3c1   :  { %v2104_v23 = vpop.f32.mrf.mxu0  ;;  %v9388_v40 = vld [vmem:[#allocation3 + $0x80] ss:$16 sps:$4 sm:$0xff]   ;;  %v9394_v42 = vld [vmem:[#allocation3 + $0x64] ss:$16 sps:$4 sm:$0xff]  }
 0x3c2   :  { %v2230_v49 = vmax.f32 %v9295_v51, %v9297_v38  ;;  %2590 = vmatpush1.bf16.msra.mxu0 %v8891_v60  ;;  %v12397_v60 = vld [vmem:[#allocation44_spill] sm:$0xff] }
 0x3c3   :  { %2565 = vmatpush2.bf16.msra.mxu1 %v8888_v21  ;;  %v2105_v5 = vpop.f32.mrf.mxu0  ;;  %2591 = vmatprep.subr.bf16.mxu0 %v12340_v48  ;;  %v12396_v21 = vld [vmem:[#allocation64_spill] sm:$0xff]  ;;  %v12400_v48 = vld [vmem:[#allocation13_spill] sm:$0xff] }
 0x3c4   :  { %2566 = vmatprep.subr.bf16.mxu1 %v8894_v50  ;;  %v12399_v50 = vld [vmem:[#allocation12_spill] sm:$0xff] }
 0x3c5   :  { %v9397_v51 = vld [vmem:[#allocation3 + $0x264] ss:$16 sps:$4 sm:$0xff]   ;;  %v9400_v38 = vld [vmem:[#allocation3 + $0x60] ss:$16 sps:$4 sm:$0xff]  }
 0x3c6   :  { %2592 = vmatpush1.bf16.msra.mxu0 %v12391_v4  ;;  %v9403_v23 = vld [vmem:[#allocation3 + $0x260] ss:$16 sps:$4 sm:$0xff]   ;;  %v9409_v5 = vld [vmem:[#allocation3 + $0x244] ss:$16 sps:$4 sm:$0xff]  }
 0x3c7   :  { %2567 = vmatpush2.bf16.msra.mxu1 %v12390_v56  ;;  %2593 = vmatprep.subr.bf16.mxu0 %v12393_v54  ;;  %v9412_v25 = vld [vmem:[#allocation3 + $0x40] ss:$16 sps:$4 sm:$0xff]  }
 0x3c8   :  { %2568 = vmatprep.subr.bf16.mxu1 %v12392_v20 }
 0x3ca   :  { %2594 = vmatpush1.bf16.msra.mxu0 %v12395_v31 }
 0x3cb   :  { %2569 = vmatpush2.bf16.msra.mxu1 %v12394_v3  ;;  %2595 = vmatprep.subr.bf16.mxu0 %v12397_v60 }
 0x3cc   :  { %2570 = vmatprep.subr.bf16.mxu1 %v12396_v21 }
 0x3ce   :  { %2596 = vmatpush1.bf16.msra.mxu0 %v12350_v39 }
 0x3cf   :  { %2571 = vmatpush2.bf16.msra.mxu1 %v12398_v0  ;;  %2597 = vmatprep.subr.bf16.mxu0 %v12400_v48 }
 0x3d0   :  { %2572 = vmatprep.subr.bf16.mxu1 %v12399_v50 }
 0x3d2   :  { %2598 = vmatpush1.bf16.msra.mxu0 %v12402_v58 }
 0x3d3   :  { %2573 = vmatpush2.bf16.msra.mxu1 %v12401_v27  ;;  %2599 = vmatprep.subr.bf16.mxu0 %v12404_v9 }
 0x3d4   :  { %2574 = vmatprep.subr.bf16.mxu1 %v12403_v47 }
 0x3d6   :  { %2600 = vmatpush1.bf16.msra.mxu0 %v12406_v10 }
 0x3d7   :  { %2575 = vmatpush2.bf16.msra.mxu1 %v12405_v57  ;;  %2601 = vmatprep.subr.bf16.mxu0 %v12408_v14 }
 0x3d8   :  { %2576 = vmatprep.subr.bf16.mxu1 %v12407_v13 }
 0x3da   :  { %2602 = vmatpush1.bf16.msra.mxu0 %v9091_v44 }
 0x3db   :  { %2577 = vmatpush2.bf16.msra.mxu1 %v12409_v36  ;;  %2663 = vmatprep.subr.bf16.mxu0 %v9335_v33 }
 0x3dc   :  { %2704 = vmatprep.subr.bf16.mxu1 %v9338_v52 }
 0x3dd   :  { %v2223_v41 = vpop.f32.mrf.mxu0  ;;  %2620 = vmatmul.mubr.bf16.vlgmr.msra.gmra.mxu0 %v9251_v18 }
 0x3de   :  { %v2182_v62 = vpop.f32.mrf.mxu1  ;;  %2579 = vmatmul.mubr.bf16.vlgmr.msra.gmra.mxu1 %v9243_v19  ;;  %2664 = vmatpush1.bf16.msra.mxu0 %v9346_v35 }
 0x3df   :  { %v2224_v22 = vadd.f32 %v2223_v41, %v2182_v62  ;;  %2705 = vmatpush1.bf16.msra.mxu1 %v9349_v43  ;;  %v2225_v30 = vpop.f32.mrf.mxu0  ;;  %2665 = vmatprep.subr.bf16.mxu0 %v9352_v55  ;;  %v9415_v62 = vld [vmem:[#allocation3 + $0x240] ss:$16 sps:$4 sm:$0xff]   ;;  %v9418_v41 = vld [vmem:[#allocation3 + $0x24] ss:$16 sps:$4 sm:$0xff]  }
 0x3e0   :  { %v2184_v24 = vpop.f32.mrf.mxu1  ;;  %2706 = vmatprep.subr.bf16.mxu1 %v9355_v1  ;;  %2736 = vmatprep.mubr.bf16.mxu1 %v11947_v63 }
 0x3e1   :  { %v2226_v19 = vadd.f32 %v2225_v30, %v2184_v24  ;;  %2695 = vmatprep.mubr.bf16.mxu0 %v9342_v37  ;;  %v2227_v6 = vpop.f32.mrf.mxu0  ;;  %v9426_v24 = vrot.slane %v9329_v17, %v7615_v34  ;;  %v9428_v30 = vld [vmem:[#allocation3 + $0x20] ss:$16 sps:$4 sm:$0xff]  }
 0x3e2   :  { %v2186_v18 = vpop.f32.mrf.mxu1  ;;  %2666 = vmatpush1.bf16.msra.mxu0 %v9360_v8  ;;  %v9437_v6 = vld [vmem:[#allocation3 + $0x204] ss:$16 sps:$4 sm:$0xff]  }
 0x3e3   :  { %v2231_v7 = vmax.f32 %v2224_v22, %v2226_v19  ;;  %2707 = vmatpush1.bf16.msra.mxu1 %v9363_v12  ;;  %v2228_v2 = vpop.f32.mrf.mxu0  ;;  %2667 = vmatprep.subr.bf16.mxu0 %v9366_v11  ;;  %v9421_v22 = vld [vmem:[#allocation3 + $0x224] ss:$16 sps:$4 sm:$0xff]   ;;  %v9431_v19 = vld [vmem:[#allocation3 + $0x220] ss:$16 sps:$4 sm:$0xff]   ;;  %12412 = vst [vmem:[#allocation56_spill] sm:$0xff] %v9437_v6  ;;  %v9442_v17 = vcombine.high %v9426_v24, %v9426_v24 }
 0x3e4   :  { %v2187_v59 = vpop.f32.mrf.mxu1  ;;  %2708 = vmatprep.subr.bf16.mxu1 %v9369_v15  ;;  %12410 = vst [vmem:[#allocation51_spill] sm:$0xff] %v9431_v19  ;;  %v9434_v18 = vld [vmem:[#allocation3 + $0x4] ss:$16 sps:$4 sm:$0xff]  }
 0x3e5   :  { %v2232_v61 = vmax.f32 %v2230_v49, %v2231_v7  ;;  %v9406_v49 = vld [vmem:[#allocation3 + $0x44] ss:$16 sps:$4 sm:$0xff]   ;;  %12411 = vst [vmem:[#allocation55_spill] sm:$0xff] %v9434_v18  ;;  %v9444_v7 = vld [vmem:[#allocation3] ss:$16 sps:$4 sm:$0xff]  }
 0x3e6   :  { %2668 = vmatpush1.bf16.msra.mxu0 %v9376_v29  ;;  %12413 = vst [vmem:[#allocation27_spill] sm:$0xff] %v9444_v7  ;;  %v9447_v59 = vld [vmem:[#allocation3 + $0x200] ss:$16 sps:$4 sm:$0xff]   ;;  %v9450_v2 = vld [vmem:[#allocation3 + $0x1e4] ss:$16 sps:$4 sm:$0xff]  }
 0x3e7   :  { %v2233_v16 = vadd.f32 %v8942_v46, %v2232_v61  ;;  %2709 = vmatpush1.bf16.msra.mxu1 %v9379_v26  ;;  %2669 = vmatprep.subr.bf16.mxu0 %v9382_v28  ;;  %v9391_v46 = vld [vmem:[#allocation3 + $0x280] ss:$16 sps:$4 sm:$0xff]   ;;  %12414 = vst [vmem:[#allocation23_spill] sm:$0xff] %v9447_v59  ;;  %12415 = vst [vmem:[#allocation39_spill] sm:$0xff] %v9450_v2  ;;  %v9453_v61 = vld [vmem:[#allocation3 + $0xec] ss:$16 sps:$4 sm:$0xff]  }
 0x3e8   :  { %2710 = vmatprep.subr.bf16.mxu1 %v9385_v45  ;;  %12416 = vst [vmem:[#allocation43_spill] sm:$0xff] %v9453_v61 }
 0x3e9   :  { %v2234_v32 = vmax.f32 %v2233_v16, 0.0 }
 0x3ea   :  { %2670 = vmatpush1.bf16.msra.mxu0 %v9388_v40 }
 0x3eb   :  { %v2235_v53 = vpack.c.bf16 %v2234_v32, %v2234_v32  ;;  %2711 = vmatpush1.bf16.msra.mxu1 %v9391_v46  ;;  %2671 = vmatprep.subr.bf16.mxu0 %v9394_v42  ;;  %v9459_v32 = vld [vmem:[#allocation3 + $0x1e0] ss:$16 sps:$4 sm:$0xff]  }
 0x3ec   :  { %2712 = vmatprep.subr.bf16.mxu1 %v9397_v51  ;;  %12417 = vst [vmem:[#allocation37_spill] sm:$0xff] %v9459_v32 }
 0x3ed   :  { %2236 = vst [vmem:[#allocation2 + $0x7] sm:$0x1] %v2235_v53  ;;  %v9462_v53 = vld [vmem:[#allocation3 + $0xe8] ss:$16 sps:$4 sm:$0xff]  }
 0x3ee   :  { %2672 = vmatpush1.bf16.msra.mxu0 %v9400_v38  ;;  %12418 = vst [vmem:[#allocation38_spill] sm:$0xff] %v9462_v53 }
 0x3ef   :  { %2713 = vmatpush1.bf16.msra.mxu1 %v9403_v23  ;;  %2673 = vmatprep.subr.bf16.mxu0 %v9406_v49 }
 0x3f0   :  { %2714 = vmatprep.subr.bf16.mxu1 %v9409_v5 }
 0x3f2   :  { %2674 = vmatpush1.bf16.msra.mxu0 %v9412_v25 }
 0x3f3   :  { %2715 = vmatpush1.bf16.msra.mxu1 %v9415_v62  ;;  %2675 = vmatprep.subr.bf16.mxu0 %v9418_v41 }
 0x3f4   :  { %2716 = vmatprep.subr.bf16.mxu1 %v9421_v22 }
 0x3f6   :  { %2676 = vmatpush1.bf16.msra.mxu0 %v9428_v30 }
 0x3f7   :  { %2717 = vmatpush1.bf16.msra.mxu1 %v9431_v19  ;;  %2677 = vmatprep.subr.bf16.mxu0 %v9434_v18  ;;  %v9480_v18 = vld [vmem:[#allocation3 + $0x1a4] ss:$16 sps:$4 sm:$0xff]   ;;  %v9580_v19 = vld [vmem:[#allocation3 + $0x1c8] ss:$16 sps:$4 sm:$0xff]  }
 0x3f8   :  { %2718 = vmatprep.subr.bf16.mxu1 %v9437_v6  ;;  %v9474_v6 = vld [vmem:[#allocation3 + $0x1c0] ss:$16 sps:$4 sm:$0xff]   ;;  %12423 = vst [vmem:[#allocation46_spill] sm:$0xff] %v9480_v18 }
 0x3f9   :  { %12421 = vst [vmem:[#allocation42_spill] sm:$0xff] %v9474_v6 }
 0x3fa   :  { %2678 = vmatpush1.bf16.msra.mxu0 %v9444_v7  ;;  %v9467_v7 = vld [vmem:[#allocation3 + $0x1c4] ss:$16 sps:$4 sm:$0xff]  }
 0x3fb   :  { %2719 = vmatpush1.bf16.msra.mxu1 %v9447_v59  ;;  %2679 = vmatprep.subr.bf16.mxu0 %v9450_v2  ;;  %12419 = vst [vmem:[#allocation40_spill] sm:$0xff] %v9467_v7  ;;  %v9470_v2 = vld [vmem:[#allocation3 + $0xcc] ss:$16 sps:$4 sm:$0xff]  }
 0x3fc   :  { %2745 = vmatprep.subr.bf16.mxu1 %v9453_v61  ;;  %12420 = vst [vmem:[#allocation41_spill] sm:$0xff] %v9470_v2 }
 0x3fe   :  { %v9456_v16 = vpop.f32.mrf.mxu1  ;;  %2737 = vmatmul.mubr.bf16.vlgmr.msra.gmra.mxu1 %v9442_v17  ;;  %2680 = vmatpush2.bf16.msra.mxu0 %v9459_v32  ;;  %v9477_v32 = vld [vmem:[#allocation3 + $0xc8] ss:$16 sps:$4 sm:$0xff]  }
 0x3ff   :  { %2746 = vmatpush1.bf16.msra.mxu1 %v9462_v53  ;;  %2681 = vmatprep.subr.bf16.mxu0 %v9467_v7  ;;  %12422 = vst [vmem:[#allocation45_spill] sm:$0xff] %v9477_v32  ;;  %v9483_v7 = vld [vmem:[#allocation3 + $0xac] ss:$16 sps:$4 sm:$0xff]  }
 0x400   :  { %v9465_v59 = vpop.f32.mrf.mxu1  ;;  %2747 = vmatprep.subr.bf16.mxu1 %v9470_v2  ;;  %2777 = vmatprep.mubr.bf16.mxu1 %v9342_v37  ;;  %12424 = vst [vmem:[#allocation47_spill] sm:$0xff] %v9483_v7  ;;  %v9486_v2 = vld [vmem:[#allocation3 + $0x1a0] ss:$16 sps:$4 sm:$0xff]   ;;  %v9489_v37 = vld [vmem:[#allocation3 + $0xa8] ss:$16 sps:$4 sm:$0xff]  }
 0x401   :  { %12425 = vst [vmem:[#allocation48_spill] sm:$0xff] %v9486_v2  ;;  %12426 = vst [vmem:[#allocation49_spill] sm:$0xff] %v9489_v37 }
 0x402   :  { %v2344_v61 = vpop.f32.mrf.mxu1  ;;  %2682 = vmatpush2.bf16.msra.mxu0 %v9474_v6 }
 0x403   :  { %2748 = vmatpush1.bf16.msra.mxu1 %v9477_v32  ;;  %2683 = vmatprep.subr.bf16.mxu0 %v9480_v18  ;;  %v9492_v61 = vld [vmem:[#allocation3 + $0x184] ss:$16 sps:$4 sm:$0xff]   ;;  %v9498_v18 = vld [vmem:[#allocation3 + $0x180] ss:$16 sps:$4 sm:$0xff]   ;;  %v9565_v32 = vld [vmem:[#allocation3 + $0x1cc] ss:$16 sps:$4 sm:$0xff]  }
 0x404   :  { %v2345_v53 = vpop.f32.mrf.mxu1  ;;  %2749 = vmatprep.subr.bf16.mxu1 %v9483_v7  ;;  %12427 = vst [vmem:[#allocation50_spill] sm:$0xff] %v9492_v61  ;;  %12429 = vst [vmem:[#allocation53_spill] sm:$0xff] %v9498_v18  ;;  %v9501_v7 = vld [vmem:[#allocation3 + $0x88] ss:$16 sps:$4 sm:$0xff]  }
 0x405   :  { %v9495_v53 = vld [vmem:[#allocation3 + $0x8c] ss:$16 sps:$4 sm:$0xff]   ;;  %12430 = vst [vmem:[#allocation54_spill] sm:$0xff] %v9501_v7  ;;  %12451 = vst [vmem:[#allocation57_spill] sm:$0xff] %v9565_v32 }
 0x406   :  { %2684 = vmatpush2.bf16.msra.mxu0 %v9486_v2  ;;  %12428 = vst [vmem:[#allocation52_spill] sm:$0xff] %v9495_v53  ;;  %v9504_v2 = vld [vmem:[#allocation3 + $0x164] ss:$16 sps:$4 sm:$0xff]  }
 0x407   :  { %2750 = vmatpush1.bf16.msra.mxu1 %v9489_v37  ;;  %2685 = vmatprep.subr.bf16.mxu0 %v9492_v61  ;;  %12431 = vst [vmem:[#allocation14_spill] sm:$0xff] %v9504_v2  ;;  %v9507_v37 = vld [vmem:[#allocation3 + $0x6c] ss:$16 sps:$4 sm:$0xff]   ;;  %v9510_v61 = vld [vmem:[#allocation3 + $0x160] ss:$16 sps:$4 sm:$0xff]  }
 0x408   :  { %2751 = vmatprep.subr.bf16.mxu1 %v9495_v53  ;;  %12432 = vst [vmem:[#allocation15_spill] sm:$0xff] %v9507_v37  ;;  %12433 = vst [vmem:[#allocation16_spill] sm:$0xff] %v9510_v61  ;;  %v9513_v53 = vld [vmem:[#allocation3 + $0x68] ss:$16 sps:$4 sm:$0xff]  }
 0x409   :  { %12434 = vst [vmem:[#allocation17_spill] sm:$0xff] %v9513_v53 }
 0x40a   :  { %2686 = vmatpush2.bf16.msra.mxu0 %v9498_v18  ;;  %v9516_v18 = vld [vmem:[#allocation3 + $0x144] ss:$16 sps:$4 sm:$0xff]  }
 0x40b   :  { %2752 = vmatpush1.bf16.msra.mxu1 %v9501_v7  ;;  %2687 = vmatprep.subr.bf16.mxu0 %v9504_v2  ;;  %12435 = vst [vmem:[#allocation18_spill] sm:$0xff] %v9516_v18  ;;  %v9519_v7 = vld [vmem:[#allocation3 + $0x4c] ss:$16 sps:$4 sm:$0xff]   ;;  %v9522_v2 = vld [vmem:[#allocation3 + $0x140] ss:$16 sps:$4 sm:$0xff]  }
 0x40c   :  { %2753 = vmatprep.subr.bf16.mxu1 %v9507_v37  ;;  %12436 = vst [vmem:[#allocation19_spill] sm:$0xff] %v9519_v7  ;;  %12437 = vst [vmem:[#allocation20_spill] sm:$0xff] %v9522_v2  ;;  %v9525_v37 = vld [vmem:[#allocation3 + $0x48] ss:$16 sps:$4 sm:$0xff]  }
 0x40d   :  { %12438 = vst [vmem:[#allocation21_spill] sm:$0xff] %v9525_v37 }
 0x40e   :  { %2688 = vmatpush2.bf16.msra.mxu0 %v9510_v61  ;;  %v9528_v61 = vld [vmem:[#allocation3 + $0x124] ss:$16 sps:$4 sm:$0xff]  }
 0x40f   :  { %2754 = vmatpush1.bf16.msra.mxu1 %v9513_v53  ;;  %2689 = vmatprep.subr.bf16.mxu0 %v9516_v18  ;;  %12439 = vst [vmem:[#allocation22_spill] sm:$0xff] %v9528_v61  ;;  %v9531_v53 = vld [vmem:[#allocation3 + $0x2c] ss:$16 sps:$4 sm:$0xff]   ;;  %v9534_v18 = vld [vmem:[#allocation3 + $0x120] ss:$16 sps:$4 sm:$0xff]  }
 0x410   :  { %2755 = vmatprep.subr.bf16.mxu1 %v9519_v7  ;;  %12440 = vst [vmem:[#allocation24_spill] sm:$0xff] %v9531_v53  ;;  %12441 = vst [vmem:[#allocation25_spill] sm:$0xff] %v9534_v18  ;;  %v9537_v7 = vld [vmem:[#allocation3 + $0x28] ss:$16 sps:$4 sm:$0xff]  }
 0x411   :  { %12442 = vst [vmem:[#allocation26_spill] sm:$0xff] %v9537_v7 }
 0x412   :  { %2690 = vmatpush2.bf16.msra.mxu0 %v9522_v2  ;;  %v9540_v2 = vld [vmem:[#allocation3 + $0x104] ss:$16 sps:$4 sm:$0xff]  }
 0x413   :  { %2756 = vmatpush1.bf16.msra.mxu1 %v9525_v37  ;;  %2691 = vmatprep.subr.bf16.mxu0 %v9528_v61  ;;  %12443 = vst [vmem:[#allocation58_spill] sm:$0xff] %v9540_v2  ;;  %v9543_v37 = vld [vmem:[#allocation3 + $0xc] ss:$16 sps:$4 sm:$0xff]   ;;  %v9546_v61 = vld [vmem:[#allocation3 + $0x100] ss:$16 sps:$4 sm:$0xff]  }
 0x414   :  { %2757 = vmatprep.subr.bf16.mxu1 %v9531_v53  ;;  %12444 = vst [vmem:[#allocation59_spill] sm:$0xff] %v9543_v37  ;;  %12445 = vst [vmem:[#allocation60_spill] sm:$0xff] %v9546_v61  ;;  %v9549_v53 = vld [vmem:[#allocation3 + $0x8] ss:$16 sps:$4 sm:$0xff]  }
 0x415   :  { %12446 = vst [vmem:[#allocation61_spill] sm:$0xff] %v9549_v53 }
 0x416   :  { %2692 = vmatpush2.bf16.msra.mxu0 %v9534_v18  ;;  %v9552_v18 = vld [vmem:[#allocation3 + $0x1ec] ss:$16 sps:$4 sm:$0xff]  }
 0x417   :  { %2758 = vmatpush1.bf16.msra.mxu1 %v9537_v7  ;;  %2693 = vmatprep.subr.bf16.mxu0 %v9540_v2  ;;  %12447 = vst [vmem:[#allocation62_spill] sm:$0xff] %v9552_v18  ;;  %v9555_v7 = vld [vmem:[#allocation3 + $0x2ec] ss:$16 sps:$4 sm:$0xff]  }
 0x418   :  { %2759 = vmatprep.subr.bf16.mxu1 %v9543_v37  ;;  %12448 = vst [vmem:[#allocation63_spill] sm:$0xff] %v9555_v7  ;;  %v9559_v37 = vld [vmem:[#allocation3 + $0x1e8] ss:$16 sps:$4 sm:$0xff]  }
 0x419   :  { %12449 = vst [vmem:[#allocation64_spill] sm:$0xff] %v9559_v37 }
 0x41a   :  { %2694 = vmatpush2.bf16.msra.mxu0 %v9546_v61  ;;  %v9562_v61 = vld [vmem:[#allocation3 + $0x2e8] ss:$16 sps:$4 sm:$0xff]  }
 0x41b   :  { %2760 = vmatpush1.bf16.msra.mxu1 %v9549_v53  ;;  %2786 = vmatprep.subr.bf16.mxu0 %v9555_v7  ;;  %12450 = vst [vmem:[#allocation44_spill] sm:$0xff] %v9562_v61 }
 0x41c   :  { %2761 = vmatprep.subr.bf16.mxu1 %v9552_v18  ;;  %v9568_v18 = vld [vmem:[#allocation3 + $0x2cc] ss:$16 sps:$4 sm:$0xff]  }
 0x41d   :  { %v2299_v2 = vpop.f32.mrf.mxu0  ;;  %2696 = vmatmul.mubr.bf16.vlgmr.msra.gmra.mxu0 %v9426_v24  ;;  %12452 = vst [vmem:[#allocation12_spill] sm:$0xff] %v9568_v18 }
 0x41e   :  { %2787 = vmatpush1.bf16.msra.mxu0 %v9562_v61  ;;  %v9572_v7 = vadd.f32 %v9456_v16, %v2299_v2  ;;  %2818 = vmatprep.mubr.bf16.mxu0 %v11947_v63  ;;  %v9586_v2 = vld [vmem:[#allocation3 + $0x1ac] ss:$16 sps:$4 sm:$0xff]   ;;  %v12482_v16 = vld [vmem:[#allocation22_spill] sm:$0xff] }
 0x41f   :  { %2762 = vmatpush2.bf16.msra.mxu1 %v9559_v37  ;;  %v2301_v53 = vpop.f32.mrf.mxu0  ;;  %2788 = vmatprep.subr.bf16.mxu0 %v9568_v18 }
 0x420   :  { %2763 = vmatprep.subr.bf16.mxu1 %v9565_v32  ;;  %v9575_v6 = vadd.f32 %v9465_v59, %v2301_v53  ;;  %v9583_v32 = vld [vmem:[#allocation3 + $0x2c8] ss:$16 sps:$4 sm:$0xff]   ;;  %v9589_v59 = vld [vmem:[#allocation3 + $0x2ac] ss:$16 sps:$4 sm:$0xff]  }
 0x421   :  { %v2303_v37 = vpop.f32.mrf.mxu0  ;;  %v12485_v53 = vld [vmem:[#allocation26_spill] sm:$0xff] }
 0x422   :  { %v2429_v61 = vmax.f32 %v9572_v7, %v9575_v6  ;;  %2789 = vmatpush1.bf16.msra.mxu0 %v9583_v32  ;;  %v12479_v6 = vld [vmem:[#allocation19_spill] sm:$0xff]  ;;  %v12481_v7 = vld [vmem:[#allocation21_spill] sm:$0xff]  ;;  %v12483_v37 = vld [vmem:[#allocation24_spill] sm:$0xff] }
 0x423   :  { %2764 = vmatpush2.bf16.msra.mxu1 %v9580_v19  ;;  %v2304_v18 = vpop.f32.mrf.mxu0  ;;  %2790 = vmatprep.subr.bf16.mxu0 %v9589_v59 }
 0x424   :  { %2765 = vmatprep.subr.bf16.mxu1 %v9586_v2  ;;  %v12478_v18 = vld [vmem:[#allocation18_spill] sm:$0xff] }
 0x426   :  { %2791 = vmatpush1.bf16.msra.mxu0 %v12391_v4 }
 0x427   :  { %2766 = vmatpush2.bf16.msra.mxu1 %v12390_v56  ;;  %2792 = vmatprep.subr.bf16.mxu0 %v12393_v54 }
 0x428   :  { %2767 = vmatprep.subr.bf16.mxu1 %v12392_v20 }
 0x42a   :  { %2793 = vmatpush1.bf16.msra.mxu0 %v12395_v31 }
 0x42b   :  { %2768 = vmatpush2.bf16.msra.mxu1 %v12394_v3  ;;  %2794 = vmatprep.subr.bf16.mxu0 %v12397_v60 }
 0x42c   :  { %2769 = vmatprep.subr.bf16.mxu1 %v12396_v21 }
 0x42e   :  { %2795 = vmatpush1.bf16.msra.mxu0 %v12350_v39  ;;  %v6069_v39 = vld.sshfl [vmem:[%s11331_s0 + $0xb] sm:$0x13 pattern:$0x75316420] }
 0x42f   :  { %2770 = vmatpush2.bf16.msra.mxu1 %v12398_v0  ;;  %2796 = vmatprep.subr.bf16.mxu0 %v12400_v48  ;;  %v2843_v56 = vcombine.high %v6069_v39, %v6069_v39 }
 0x430   :  { %2771 = vmatprep.subr.bf16.mxu1 %v12399_v50 }
 0x431   :  { %v2857_v4 = vrot.slane %v2843_v56, %v7615_v34  ;;  %v12487_v56 = vld [vmem:[#allocation59_spill] sm:$0xff] }
 0x432   :  { %2797 = vmatpush1.bf16.msra.mxu0 %v12402_v58 }
 0x433   :  { %2772 = vmatpush2.bf16.msra.mxu1 %v12401_v27  ;;  %2798 = vmatprep.subr.bf16.mxu0 %v12404_v9 }
 0x434   :  { %2773 = vmatprep.subr.bf16.mxu1 %v12403_v47  ;;  %v9634_v47 = vld [vmem:[%s11333_s2] ss:$0 sm:$0xff] }
 0x436   :  { %2799 = vmatpush1.bf16.msra.mxu0 %v12406_v10 }
 0x437   :  { %2774 = vmatpush2.bf16.msra.mxu1 %v12405_v57  ;;  %2800 = vmatprep.subr.bf16.mxu0 %v12408_v14  ;;  %v12453_v14 = vld [vmem:[#allocation51_spill] sm:$0xff] }
 0x438   :  { %2775 = vmatprep.subr.bf16.mxu1 %v12407_v13  ;;  %v9654_v13 = vrot.slane %v6069_v39, %v7615_v34  ;;  %v12486_v39 = vld [vmem:[#allocation58_spill] sm:$0xff] }
 0x43a   :  { %2801 = vmatpush1.bf16.msra.mxu0 %v9091_v44 }
 0x43b   :  { %2776 = vmatpush2.bf16.msra.mxu1 %v12409_v36  ;;  %2862 = vmatprep.subr.bf16.mxu0 %v9335_v33  ;;  %v12454_v36 = vld [vmem:[#allocation55_spill] sm:$0xff]  ;;  %v12455_v33 = vld [vmem:[#allocation56_spill] sm:$0xff] }
 0x43c   :  { %2903 = vmatprep.subr.bf16.mxu1 %v9338_v52  ;;  %v9662_v52 = vcombine.high %v9654_v13, %v9654_v13 }
 0x43d   :  { %v2422_v54 = vpop.f32.mrf.mxu0  ;;  %2819 = vmatmul.mubr.bf16.vlgmr.msra.gmra.mxu0 %v9442_v17  ;;  %v12480_v17 = vld [vmem:[#allocation20_spill] sm:$0xff] }
 0x43e   :  { %v2381_v20 = vpop.f32.mrf.mxu1  ;;  %2778 = vmatmul.mubr.bf16.vlgmr.msra.gmra.mxu1 %v9426_v24  ;;  %2863 = vmatpush1.bf16.msra.mxu0 %v9346_v35  ;;  %v12456_v35 = vld [vmem:[#allocation27_spill] sm:$0xff]  ;;  %v12476_v24 = vld [vmem:[#allocation16_spill] sm:$0xff] }
 0x43f   :  { %v2423_v3 = vadd.f32 %v2422_v54, %v2381_v20  ;;  %2904 = vmatpush1.bf16.msra.mxu1 %v9349_v43  ;;  %v2424_v21 = vpop.f32.mrf.mxu0  ;;  %2864 = vmatprep.subr.bf16.mxu0 %v9352_v55  ;;  %v12457_v43 = vld [vmem:[#allocation23_spill] sm:$0xff]  ;;  %v12489_v20 = vld [vmem:[#allocation61_spill] sm:$0xff]  ;;  %v12490_v54 = vld [vmem:[#allocation62_spill] sm:$0xff] }
 0x440   :  { %v2383_v31 = vpop.f32.mrf.mxu1  ;;  %2905 = vmatprep.subr.bf16.mxu1 %v9355_v1  ;;  %2935 = vmatprep.mubr.bf16.mxu1 %v11947_v63  ;;  %v12458_v55 = vld [vmem:[#allocation39_spill] sm:$0xff] }
 0x441   :  { %v2425_v44 = vadd.f32 %v2424_v21, %v2383_v31  ;;  %2894 = vmatprep.mubr.bf16.mxu0 %v2857_v4  ;;  %v2426_v0 = vpop.f32.mrf.mxu0  ;;  %v12459_v1 = vld [vmem:[#allocation43_spill] sm:$0xff]  ;;  %v12492_v21 = vld [vmem:[#allocation64_spill] sm:$0xff] }
 0x442   :  { %v2385_v60 = vpop.f32.mrf.mxu1  ;;  %2865 = vmatpush1.bf16.msra.mxu0 %v9360_v8  ;;  %v12494_v0 = vld [vmem:[#allocation57_spill] sm:$0xff] }
 0x443   :  { %v2430_v50 = vmax.f32 %v2423_v3, %v2425_v44  ;;  %2906 = vmatpush1.bf16.msra.mxu1 %v9363_v12  ;;  %v2427_v27 = vpop.f32.mrf.mxu0  ;;  %2866 = vmatprep.subr.bf16.mxu0 %v9366_v11  ;;  %v12460_v12 = vld [vmem:[#allocation37_spill] sm:$0xff]  ;;  %v12461_v11 = vld [vmem:[#allocation38_spill] sm:$0xff]  ;;  %v12491_v3 = vld [vmem:[#allocation63_spill] sm:$0xff] }
 0x444   :  { %v2386_v48 = vpop.f32.mrf.mxu1  ;;  %2907 = vmatprep.subr.bf16.mxu1 %v9369_v15  ;;  %v12493_v44 = vld [vmem:[#allocation44_spill] sm:$0xff] }
 0x445   :  { %v2431_v58 = vmax.f32 %v2429_v61, %v2430_v50  ;;  %v12484_v61 = vld [vmem:[#allocation25_spill] sm:$0xff]  ;;  %v12495_v50 = vld [vmem:[#allocation12_spill] sm:$0xff] }
 0x446   :  { %2867 = vmatpush1.bf16.msra.mxu0 %v9376_v29  ;;  %v12462_v29 = vld [vmem:[#allocation40_spill] sm:$0xff] }
 0x447   :  { %v2432_v9 = vadd.f32 %v9634_v47, %v2431_v58  ;;  %2908 = vmatpush1.bf16.msra.mxu1 %v9379_v26  ;;  %2868 = vmatprep.subr.bf16.mxu0 %v9382_v28  ;;  %v12463_v26 = vld [vmem:[#allocation41_spill] sm:$0xff] }
 0x448   :  { %2909 = vmatprep.subr.bf16.mxu1 %v9385_v45  ;;  %v12464_v45 = vld [vmem:[#allocation42_spill] sm:$0xff] }
 0x449   :  { %v2433_v57 = vmax.f32 %v2432_v9, 0.0 }
 0x44a   :  { %2869 = vmatpush1.bf16.msra.mxu0 %v9388_v40  ;;  %v12465_v40 = vld [vmem:[#allocation45_spill] sm:$0xff] }
 0x44b   :  { %v2434_v10 = vpack.c.bf16 %v2433_v57, %v2433_v57  ;;  %2910 = vmatpush1.bf16.msra.mxu1 %v9391_v46  ;;  %2870 = vmatprep.subr.bf16.mxu0 %v9394_v42  ;;  %v12466_v42 = vld [vmem:[#allocation46_spill] sm:$0xff] }
 0x44c   :  { %2911 = vmatprep.subr.bf16.mxu1 %v9397_v51  ;;  %v12467_v51 = vld [vmem:[#allocation47_spill] sm:$0xff] }
 0x44d   :  { %2435 = vst [vmem:[#allocation2 + $0x8] sm:$0x1] %v2434_v10  ;;  %v7188_v10 = vld [vmem:[#allocation3 + $0x1a8] ss:$16 sps:$4 sm:$0xff]  }
 0x44e   :  { %2871 = vmatpush1.bf16.msra.mxu0 %v9400_v38  ;;  %v12468_v38 = vld [vmem:[#allocation48_spill] sm:$0xff] }
 0x44f   :  { %2912 = vmatpush1.bf16.msra.mxu1 %v9403_v23  ;;  %2872 = vmatprep.subr.bf16.mxu0 %v9406_v49  ;;  %v12469_v23 = vld [vmem:[#allocation49_spill] sm:$0xff]  ;;  %v12470_v49 = vld [vmem:[#allocation50_spill] sm:$0xff] }
 0x450   :  { %2913 = vmatprep.subr.bf16.mxu1 %v9409_v5  ;;  %v12471_v5 = vld [vmem:[#allocation52_spill] sm:$0xff] }
 0x452   :  { %2873 = vmatpush1.bf16.msra.mxu0 %v9412_v25  ;;  %v12472_v25 = vld [vmem:[#allocation53_spill] sm:$0xff] }
 0x453   :  { %2914 = vmatpush1.bf16.msra.mxu1 %v9415_v62  ;;  %2874 = vmatprep.subr.bf16.mxu0 %v9418_v41  ;;  %v12473_v62 = vld [vmem:[#allocation54_spill] sm:$0xff] }
 0x454   :  { %2915 = vmatprep.subr.bf16.mxu1 %v9421_v22  ;;  %v12474_v41 = vld [vmem:[#allocation14_spill] sm:$0xff]  ;;  %v12475_v22 = vld [vmem:[#allocation15_spill] sm:$0xff] }
 0x456   :  { %2875 = vmatpush1.bf16.msra.mxu0 %v9428_v30  ;;  %v12477_v30 = vld [vmem:[#allocation17_spill] sm:$0xff] }
 0x457   :  { %2916 = vmatpush1.bf16.msra.mxu1 %v12453_v14  ;;  %2876 = vmatprep.subr.bf16.mxu0 %v12454_v36  ;;  %v7189_v14 = vld [vmem:[#allocation3 + $0x2a8] ss:$16 sps:$4 sm:$0xff]   ;;  %v7190_v36 = vld [vmem:[#allocation3 + $0x18c] ss:$16 sps:$4 sm:$0xff]  }
 0x458   :  { %2917 = vmatprep.subr.bf16.mxu1 %v12455_v33  ;;  %v7192_v33 = vld [vmem:[#allocation3 + $0x188] ss:$16 sps:$4 sm:$0xff]  }
 0x45a   :  { %2877 = vmatpush1.bf16.msra.mxu0 %v12456_v35  ;;  %v7193_v35 = vld [vmem:[#allocation3 + $0x288] ss:$16 sps:$4 sm:$0xff]  }
 0x45b   :  { %2918 = vmatpush1.bf16.msra.mxu1 %v12457_v43  ;;  %2878 = vmatprep.subr.bf16.mxu0 %v12458_v55  ;;  %v7196_v43 = vld [vmem:[#allocation3 + $0x168] ss:$16 sps:$4 sm:$0xff]   ;;  %v7198_v55 = vld [vmem:[#allocation3 + $0x14c] ss:$16 sps:$4 sm:$0xff]  }
 0x45c   :  { %2944 = vmatprep.subr.bf16.mxu1 %v12459_v1  ;;  %v7199_v1 = vld [vmem:[#allocation3 + $0x24c] ss:$16 sps:$4 sm:$0xff]  }
 0x45e   :  { %v2539_v8 = vpop.f32.mrf.mxu1  ;;  %2936 = vmatmul.mubr.bf16.vlgmr.msra.gmra.mxu1 %v9662_v52  ;;  %2879 = vmatpush2.bf16.msra.mxu0 %v12460_v12  ;;  %v7200_v12 = vld [vmem:[#allocation3 + $0x148] ss:$16 sps:$4 sm:$0xff]  }
 0x45f   :  { %2945 = vmatpush1.bf16.msra.mxu1 %v12461_v11  ;;  %2880 = vmatprep.subr.bf16.mxu0 %v12462_v29  ;;  %v7201_v11 = vld [vmem:[#allocation3 + $0x248] ss:$16 sps:$4 sm:$0xff]   ;;  %v7203_v29 = vld [vmem:[#allocation3 + $0x22c] ss:$16 sps:$4 sm:$0xff]  }
 0x460   :  { %v2541_v15 = vpop.f32.mrf.mxu1  ;;  %2946 = vmatprep.subr.bf16.mxu1 %v12463_v26  ;;  %2976 = vmatprep.mubr.bf16.mxu1 %v2857_v4  ;;  %v12488_v4 = vld [vmem:[#allocation60_spill] sm:$0xff] }
 0x462   :  { %v2543_v28 = vpop.f32.mrf.mxu1  ;;  %2881 = vmatpush2.bf16.msra.mxu0 %v12464_v45  ;;  %v7205_v45 = vld [vmem:[#allocation3 + $0x228] ss:$16 sps:$4 sm:$0xff]  }
 0x463   :  { %2947 = vmatpush1.bf16.msra.mxu1 %v12465_v40  ;;  %2882 = vmatprep.subr.bf16.mxu0 %v12466_v42  ;;  %v7204_v28 = vld [vmem:[#allocation3 + $0x128] ss:$16 sps:$4 sm:$0xff]   ;;  %v7206_v40 = vld [vmem:[#allocation3 + $0x10c] ss:$16 sps:$4 sm:$0xff]   ;;  %v9725_v42 = vld [vmem:[#allocation6 + $0xe4] ss:$16 sps:$4 sm:$0xff]  }
 0x464   :  { %v2544_v46 = vpop.f32.mrf.mxu1  ;;  %2948 = vmatprep.subr.bf16.mxu1 %v12467_v51  ;;  %v9727_v51 = vld [vmem:[#allocation6 + $0x2e4] ss:$16 sps:$4 sm:$0xff]  }
 0x465   :  { %v7207_v46 = vld [vmem:[#allocation3 + $0x20c] ss:$16 sps:$4 sm:$0xff]  }
 0x466   :  { %2883 = vmatpush2.bf16.msra.mxu0 %v12468_v38 }
 0x467   :  { %2949 = vmatpush1.bf16.msra.mxu1 %v12469_v23  ;;  %2884 = vmatprep.subr.bf16.mxu0 %v12470_v49  ;;  %v7208_v23 = vld [vmem:[#allocation3 + $0x108] ss:$16 sps:$4 sm:$0xff]  }
 0x468   :  { %2950 = vmatprep.subr.bf16.mxu1 %v12471_v5  ;;  %v7209_v49 = vld [vmem:[#allocation3 + $0x208] ss:$16 sps:$4 sm:$0xff]   ;;  %v9732_v5 = vld [vmem:[#allocation6 + $0xe0] ss:$16 sps:$4 sm:$0xff]  }
 0x46a   :  { %2885 = vmatpush2.bf16.msra.mxu0 %v12472_v25  ;;  %v9736_v25 = vld [vmem:[#allocation6 + $0x2e0] ss:$16 sps:$4 sm:$0xff]  }
 0x46b   :  { %2951 = vmatpush1.bf16.msra.mxu1 %v12473_v62  ;;  %2886 = vmatprep.subr.bf16.mxu0 %v12474_v41  ;;  %v9738_v62 = vld [vmem:[#allocation6 + $0xc4] ss:$16 sps:$4 sm:$0xff]  }
 0x46c   :  { %2952 = vmatprep.subr.bf16.mxu1 %v12475_v22  ;;  %v9740_v41 = vld [vmem:[#allocation6 + $0x2c4] ss:$16 sps:$4 sm:$0xff]  }
 0x46e   :  { %2887 = vmatpush2.bf16.msra.mxu0 %v12476_v24 }
 0x46f   :  { %2953 = vmatpush1.bf16.msra.mxu1 %v12477_v30  ;;  %2888 = vmatprep.subr.bf16.mxu0 %v12478_v18 }
 0x470   :  { %2954 = vmatprep.subr.bf16.mxu1 %v12479_v6  ;;  %v9750_v6 = vld [vmem:[#allocation6 + $0xc0] ss:$16 sps:$4 sm:$0xff]  }
 0x472   :  { %2889 = vmatpush2.bf16.msra.mxu0 %v12480_v17 }
 0x473   :  { %2955 = vmatpush1.bf16.msra.mxu1 %v12481_v7  ;;  %2890 = vmatprep.subr.bf16.mxu0 %v12482_v16 }
 0x474   :  { %2956 = vmatprep.subr.bf16.mxu1 %v12483_v37  ;;  %v9760_v37 = vld [vmem:[#allocation6 + $0x2a4] ss:$16 sps:$4 sm:$0xff]  }
 0x476   :  { %2891 = vmatpush2.bf16.msra.mxu0 %v12484_v61 }
 0x477   :  { %2957 = vmatpush1.bf16.msra.mxu1 %v12485_v53  ;;  %2892 = vmatprep.subr.bf16.mxu0 %v12486_v39 }
 0x478   :  { %2958 = vmatprep.subr.bf16.mxu1 %v12487_v56  ;;  %v9763_v56 = vld [vmem:[#allocation6 + $0xa0] ss:$16 sps:$4 sm:$0xff]  }
 0x47a   :  { %2893 = vmatpush2.bf16.msra.mxu0 %v12488_v4 }
 0x47b   :  { %2959 = vmatpush1.bf16.msra.mxu1 %v12489_v20  ;;  %2985 = vmatprep.subr.bf16.mxu0 %v12491_v3  ;;  %v9769_v3 = vld [vmem:[#allocation6 + $0x84] ss:$16 sps:$4 sm:$0xff]  }
 0x47c   :  { %2960 = vmatprep.subr.bf16.mxu1 %v12490_v54  ;;  %v9767_v54 = vld [vmem:[#allocation6 + $0x2a0] ss:$16 sps:$4 sm:$0xff]  }
 0x47d   :  { %v2498_v31 = vpop.f32.mrf.mxu0  ;;  %2895 = vmatmul.mubr.bf16.vlgmr.msra.gmra.mxu0 %v9654_v13 }
 0x47e   :  { %2986 = vmatpush1.bf16.msra.mxu0 %v12493_v44  ;;  %v9706_v48 = vadd.f32 %v2539_v8, %v2498_v31  ;;  %3017 = vmatprep.mubr.bf16.mxu0 %v11947_v63  ;;  %v7191_v63 = vld [vmem:[#allocation3 + $0x28c] ss:$16 sps:$4 sm:$0xff]  }
 0x47f   :  { %2961 = vmatpush2.bf16.msra.mxu1 %v12492_v21  ;;  %v2500_v60 = vpop.f32.mrf.mxu0  ;;  %2987 = vmatprep.subr.bf16.mxu0 %v12495_v50  ;;  %v9775_v21 = vld [vmem:[#allocation6 + $0x284] ss:$16 sps:$4 sm:$0xff]  }
 0x480   :  { %2962 = vmatprep.subr.bf16.mxu1 %v12494_v0  ;;  %v9708_v27 = vadd.f32 %v2541_v15, %v2500_v60  ;;  %v7202_v15 = vld [vmem:[#allocation3 + $0x12c] ss:$16 sps:$4 sm:$0xff]   ;;  %v9779_v60 = vld [vmem:[#allocation6 + $0x80] ss:$16 sps:$4 sm:$0xff]   ;;  %v9785_v50 = vld [vmem:[#allocation6 + $0x64] ss:$16 sps:$4 sm:$0xff]  }
 0x481   :  { %v2502_v58 = vpop.f32.mrf.mxu0  ;;  %v9783_v0 = vld [vmem:[#allocation6 + $0x280] ss:$16 sps:$4 sm:$0xff]  }
 0x482   :  { %v2628_v9 = vmax.f32 %v9706_v48, %v9708_v27  ;;  %2988 = vmatpush1.bf16.msra.mxu0 %v9583_v32  ;;  %v7195_v32 = vld [vmem:[#allocation3 + $0x26c] ss:$16 sps:$4 sm:$0xff]   ;;  %v9788_v27 = vld [vmem:[#allocation6 + $0x264] ss:$16 sps:$4 sm:$0xff]  }
 0x483   :  { %2963 = vmatpush2.bf16.msra.mxu1 %v9580_v19  ;;  %v2503_v57 = vpop.f32.mrf.mxu0  ;;  %2989 = vmatprep.subr.bf16.mxu0 %v9589_v59  ;;  %v7194_v19 = vld [vmem:[#allocation3 + $0x16c] ss:$16 sps:$4 sm:$0xff]   ;;  %v9717_v59 = vld [vmem:[#allocation2] sm:$0x3f] }
 0x484   :  { %2964 = vmatprep.subr.bf16.mxu1 %v9586_v2  ;;  %v7197_v2 = vld [vmem:[#allocation3 + $0x268] ss:$16 sps:$4 sm:$0xff]   ;;  %v9721_v8 = vrot.slane %v9717_v59, %v7615_v34  ;;  %v9795_v57 = vld [vmem:[#allocation6 + $0x260] ss:$16 sps:$4 sm:$0xff]  }
 0x486   :  { %2990 = vmatpush1.bf16.msra.mxu0 %v7189_v14  ;;  %v3243_v26 = vcombine.high %v9721_v8, %v9721_v8  ;;  %v9800_v14 = vld [vmem:[#allocation6 + $0x244] ss:$16 sps:$4 sm:$0xff]  }
 0x487   :  { %2965 = vmatpush2.bf16.msra.mxu1 %v7188_v10  ;;  %2991 = vmatprep.subr.bf16.mxu0 %v7191_v63  ;;  %v9797_v10 = vld [vmem:[#allocation6 + $0x44] ss:$16 sps:$4 sm:$0xff]   ;;  %v9807_v63 = vld [vmem:[#allocation6 + $0x240] ss:$16 sps:$4 sm:$0xff]  }
 0x488   :  { %2966 = vmatprep.subr.bf16.mxu1 %v7190_v36  ;;  %v9730_v38 = vrot.slane %v3243_v26, %v7615_v34  ;;  %v9803_v36 = vld [vmem:[#allocation6 + $0x40] ss:$16 sps:$4 sm:$0xff]   ;;  %v9845_v26 = vld [vmem:[#allocation6 + $0x1c4] ss:$16 sps:$4 sm:$0xff]  }
 0x48a   :  { %2992 = vmatpush1.bf16.msra.mxu0 %v7193_v35  ;;  %v9746_v30 = vcombine.high %v9730_v38, %v9730_v38  ;;  %v9812_v35 = vld [vmem:[#allocation6 + $0x224] ss:$16 sps:$4 sm:$0xff]  }
 0x48b   :  { %2967 = vmatpush2.bf16.msra.mxu1 %v7192_v33  ;;  %2993 = vmatprep.subr.bf16.mxu0 %v7195_v32  ;;  %v9809_v33 = vld [vmem:[#allocation6 + $0x24] ss:$16 sps:$4 sm:$0xff]   ;;  %v9819_v32 = vld [vmem:[#allocation6 + $0x220] ss:$16 sps:$4 sm:$0xff]  }
 0x48c   :  { %2968 = vmatprep.subr.bf16.mxu1 %v7194_v19  ;;  %v9815_v19 = vld [vmem:[#allocation6 + $0x20] ss:$16 sps:$4 sm:$0xff]  }
 0x48e   :  { %2994 = vmatpush1.bf16.msra.mxu0 %v7197_v2  ;;  %v9824_v2 = vld [vmem:[#allocation6 + $0x204] ss:$16 sps:$4 sm:$0xff]  }
 0x48f   :  { %2969 = vmatpush2.bf16.msra.mxu1 %v7196_v43  ;;  %2995 = vmatprep.subr.bf16.mxu0 %v7199_v1  ;;  %v9821_v43 = vld [vmem:[#allocation6 + $0x4] ss:$16 sps:$4 sm:$0xff]   ;;  %v9831_v1 = vld [vmem:[#allocation6 + $0x200] ss:$16 sps:$4 sm:$0xff]  }
 0x490   :  { %2970 = vmatprep.subr.bf16.mxu1 %v7198_v55  ;;  %v9827_v55 = vld [vmem:[#allocation6] ss:$16 sps:$4 sm:$0xff]  }
 0x492   :  { %2996 = vmatpush1.bf16.msra.mxu0 %v7201_v11  ;;  %v9836_v11 = vld [vmem:[#allocation6 + $0x3e4] ss:$16 sps:$4 sm:$0xff]  }
 0x493   :  { %2971 = vmatpush2.bf16.msra.mxu1 %v7200_v12  ;;  %2997 = vmatprep.subr.bf16.mxu0 %v7203_v29  ;;  %v9833_v12 = vld [vmem:[#allocation6 + $0x1e4] ss:$16 sps:$4 sm:$0xff]   ;;  %v9843_v29 = vld [vmem:[#allocation6 + $0x3e0] ss:$16 sps:$4 sm:$0xff]  }
 0x494   :  { %2972 = vmatprep.subr.bf16.mxu1 %v7202_v15  ;;  %v9839_v15 = vld [vmem:[#allocation6 + $0x1e0] ss:$16 sps:$4 sm:$0xff]  }
 0x496   :  { %2998 = vmatpush1.bf16.msra.mxu0 %v7205_v45 }
 0x497   :  { %2973 = vmatpush2.bf16.msra.mxu1 %v7204_v28  ;;  %2999 = vmatprep.subr.bf16.mxu0 %v7207_v46  ;;  %v9848_v28 = vld [vmem:[#allocation6 + $0x3c4] ss:$16 sps:$4 sm:$0xff]  }
 0x498   :  { %2974 = vmatprep.subr.bf16.mxu1 %v7206_v40  ;;  %v9853_v40 = vld [vmem:[#allocation6 + $0x1c0] ss:$16 sps:$4 sm:$0xff]  }
 0x49a   :  { %3000 = vmatpush1.bf16.msra.mxu0 %v7209_v49  ;;  %v9861_v49 = vld [vmem:[#allocation6 + $0x1a4] ss:$16 sps:$4 sm:$0xff]  }
 0x49b   :  { %2975 = vmatpush2.bf16.msra.mxu1 %v7208_v23  ;;  %4241 = vmatprep.subr.bf16.mxu0 %v9725_v42  ;;  %v9859_v23 = vld [vmem:[#allocation6 + $0x3c0] ss:$16 sps:$4 sm:$0xff]   ;;  %12497 = vst [vmem:[#allocation28_spill] sm:$0xff] %v9861_v49 }
 0x49c   :  { %4282 = vmatprep.subr.bf16.mxu1 %v9727_v51  ;;  %12496 = vst [vmem:[#allocation13_spill] sm:$0xff] %v9859_v23 }
 0x49d   :  { %v2621_v24 = vpop.f32.mrf.mxu0  ;;  %3018 = vmatmul.mubr.bf16.vlgmr.msra.gmra.mxu0 %v9662_v52  ;;  %v9756_v52 = vld [vmem:[#allocation6 + $0xa4] ss:$16 sps:$4 sm:$0xff]  }
 0x49e   :  { %v2580_v22 = vpop.f32.mrf.mxu1  ;;  %2977 = vmatmul.mubr.bf16.vlgmr.msra.gmra.mxu1 %v9654_v13  ;;  %4242 = vmatpush1.bf16.msra.mxu0 %v9732_v5  ;;  %v9754_v13 = vld [vmem:[#allocation6 + $0x2c0] ss:$16 sps:$4 sm:$0xff]  }
 0x49f   :  { %v2622_v18 = vadd.f32 %v2621_v24, %v2580_v22  ;;  %4273 = vmatprep.mubr.bf16.mxu0 %v9730_v38  ;;  %4283 = vmatpush1.bf16.msra.mxu1 %v9736_v25  ;;  %v2623_v7 = vpop.f32.mrf.mxu0  ;;  %v9864_v22 = vld [vmem:[#allocation6 + $0x3a4] ss:$16 sps:$4 sm:$0xff]  }
 0x4a0   :  { %4314 = vmatprep.mubr.bf16.mxu1 %v9746_v30  ;;  %v2582_v17 = vpop.f32.mrf.mxu1  ;;  %4243 = vmatprep.subr.bf16.mxu0 %v9738_v62  ;;  %12498 = vst [vmem:[#allocation29_spill] sm:$0xff] %v9864_v22 }
 0x4a1   :  { %v2624_v16 = vadd.f32 %v2623_v7, %v2582_v17  ;;  %4284 = vmatprep.subr.bf16.mxu1 %v9740_v41  ;;  %v2625_v53 = vpop.f32.mrf.mxu0  ;;  %v9871_v7 = vld [vmem:[#allocation6 + $0x3a0] ss:$16 sps:$4 sm:$0xff]  }
 0x4a2   :  { %v2584_v61 = vpop.f32.mrf.mxu1  ;;  %4244 = vmatpush1.bf16.msra.mxu0 %v9750_v6  ;;  %12500 = vst [vmem:[#allocation31_spill] sm:$0xff] %v9871_v7  ;;  %v9879_v53 = vld [vmem:[#allocation6 + $0x180] ss:$16 sps:$4 sm:$0xff]  }
 0x4a3   :  { %v2629_v39 = vmax.f32 %v2622_v18, %v2624_v16  ;;  %4285 = vmatpush1.bf16.msra.mxu1 %v9754_v13  ;;  %v2626_v20 = vpop.f32.mrf.mxu0  ;;  %4245 = vmatprep.subr.bf16.mxu0 %v9756_v52  ;;  %v9867_v18 = vld [vmem:[#allocation6 + $0x1a0] ss:$16 sps:$4 sm:$0xff]   ;;  %v9873_v16 = vld [vmem:[#allocation6 + $0x184] ss:$16 sps:$4 sm:$0xff]   ;;  %12503 = vst [vmem:[#allocation34_spill] sm:$0xff] %v9879_v53 }
 0x4a4   :  { %v2585_v4 = vpop.f32.mrf.mxu1  ;;  %4286 = vmatprep.subr.bf16.mxu1 %v9760_v37  ;;  %12499 = vst [vmem:[#allocation30_spill] sm:$0xff] %v9867_v18  ;;  %12501 = vst [vmem:[#allocation32_spill] sm:$0xff] %v9873_v16  ;;  %v9876_v61 = vld [vmem:[#allocation6 + $0x384] ss:$16 sps:$4 sm:$0xff]  }
 0x4a5   :  { %v2630_v31 = vmax.f32 %v2628_v9, %v2629_v39  ;;  %v9791_v9 = vld [vmem:[#allocation6 + $0x60] ss:$16 sps:$4 sm:$0xff]   ;;  %12502 = vst [vmem:[#allocation33_spill] sm:$0xff] %v9876_v61  ;;  %v9885_v4 = vld [vmem:[#allocation6 + $0x164] ss:$16 sps:$4 sm:$0xff]  }
 0x4a6   :  { %4246 = vmatpush1.bf16.msra.mxu0 %v9763_v56  ;;  %v9883_v39 = vld [vmem:[#allocation6 + $0x380] ss:$16 sps:$4 sm:$0xff]   ;;  %12505 = vst [vmem:[#allocation36_spill] sm:$0xff] %v9885_v4  ;;  %v9888_v20 = vld [vmem:[#allocation6 + $0x364] ss:$16 sps:$4 sm:$0xff]  }
 0x4a7   :  { %v2631_v44 = vadd.f32 %v9634_v47, %v2630_v31  ;;  %4287 = vmatpush1.bf16.msra.mxu1 %v9767_v54  ;;  %4247 = vmatprep.subr.bf16.mxu0 %v9769_v3  ;;  %12504 = vst [vmem:[#allocation35_spill] sm:$0xff] %v9883_v39  ;;  %12506 = vst [vmem:[#allocation51_spill] sm:$0xff] %v9888_v20  ;;  %v9891_v31 = vld [vmem:[#allocation6 + $0x160] ss:$16 sps:$4 sm:$0xff]  }
 0x4a8   :  { %4288 = vmatprep.subr.bf16.mxu1 %v9775_v21  ;;  %12507 = vst [vmem:[#allocation55_spill] sm:$0xff] %v9891_v31 }
 0x4a9   :  { %v2632_v48 = vmax.f32 %v2631_v44, 0.0  ;;  %v9895_v44 = vld [vmem:[#allocation6 + $0x360] ss:$16 sps:$4 sm:$0xff]  }
 0x4aa   :  { %4248 = vmatpush1.bf16.msra.mxu0 %v9779_v60  ;;  %12508 = vst [vmem:[#allocation56_spill] sm:$0xff] %v9895_v44 }
 0x4ab   :  { %v2633_v58 = vpack.c.bf16 %v2632_v48, %v2632_v48  ;;  %4289 = vmatpush1.bf16.msra.mxu1 %v9783_v0  ;;  %4249 = vmatprep.subr.bf16.mxu0 %v9785_v50  ;;  %v9897_v48 = vld [vmem:[#allocation6 + $0x144] ss:$16 sps:$4 sm:$0xff]  }
 0x4ac   :  { %4290 = vmatprep.subr.bf16.mxu1 %v9788_v27  ;;  %12509 = vst [vmem:[#allocation27_spill] sm:$0xff] %v9897_v48 }
 0x4ad   :  { %2634 = vst [vmem:[#allocation2 + $0x9] sm:$0x1] %v2633_v58  ;;  %v9900_v58 = vld [vmem:[#allocation6 + $0x344] ss:$16 sps:$4 sm:$0xff]  }
 0x4ae   :  { %4250 = vmatpush1.bf16.msra.mxu0 %v9791_v9  ;;  %12510 = vst [vmem:[#allocation23_spill] sm:$0xff] %v9900_v58 }
 0x4af   :  { %4291 = vmatpush1.bf16.msra.mxu1 %v9795_v57  ;;  %4251 = vmatprep.subr.bf16.mxu0 %v9797_v10 }
 0x4b0   :  { %4292 = vmatprep.subr.bf16.mxu1 %v9800_v14 }
 0x4b2   :  { %4252 = vmatpush1.bf16.msra.mxu0 %v9803_v36 }
 0x4b3   :  { %4293 = vmatpush1.bf16.msra.mxu1 %v9807_v63  ;;  %4253 = vmatprep.subr.bf16.mxu0 %v9809_v33 }
 0x4b4   :  { %4294 = vmatprep.subr.bf16.mxu1 %v9812_v35 }
 0x4b6   :  { %4254 = vmatpush1.bf16.msra.mxu0 %v9815_v19 }
 0x4b7   :  { %4295 = vmatpush1.bf16.msra.mxu1 %v9819_v32  ;;  %4255 = vmatprep.subr.bf16.mxu0 %v9821_v43 }
 0x4b8   :  { %4296 = vmatprep.subr.bf16.mxu1 %v9824_v2 }
 0x4ba   :  { %4256 = vmatpush1.bf16.msra.mxu0 %v9827_v55 }
 0x4bb   :  { %4297 = vmatpush1.bf16.msra.mxu1 %v9831_v1  ;;  %4257 = vmatprep.subr.bf16.mxu0 %v9833_v12 }
 0x4bc   :  { %4298 = vmatprep.subr.bf16.mxu1 %v9836_v11 }
 0x4be   :  { %v9850_v45 = vpop.f32.mrf.mxu1  ;;  %4258 = vmatpush2.bf16.msra.mxu0 %v9839_v15 }
 0x4bf   :  { %4299 = vmatpush2.bf16.msra.mxu1 %v9843_v29  ;;  %4259 = vmatprep.subr.bf16.mxu0 %v9845_v26 }
 0x4c0   :  { %v9856_v46 = vpop.f32.mrf.mxu1  ;;  %4300 = vmatprep.subr.bf16.mxu1 %v9848_v28 }
 0x4c2   :  { %v2742_v24 = vpop.f32.mrf.mxu1  ;;  %4260 = vmatpush2.bf16.msra.mxu0 %v9853_v40 }
 0x4c3   :  { %4301 = vmatpush2.bf16.msra.mxu1 %v9859_v23  ;;  %4261 = vmatprep.subr.bf16.mxu0 %v9861_v49  ;;  %v9903_v24 = vld [vmem:[#allocation6 + $0x140] ss:$16 sps:$4 sm:$0xff]   ;;  %v10093_v23 = vld [vmem:[#allocation6 + $0x1a8] ss:$16 sps:$4 sm:$0xff]  }
 0x4c4   :  { %v2743_v17 = vpop.f32.mrf.mxu1  ;;  %4302 = vmatprep.subr.bf16.mxu1 %v9864_v22  ;;  %12511 = vst [vmem:[#allocation39_spill] sm:$0xff] %v9903_v24  ;;  %v9993_v22 = vld [vmem:[#allocation6 + $0x4a0] ss:$16 sps:$4 sm:$0xff]  }
 0x4c5   :  { %v9907_v17 = vld [vmem:[#allocation6 + $0x340] ss:$16 sps:$4 sm:$0xff]   ;;  %12531 = vst [vmem:[#allocation18_spill] sm:$0xff] %v9993_v22 }
 0x4c6   :  { %4262 = vmatpush2.bf16.msra.mxu0 %v9867_v18  ;;  %12512 = vst [vmem:[#allocation43_spill] sm:$0xff] %v9907_v17  ;;  %v10089_v49 = vld [vmem:[#allocation6 + $0x5a0] ss:$16 sps:$4 sm:$0xff]  }
 0x4c7   :  { %4303 = vmatpush2.bf16.msra.mxu1 %v9871_v7  ;;  %4263 = vmatprep.subr.bf16.mxu0 %v9873_v16  ;;  %v9977_v16 = vld [vmem:[#allocation6 + $0x4a4] ss:$16 sps:$4 sm:$0xff]  }
 0x4c8   :  { %4304 = vmatprep.subr.bf16.mxu1 %v9876_v61  ;;  %v9967_v61 = vld [vmem:[#allocation6 + $0xcc] ss:$16 sps:$4 sm:$0xff]   ;;  %12529 = vst [vmem:[#allocation16_spill] sm:$0xff] %v9977_v16 }
 0x4c9   :  { %12526 = vst [vmem:[#allocation54_spill] sm:$0xff] %v9967_v61 }
 0x4ca   :  { %4264 = vmatpush2.bf16.msra.mxu0 %v9879_v53 }
 0x4cb   :  { %4305 = vmatpush2.bf16.msra.mxu1 %v9883_v39  ;;  %4265 = vmatprep.subr.bf16.mxu0 %v9885_v4  ;;  %v9909_v39 = vld [vmem:[#allocation6 + $0x124] ss:$16 sps:$4 sm:$0xff]  }
 0x4cc   :  { %4306 = vmatprep.subr.bf16.mxu1 %v9888_v20  ;;  %12513 = vst [vmem:[#allocation37_spill] sm:$0xff] %v9909_v39  ;;  %v9912_v4 = vld [vmem:[#allocation6 + $0x324] ss:$16 sps:$4 sm:$0xff]   ;;  %v3228_v20 = vcombine.high %v9717_v59, %v9717_v59  ;;  %v9932_v59 = vld [vmem:[#allocation6 + $0x100] ss:$16 sps:$4 sm:$0xff]  }
 0x4cd   :  { %12514 = vst [vmem:[#allocation38_spill] sm:$0xff] %v9912_v4  ;;  %12519 = vst [vmem:[#allocation46_spill] sm:$0xff] %v9932_v59 }
 0x4ce   :  { %4266 = vmatpush2.bf16.msra.mxu0 %v9891_v31  ;;  %v9917_v31 = vld [vmem:[#allocation6 + $0x120] ss:$16 sps:$4 sm:$0xff]   ;;  %v9929_v53 = vrot.slane %v3228_v20, %v7615_v34  ;;  %v9945_v20 = vld [vmem:[#allocation6 + $0xec] ss:$16 sps:$4 sm:$0xff]  }
 0x4cf   :  { %4307 = vmatpush2.bf16.msra.mxu1 %v9895_v44  ;;  %4267 = vmatprep.subr.bf16.mxu0 %v9897_v48  ;;  %12515 = vst [vmem:[#allocation40_spill] sm:$0xff] %v9917_v31  ;;  %v9921_v48 = vld [vmem:[#allocation6 + $0x320] ss:$16 sps:$4 sm:$0xff]   ;;  %v9923_v44 = vld [vmem:[#allocation6 + $0x104] ss:$16 sps:$4 sm:$0xff]   ;;  %12522 = vst [vmem:[#allocation49_spill] sm:$0xff] %v9945_v20 }
 0x4d0   :  { %4308 = vmatprep.subr.bf16.mxu1 %v9900_v58  ;;  %12516 = vst [vmem:[#allocation41_spill] sm:$0xff] %v9921_v48  ;;  %12517 = vst [vmem:[#allocation42_spill] sm:$0xff] %v9923_v44  ;;  %v9926_v58 = vld [vmem:[#allocation6 + $0x304] ss:$16 sps:$4 sm:$0xff]  }
 0x4d1   :  { %12518 = vst [vmem:[#allocation45_spill] sm:$0xff] %v9926_v58 }
 0x4d2   :  { %4268 = vmatpush2.bf16.msra.mxu0 %v9903_v24 }
 0x4d3   :  { %4309 = vmatpush2.bf16.msra.mxu1 %v9907_v17  ;;  %4269 = vmatprep.subr.bf16.mxu0 %v9909_v39  ;;  %v9936_v39 = vld [vmem:[#allocation6 + $0x300] ss:$16 sps:$4 sm:$0xff]   ;;  %v9938_v17 = vld [vmem:[#allocation6 + $0x4e4] ss:$16 sps:$4 sm:$0xff]  }
 0x4d4   :  { %4310 = vmatprep.subr.bf16.mxu1 %v9912_v4  ;;  %12520 = vst [vmem:[#allocation47_spill] sm:$0xff] %v9936_v39  ;;  %12521 = vst [vmem:[#allocation48_spill] sm:$0xff] %v9938_v17  ;;  %v9943_v4 = vrot.slane %v9721_v8, %v7615_v34  ;;  %v9961_v8 = vld [vmem:[#allocation6 + $0x4c4] ss:$16 sps:$4 sm:$0xff]  }
 0x4d5   :  { %12525 = vst [vmem:[#allocation53_spill] sm:$0xff] %v9961_v8 }
 0x4d6   :  { %4270 = vmatpush2.bf16.msra.mxu0 %v9917_v31  ;;  %v3244_v31 = vcombine.high %v9929_v53, %v9929_v53 }
 0x4d7   :  { %4311 = vmatpush2.bf16.msra.mxu1 %v9921_v48  ;;  %4271 = vmatprep.subr.bf16.mxu0 %v9923_v44  ;;  %v9950_v48 = vld [vmem:[#allocation6 + $0x4e0] ss:$16 sps:$4 sm:$0xff]   ;;  %v9954_v44 = vld [vmem:[#allocation6 + $0xe8] ss:$16 sps:$4 sm:$0xff]  }
 0x4d8   :  { %4312 = vmatprep.subr.bf16.mxu1 %v9926_v58  ;;  %12523 = vst [vmem:[#allocation50_spill] sm:$0xff] %v9950_v48  ;;  %12524 = vst [vmem:[#allocation52_spill] sm:$0xff] %v9954_v44  ;;  %v9958_v58 = vcombine.high %v9943_v4, %v9943_v4 }
 0x4da   :  { %4272 = vmatpush2.bf16.msra.mxu0 %v9932_v59  ;;  %v9965_v59 = vrot.slane %v3244_v31, %v7615_v34 }
 0x4db   :  { %4313 = vmatpush2.bf16.msra.mxu1 %v9936_v39  ;;  %4323 = vmatprep.subr.bf16.mxu0 %v9938_v17  ;;  %v9971_v17 = vld [vmem:[#allocation6 + $0x4c0] ss:$16 sps:$4 sm:$0xff]   ;;  %v9975_v39 = vld [vmem:[#allocation6 + $0xc8] ss:$16 sps:$4 sm:$0xff]  }
 0x4dc   :  { %4364 = vmatprep.subr.bf16.mxu1 %v9945_v20  ;;  %12527 = vst [vmem:[#allocation14_spill] sm:$0xff] %v9971_v17  ;;  %12528 = vst [vmem:[#allocation15_spill] sm:$0xff] %v9975_v39 }
 0x4dd   :  { %v2697_v24 = vpop.f32.mrf.mxu0  ;;  %4274 = vmatmul.mubr.bf16.vlgmr.msra.gmra.mxu0 %v9943_v4 }
 0x4de   :  { %4315 = vmatmul.mubr.bf16.vlgmr.msra.gmra.mxu1 %v9958_v58  ;;  %4324 = vmatpush1.bf16.msra.mxu0 %v9950_v48  ;;  %v9980_v31 = vadd.f32 %v9850_v45, %v2697_v24  ;;  %v9987_v48 = vld [vmem:[#allocation6 + $0xac] ss:$16 sps:$4 sm:$0xff]   ;;  %v9997_v45 = vld [vmem:[#allocation6 + $0xa8] ss:$16 sps:$4 sm:$0xff]   ;;  %v10005_v24 = vld [vmem:[#allocation6 + $0x480] ss:$16 sps:$4 sm:$0xff]  }
 0x4df   :  { %4355 = vmatprep.mubr.bf16.mxu0 %v9965_v59  ;;  %4365 = vmatpush1.bf16.msra.mxu1 %v9954_v44  ;;  %v2699_v20 = vpop.f32.mrf.mxu0  ;;  %12530 = vst [vmem:[#allocation17_spill] sm:$0xff] %v9987_v48  ;;  %12532 = vst [vmem:[#allocation19_spill] sm:$0xff] %v9997_v45  ;;  %v10014_v44 = vld [vmem:[#allocation6 + $0x6c] ss:$16 sps:$4 sm:$0xff]  }
 0x4e0   :  { %4396 = vmatprep.mubr.bf16.mxu1 %v9730_v38  ;;  %v9984_v7 = vadd.f32 %v9856_v46, %v2699_v20  ;;  %4325 = vmatprep.subr.bf16.mxu0 %v9961_v8  ;;  %v9999_v46 = vld [vmem:[#allocation6 + $0x484] ss:$16 sps:$4 sm:$0xff]   ;;  %12535 = vst [vmem:[#allocation22_spill] sm:$0xff] %v10005_v24  ;;  %v10009_v20 = vld [vmem:[#allocation6 + $0x88] ss:$16 sps:$4 sm:$0xff]   ;;  %12538 = vst [vmem:[#allocation26_spill] sm:$0xff] %v10014_v44 }
 0x4e1   :  { %v2701_v18 = vpop.f32.mrf.mxu0  ;;  %4366 = vmatprep.subr.bf16.mxu1 %v9967_v61  ;;  %12533 = vst [vmem:[#allocation20_spill] sm:$0xff] %v9999_v46  ;;  %12536 = vst [vmem:[#allocation24_spill] sm:$0xff] %v10009_v20  ;;  %v10083_v61 = vld [vmem:[#allocation6 + $0x5a4] ss:$16 sps:$4 sm:$0xff]   ;;  %v10086_v8 = vld [vmem:[#allocation6 + $0x1ac] ss:$16 sps:$4 sm:$0xff]  }
 0x4e2   :  { %4326 = vmatpush1.bf16.msra.mxu0 %v9971_v17  ;;  %v10002_v18 = vld [vmem:[#allocation6 + $0x8c] ss:$16 sps:$4 sm:$0xff]  }
 0x4e3   :  { %4367 = vmatpush1.bf16.msra.mxu1 %v9975_v39  ;;  %v2702_v38 = vpop.f32.mrf.mxu0  ;;  %4327 = vmatprep.subr.bf16.mxu0 %v9977_v16  ;;  %12534 = vst [vmem:[#allocation21_spill] sm:$0xff] %v10002_v18 }
 0x4e4   :  { %4368 = vmatprep.subr.bf16.mxu1 %v9987_v48  ;;  %v10011_v38 = vld [vmem:[#allocation6 + $0x464] ss:$16 sps:$4 sm:$0xff]   ;;  %v10017_v48 = vld [vmem:[#allocation6 + $0x460] ss:$16 sps:$4 sm:$0xff]  }
 0x4e5   :  { %12537 = vst [vmem:[#allocation25_spill] sm:$0xff] %v10011_v38  ;;  %12539 = vst [vmem:[#allocation58_spill] sm:$0xff] %v10017_v48 }
 0x4e6   :  { %4328 = vmatpush1.bf16.msra.mxu0 %v9993_v22  ;;  %v10021_v22 = vld [vmem:[#allocation6 + $0x68] ss:$16 sps:$4 sm:$0xff]  }
 0x4e7   :  { %4369 = vmatpush1.bf16.msra.mxu1 %v9997_v45  ;;  %4329 = vmatprep.subr.bf16.mxu0 %v9999_v46  ;;  %12540 = vst [vmem:[#allocation59_spill] sm:$0xff] %v10021_v22  ;;  %v10023_v45 = vld [vmem:[#allocation6 + $0x444] ss:$16 sps:$4 sm:$0xff]   ;;  %v10026_v46 = vld [vmem:[#allocation6 + $0x4c] ss:$16 sps:$4 sm:$0xff]  }
 0x4e8   :  { %4370 = vmatprep.subr.bf16.mxu1 %v10002_v18  ;;  %12541 = vst [vmem:[#allocation60_spill] sm:$0xff] %v10023_v45  ;;  %12542 = vst [vmem:[#allocation61_spill] sm:$0xff] %v10026_v46  ;;  %v10029_v18 = vld [vmem:[#allocation6 + $0x440] ss:$16 sps:$4 sm:$0xff]  }
 0x4e9   :  { %12543 = vst [vmem:[#allocation62_spill] sm:$0xff] %v10029_v18 }
 0x4ea   :  { %4330 = vmatpush1.bf16.msra.mxu0 %v10005_v24  ;;  %v10033_v24 = vld [vmem:[#allocation6 + $0x48] ss:$16 sps:$4 sm:$0xff]  }
 0x4eb   :  { %4371 = vmatpush1.bf16.msra.mxu1 %v10009_v20  ;;  %4331 = vmatprep.subr.bf16.mxu0 %v10011_v38  ;;  %12544 = vst [vmem:[#allocation63_spill] sm:$0xff] %v10033_v24  ;;  %v10035_v20 = vld [vmem:[#allocation6 + $0x424] ss:$16 sps:$4 sm:$0xff]   ;;  %v10038_v38 = vld [vmem:[#allocation6 + $0x2c] ss:$16 sps:$4 sm:$0xff]  }
 0x4ec   :  { %4372 = vmatprep.subr.bf16.mxu1 %v10014_v44  ;;  %12545 = vst [vmem:[#allocation64_spill] sm:$0xff] %v10035_v20  ;;  %12546 = vst [vmem:[#allocation44_spill] sm:$0xff] %v10038_v38  ;;  %v10041_v44 = vld [vmem:[#allocation6 + $0x420] ss:$16 sps:$4 sm:$0xff]  }
 0x4ed   :  { %12547 = vst [vmem:[#allocation57_spill] sm:$0xff] %v10041_v44 }
 0x4ee   :  { %4332 = vmatpush1.bf16.msra.mxu0 %v10017_v48  ;;  %v10045_v48 = vld [vmem:[#allocation6 + $0x28] ss:$16 sps:$4 sm:$0xff]  }
 0x4ef   :  { %4373 = vmatpush1.bf16.msra.mxu1 %v10021_v22  ;;  %4333 = vmatprep.subr.bf16.mxu0 %v10023_v45  ;;  %12548 = vst [vmem:[#allocation12_spill] sm:$0xff] %v10045_v48  ;;  %v10047_v22 = vld [vmem:[#allocation6 + $0x404] ss:$16 sps:$4 sm:$0xff]   ;;  %v10050_v45 = vld [vmem:[#allocation6 + $0xc] ss:$16 sps:$4 sm:$0xff]  }
 0x4f0   :  { %4374 = vmatprep.subr.bf16.mxu1 %v10026_v46  ;;  %12549 = vst [vmem:[#allocation65_spill] sm:$0xff] %v10047_v22  ;;  %12550 = vst [vmem:[#allocation66_spill] sm:$0xff] %v10050_v45  ;;  %v10053_v46 = vld [vmem:[#allocation6 + $0x400] ss:$16 sps:$4 sm:$0xff]  }
 0x4f1   :  { %12551 = vst [vmem:[#allocation67_spill] sm:$0xff] %v10053_v46 }
 0x4f2   :  { %4334 = vmatpush1.bf16.msra.mxu0 %v10029_v18  ;;  %v10057_v18 = vld [vmem:[#allocation6 + $0x8] ss:$16 sps:$4 sm:$0xff]  }
 0x4f3   :  { %4375 = vmatpush1.bf16.msra.mxu1 %v10033_v24  ;;  %4335 = vmatprep.subr.bf16.mxu0 %v10035_v20  ;;  %12552 = vst [vmem:[#allocation68_spill] sm:$0xff] %v10057_v18  ;;  %v10059_v24 = vld [vmem:[#allocation6 + $0x5e4] ss:$16 sps:$4 sm:$0xff]   ;;  %v10062_v20 = vld [vmem:[#allocation6 + $0x1ec] ss:$16 sps:$4 sm:$0xff]  }
 0x4f4   :  { %4376 = vmatprep.subr.bf16.mxu1 %v10038_v38  ;;  %12553 = vst [vmem:[#allocation69_spill] sm:$0xff] %v10059_v24  ;;  %12554 = vst [vmem:[#allocation70_spill] sm:$0xff] %v10062_v20  ;;  %v10065_v38 = vld [vmem:[#allocation6 + $0x5e0] ss:$16 sps:$4 sm:$0xff]  }
 0x4f5   :  { %12555 = vst [vmem:[#allocation71_spill] sm:$0xff] %v10065_v38 }
 0x4f6   :  { %4336 = vmatpush1.bf16.msra.mxu0 %v10041_v44  ;;  %v10069_v44 = vld [vmem:[#allocation6 + $0x1e8] ss:$16 sps:$4 sm:$0xff]  }
 0x4f7   :  { %4377 = vmatpush1.bf16.msra.mxu1 %v10045_v48  ;;  %4337 = vmatprep.subr.bf16.mxu0 %v10047_v22  ;;  %12556 = vst [vmem:[#allocation72_spill] sm:$0xff] %v10069_v44  ;;  %v10071_v48 = vld [vmem:[#allocation6 + $0x5c4] ss:$16 sps:$4 sm:$0xff]   ;;  %v10074_v22 = vld [vmem:[#allocation6 + $0x1cc] ss:$16 sps:$4 sm:$0xff]  }
 0x4f8   :  { %4378 = vmatprep.subr.bf16.mxu1 %v10050_v45  ;;  %12557 = vst [vmem:[#allocation73_spill] sm:$0xff] %v10071_v48 }
 0x4fa   :  { %4338 = vmatpush1.bf16.msra.mxu0 %v10053_v46  ;;  %v10077_v46 = vld [vmem:[#allocation6 + $0x5c0] ss:$16 sps:$4 sm:$0xff]  }
 0x4fb   :  { %4379 = vmatpush1.bf16.msra.mxu1 %v10057_v18  ;;  %4339 = vmatprep.subr.bf16.mxu0 %v10059_v24  ;;  %v10081_v24 = vld [vmem:[#allocation6 + $0x1c8] ss:$16 sps:$4 sm:$0xff]  }
 0x4fc   :  { %4380 = vmatprep.subr.bf16.mxu1 %v10062_v20 }
 0x4fd   :  { %v2820_v45 = vpop.f32.mrf.mxu0 }
 0x4fe   :  { %v2779_v16 = vpop.f32.mrf.mxu1  ;;  %4340 = vmatpush2.bf16.msra.mxu0 %v10065_v38 }
 0x4ff   :  { %v2821_v39 = vadd.f32 %v2820_v45, %v2779_v16  ;;  %4381 = vmatpush2.bf16.msra.mxu1 %v10069_v44  ;;  %v2822_v17 = vpop.f32.mrf.mxu0  ;;  %4341 = vmatprep.subr.bf16.mxu0 %v10071_v48 }
 0x500   :  { %v2781_v18 = vpop.f32.mrf.mxu1  ;;  %4382 = vmatprep.subr.bf16.mxu1 %v10074_v22 }
 0x501   :  { %v2823_v20 = vadd.f32 %v2822_v17, %v2781_v18  ;;  %v2824_v45 = vpop.f32.mrf.mxu0  ;;  %v10095_v17 = vld [vmem:[#allocation6 + $0x584] ss:$16 sps:$4 sm:$0xff]   ;;  %v12559_v18 = vmax.f32 %v9980_v31, %v9984_v7  ;;  %v10114_v31 = vld [vmem:[#allocation6 + $0x16c] ss:$16 sps:$4 sm:$0xff]  }
 0x502   :  { %v2783_v16 = vpop.f32.mrf.mxu1  ;;  %4342 = vmatpush2.bf16.msra.mxu0 %v10077_v46  ;;  %12558 = vst [vmem:[#allocation74_spill] sm:$0xff] %v10095_v17  ;;  %v10111_v45 = vld [vmem:[#allocation6 + $0x564] ss:$16 sps:$4 sm:$0xff]   ;;  %12564 = vst [vmem:[#allocation79_spill] sm:$0xff] %v10114_v31 }
 0x503   :  { %v2828_v38 = vmax.f32 %v2821_v39, %v2823_v20  ;;  %4383 = vmatpush2.bf16.msra.mxu1 %v10081_v24  ;;  %v2825_v48 = vpop.f32.mrf.mxu0  ;;  %4343 = vmatprep.subr.bf16.mxu0 %v10083_v61  ;;  %v10101_v39 = vld [vmem:[#allocation6 + $0x18c] ss:$16 sps:$4 sm:$0xff]   ;;  %12563 = vst [vmem:[#allocation78_spill] sm:$0xff] %v10111_v45 }
 0x504   :  { %v2784_v44 = vpop.f32.mrf.mxu1  ;;  %4384 = vmatprep.subr.bf16.mxu1 %v10086_v8  ;;  %12560 = vst [vmem:[#allocation75_spill] sm:$0xff] %v10101_v39  ;;  %v10109_v48 = vld [vmem:[#allocation6 + $0x188] ss:$16 sps:$4 sm:$0xff]  }
 0x505   :  { %v2829_v16 = vmax.f32 %v12559_v18, %v2828_v38  ;;  %v10105_v44 = vld [vmem:[#allocation6 + $0x580] ss:$16 sps:$4 sm:$0xff]   ;;  %12562 = vst [vmem:[#allocation77_spill] sm:$0xff] %v10109_v48  ;;  %v10121_v18 = vld [vmem:[#allocation6 + $0x168] ss:$16 sps:$4 sm:$0xff]  }
 0x506   :  { %4344 = vmatpush2.bf16.msra.mxu0 %v10089_v49  ;;  %12561 = vst [vmem:[#allocation76_spill] sm:$0xff] %v10105_v44  ;;  %12566 = vst [vmem:[#allocation81_spill] sm:$0xff] %v10121_v18 }
 0x507   :  { %v2830_v20 = vadd.f32 %v9634_v47, %v2829_v16  ;;  %4385 = vmatpush2.bf16.msra.mxu1 %v10093_v23  ;;  %4345 = vmatprep.subr.bf16.mxu0 %v10095_v17  ;;  %v10117_v47 = vld [vmem:[#allocation6 + $0x560] ss:$16 sps:$4 sm:$0xff]   ;;  %v10123_v16 = vld [vmem:[#allocation6 + $0x544] ss:$16 sps:$4 sm:$0xff]  }
 0x508   :  { %4386 = vmatprep.subr.bf16.mxu1 %v10101_v39  ;;  %12565 = vst [vmem:[#allocation80_spill] sm:$0xff] %v10117_v47  ;;  %12567 = vst [vmem:[#allocation82_spill] sm:$0xff] %v10123_v16  ;;  %v10207_v39 = vld [vmem:[#allocation6 + $0x28c] ss:$16 sps:$4 sm:$0xff]  }
 0x509   :  { %v2831_v7 = vmax.f32 %v2830_v20, 0.0  ;;  %v10126_v20 = vld [vmem:[#allocation6 + $0x14c] ss:$16 sps:$4 sm:$0xff]   ;;  %12591 = vst [vmem:[#allocation106_spill] sm:$0xff] %v10207_v39 }
 0x50a   :  { %4346 = vmatpush2.bf16.msra.mxu0 %v10105_v44  ;;  %12568 = vst [vmem:[#allocation83_spill] sm:$0xff] %v10126_v20  ;;  %v10138_v44 = vld [vmem:[#allocation6 + $0x12c] ss:$16 sps:$4 sm:$0xff]  }
 0x50b   :  { %v2832_v38 = vpack.c.bf16 %v2831_v7, %v2831_v7  ;;  %4387 = vmatpush2.bf16.msra.mxu1 %v10109_v48  ;;  %4347 = vmatprep.subr.bf16.mxu0 %v10111_v45  ;;  %v10129_v7 = vld [vmem:[#allocation6 + $0x540] ss:$16 sps:$4 sm:$0xff]   ;;  %v10133_v48 = vld [vmem:[#allocation6 + $0x148] ss:$16 sps:$4 sm:$0xff]   ;;  %v10135_v45 = vld [vmem:[#allocation6 + $0x524] ss:$16 sps:$4 sm:$0xff]  }
 0x50c   :  { %4388 = vmatprep.subr.bf16.mxu1 %v10114_v31  ;;  %12569 = vst [vmem:[#allocation84_spill] sm:$0xff] %v10129_v7  ;;  %12570 = vst [vmem:[#allocation85_spill] sm:$0xff] %v10133_v48  ;;  %v10197_v31 = vld [vmem:[#allocation6 + $0x4ac] ss:$16 sps:$4 sm:$0xff]  }
 0x50d   :  { %2833 = vst [vmem:[#allocation2 + $0xa] sm:$0x1] %v2832_v38  ;;  %12571 = vst [vmem:[#allocation86_spill] sm:$0xff] %v10135_v45  ;;  %v10141_v38 = vld [vmem:[#allocation6 + $0x520] ss:$16 sps:$4 sm:$0xff]  }
 0x50e   :  { %4348 = vmatpush2.bf16.msra.mxu0 %v10117_v47  ;;  %12572 = vst [vmem:[#allocation87_spill] sm:$0xff] %v10138_v44  ;;  %12573 = vst [vmem:[#allocation88_spill] sm:$0xff] %v10141_v38  ;;  %v10145_v47 = vld [vmem:[#allocation6 + $0x128] ss:$16 sps:$4 sm:$0xff]  }
 0x50f   :  { %4389 = vmatpush2.bf16.msra.mxu1 %v10121_v18  ;;  %4349 = vmatprep.subr.bf16.mxu0 %v10123_v16  ;;  %12574 = vst [vmem:[#allocation89_spill] sm:$0xff] %v10145_v47  ;;  %v10147_v18 = vld [vmem:[#allocation6 + $0x504] ss:$16 sps:$4 sm:$0xff]   ;;  %v10150_v16 = vld [vmem:[#allocation6 + $0x10c] ss:$16 sps:$4 sm:$0xff]   ;;  %12588 = vst [vmem:[#allocation103_spill] sm:$0xff] %v10197_v31 }
 0x510   :  { %4390 = vmatprep.subr.bf16.mxu1 %v10126_v20  ;;  %12575 = vst [vmem:[#allocation90_spill] sm:$0xff] %v10147_v18  ;;  %12576 = vst [vmem:[#allocation91_spill] sm:$0xff] %v10150_v16  ;;  %v10153_v20 = vld [vmem:[#allocation6 + $0x500] ss:$16 sps:$4 sm:$0xff]  }
 0x511   :  { %12577 = vst [vmem:[#allocation92_spill] sm:$0xff] %v10153_v20 }
 0x512   :  { %4350 = vmatpush2.bf16.msra.mxu0 %v10129_v7  ;;  %v10157_v7 = vld [vmem:[#allocation6 + $0x108] ss:$16 sps:$4 sm:$0xff]  }
 0x513   :  { %4391 = vmatpush2.bf16.msra.mxu1 %v10133_v48  ;;  %4351 = vmatprep.subr.bf16.mxu0 %v10135_v45  ;;  %12578 = vst [vmem:[#allocation93_spill] sm:$0xff] %v10157_v7  ;;  %v10159_v48 = vld [vmem:[#allocation6 + $0x2ec] ss:$16 sps:$4 sm:$0xff]  }
 0x514   :  { %4392 = vmatprep.subr.bf16.mxu1 %v10138_v44  ;;  %12579 = vst [vmem:[#allocation94_spill] sm:$0xff] %v10159_v48  ;;  %v10162_v45 = vld [vmem:[#allocation6 + $0x4ec] ss:$16 sps:$4 sm:$0xff]   ;;  %v10165_v44 = vld [vmem:[#allocation6 + $0x2e8] ss:$16 sps:$4 sm:$0xff]  }
 0x515   :  { %12580 = vst [vmem:[#allocation95_spill] sm:$0xff] %v10162_v45  ;;  %12581 = vst [vmem:[#allocation96_spill] sm:$0xff] %v10165_v44 }
 0x516   :  { %4352 = vmatpush2.bf16.msra.mxu0 %v10141_v38  ;;  %v10170_v38 = vrot.slane %v9929_v53, %v7615_v34  ;;  %v10185_v53 = vld [vmem:[#allocation6 + $0x2c8] ss:$16 sps:$4 sm:$0xff]  }
 0x517   :  { %4393 = vmatpush2.bf16.msra.mxu1 %v10145_v47  ;;  %4353 = vmatprep.subr.bf16.mxu0 %v10147_v18  ;;  %v10173_v18 = vld [vmem:[#allocation6 + $0x4e8] ss:$16 sps:$4 sm:$0xff]   ;;  %v10176_v47 = vld [vmem:[#allocation6 + $0x2cc] ss:$16 sps:$4 sm:$0xff]   ;;  %12585 = vst [vmem:[#allocation100_spill] sm:$0xff] %v10185_v53 }
 0x518   :  { %4394 = vmatprep.subr.bf16.mxu1 %v10150_v16  ;;  %12582 = vst [vmem:[#allocation97_spill] sm:$0xff] %v10173_v18  ;;  %12583 = vst [vmem:[#allocation98_spill] sm:$0xff] %v10176_v47 }
 0x51a   :  { %4354 = vmatpush2.bf16.msra.mxu0 %v10153_v20  ;;  %v10181_v20 = vld [vmem:[#allocation6 + $0x4cc] ss:$16 sps:$4 sm:$0xff]  }
 0x51b   :  { %4395 = vmatpush2.bf16.msra.mxu1 %v10157_v7  ;;  %4405 = vmatprep.subr.bf16.mxu0 %v10159_v48  ;;  %12584 = vst [vmem:[#allocation99_spill] sm:$0xff] %v10181_v20  ;;  %v10193_v7 = vld [vmem:[#allocation6 + $0x2ac] ss:$16 sps:$4 sm:$0xff]  }
 0x51c   :  { %4446 = vmatprep.subr.bf16.mxu1 %v10162_v45  ;;  %v10191_v45 = vld [vmem:[#allocation6 + $0x4c8] ss:$16 sps:$4 sm:$0xff]   ;;  %12587 = vst [vmem:[#allocation102_spill] sm:$0xff] %v10193_v7 }
 0x51d   :  { %4356 = vmatmul.mubr.bf16.vlgmr.msra.gmra.mxu0 %v10170_v38  ;;  %12586 = vst [vmem:[#allocation101_spill] sm:$0xff] %v10191_v45 }
 0x51e   :  { %v10178_v16 = vpop.f32.mrf.mxu1  ;;  %4397 = vmatmul.mubr.bf16.vlgmr.msra.gmra.mxu1 %v9943_v4  ;;  %4406 = vmatpush1.bf16.msra.mxu0 %v10165_v44  ;;  %v10205_v44 = vld [vmem:[#allocation6 + $0x4a8] ss:$16 sps:$4 sm:$0xff]  }
 0x51f   :  { %4437 = vmatprep.mubr.bf16.mxu0 %v9746_v30  ;;  %4447 = vmatpush1.bf16.msra.mxu1 %v10173_v18  ;;  %v10201_v30 = vld [vmem:[#allocation6 + $0x2a8] ss:$16 sps:$4 sm:$0xff]   ;;  %12590 = vst [vmem:[#allocation105_spill] sm:$0xff] %v10205_v44 }
 0x520   :  { %v10189_v48 = vpop.f32.mrf.mxu1  ;;  %4478 = vmatprep.mubr.bf16.mxu1 %v9965_v59  ;;  %4407 = vmatprep.subr.bf16.mxu0 %v10176_v47  ;;  %12589 = vst [vmem:[#allocation104_spill] sm:$0xff] %v10201_v30  ;;  %v10210_v59 = vld [vmem:[#allocation6 + $0x48c] ss:$16 sps:$4 sm:$0xff]  }
 0x521   :  { %4448 = vmatprep.subr.bf16.mxu1 %v10181_v20  ;;  %12592 = vst [vmem:[#allocation107_spill] sm:$0xff] %v10210_v59 }
 0x522   :  { %v2941_v4 = vpop.f32.mrf.mxu1  ;;  %4408 = vmatpush1.bf16.msra.mxu0 %v10185_v53 }
 0x523   :  { %4449 = vmatpush1.bf16.msra.mxu1 %v10191_v45  ;;  %4409 = vmatprep.subr.bf16.mxu0 %v10193_v7  ;;  %v10213_v4 = vld [vmem:[#allocation6 + $0x288] ss:$16 sps:$4 sm:$0xff]   ;;  %v10222_v7 = vld [vmem:[#allocation6 + $0x46c] ss:$16 sps:$4 sm:$0xff]  }
 0x524   :  { %v2942_v18 = vpop.f32.mrf.mxu1  ;;  %4450 = vmatprep.subr.bf16.mxu1 %v10197_v31  ;;  %12593 = vst [vmem:[#allocation108_spill] sm:$0xff] %v10213_v4  ;;  %v10217_v45 = vld [vmem:[#allocation6 + $0x488] ss:$16 sps:$4 sm:$0xff]   ;;  %12596 = vst [vmem:[#allocation111_spill] sm:$0xff] %v10222_v7 }
 0x525   :  { %12594 = vst [vmem:[#allocation109_spill] sm:$0xff] %v10217_v45  ;;  %v10219_v18 = vld [vmem:[#allocation6 + $0x26c] ss:$16 sps:$4 sm:$0xff]   ;;  %v10225_v31 = vld [vmem:[#allocation6 + $0x268] ss:$16 sps:$4 sm:$0xff]  }
 0x526   :  { %4410 = vmatpush1.bf16.msra.mxu0 %v10201_v30  ;;  %12595 = vst [vmem:[#allocation110_spill] sm:$0xff] %v10219_v18  ;;  %12597 = vst [vmem:[#allocation112_spill] sm:$0xff] %v10225_v31  ;;  %v10229_v30 = vld [vmem:[#allocation6 + $0x468] ss:$16 sps:$4 sm:$0xff]  }
 0x527   :  { %4451 = vmatpush1.bf16.msra.mxu1 %v10205_v44  ;;  %4411 = vmatprep.subr.bf16.mxu0 %v10207_v39  ;;  %12598 = vst [vmem:[#allocation113_spill] sm:$0xff] %v10229_v30  ;;  %v10231_v44 = vld [vmem:[#allocation6 + $0x24c] ss:$16 sps:$4 sm:$0xff]  }
 0x528   :  { %4452 = vmatprep.subr.bf16.mxu1 %v10210_v59  ;;  %12599 = vst [vmem:[#allocation114_spill] sm:$0xff] %v10231_v44  ;;  %v10234_v39 = vld [vmem:[#allocation6 + $0x44c] ss:$16 sps:$4 sm:$0xff]   ;;  %v10237_v59 = vld [vmem:[#allocation6 + $0x248] ss:$16 sps:$4 sm:$0xff]  }
 0x529   :  { %12600 = vst [vmem:[#allocation115_spill] sm:$0xff] %v10234_v39  ;;  %12601 = vst [vmem:[#allocation116_spill] sm:$0xff] %v10237_v59 }
 0x52a   :  { %4412 = vmatpush1.bf16.msra.mxu0 %v10213_v4  ;;  %v10241_v4 = vld [vmem:[#allocation6 + $0x448] ss:$16 sps:$4 sm:$0xff]  }
 0x52b   :  { %4453 = vmatpush1.bf16.msra.mxu1 %v10217_v45  ;;  %4413 = vmatprep.subr.bf16.mxu0 %v10219_v18  ;;  %12602 = vst [vmem:[#allocation117_spill] sm:$0xff] %v10241_v4  ;;  %v10243_v45 = vld [vmem:[#allocation6 + $0x22c] ss:$16 sps:$4 sm:$0xff]  }
 0x52c   :  { %4454 = vmatprep.subr.bf16.mxu1 %v10222_v7  ;;  %12603 = vst [vmem:[#allocation118_spill] sm:$0xff] %v10243_v45  ;;  %v10246_v18 = vld [vmem:[#allocation6 + $0x42c] ss:$16 sps:$4 sm:$0xff]   ;;  %v10249_v7 = vld [vmem:[#allocation6 + $0x228] ss:$16 sps:$4 sm:$0xff]  }
 0x52d   :  { %12604 = vst [vmem:[#allocation119_spill] sm:$0xff] %v10246_v18  ;;  %12605 = vst [vmem:[#allocation120_spill] sm:$0xff] %v10249_v7 }
 0x52e   :  { %4414 = vmatpush1.bf16.msra.mxu0 %v10225_v31  ;;  %v10253_v31 = vld [vmem:[#allocation6 + $0x428] ss:$16 sps:$4 sm:$0xff]  }
 0x52f   :  { %4455 = vmatpush1.bf16.msra.mxu1 %v10229_v30  ;;  %4415 = vmatprep.subr.bf16.mxu0 %v10231_v44  ;;  %12606 = vst [vmem:[#allocation121_spill] sm:$0xff] %v10253_v31  ;;  %v10255_v30 = vld [vmem:[#allocation6 + $0x20c] ss:$16 sps:$4 sm:$0xff]  }
 0x530   :  { %4456 = vmatprep.subr.bf16.mxu1 %v10234_v39  ;;  %12607 = vst [vmem:[#allocation122_spill] sm:$0xff] %v10255_v30  ;;  %v10258_v44 = vld [vmem:[#allocation6 + $0x40c] ss:$16 sps:$4 sm:$0xff]   ;;  %v10261_v39 = vld [vmem:[#allocation6 + $0x208] ss:$16 sps:$4 sm:$0xff]  }
 0x531   :  { %12608 = vst [vmem:[#allocation123_spill] sm:$0xff] %v10258_v44  ;;  %12609 = vst [vmem:[#allocation124_spill] sm:$0xff] %v10261_v39 }
 0x532   :  { %4416 = vmatpush1.bf16.msra.mxu0 %v10237_v59  ;;  %v10265_v59 = vld [vmem:[#allocation6 + $0x408] ss:$16 sps:$4 sm:$0xff]  }
 0x533   :  { %4457 = vmatpush1.bf16.msra.mxu1 %v10241_v4  ;;  %4417 = vmatprep.subr.bf16.mxu0 %v10243_v45  ;;  %12610 = vst [vmem:[#allocation125_spill] sm:$0xff] %v10265_v59  ;;  %v10267_v4 = vld [vmem:[#allocation6 + $0x3ec] ss:$16 sps:$4 sm:$0xff]  }
 0x534   :  { %4458 = vmatprep.subr.bf16.mxu1 %v10246_v18  ;;  %12611 = vst [vmem:[#allocation126_spill] sm:$0xff] %v10267_v4  ;;  %v10270_v45 = vld [vmem:[#allocation6 + $0x5ec] ss:$16 sps:$4 sm:$0xff]   ;;  %v10273_v18 = vld [vmem:[#allocation6 + $0x3e8] ss:$16 sps:$4 sm:$0xff]  }
 0x535   :  { %12612 = vst [vmem:[#allocation127_spill] sm:$0xff] %v10270_v45  ;;  %12613 = vst [vmem:[#allocation128_spill] sm:$0xff] %v10273_v18 }
 0x536   :  { %4418 = vmatpush1.bf16.msra.mxu0 %v10249_v7  ;;  %v10277_v7 = vld [vmem:[#allocation6 + $0x5e8] ss:$16 sps:$4 sm:$0xff]  }
 0x537   :  { %4459 = vmatpush1.bf16.msra.mxu1 %v10253_v31  ;;  %4419 = vmatprep.subr.bf16.mxu0 %v10255_v30  ;;  %12614 = vst [vmem:[#allocation129_spill] sm:$0xff] %v10277_v7  ;;  %v10279_v31 = vld [vmem:[#allocation6 + $0x3cc] ss:$16 sps:$4 sm:$0xff]  }
 0x538   :  { %4460 = vmatprep.subr.bf16.mxu1 %v10258_v44  ;;  %12615 = vst [vmem:[#allocation130_spill] sm:$0xff] %v10279_v31  ;;  %v10282_v30 = vld [vmem:[#allocation6 + $0x5cc] ss:$16 sps:$4 sm:$0xff]   ;;  %v10285_v44 = vld [vmem:[#allocation6 + $0x3c8] ss:$16 sps:$4 sm:$0xff]  }
 0x53a   :  { %4420 = vmatpush1.bf16.msra.mxu0 %v10261_v39 }
 0x53b   :  { %4461 = vmatpush1.bf16.msra.mxu1 %v10265_v59  ;;  %4421 = vmatprep.subr.bf16.mxu0 %v10267_v4  ;;  %v10289_v59 = vld [vmem:[#allocation6 + $0x5c8] ss:$16 sps:$4 sm:$0xff]   ;;  %v10291_v4 = vld [vmem:[#allocation6 + $0x3ac] ss:$16 sps:$4 sm:$0xff]  }
 0x53c   :  { %4462 = vmatprep.subr.bf16.mxu1 %v10270_v45  ;;  %12616 = vst [vmem:[#allocation131_spill] sm:$0xff] %v10289_v59  ;;  %12617 = vst [vmem:[#allocation132_spill] sm:$0xff] %v10291_v4 }
 0x53d   :  { %v2896_v53 = vpop.f32.mrf.mxu0 }
 0x53e   :  { %4422 = vmatpush2.bf16.msra.mxu0 %v10273_v18  ;;  %v10294_v20 = vadd.f32 %v10178_v16, %v2896_v53  ;;  %v10300_v18 = vld [vmem:[#allocation6 + $0x5ac] ss:$16 sps:$4 sm:$0xff]   ;;  %v10309_v16 = vld [vmem:[#allocation6 + $0x5a8] ss:$16 sps:$4 sm:$0xff]  }
 0x53f   :  { %4463 = vmatpush2.bf16.msra.mxu1 %v10277_v7  ;;  %v2898_v39 = vpop.f32.mrf.mxu0  ;;  %4423 = vmatprep.subr.bf16.mxu0 %v10279_v31  ;;  %12618 = vst [vmem:[#allocation133_spill] sm:$0xff] %v10300_v18  ;;  %v10305_v31 = vld [vmem:[#allocation6 + $0x3a8] ss:$16 sps:$4 sm:$0xff]   ;;  %12620 = vst [vmem:[#allocation135_spill] sm:$0xff] %v10309_v16  ;;  %v10326_v7 = vld [vmem:[#allocation6 + $0x56c] ss:$16 sps:$4 sm:$0xff]  }
 0x540   :  { %v10297_v45 = vadd.f32 %v10189_v48, %v2898_v39  ;;  %4464 = vmatprep.subr.bf16.mxu1 %v10282_v30  ;;  %12619 = vst [vmem:[#allocation134_spill] sm:$0xff] %v10305_v31  ;;  %v10311_v39 = vld [vmem:[#allocation6 + $0x38c] ss:$16 sps:$4 sm:$0xff]   ;;  %v10321_v53 = vld [vmem:[#allocation6 + $0x588] ss:$16 sps:$4 sm:$0xff]   ;;  %12626 = vst [vmem:[#allocation141_spill] sm:$0xff] %v10326_v7 }
 0x541   :  { %v2900_v47 = vpop.f32.mrf.mxu0  ;;  %12621 = vst [vmem:[#allocation136_spill] sm:$0xff] %v10311_v39  ;;  %v10314_v48 = vld [vmem:[#allocation6 + $0x58c] ss:$16 sps:$4 sm:$0xff]   ;;  %12624 = vst [vmem:[#allocation139_spill] sm:$0xff] %v10321_v53 }
 0x542   :  { %4424 = vmatpush2.bf16.msra.mxu0 %v10285_v44  ;;  %12622 = vst [vmem:[#allocation137_spill] sm:$0xff] %v10314_v48  ;;  %v10317_v47 = vld [vmem:[#allocation6 + $0x388] ss:$16 sps:$4 sm:$0xff]  }
 0x543   :  { %4465 = vmatpush2.bf16.msra.mxu1 %v10289_v59  ;;  %v2901_v17 = vpop.f32.mrf.mxu0  ;;  %4425 = vmatprep.subr.bf16.mxu0 %v10291_v4  ;;  %12623 = vst [vmem:[#allocation138_spill] sm:$0xff] %v10317_v47  ;;  %v10352_v4 = vld [vmem:[#allocation6 + $0x52c] ss:$16 sps:$4 sm:$0xff]  }
 0x544   :  { %4466 = vmatprep.subr.bf16.mxu1 %v10300_v18  ;;  %v10323_v17 = vld [vmem:[#allocation6 + $0x36c] ss:$16 sps:$4 sm:$0xff]   ;;  %v10329_v18 = vld [vmem:[#allocation6 + $0x368] ss:$16 sps:$4 sm:$0xff]   ;;  %12634 = vst [vmem:[#allocation149_spill] sm:$0xff] %v10352_v4 }
 0x545   :  { %12625 = vst [vmem:[#allocation140_spill] sm:$0xff] %v10323_v17  ;;  %12627 = vst [vmem:[#allocation142_spill] sm:$0xff] %v10329_v18 }
 0x546   :  { %4426 = vmatpush2.bf16.msra.mxu0 %v10305_v31  ;;  %v10333_v31 = vld [vmem:[#allocation6 + $0x568] ss:$16 sps:$4 sm:$0xff]  }
 0x547   :  { %4467 = vmatpush2.bf16.msra.mxu1 %v10309_v16  ;;  %4427 = vmatprep.subr.bf16.mxu0 %v10311_v39  ;;  %12628 = vst [vmem:[#allocation143_spill] sm:$0xff] %v10333_v31  ;;  %v10335_v16 = vld [vmem:[#allocation6 + $0x34c] ss:$16 sps:$4 sm:$0xff]  }
 0x548   :  { %4468 = vmatprep.subr.bf16.mxu1 %v10314_v48  ;;  %12629 = vst [vmem:[#allocation144_spill] sm:$0xff] %v10335_v16  ;;  %v10338_v39 = vld [vmem:[#allocation6 + $0x54c] ss:$16 sps:$4 sm:$0xff]   ;;  %v10341_v48 = vld [vmem:[#allocation6 + $0x348] ss:$16 sps:$4 sm:$0xff]  }
 0x549   :  { %12630 = vst [vmem:[#allocation145_spill] sm:$0xff] %v10338_v39  ;;  %12631 = vst [vmem:[#allocation146_spill] sm:$0xff] %v10341_v48 }
 0x54a   :  { %4428 = vmatpush2.bf16.msra.mxu0 %v10317_v47  ;;  %v10345_v47 = vld [vmem:[#allocation6 + $0x548] ss:$16 sps:$4 sm:$0xff]  }
 0x54b   :  { %4469 = vmatpush2.bf16.msra.mxu1 %v10321_v53  ;;  %4429 = vmatprep.subr.bf16.mxu0 %v10323_v17  ;;  %12632 = vst [vmem:[#allocation147_spill] sm:$0xff] %v10345_v47  ;;  %v10347_v53 = vld [vmem:[#allocation6 + $0x32c] ss:$16 sps:$4 sm:$0xff]   ;;  %v10349_v17 = vld [vmem:[#allocation2 + $0x2] sm:$0x3f] }
 0x54c   :  { %4470 = vmatprep.subr.bf16.mxu1 %v10326_v7  ;;  %12633 = vst [vmem:[#allocation148_spill] sm:$0xff] %v10347_v53  ;;  %v10355_v7 = vld [vmem:[#allocation6 + $0x328] ss:$16 sps:$4 sm:$0xff]  }
 0x54d   :  { %12635 = vst [vmem:[#allocation150_spill] sm:$0xff] %v10355_v7 }
 0x54e   :  { %4430 = vmatpush2.bf16.msra.mxu0 %v10329_v18  ;;  %v10359_v18 = vrot.slane %v10349_v17, %v7615_v34 }
 0x54f   :  { %4471 = vmatpush2.bf16.msra.mxu1 %v10333_v31  ;;  %4431 = vmatprep.subr.bf16.mxu0 %v10335_v16  ;;  %v10363_v16 = vld [vmem:[#allocation6 + $0x528] ss:$16 sps:$4 sm:$0xff]   ;;  %v10365_v31 = vld [vmem:[#allocation6 + $0x30c] ss:$16 sps:$4 sm:$0xff]  }
 0x550   :  { %4472 = vmatprep.subr.bf16.mxu1 %v10338_v39  ;;  %12636 = vst [vmem:[#allocation151_spill] sm:$0xff] %v10365_v31  ;;  %v10368_v39 = vld [vmem:[#allocation6 + $0x50c] ss:$16 sps:$4 sm:$0xff]   ;;  %v4532_v59 = vcombine.high %v10359_v18, %v10359_v18 }
 0x552   :  { %4432 = vmatpush2.bf16.msra.mxu0 %v10341_v48  ;;  %v10371_v48 = vld [vmem:[#allocation6 + $0x308] ss:$16 sps:$4 sm:$0xff]  }
 0x553   :  { %4473 = vmatpush2.bf16.msra.mxu1 %v10345_v47  ;;  %4433 = vmatprep.subr.bf16.mxu0 %v10347_v53  ;;  %12637 = vst [vmem:[#allocation152_spill] sm:$0xff] %v10371_v48  ;;  %v10377_v53 = vld [vmem:[#allocation6 + $0x508] ss:$16 sps:$4 sm:$0xff]  }
 0x554   :  { %4474 = vmatprep.subr.bf16.mxu1 %v10352_v4  ;;  %12638 = vst [vmem:[#allocation153_spill] sm:$0xff] %v10377_v53  ;;  %v10382_v4 = vrot.slane %v4532_v59, %v7615_v34 }
 0x556   :  { %4434 = vmatpush2.bf16.msra.mxu0 %v10355_v7 }
 0x557   :  { %4475 = vmatpush2.bf16.msra.mxu1 %v10363_v16  ;;  %4435 = vmatprep.subr.bf16.mxu0 %v10365_v31 }
 0x558   :  { %4476 = vmatprep.subr.bf16.mxu1 %v10368_v39 }
 0x55a   :  { %4436 = vmatpush2.bf16.msra.mxu0 %v10371_v48  ;;  %v10392_v48 = vcombine.high %v10382_v4, %v10382_v4 }
 0x55b   :  { %4477 = vmatpush2.bf16.msra.mxu1 %v10377_v53  ;;  %4570 = vmatprep.subr.bf16.mxu0 %v9725_v42 }
 0x55c   :  { %4611 = vmatprep.subr.bf16.mxu1 %v9727_v51 }
 0x55d   :  { %v3019_v47 = vpop.f32.mrf.mxu0  ;;  %4438 = vmatmul.mubr.bf16.vlgmr.msra.gmra.mxu0 %v9958_v58 }
 0x55e   :  { %v2978_v7 = vpop.f32.mrf.mxu1  ;;  %4479 = vmatmul.mubr.bf16.vlgmr.msra.gmra.mxu1 %v10170_v38  ;;  %4571 = vmatpush1.bf16.msra.mxu0 %v9732_v5 }
 0x55f   :  { %v3020_v31 = vadd.f32 %v3019_v47, %v2978_v7  ;;  %4602 = vmatprep.mubr.bf16.mxu0 %v10382_v4  ;;  %4612 = vmatpush1.bf16.msra.mxu1 %v9736_v25  ;;  %v3021_v59 = vpop.f32.mrf.mxu0  ;;  %v12639_v25 = vmax.f32 %v10294_v20, %v10297_v45  ;;  %v12666_v45 = vld [vmem:[#allocation49_spill] sm:$0xff] }
 0x560   :  { %v2980_v42 = vpop.f32.mrf.mxu1  ;;  %4643 = vmatprep.mubr.bf16.mxu1 %v10392_v48  ;;  %4572 = vmatprep.subr.bf16.mxu0 %v9738_v62  ;;  %v7210_v62 = vld [vmem:[%s11333_s2] ss:$0 sm:$0xff] }
 0x561   :  { %v3022_v51 = vadd.f32 %v3021_v59, %v2980_v42  ;;  %v3023_v7 = vpop.f32.mrf.mxu0  ;;  %4613 = vmatprep.subr.bf16.mxu1 %v9740_v41  ;;  %v12668_v42 = vld [vmem:[#allocation52_spill] sm:$0xff] }
 0x562   :  { %v2982_v58 = vpop.f32.mrf.mxu1  ;;  %4573 = vmatpush1.bf16.msra.mxu0 %v9750_v6 }
 0x563   :  { %v3027_v5 = vmax.f32 %v3020_v31, %v3022_v51  ;;  %4614 = vmatpush1.bf16.msra.mxu1 %v9754_v13  ;;  %v3024_v47 = vpop.f32.mrf.mxu0  ;;  %4574 = vmatprep.subr.bf16.mxu0 %v9756_v52  ;;  %v12640_v52 = vld [vmem:[#allocation13_spill] sm:$0xff] }
 0x564   :  { %v2983_v38 = vpop.f32.mrf.mxu1  ;;  %4615 = vmatprep.subr.bf16.mxu1 %v9760_v37  ;;  %v12641_v37 = vld [vmem:[#allocation28_spill] sm:$0xff]  ;;  %v12669_v58 = vld [vmem:[#allocation53_spill] sm:$0xff] }
 0x565   :  { %v3028_v53 = vmax.f32 %v12639_v25, %v3027_v5  ;;  %v12670_v38 = vld [vmem:[#allocation54_spill] sm:$0xff] }
 0x566   :  { %4575 = vmatpush1.bf16.msra.mxu0 %v9763_v56  ;;  %v12642_v56 = vld [vmem:[#allocation29_spill] sm:$0xff]  ;;  %v12671_v25 = vld [vmem:[#allocation14_spill] sm:$0xff] }
 0x567   :  { %v3029_v41 = vadd.f32 %v7210_v62, %v3028_v53  ;;  %4616 = vmatpush1.bf16.msra.mxu1 %v9767_v54  ;;  %4576 = vmatprep.subr.bf16.mxu0 %v9769_v3  ;;  %v12643_v54 = vld [vmem:[#allocation30_spill] sm:$0xff]  ;;  %v12644_v3 = vld [vmem:[#allocation31_spill] sm:$0xff] }
 0x568   :  { %4617 = vmatprep.subr.bf16.mxu1 %v9775_v21  ;;  %v12645_v21 = vld [vmem:[#allocation32_spill] sm:$0xff]  ;;  %v12667_v53 = vld [vmem:[#allocation50_spill] sm:$0xff]  ;;  %v12672_v62 = vld [vmem:[#allocation15_spill] sm:$0xff] }
 0x569   :  { %v3030_v6 = vmax.f32 %v3029_v41, 0.0 }
 0x56a   :  { %4577 = vmatpush1.bf16.msra.mxu0 %v9779_v60  ;;  %v12646_v60 = vld [vmem:[#allocation33_spill] sm:$0xff] }
 0x56b   :  { %v3031_v13 = vpack.c.bf16 %v3030_v6, %v3030_v6  ;;  %4618 = vmatpush1.bf16.msra.mxu1 %v9783_v0  ;;  %4578 = vmatprep.subr.bf16.mxu0 %v9785_v50  ;;  %v12647_v0 = vld [vmem:[#allocation34_spill] sm:$0xff]  ;;  %v12648_v50 = vld [vmem:[#allocation35_spill] sm:$0xff]  ;;  %v12673_v6 = vld [vmem:[#allocation16_spill] sm:$0xff] }
 0x56c   :  { %4619 = vmatprep.subr.bf16.mxu1 %v9788_v27  ;;  %v12649_v27 = vld [vmem:[#allocation36_spill] sm:$0xff] }
 0x56d   :  { %3032 = vst [vmem:[#allocation2 + $0xb] sm:$0x1] %v3031_v13 }
 0x56e   :  { %4579 = vmatpush1.bf16.msra.mxu0 %v9791_v9  ;;  %v12650_v9 = vld [vmem:[#allocation51_spill] sm:$0xff] }
 0x56f   :  { %4620 = vmatpush1.bf16.msra.mxu1 %v9795_v57  ;;  %4580 = vmatprep.subr.bf16.mxu0 %v9797_v10  ;;  %v12651_v57 = vld [vmem:[#allocation55_spill] sm:$0xff]  ;;  %v12652_v10 = vld [vmem:[#allocation56_spill] sm:$0xff] }
 0x570   :  { %4621 = vmatprep.subr.bf16.mxu1 %v9800_v14  ;;  %v12653_v14 = vld [vmem:[#allocation27_spill] sm:$0xff] }
 0x572   :  { %4581 = vmatpush1.bf16.msra.mxu0 %v9803_v36  ;;  %v12654_v36 = vld [vmem:[#allocation23_spill] sm:$0xff] }
 0x573   :  { %4622 = vmatpush1.bf16.msra.mxu1 %v9807_v63  ;;  %4582 = vmatprep.subr.bf16.mxu0 %v9809_v33  ;;  %v4517_v63 = vcombine.high %v10349_v17, %v10349_v17  ;;  %v12655_v33 = vld [vmem:[#allocation39_spill] sm:$0xff] }
 0x574   :  { %4623 = vmatprep.subr.bf16.mxu1 %v9812_v35  ;;  %v12656_v35 = vld [vmem:[#allocation43_spill] sm:$0xff] }
 0x576   :  { %4583 = vmatpush1.bf16.msra.mxu0 %v9815_v19  ;;  %v12657_v19 = vld [vmem:[#allocation37_spill] sm:$0xff] }
 0x577   :  { %4624 = vmatpush1.bf16.msra.mxu1 %v9819_v32  ;;  %4584 = vmatprep.subr.bf16.mxu0 %v9821_v43  ;;  %v12658_v32 = vld [vmem:[#allocation38_spill] sm:$0xff]  ;;  %v10460_v43 = vrot.slane %v4517_v63, %v7615_v34  ;;  %v12690_v63 = vld [vmem:[#allocation44_spill] sm:$0xff] }
 0x578   :  { %4625 = vmatprep.subr.bf16.mxu1 %v9824_v2  ;;  %v12659_v2 = vld [vmem:[#allocation40_spill] sm:$0xff] }
 0x57a   :  { %4585 = vmatpush1.bf16.msra.mxu0 %v9827_v55  ;;  %v12660_v55 = vld [vmem:[#allocation41_spill] sm:$0xff] }
 0x57b   :  { %4626 = vmatpush1.bf16.msra.mxu1 %v9831_v1  ;;  %4586 = vmatprep.subr.bf16.mxu0 %v9833_v12  ;;  %v12661_v1 = vld [vmem:[#allocation42_spill] sm:$0xff]  ;;  %v12662_v12 = vld [vmem:[#allocation45_spill] sm:$0xff] }
 0x57c   :  { %4627 = vmatprep.subr.bf16.mxu1 %v9836_v11  ;;  %v10468_v11 = vrot.slane %v10359_v18, %v7615_v34 }
 0x57e   :  { %4587 = vmatpush2.bf16.msra.mxu0 %v9839_v15  ;;  %v4533_v15 = vcombine.high %v10460_v43, %v10460_v43 }
 0x57f   :  { %4628 = vmatpush2.bf16.msra.mxu1 %v9843_v29  ;;  %4588 = vmatprep.subr.bf16.mxu0 %v9845_v26  ;;  %v12663_v29 = vld [vmem:[#allocation46_spill] sm:$0xff]  ;;  %v12664_v26 = vld [vmem:[#allocation47_spill] sm:$0xff] }
 0x580   :  { %4629 = vmatprep.subr.bf16.mxu1 %v9848_v28  ;;  %v12665_v28 = vld [vmem:[#allocation48_spill] sm:$0xff]  ;;  %v10482_v20 = vrot.slane %v4533_v15, %v7615_v34  ;;  %v12699_v15 = vld [vmem:[#allocation71_spill] sm:$0xff] }
 0x582   :  { %4589 = vmatpush2.bf16.msra.mxu0 %v9853_v40  ;;  %v10477_v40 = vcombine.high %v10468_v11, %v10468_v11 }
 0x583   :  { %4630 = vmatpush2.bf16.msra.mxu1 %v12640_v52  ;;  %4590 = vmatprep.subr.bf16.mxu0 %v12641_v37  ;;  %v12674_v52 = vld [vmem:[#allocation17_spill] sm:$0xff]  ;;  %v12676_v37 = vld [vmem:[#allocation19_spill] sm:$0xff] }
 0x584   :  { %4631 = vmatprep.subr.bf16.mxu1 %v12642_v56  ;;  %v12677_v56 = vld [vmem:[#allocation20_spill] sm:$0xff] }
 0x586   :  { %4591 = vmatpush2.bf16.msra.mxu0 %v12643_v54  ;;  %v12678_v54 = vld [vmem:[#allocation21_spill] sm:$0xff] }
 0x587   :  { %4632 = vmatpush2.bf16.msra.mxu1 %v12644_v3  ;;  %4592 = vmatprep.subr.bf16.mxu0 %v12645_v21  ;;  %v12679_v3 = vld [vmem:[#allocation22_spill] sm:$0xff]  ;;  %v12680_v21 = vld [vmem:[#allocation24_spill] sm:$0xff] }
 0x588   :  { %4633 = vmatprep.subr.bf16.mxu1 %v12646_v60  ;;  %v12681_v60 = vld [vmem:[#allocation25_spill] sm:$0xff] }
 0x58a   :  { %4593 = vmatpush2.bf16.msra.mxu0 %v12647_v0  ;;  %v12682_v0 = vld [vmem:[#allocation26_spill] sm:$0xff] }
 0x58b   :  { %4634 = vmatpush2.bf16.msra.mxu1 %v12648_v50  ;;  %4594 = vmatprep.subr.bf16.mxu0 %v12649_v27  ;;  %v12683_v50 = vld [vmem:[#allocation58_spill] sm:$0xff]  ;;  %v12684_v27 = vld [vmem:[#allocation59_spill] sm:$0xff] }
 0x58c   :  { %4635 = vmatprep.subr.bf16.mxu1 %v12650_v9  ;;  %v12685_v9 = vld [vmem:[#allocation60_spill] sm:$0xff] }
 0x58e   :  { %4595 = vmatpush2.bf16.msra.mxu0 %v12651_v57  ;;  %v12686_v57 = vld [vmem:[#allocation61_spill] sm:$0xff] }
 0x58f   :  { %4636 = vmatpush2.bf16.msra.mxu1 %v12652_v10  ;;  %4596 = vmatprep.subr.bf16.mxu0 %v12653_v14  ;;  %v12687_v10 = vld [vmem:[#allocation62_spill] sm:$0xff]  ;;  %v12688_v14 = vld [vmem:[#allocation63_spill] sm:$0xff] }
 0x590   :  { %4637 = vmatprep.subr.bf16.mxu1 %v12654_v36  ;;  %v12689_v36 = vld [vmem:[#allocation64_spill] sm:$0xff] }
 0x592   :  { %4597 = vmatpush2.bf16.msra.mxu0 %v12655_v33  ;;  %v12691_v33 = vld [vmem:[#allocation57_spill] sm:$0xff] }
 0x593   :  { %4638 = vmatpush2.bf16.msra.mxu1 %v12656_v35  ;;  %4598 = vmatprep.subr.bf16.mxu0 %v12657_v19  ;;  %v12692_v35 = vld [vmem:[#allocation12_spill] sm:$0xff]  ;;  %v12693_v19 = vld [vmem:[#allocation65_spill] sm:$0xff] }
 0x594   :  { %4639 = vmatprep.subr.bf16.mxu1 %v12658_v32  ;;  %v12694_v32 = vld [vmem:[#allocation66_spill] sm:$0xff] }
 0x596   :  { %4599 = vmatpush2.bf16.msra.mxu0 %v12659_v2  ;;  %v12695_v2 = vld [vmem:[#allocation67_spill] sm:$0xff] }
 0x597   :  { %4640 = vmatpush2.bf16.msra.mxu1 %v12660_v55  ;;  %4600 = vmatprep.subr.bf16.mxu0 %v12661_v1  ;;  %v12696_v55 = vld [vmem:[#allocation68_spill] sm:$0xff]  ;;  %v12697_v1 = vld [vmem:[#allocation69_spill] sm:$0xff] }
 0x598   :  { %4641 = vmatprep.subr.bf16.mxu1 %v12662_v12  ;;  %v12698_v12 = vld [vmem:[#allocation70_spill] sm:$0xff] }
 0x59a   :  { %4601 = vmatpush2.bf16.msra.mxu0 %v12663_v29  ;;  %v12700_v29 = vld [vmem:[#allocation72_spill] sm:$0xff] }
 0x59b   :  { %4642 = vmatpush2.bf16.msra.mxu1 %v12664_v26  ;;  %4652 = vmatprep.subr.bf16.mxu0 %v12665_v28  ;;  %v12701_v26 = vld [vmem:[#allocation73_spill] sm:$0xff]  ;;  %v12702_v28 = vld [vmem:[#allocation74_spill] sm:$0xff] }
 0x59c   :  { %4693 = vmatprep.subr.bf16.mxu1 %v12666_v45  ;;  %v12703_v45 = vld [vmem:[#allocation75_spill] sm:$0xff] }
 0x59d   :  { %v4275_v31 = vpop.f32.mrf.mxu0  ;;  %4603 = vmatmul.mubr.bf16.vlgmr.msra.gmra.mxu0 %v10468_v11 }
 0x59e   :  { %v4316_v18 = vpop.f32.mrf.mxu1  ;;  %4644 = vmatmul.mubr.bf16.vlgmr.msra.gmra.mxu1 %v10477_v40  ;;  %4653 = vmatpush1.bf16.msra.mxu0 %v12667_v53  ;;  %v12713_v53 = vld [vmem:[#allocation85_spill] sm:$0xff] }
 0x59f   :  { %v10486_v17 = vadd.f32 %v4316_v18, %v4275_v31  ;;  %4684 = vmatprep.mubr.bf16.mxu0 %v10482_v20  ;;  %4694 = vmatpush1.bf16.msra.mxu1 %v12668_v42  ;;  %v4277_v59 = vpop.f32.mrf.mxu0  ;;  %v12704_v31 = vld [vmem:[#allocation76_spill] sm:$0xff]  ;;  %v12705_v18 = vld [vmem:[#allocation77_spill] sm:$0xff]  ;;  %v12714_v42 = vld [vmem:[#allocation86_spill] sm:$0xff] }
 0x5a0   :  { %4725 = vmatprep.mubr.bf16.mxu1 %v10382_v4  ;;  %v4318_v51 = vpop.f32.mrf.mxu1  ;;  %4654 = vmatprep.subr.bf16.mxu0 %v12669_v58  ;;  %v12675_v4 = vld [vmem:[#allocation18_spill] sm:$0xff]  ;;  %v12717_v58 = vld [vmem:[#allocation89_spill] sm:$0xff] }
 0x5a1   :  { %v10492_v7 = vadd.f32 %v4318_v51, %v4277_v59  ;;  %v4279_v5 = vpop.f32.mrf.mxu0  ;;  %4695 = vmatprep.subr.bf16.mxu1 %v12670_v38  ;;  %v12715_v59 = vld [vmem:[#allocation87_spill] sm:$0xff]  ;;  %v12716_v51 = vld [vmem:[#allocation88_spill] sm:$0xff] }
 0x5a2   :  { %v4320_v47 = vpop.f32.mrf.mxu1  ;;  %4655 = vmatpush1.bf16.msra.mxu0 %v12671_v25  ;;  %v12718_v5 = vld [vmem:[#allocation90_spill] sm:$0xff]  ;;  %v12719_v38 = vld [vmem:[#allocation91_spill] sm:$0xff]  ;;  %v10554_v25 = vrot.slane %v10460_v43, %v7615_v34  ;;  %v12725_v43 = vld [vmem:[#allocation97_spill] sm:$0xff] }
 0x5a3   :  { %4696 = vmatpush1.bf16.msra.mxu1 %v12672_v62  ;;  %v4280_v41 = vpop.f32.mrf.mxu0  ;;  %4656 = vmatprep.subr.bf16.mxu0 %v12673_v6  ;;  %v12720_v47 = vld [vmem:[#allocation92_spill] sm:$0xff]  ;;  %v12721_v62 = vld [vmem:[#allocation93_spill] sm:$0xff]  ;;  %v12723_v6 = vld [vmem:[#allocation95_spill] sm:$0xff] }
 0x5a4   :  { %v4321_v13 = vpop.f32.mrf.mxu1  ;;  %4697 = vmatprep.subr.bf16.mxu1 %v12674_v52  ;;  %v12722_v41 = vld [vmem:[#allocation94_spill] sm:$0xff] }
 0x5a6   :  { %4657 = vmatpush1.bf16.msra.mxu0 %v12675_v4 }
 0x5a7   :  { %4698 = vmatpush1.bf16.msra.mxu1 %v12676_v37  ;;  %4658 = vmatprep.subr.bf16.mxu0 %v12677_v56  ;;  %v12724_v37 = vld [vmem:[#allocation96_spill] sm:$0xff] }
 0x5a8   :  { %4699 = vmatprep.subr.bf16.mxu1 %v12678_v54 }
 0x5aa   :  { %4659 = vmatpush1.bf16.msra.mxu0 %v12679_v3 }
 0x5ab   :  { %4700 = vmatpush1.bf16.msra.mxu1 %v12680_v21  ;;  %4660 = vmatprep.subr.bf16.mxu0 %v12681_v60  ;;  %v12727_v60 = vld [vmem:[#allocation99_spill] sm:$0xff] }
 0x5ac   :  { %4701 = vmatprep.subr.bf16.mxu1 %v12682_v0 }
 0x5ae   :  { %4661 = vmatpush1.bf16.msra.mxu0 %v12683_v50  ;;  %v12729_v50 = vld [vmem:[#allocation101_spill] sm:$0xff] }
 0x5af   :  { %4702 = vmatpush1.bf16.msra.mxu1 %v12684_v27  ;;  %4662 = vmatprep.subr.bf16.mxu0 %v12685_v9  ;;  %v12731_v9 = vld [vmem:[#allocation103_spill] sm:$0xff] }
 0x5b0   :  { %4703 = vmatprep.subr.bf16.mxu1 %v12686_v57  ;;  %v12732_v57 = vld [vmem:[#allocation104_spill] sm:$0xff] }
 0x5b2   :  { %4663 = vmatpush1.bf16.msra.mxu0 %v12687_v10  ;;  %v12733_v10 = vld [vmem:[#allocation105_spill] sm:$0xff] }
 0x5b3   :  { %4704 = vmatpush1.bf16.msra.mxu1 %v12688_v14  ;;  %4664 = vmatprep.subr.bf16.mxu0 %v12689_v36  ;;  %v12734_v14 = vld [vmem:[#allocation106_spill] sm:$0xff]  ;;  %v12735_v36 = vld [vmem:[#allocation107_spill] sm:$0xff] }
 0x5b4   :  { %4705 = vmatprep.subr.bf16.mxu1 %v12690_v63  ;;  %v12736_v63 = vld [vmem:[#allocation108_spill] sm:$0xff] }
 0x5b6   :  { %4665 = vmatpush1.bf16.msra.mxu0 %v12691_v33  ;;  %v12737_v33 = vld [vmem:[#allocation109_spill] sm:$0xff] }
 0x5b7   :  { %4706 = vmatpush1.bf16.msra.mxu1 %v12692_v35  ;;  %4666 = vmatprep.subr.bf16.mxu0 %v12693_v19  ;;  %v12738_v35 = vld [vmem:[#allocation110_spill] sm:$0xff]  ;;  %v12739_v19 = vld [vmem:[#allocation111_spill] sm:$0xff] }
 0x5b8   :  { %4707 = vmatprep.subr.bf16.mxu1 %v12694_v32  ;;  %v12740_v32 = vld [vmem:[#allocation112_spill] sm:$0xff] }
 0x5ba   :  { %4667 = vmatpush1.bf16.msra.mxu0 %v12695_v2  ;;  %v12741_v2 = vld [vmem:[#allocation113_spill] sm:$0xff] }
 0x5bb   :  { %4708 = vmatpush1.bf16.msra.mxu1 %v12696_v55  ;;  %4668 = vmatprep.subr.bf16.mxu0 %v12697_v1  ;;  %v12742_v55 = vld [vmem:[#allocation114_spill] sm:$0xff]  ;;  %v12743_v1 = vld [vmem:[#allocation115_spill] sm:$0xff] }
 0x5bc   :  { %4709 = vmatprep.subr.bf16.mxu1 %v12698_v12  ;;  %v12744_v12 = vld [vmem:[#allocation116_spill] sm:$0xff] }
 0x5be   :  { %4669 = vmatpush2.bf16.msra.mxu0 %v12699_v15  ;;  %v12745_v15 = vld [vmem:[#allocation117_spill] sm:$0xff] }
 0x5bf   :  { %4710 = vmatpush2.bf16.msra.mxu1 %v12700_v29  ;;  %4670 = vmatprep.subr.bf16.mxu0 %v12701_v26  ;;  %v12746_v29 = vld [vmem:[#allocation118_spill] sm:$0xff]  ;;  %v12747_v26 = vld [vmem:[#allocation119_spill] sm:$0xff] }
 0x5c0   :  { %4711 = vmatprep.subr.bf16.mxu1 %v10074_v22  ;;  %v12706_v22 = vld [vmem:[#allocation78_spill] sm:$0xff] }
 0x5c2   :  { %4671 = vmatpush2.bf16.msra.mxu0 %v10077_v46  ;;  %v12707_v46 = vld [vmem:[#allocation79_spill] sm:$0xff] }
 0x5c3   :  { %4712 = vmatpush2.bf16.msra.mxu1 %v10081_v24  ;;  %4672 = vmatprep.subr.bf16.mxu0 %v10083_v61  ;;  %v12708_v24 = vld [vmem:[#allocation80_spill] sm:$0xff]  ;;  %v12709_v61 = vld [vmem:[#allocation81_spill] sm:$0xff] }
 0x5c4   :  { %4713 = vmatprep.subr.bf16.mxu1 %v10086_v8  ;;  %v12710_v8 = vld [vmem:[#allocation82_spill] sm:$0xff] }
 0x5c6   :  { %4673 = vmatpush2.bf16.msra.mxu0 %v10089_v49  ;;  %v12711_v49 = vld [vmem:[#allocation83_spill] sm:$0xff] }
 0x5c7   :  { %4714 = vmatpush2.bf16.msra.mxu1 %v10093_v23  ;;  %4674 = vmatprep.subr.bf16.mxu0 %v12702_v28  ;;  %v12712_v23 = vld [vmem:[#allocation84_spill] sm:$0xff] }
 0x5c8   :  { %4715 = vmatprep.subr.bf16.mxu1 %v12703_v45  ;;  %v12748_v28 = vld [vmem:[#allocation120_spill] sm:$0xff]  ;;  %v12749_v45 = vld [vmem:[#allocation121_spill] sm:$0xff] }
 0x5ca   :  { %4675 = vmatpush2.bf16.msra.mxu0 %v12704_v31  ;;  %v12750_v31 = vld [vmem:[#allocation122_spill] sm:$0xff] }
 0x5cb   :  { %4716 = vmatpush2.bf16.msra.mxu1 %v12705_v18  ;;  %4676 = vmatprep.subr.bf16.mxu0 %v12706_v22  ;;  %v12751_v18 = vld [vmem:[#allocation123_spill] sm:$0xff]  ;;  %v12752_v22 = vld [vmem:[#allocation124_spill] sm:$0xff] }
 0x5cc   :  { %4717 = vmatprep.subr.bf16.mxu1 %v12707_v46  ;;  %v12753_v46 = vld [vmem:[#allocation125_spill] sm:$0xff] }
 0x5ce   :  { %4677 = vmatpush2.bf16.msra.mxu0 %v12708_v24  ;;  %v12754_v24 = vld [vmem:[#allocation126_spill] sm:$0xff] }
 0x5cf   :  { %4718 = vmatpush2.bf16.msra.mxu1 %v12709_v61  ;;  %4678 = vmatprep.subr.bf16.mxu0 %v12710_v8  ;;  %v12755_v61 = vld [vmem:[#allocation127_spill] sm:$0xff]  ;;  %v12756_v8 = vld [vmem:[#allocation128_spill] sm:$0xff] }
 0x5d0   :  { %4719 = vmatprep.subr.bf16.mxu1 %v12711_v49  ;;  %v12757_v49 = vld [vmem:[#allocation129_spill] sm:$0xff] }
 0x5d2   :  { %4679 = vmatpush2.bf16.msra.mxu0 %v12712_v23  ;;  %v12758_v23 = vld [vmem:[#allocation130_spill] sm:$0xff] }
 0x5d3   :  { %4720 = vmatpush2.bf16.msra.mxu1 %v12713_v53  ;;  %4680 = vmatprep.subr.bf16.mxu0 %v12714_v42  ;;  %v12759_v53 = vld [vmem:[#allocation131_spill] sm:$0xff]  ;;  %v12760_v42 = vld [vmem:[#allocation132_spill] sm:$0xff] }
 0x5d4   :  { %4721 = vmatprep.subr.bf16.mxu1 %v12715_v59  ;;  %v12761_v59 = vld [vmem:[#allocation133_spill] sm:$0xff] }
 0x5d6   :  { %4681 = vmatpush2.bf16.msra.mxu0 %v12716_v51  ;;  %v12762_v51 = vld [vmem:[#allocation134_spill] sm:$0xff] }
 0x5d7   :  { %4722 = vmatpush2.bf16.msra.mxu1 %v12717_v58  ;;  %4682 = vmatprep.subr.bf16.mxu0 %v12718_v5  ;;  %v12763_v58 = vld [vmem:[#allocation135_spill] sm:$0xff]  ;;  %v12764_v5 = vld [vmem:[#allocation136_spill] sm:$0xff] }
 0x5d8   :  { %4723 = vmatprep.subr.bf16.mxu1 %v12719_v38  ;;  %v12765_v38 = vld [vmem:[#allocation137_spill] sm:$0xff] }
 0x5da   :  { %4683 = vmatpush2.bf16.msra.mxu0 %v12720_v47  ;;  %v12766_v47 = vld [vmem:[#allocation138_spill] sm:$0xff] }
 0x5db   :  { %4724 = vmatpush2.bf16.msra.mxu1 %v12721_v62  ;;  %4734 = vmatprep.subr.bf16.mxu0 %v12722_v41  ;;  %v12767_v62 = vld [vmem:[#allocation139_spill] sm:$0xff]  ;;  %v12770_v41 = vld [vmem:[#allocation142_spill] sm:$0xff] }
 0x5dc   :  { %4775 = vmatprep.subr.bf16.mxu1 %v12723_v6  ;;  %v12771_v6 = vld [vmem:[#allocation143_spill] sm:$0xff] }
 0x5dd   :  { %v4357_v13 = vpop.f32.mrf.mxu0  ;;  %4685 = vmatmul.mubr.bf16.vlgmr.msra.gmra.mxu0 %v10554_v25 }
 0x5de   :  { %v10561_v52 = vadd.f32 %v4357_v13, %v10486_v17  ;;  %v10563_v4 = vpop.f32.mrf.mxu1  ;;  %4726 = vmatmul.mubr.bf16.vlgmr.msra.gmra.mxu1 %v10468_v11  ;;  %4735 = vmatpush1.bf16.msra.mxu0 %v12724_v37  ;;  %v12726_v17 = vld [vmem:[#allocation98_spill] sm:$0xff]  ;;  %v12772_v13 = vld [vmem:[#allocation144_spill] sm:$0xff]  ;;  %v12773_v37 = vld [vmem:[#allocation145_spill] sm:$0xff] }
 0x5df   :  { %4766 = vmatprep.mubr.bf16.mxu0 %v10392_v48  ;;  %4776 = vmatpush1.bf16.msra.mxu1 %v12725_v43  ;;  %v4359_v56 = vpop.f32.mrf.mxu0  ;;  %v12728_v48 = vld [vmem:[#allocation100_spill] sm:$0xff]  ;;  %v12774_v43 = vld [vmem:[#allocation146_spill] sm:$0xff] }
 0x5e0   :  { %4807 = vmatprep.mubr.bf16.mxu1 %v10482_v20  ;;  %v10571_v54 = vadd.f32 %v4359_v56, %v10492_v7  ;;  %v10573_v3 = vpop.f32.mrf.mxu1  ;;  %4736 = vmatprep.subr.bf16.mxu0 %v12726_v17  ;;  %v12730_v20 = vld [vmem:[#allocation102_spill] sm:$0xff]  ;;  %v12775_v56 = vld [vmem:[#allocation147_spill] sm:$0xff]  ;;  %v12776_v17 = vld [vmem:[#allocation148_spill] sm:$0xff] }
 0x5e1   :  { %v4361_v21 = vpop.f32.mrf.mxu0  ;;  %4777 = vmatprep.subr.bf16.mxu1 %v12727_v60  ;;  %v12778_v60 = vld [vmem:[#allocation150_spill] sm:$0xff] }
 0x5e2   :  { %v4487_v11 = vmax.f32 %v10561_v52, %v10571_v54  ;;  %v4402_v0 = vpop.f32.mrf.mxu1  ;;  %4737 = vmatpush1.bf16.msra.mxu0 %v12728_v48  ;;  %v12777_v21 = vld [vmem:[#allocation149_spill] sm:$0xff]  ;;  %v12780_v48 = vld [vmem:[#allocation152_spill] sm:$0xff]  ;;  %v10678_v54 = vld [vmem:[%s11335_s4] ss:$0 sm:$0xff] }
 0x5e3   :  { %4778 = vmatpush1.bf16.msra.mxu1 %v12729_v50  ;;  %v4362_v27 = vpop.f32.mrf.mxu0  ;;  %4738 = vmatprep.subr.bf16.mxu0 %v12730_v20  ;;  %v12779_v0 = vld [vmem:[#allocation151_spill] sm:$0xff]  ;;  %v12781_v50 = vld [vmem:[#allocation153_spill] sm:$0xff]  ;;  %v11861_v20 = vmov 0.0  }
 0x5e4   :  { %v4403_v7 = vpop.f32.mrf.mxu1  ;;  %4779 = vmatprep.subr.bf16.mxu1 %v12731_v9  ;;  %v6878_v27 = vld [vmem:[%s11336_s5 + $0x38] sm:$0xff]   ;;  %v6883_v52 = vld [vmem:[%s11336_s5 + $0x10] sm:$0xff]  }
 0x5e6   :  { %4739 = vmatpush1.bf16.msra.mxu0 %v12732_v57 }
 0x5e7   :  { %4780 = vmatpush1.bf16.msra.mxu1 %v12733_v10  ;;  %4740 = vmatprep.subr.bf16.mxu0 %v12734_v14  ;;  %v6879_v14 = vld [vmem:[%s11336_s5 + $0x30] sm:$0xff]  }
 0x5e8   :  { %4781 = vmatprep.subr.bf16.mxu1 %v12735_v36 }
 0x5ea   :  { %4741 = vmatpush1.bf16.msra.mxu0 %v12736_v63 }
 0x5eb   :  { %4782 = vmatpush1.bf16.msra.mxu1 %v12737_v33  ;;  %4742 = vmatprep.subr.bf16.mxu0 %v12738_v35 }
 0x5ec   :  { %4783 = vmatprep.subr.bf16.mxu1 %v12739_v19  ;;  %v6880_v19 = vld [vmem:[%s11336_s5 + $0x28] sm:$0xff]  }
 0x5ee   :  { %4743 = vmatpush1.bf16.msra.mxu0 %v12740_v32 }
 0x5ef   :  { %4784 = vmatpush1.bf16.msra.mxu1 %v12741_v2  ;;  %4744 = vmatprep.subr.bf16.mxu0 %v12742_v55  ;;  %v6881_v55 = vld [vmem:[%s11336_s5 + $0x20] sm:$0xff]  }
 0x5f0   :  { %4785 = vmatprep.subr.bf16.mxu1 %v12743_v1  ;;  %v6882_v1 = vld [vmem:[%s11336_s5 + $0x18] sm:$0xff]  }
 0x5f2   :  { %4745 = vmatpush1.bf16.msra.mxu0 %v12744_v12  ;;  %v10669_v12 = vld [vmem:[#allocation2 + $0x4] sm:$0x3f] }
 0x5f3   :  { %4786 = vmatpush1.bf16.msra.mxu1 %v12745_v15  ;;  %4746 = vmatprep.subr.bf16.mxu0 %v12746_v29  ;;  %v6884_v15 = vld [vmem:[%s11336_s5 + $0x8] sm:$0xff]  }
 0x5f4   :  { %4787 = vmatprep.subr.bf16.mxu1 %v12747_v26 }
 0x5f6   :  { %4747 = vmatpush1.bf16.msra.mxu0 %v12748_v28  ;;  %v6885_v28 = vld [vmem:[%s11336_s5] sm:$0xff]  }
 0x5f7   :  { %4788 = vmatpush1.bf16.msra.mxu1 %v12749_v45  ;;  %4748 = vmatprep.subr.bf16.mxu0 %v12750_v31 }
 0x5f8   :  { %4789 = vmatprep.subr.bf16.mxu1 %v12751_v18 }
 0x5fa   :  { %4749 = vmatpush1.bf16.msra.mxu0 %v12752_v22  ;;  %v10698_v22 = vld [vmem:[#allocation6 + $0x2e4] ss:$16 sps:$4 sm:$0xff]  }
 0x5fb   :  { %4790 = vmatpush1.bf16.msra.mxu1 %v12753_v46  ;;  %4750 = vmatprep.subr.bf16.mxu0 %v12754_v24  ;;  %v10705_v24 = vld [vmem:[#allocation6 + $0x2e0] ss:$16 sps:$4 sm:$0xff]  }
 0x5fc   :  { %4791 = vmatprep.subr.bf16.mxu1 %v12755_v61  ;;  %v10709_v61 = vld [vmem:[#allocation6 + $0x2c4] ss:$16 sps:$4 sm:$0xff]  }
 0x5fe   :  { %4751 = vmatpush2.bf16.msra.mxu0 %v12756_v8  ;;  %v10712_v8 = vld [vmem:[#allocation6 + $0x2c0] ss:$16 sps:$4 sm:$0xff]  }
 0x5ff   :  { %4792 = vmatpush2.bf16.msra.mxu1 %v12757_v49  ;;  %4752 = vmatprep.subr.bf16.mxu0 %v12758_v23  ;;  %v10715_v49 = vld [vmem:[#allocation6 + $0x2a4] ss:$16 sps:$4 sm:$0xff]   ;;  %v10718_v23 = vld [vmem:[#allocation6 + $0x2a0] ss:$16 sps:$4 sm:$0xff]  }
 0x600   :  { %4793 = vmatprep.subr.bf16.mxu1 %v10282_v30  ;;  %v12768_v30 = vld [vmem:[#allocation140_spill] sm:$0xff] }
 0x602   :  { %4753 = vmatpush2.bf16.msra.mxu0 %v10285_v44  ;;  %v12769_v44 = vld [vmem:[#allocation141_spill] sm:$0xff] }
 0x603   :  { %4794 = vmatpush2.bf16.msra.mxu1 %v12759_v53  ;;  %4754 = vmatprep.subr.bf16.mxu0 %v12760_v42  ;;  %v10721_v53 = vld [vmem:[#allocation6 + $0x284] ss:$16 sps:$4 sm:$0xff]   ;;  %v10724_v42 = vld [vmem:[#allocation6 + $0x280] ss:$16 sps:$4 sm:$0xff]  }
 0x604   :  { %4795 = vmatprep.subr.bf16.mxu1 %v12761_v59  ;;  %v10727_v59 = vld [vmem:[#allocation6 + $0x264] ss:$16 sps:$4 sm:$0xff]  }
 0x606   :  { %4755 = vmatpush2.bf16.msra.mxu0 %v12762_v51  ;;  %v6887_v51 = vld [vmem:[%s11336_s5 + $0x78] sm:$0xff]  }
 0x607   :  { %4796 = vmatpush2.bf16.msra.mxu1 %v12763_v58  ;;  %4756 = vmatprep.subr.bf16.mxu0 %v12764_v5  ;;  %v10733_v5 = vld [vmem:[#allocation6 + $0x260] ss:$16 sps:$4 sm:$0xff]  }
 0x608   :  { %4797 = vmatprep.subr.bf16.mxu1 %v12765_v38 }
 0x60a   :  { %4757 = vmatpush2.bf16.msra.mxu0 %v12766_v47  ;;  %v10737_v47 = vld [vmem:[#allocation6 + $0x244] ss:$16 sps:$4 sm:$0xff]  }
 0x60b   :  { %4798 = vmatpush2.bf16.msra.mxu1 %v12767_v62  ;;  %4758 = vmatprep.subr.bf16.mxu0 %v12768_v30  ;;  %v6888_v30 = vld [vmem:[%s11336_s5 + $0x70] sm:$0xff]  }
 0x60c   :  { %4799 = vmatprep.subr.bf16.mxu1 %v12769_v44 }
 0x60e   :  { %4759 = vmatpush2.bf16.msra.mxu0 %v12770_v41  ;;  %v10743_v41 = vld [vmem:[#allocation6 + $0x240] ss:$16 sps:$4 sm:$0xff]  }
 0x60f   :  { %4800 = vmatpush2.bf16.msra.mxu1 %v12771_v6  ;;  %4760 = vmatprep.subr.bf16.mxu0 %v12772_v13  ;;  %v10747_v13 = vld [vmem:[#allocation6 + $0x224] ss:$16 sps:$4 sm:$0xff]  }
 0x610   :  { %4801 = vmatprep.subr.bf16.mxu1 %v12773_v37 }
 0x612   :  { %4761 = vmatpush2.bf16.msra.mxu0 %v12774_v43  ;;  %v6889_v43 = vld [vmem:[%s11336_s5 + $0x68] sm:$0xff]  }
 0x613   :  { %4802 = vmatpush2.bf16.msra.mxu1 %v12775_v56  ;;  %4762 = vmatprep.subr.bf16.mxu0 %v12776_v17  ;;  %v10753_v17 = vld [vmem:[#allocation6 + $0x220] ss:$16 sps:$4 sm:$0xff]  }
 0x614   :  { %4803 = vmatprep.subr.bf16.mxu1 %v12777_v21 }
 0x616   :  { %4763 = vmatpush2.bf16.msra.mxu0 %v12778_v60  ;;  %v10757_v60 = vld [vmem:[#allocation6 + $0x204] ss:$16 sps:$4 sm:$0xff]  }
 0x617   :  { %4804 = vmatpush2.bf16.msra.mxu1 %v10363_v16  ;;  %4764 = vmatprep.subr.bf16.mxu0 %v12779_v0  ;;  %v6890_v0 = vld [vmem:[%s11336_s5 + $0x60] sm:$0xff]  }
 0x618   :  { %4805 = vmatprep.subr.bf16.mxu1 %v10368_v39 }
 0x61a   :  { %4765 = vmatpush2.bf16.msra.mxu0 %v12780_v48  ;;  %v10763_v48 = vld [vmem:[#allocation6 + $0x200] ss:$16 sps:$4 sm:$0xff]  }
 0x61b   :  { %4806 = vmatpush2.bf16.msra.mxu1 %v12781_v50  ;;  %6343 = vmatprep.subr.bf16.mxu0 %v11861_v20 }
 0x61c   :  { %6363 = vmatprep.subr.bf16.mxu1 %v11861_v20 }
 0x61d   :  { %v4439_v7 = vpop.f32.mrf.mxu0  ;;  %4767 = vmatmul.mubr.bf16.vlgmr.msra.gmra.mxu0 %v10477_v40 }
 0x61e   :  { %v4440_v9 = vadd.f32 %v4439_v7, %v10563_v4  ;;  %v4480_v57 = vpop.f32.mrf.mxu1  ;;  %4808 = vmatmul.mubr.bf16.vlgmr.msra.gmra.mxu1 %v10554_v25  ;;  %6359 = vmatprep.mubr.msk.bf16.mxu0 %vm7477_vm0, %v11861_v20 }
 0x61f   :  { %6364 = vmatpush3.bf16.msra.mxu1 %v6878_v27  ;;  %v4441_v10 = vpop.f32.mrf.mxu0  ;;  %6379 = vmatprep.mubr.msk.bf16.mxu1 %vm7477_vm0, %v11861_v20  ;;  %v10767_v27 = vld [vmem:[#allocation6 + $0x3e4] ss:$16 sps:$4 sm:$0xff]  }
 0x620   :  { %v4442_v40 = vadd.f32 %v4441_v10, %v10573_v3  ;;  %v4482_v36 = vpop.f32.mrf.mxu1  ;;  %6365 = vmatprep.subr.bf16.mxu1 %v11861_v20  ;;  %v4481_v25 = vadd.f32 %v4480_v57, %v4440_v9  ;;  %6344 = vmatpush3.bf16.msra.mxu0 %v6887_v51  ;;  %v6891_v57 = vld [vmem:[%s11336_s5 + $0x58] sm:$0xff]  }
 0x621   :  { %v4443_v4 = vpop.f32.mrf.mxu0  ;;  %6345 = vmatprep.subr.bf16.mxu0 %v11861_v20  ;;  %v10822_v51 = vld [vmem:[#allocation6 + $0x340] ss:$16 sps:$4 sm:$0xff]  }
 0x622   :  { %v4483_v63 = vadd.f32 %v4482_v36, %v4442_v40  ;;  %v4484_v33 = vpop.f32.mrf.mxu1  ;;  %v10778_v4 = vld [vmem:[#allocation6 + $0x3c4] ss:$16 sps:$4 sm:$0xff]   ;;  %12783 = vst [vmem:[#allocation28_spill] sm:$0xff] %v10822_v51 }
 0x623   :  { %6366 = vmatpush3.bf16.msra.mxu1 %v6879_v14  ;;  %v4444_v35 = vpop.f32.mrf.mxu0  ;;  %v10775_v14 = vld [vmem:[#allocation6 + $0x3e0] ss:$16 sps:$4 sm:$0xff]  }
 0x624   :  { %v4488_v32 = vmax.f32 %v4481_v25, %v4483_v63  ;;  %v4485_v2 = vpop.f32.mrf.mxu1  ;;  %6367 = vmatprep.subr.bf16.mxu1 %v11861_v20  ;;  %6346 = vmatpush3.bf16.msra.mxu0 %v6888_v30  ;;  %v6892_v35 = vld [vmem:[%s11336_s5 + $0x50] sm:$0xff]  }
 0x625   :  { %6347 = vmatprep.subr.bf16.mxu0 %v11861_v20  ;;  %v10825_v30 = vld [vmem:[#allocation6 + $0x324] ss:$16 sps:$4 sm:$0xff]  }
 0x626   :  { %v4489_v3 = vmax.f32 %v4487_v11, %v4488_v32  ;;  %v10682_v11 = vrot.slane %v10669_v12, %v7615_v34  ;;  %12784 = vst [vmem:[#allocation29_spill] sm:$0xff] %v10825_v30 }
 0x627   :  { %6368 = vmatpush3.bf16.msra.mxu1 %v6880_v19  ;;  %v10787_v19 = vld [vmem:[#allocation6 + $0x3c0] ss:$16 sps:$4 sm:$0xff]  }
 0x628   :  { %6369 = vmatprep.subr.bf16.mxu1 %v11861_v20  ;;  %v4496_v29 = vadd.f32 %v10678_v54, %v4489_v3  ;;  %v5031_v26 = vcombine.high %v10682_v11, %v10682_v11  ;;  %6348 = vmatpush3.bf16.msra.mxu0 %v6889_v43  ;;  %v10790_v3 = vld [vmem:[#allocation6 + $0x3a4] ss:$16 sps:$4 sm:$0xff]   ;;  %v10828_v43 = vld [vmem:[#allocation6 + $0x320] ss:$16 sps:$4 sm:$0xff]  }
 0x629   :  { %6349 = vmatprep.subr.bf16.mxu0 %v11861_v20  ;;  %12785 = vst [vmem:[#allocation30_spill] sm:$0xff] %v10828_v43 }
 0x62a   :  { %v4497_v45 = vmax.f32 %v4496_v29, 0.0  ;;  %v10696_v31 = vrot.slane %v5031_v26, %v7615_v34  ;;  %v10807_v29 = vld [vmem:[#allocation6 + $0x380] ss:$16 sps:$4 sm:$0xff]   ;;  %v10810_v26 = vld [vmem:[#allocation6 + $0x364] ss:$16 sps:$4 sm:$0xff]  }
 0x62b   :  { %6370 = vmatpush3.bf16.msra.mxu1 %v6881_v55  ;;  %v6893_v55 = vld [vmem:[%s11336_s5 + $0x48] sm:$0xff]  }
 0x62c   :  { %6371 = vmatprep.subr.bf16.mxu1 %v11861_v20  ;;  %v4498_v18 = vpack.c.bf16 %v4497_v45, %v4497_v45  ;;  %v10703_v46 = vcombine.high %v10696_v31, %v10696_v31  ;;  %6350 = vmatpush3.bf16.msra.mxu0 %v6890_v0  ;;  %v10816_v45 = vld [vmem:[#allocation6 + $0x360] ss:$16 sps:$4 sm:$0xff]   ;;  %v10833_v0 = vrot.slane %v10682_v11, %v7615_v34  ;;  %v10849_v11 = vld [vmem:[#allocation6 + $0xe8] ss:$16 sps:$4 sm:$0xff]  }
 0x62d   :  { %6351 = vmatprep.subr.bf16.mxu0 %v11861_v20  ;;  %12789 = vst [vmem:[#allocation34_spill] sm:$0xff] %v10849_v11 }
 0x62f   :  { %6372 = vmatpush3.bf16.msra.mxu1 %v6882_v1  ;;  %v10797_v1 = vld [vmem:[#allocation6 + $0x3a0] ss:$16 sps:$4 sm:$0xff]  }
 0x630   :  { %6373 = vmatprep.subr.bf16.mxu1 %v11861_v20  ;;  %6352 = vmatpush3.bf16.msra.mxu0 %v6891_v57  ;;  %v10843_v57 = vcombine.high %v10833_v0, %v10833_v0 }
 0x631   :  { %6353 = vmatprep.subr.bf16.mxu0 %v11861_v20 }
 0x633   :  { %6374 = vmatpush3.bf16.msra.mxu1 %v6883_v52  ;;  %v10800_v52 = vld [vmem:[#allocation6 + $0x384] ss:$16 sps:$4 sm:$0xff]  }
 0x634   :  { %6375 = vmatprep.subr.bf16.mxu1 %v11861_v20  ;;  %6354 = vmatpush3.bf16.msra.mxu0 %v6892_v35  ;;  %v10862_v35 = vld [vmem:[#allocation6 + $0xa8] ss:$16 sps:$4 sm:$0xff]  }
 0x635   :  { %6355 = vmatprep.subr.bf16.mxu0 %v11861_v20  ;;  %12793 = vst [vmem:[#allocation55_spill] sm:$0xff] %v10862_v35 }
 0x637   :  { %6376 = vmatpush3.bf16.msra.mxu1 %v6884_v15  ;;  %v6894_v15 = vld [vmem:[%s11336_s5 + $0x40] sm:$0xff]  }
 0x638   :  { %6377 = vmatprep.subr.bf16.mxu1 %v11861_v20  ;;  %6356 = vmatpush3.bf16.msra.mxu0 %v6893_v55  ;;  %v10871_v55 = vld [vmem:[#allocation6 + $0x6c] ss:$16 sps:$4 sm:$0xff]  }
 0x639   :  { %6357 = vmatprep.subr.bf16.mxu0 %v11861_v20  ;;  %12796 = vst [vmem:[#allocation23_spill] sm:$0xff] %v10871_v55  ;;  %v10877_v20 = vld [vmem:[#allocation6 + $0x4c] ss:$16 sps:$4 sm:$0xff]  }
 0x63a   :  { %12798 = vst [vmem:[#allocation43_spill] sm:$0xff] %v10877_v20 }
 0x63b   :  { %6378 = vmatpush3.bf16.msra.mxu1 %v6885_v28  ;;  %v10813_v28 = vld [vmem:[#allocation6 + $0xe4] ss:$16 sps:$4 sm:$0xff]  }
 0x63c   :  { %5110 = vmatprep.subr.bf16.mxu1 %v10698_v22  ;;  %6358 = vmatpush3.bf16.msra.mxu0 %v6894_v15  ;;  %v10874_v15 = vld [vmem:[#allocation6 + $0x68] ss:$16 sps:$4 sm:$0xff]  }
 0x63d   :  { %5069 = vmatprep.subr.bf16.mxu0 %v10813_v28  ;;  %12797 = vst [vmem:[#allocation39_spill] sm:$0xff] %v10874_v15 }
 0x63e   :  { %6380 = vmatmul.mubr.bf16.vlgmr.msra.gmra.mxu1 %v4498_v18  ;;  %v10819_v18 = vld [vmem:[#allocation6 + $0x344] ss:$16 sps:$4 sm:$0xff]  }
 0x63f   :  { %5111 = vmatpush1.bf16.msra.mxu1 %v10705_v24  ;;  %5142 = vmatprep.mubr.bf16.mxu1 %v10703_v46  ;;  %12782 = vst [vmem:[#allocation13_spill] sm:$0xff] %v10819_v18 }
 0x640   :  { %5112 = vmatprep.subr.bf16.mxu1 %v10709_v61 }
 0x643   :  { %5113 = vmatpush1.bf16.msra.mxu1 %v10712_v8 }
 0x644   :  { %5114 = vmatprep.subr.bf16.mxu1 %v10715_v49 }
 0x647   :  { %5115 = vmatpush1.bf16.msra.mxu1 %v10718_v23 }
 0x648   :  { %5116 = vmatprep.subr.bf16.mxu1 %v10721_v53 }
 0x64b   :  { %5117 = vmatpush1.bf16.msra.mxu1 %v10724_v42 }
 0x64c   :  { %5118 = vmatprep.subr.bf16.mxu1 %v10727_v59 }
 0x64f   :  { %5119 = vmatpush1.bf16.msra.mxu1 %v10733_v5 }
 0x650   :  { %5120 = vmatprep.subr.bf16.mxu1 %v10737_v47 }
 0x653   :  { %5121 = vmatpush1.bf16.msra.mxu1 %v10743_v41 }
 0x654   :  { %5122 = vmatprep.subr.bf16.mxu1 %v10747_v13 }
 0x657   :  { %5123 = vmatpush1.bf16.msra.mxu1 %v10753_v17 }
 0x658   :  { %5124 = vmatprep.subr.bf16.mxu1 %v10757_v60 }
 0x65b   :  { %5125 = vmatpush1.bf16.msra.mxu1 %v10763_v48 }
 0x65c   :  { %5126 = vmatprep.subr.bf16.mxu1 %v10767_v27 }
 0x65d   :  { %v4604_v7 = vpop.f32.mrf.mxu0 }
 0x65e   :  { %v4645_v9 = vpop.f32.mrf.mxu1 }
 0x65f   :  { %v10773_v10 = vadd.f32 %v4645_v9, %v4604_v7  ;;  %5127 = vmatpush2.bf16.msra.mxu1 %v10775_v14  ;;  %v4606_v40 = vpop.f32.mrf.mxu0  ;;  %v10835_v7 = vld [vmem:[#allocation6 + $0x304] ss:$16 sps:$4 sm:$0xff]   ;;  %v10838_v9 = vld [vmem:[#allocation6 + $0x300] ss:$16 sps:$4 sm:$0xff]  }
 0x660   :  { %v4647_v36 = vpop.f32.mrf.mxu1  ;;  %5128 = vmatprep.subr.bf16.mxu1 %v10778_v4  ;;  %12786 = vst [vmem:[#allocation31_spill] sm:$0xff] %v10835_v7  ;;  %12787 = vst [vmem:[#allocation32_spill] sm:$0xff] %v10838_v9 }
 0x661   :  { %v10781_v25 = vadd.f32 %v4647_v36, %v4606_v40  ;;  %v4608_v63 = vpop.f32.mrf.mxu0  ;;  %v10845_v40 = vld [vmem:[#allocation6 + $0xec] ss:$16 sps:$4 sm:$0xff]  }
 0x662   :  { %v4649_v33 = vpop.f32.mrf.mxu1  ;;  %12788 = vst [vmem:[#allocation33_spill] sm:$0xff] %v10845_v40  ;;  %v10853_v36 = vld [vmem:[#allocation6 + $0xcc] ss:$16 sps:$4 sm:$0xff]   ;;  %v10856_v63 = vld [vmem:[#allocation6 + $0xc8] ss:$16 sps:$4 sm:$0xff]  }
 0x663   :  { %5129 = vmatpush2.bf16.msra.mxu1 %v10787_v19  ;;  %v4609_v32 = vpop.f32.mrf.mxu0  ;;  %12790 = vst [vmem:[#allocation35_spill] sm:$0xff] %v10853_v36  ;;  %12791 = vst [vmem:[#allocation36_spill] sm:$0xff] %v10856_v63  ;;  %v10859_v33 = vld [vmem:[#allocation6 + $0xac] ss:$16 sps:$4 sm:$0xff]  }
 0x664   :  { %v4650_v2 = vpop.f32.mrf.mxu1  ;;  %5130 = vmatprep.subr.bf16.mxu1 %v10790_v3  ;;  %12792 = vst [vmem:[#allocation51_spill] sm:$0xff] %v10859_v33  ;;  %v10865_v32 = vld [vmem:[#allocation6 + $0x8c] ss:$16 sps:$4 sm:$0xff]  }
 0x665   :  { %12794 = vst [vmem:[#allocation56_spill] sm:$0xff] %v10865_v32  ;;  %v10868_v2 = vld [vmem:[#allocation6 + $0x88] ss:$16 sps:$4 sm:$0xff]  }
 0x666   :  { %12795 = vst [vmem:[#allocation27_spill] sm:$0xff] %v10868_v2 }
 0x667   :  { %5131 = vmatpush2.bf16.msra.mxu1 %v10797_v1 }
 0x668   :  { %5132 = vmatprep.subr.bf16.mxu1 %v10800_v52 }
 0x66b   :  { %5133 = vmatpush2.bf16.msra.mxu1 %v10807_v29 }
 0x66c   :  { %5134 = vmatprep.subr.bf16.mxu1 %v10810_v26 }
 0x66f   :  { %5135 = vmatpush2.bf16.msra.mxu1 %v10816_v45 }
 0x670   :  { %5136 = vmatprep.subr.bf16.mxu1 %v10819_v18 }
 0x673   :  { %5137 = vmatpush2.bf16.msra.mxu1 %v10822_v51  ;;  %v11026_v51 = vld [vmem:[#allocation6 + $0x5c8] ss:$16 sps:$4 sm:$0xff]  }
 0x674   :  { %5138 = vmatprep.subr.bf16.mxu1 %v10825_v30 }
 0x677   :  { %5139 = vmatpush2.bf16.msra.mxu1 %v10828_v43 }
 0x678   :  { %5140 = vmatprep.subr.bf16.mxu1 %v10835_v7  ;;  %v11023_v7 = vld [vmem:[#allocation6 + $0x5cc] ss:$16 sps:$4 sm:$0xff]  }
 0x67b   :  { %5141 = vmatpush2.bf16.msra.mxu1 %v10838_v9  ;;  %v10919_v9 = vld [vmem:[#allocation6 + $0x1ac] ss:$16 sps:$4 sm:$0xff]  }
 0x67c   :  { %5192 = vmatprep.subr.bf16.mxu1 %v10845_v40  ;;  %12808 = vst [vmem:[#allocation49_spill] sm:$0xff] %v10919_v9 }
 0x67e   :  { %5143 = vmatmul.mubr.bf16.vlgmr.msra.gmra.mxu1 %v10843_v57 }
 0x67f   :  { %5193 = vmatpush1.bf16.msra.mxu1 %v10849_v11  ;;  %5224 = vmatprep.mubr.bf16.mxu1 %v10696_v31  ;;  %v10916_v11 = vld [vmem:[#allocation6 + $0x1c8] ss:$16 sps:$4 sm:$0xff]  }
 0x680   :  { %5194 = vmatprep.subr.bf16.mxu1 %v10853_v36  ;;  %12807 = vst [vmem:[#allocation48_spill] sm:$0xff] %v10916_v11 }
 0x683   :  { %5195 = vmatpush1.bf16.msra.mxu1 %v10856_v63  ;;  %v10903_v63 = vld [vmem:[#allocation6 + $0x1e8] ss:$16 sps:$4 sm:$0xff]  }
 0x684   :  { %5196 = vmatprep.subr.bf16.mxu1 %v10859_v33  ;;  %12805 = vst [vmem:[#allocation46_spill] sm:$0xff] %v10903_v63 }
 0x687   :  { %5197 = vmatpush1.bf16.msra.mxu1 %v10862_v35  ;;  %v10880_v35 = vld [vmem:[#allocation6 + $0x48] ss:$16 sps:$4 sm:$0xff]  }
 0x688   :  { %5198 = vmatprep.subr.bf16.mxu1 %v10865_v32  ;;  %12799 = vst [vmem:[#allocation37_spill] sm:$0xff] %v10880_v35  ;;  %v10883_v32 = vld [vmem:[#allocation6 + $0x2c] ss:$16 sps:$4 sm:$0xff]  }
 0x689   :  { %12800 = vst [vmem:[#allocation38_spill] sm:$0xff] %v10883_v32 }
 0x68b   :  { %5199 = vmatpush1.bf16.msra.mxu1 %v10868_v2  ;;  %v10886_v2 = vld [vmem:[#allocation6 + $0x28] ss:$16 sps:$4 sm:$0xff]  }
 0x68c   :  { %5200 = vmatprep.subr.bf16.mxu1 %v10871_v55  ;;  %12801 = vst [vmem:[#allocation40_spill] sm:$0xff] %v10886_v2  ;;  %v10889_v55 = vld [vmem:[#allocation6 + $0xc] ss:$16 sps:$4 sm:$0xff]  }
 0x68d   :  { %12802 = vst [vmem:[#allocation41_spill] sm:$0xff] %v10889_v55 }
 0x68f   :  { %5201 = vmatpush1.bf16.msra.mxu1 %v10874_v15  ;;  %v10892_v15 = vld [vmem:[#allocation6 + $0x8] ss:$16 sps:$4 sm:$0xff]  }
 0x690   :  { %5202 = vmatprep.subr.bf16.mxu1 %v10877_v20  ;;  %12803 = vst [vmem:[#allocation42_spill] sm:$0xff] %v10892_v15  ;;  %v10895_v20 = vld [vmem:[#allocation6 + $0x1ec] ss:$16 sps:$4 sm:$0xff]  }
 0x691   :  { %12804 = vst [vmem:[#allocation45_spill] sm:$0xff] %v10895_v20 }
 0x693   :  { %5203 = vmatpush1.bf16.msra.mxu1 %v10880_v35 }
 0x694   :  { %5204 = vmatprep.subr.bf16.mxu1 %v10883_v32 }
 0x697   :  { %5205 = vmatpush1.bf16.msra.mxu1 %v10886_v2 }
 0x698   :  { %5206 = vmatprep.subr.bf16.mxu1 %v10889_v55 }
 0x69b   :  { %5207 = vmatpush1.bf16.msra.mxu1 %v10892_v15  ;;  %v10911_v15 = vld [vmem:[#allocation6 + $0x1cc] ss:$16 sps:$4 sm:$0xff]  }
 0x69c   :  { %5208 = vmatprep.subr.bf16.mxu1 %v10895_v20  ;;  %12806 = vst [vmem:[#allocation47_spill] sm:$0xff] %v10911_v15 }
 0x69d   :  { %v4686_v35 = vpop.f32.mrf.mxu0 }
 0x69e   :  { %v10899_v33 = vadd.f32 %v4686_v35, %v10773_v10  ;;  %v10901_v32 = vpop.f32.mrf.mxu1  ;;  %v5016_v10 = vcombine.high %v10669_v12, %v10669_v12 }
 0x69f   :  { %5209 = vmatpush2.bf16.msra.mxu1 %v10903_v63  ;;  %v4688_v2 = vpop.f32.mrf.mxu0 }
 0x6a0   :  { %v10907_v55 = vadd.f32 %v4688_v2, %v10781_v25  ;;  %v10909_v36 = vpop.f32.mrf.mxu1  ;;  %5210 = vmatprep.subr.bf16.mxu1 %v10911_v15  ;;  %v10922_v25 = vld [vmem:[#allocation6 + $0x1a8] ss:$16 sps:$4 sm:$0xff]   ;;  %v10925_v2 = vld [vmem:[#allocation6 + $0x18c] ss:$16 sps:$4 sm:$0xff]  }
 0x6a1   :  { %v4690_v20 = vpop.f32.mrf.mxu0  ;;  %12809 = vst [vmem:[#allocation50_spill] sm:$0xff] %v10922_v25  ;;  %12810 = vst [vmem:[#allocation52_spill] sm:$0xff] %v10925_v2 }
 0x6a2   :  { %v4731_v35 = vpop.f32.mrf.mxu1  ;;  %v10928_v20 = vld [vmem:[#allocation6 + $0x188] ss:$16 sps:$4 sm:$0xff]  }
 0x6a3   :  { %5211 = vmatpush2.bf16.msra.mxu1 %v10916_v11  ;;  %v4691_v63 = vpop.f32.mrf.mxu0  ;;  %12811 = vst [vmem:[#allocation53_spill] sm:$0xff] %v10928_v20  ;;  %v10931_v35 = vld [vmem:[#allocation6 + $0x16c] ss:$16 sps:$4 sm:$0xff]   ;;  %v11019_v11 = vld [vmem:[#allocation6 + $0x5e8] ss:$16 sps:$4 sm:$0xff]  }
 0x6a4   :  { %v4732_v40 = vpop.f32.mrf.mxu1  ;;  %5212 = vmatprep.subr.bf16.mxu1 %v10919_v9  ;;  %12812 = vst [vmem:[#allocation54_spill] sm:$0xff] %v10931_v35  ;;  %v10937_v63 = vld [vmem:[#allocation6 + $0x14c] ss:$16 sps:$4 sm:$0xff]   ;;  %12837 = vst [vmem:[#allocation67_spill] sm:$0xff] %v11019_v11 }
 0x6a5   :  { %v10934_v40 = vld [vmem:[#allocation6 + $0x168] ss:$16 sps:$4 sm:$0xff]   ;;  %12814 = vst [vmem:[#allocation15_spill] sm:$0xff] %v10937_v63 }
 0x6a6   :  { %12813 = vst [vmem:[#allocation14_spill] sm:$0xff] %v10934_v40 }
 0x6a7   :  { %5213 = vmatpush2.bf16.msra.mxu1 %v10922_v25  ;;  %v10951_v25 = vld [vmem:[#allocation6 + $0x128] ss:$16 sps:$4 sm:$0xff]  }
 0x6a8   :  { %5214 = vmatprep.subr.bf16.mxu1 %v10925_v2  ;;  %v10942_v2 = vld [vmem:[#allocation6 + $0x148] ss:$16 sps:$4 sm:$0xff]   ;;  %12817 = vst [vmem:[#allocation18_spill] sm:$0xff] %v10951_v25 }
 0x6a9   :  { %12815 = vst [vmem:[#allocation16_spill] sm:$0xff] %v10942_v2 }
 0x6ab   :  { %5215 = vmatpush2.bf16.msra.mxu1 %v10928_v20  ;;  %v10945_v20 = vld [vmem:[#allocation6 + $0x12c] ss:$16 sps:$4 sm:$0xff]  }
 0x6ac   :  { %5216 = vmatprep.subr.bf16.mxu1 %v10931_v35  ;;  %12816 = vst [vmem:[#allocation17_spill] sm:$0xff] %v10945_v20  ;;  %v10949_v35 = vrot.slane %v5016_v10, %v7615_v34 }
 0x6ae   :  { %v5032_v12 = vcombine.high %v10949_v35, %v10949_v35 }
 0x6af   :  { %5217 = vmatpush2.bf16.msra.mxu1 %v10934_v40  ;;  %v10954_v40 = vld [vmem:[#allocation6 + $0x10c] ss:$16 sps:$4 sm:$0xff]  }
 0x6b0   :  { %5218 = vmatprep.subr.bf16.mxu1 %v10937_v63  ;;  %12818 = vst [vmem:[#allocation19_spill] sm:$0xff] %v10954_v40  ;;  %v10959_v63 = vld [vmem:[#allocation6 + $0x108] ss:$16 sps:$4 sm:$0xff]   ;;  %v10966_v10 = vrot.slane %v5032_v12, %v7615_v34 }
 0x6b1   :  { %12819 = vst [vmem:[#allocation20_spill] sm:$0xff] %v10959_v63  ;;  %v10982_v12 = vld [vmem:[#allocation6 + $0x4a8] ss:$16 sps:$4 sm:$0xff]  }
 0x6b2   :  { %12825 = vst [vmem:[#allocation58_spill] sm:$0xff] %v10982_v12 }
 0x6b3   :  { %5219 = vmatpush2.bf16.msra.mxu1 %v10942_v2  ;;  %v10962_v2 = vld [vmem:[#allocation6 + $0x4ec] ss:$16 sps:$4 sm:$0xff]  }
 0x6b4   :  { %5220 = vmatprep.subr.bf16.mxu1 %v10945_v20  ;;  %12820 = vst [vmem:[#allocation21_spill] sm:$0xff] %v10962_v2  ;;  %v10985_v20 = vld [vmem:[#allocation6 + $0x48c] ss:$16 sps:$4 sm:$0xff]  }
 0x6b5   :  { %12826 = vst [vmem:[#allocation59_spill] sm:$0xff] %v10985_v20 }
 0x6b7   :  { %5221 = vmatpush2.bf16.msra.mxu1 %v10951_v25  ;;  %v10969_v25 = vld [vmem:[#allocation6 + $0x4e8] ss:$16 sps:$4 sm:$0xff]  }
 0x6b8   :  { %5222 = vmatprep.subr.bf16.mxu1 %v10954_v40  ;;  %12821 = vst [vmem:[#allocation22_spill] sm:$0xff] %v10969_v25  ;;  %v10973_v40 = vld [vmem:[#allocation6 + $0x4cc] ss:$16 sps:$4 sm:$0xff]  }
 0x6b9   :  { %12822 = vst [vmem:[#allocation24_spill] sm:$0xff] %v10973_v40 }
 0x6bb   :  { %5223 = vmatpush2.bf16.msra.mxu1 %v10959_v63  ;;  %v10976_v63 = vld [vmem:[#allocation6 + $0x4c8] ss:$16 sps:$4 sm:$0xff]  }
 0x6bc   :  { %5274 = vmatprep.subr.bf16.mxu1 %v10962_v2  ;;  %12823 = vst [vmem:[#allocation25_spill] sm:$0xff] %v10976_v63  ;;  %v10979_v2 = vld [vmem:[#allocation6 + $0x4ac] ss:$16 sps:$4 sm:$0xff]  }
 0x6bd   :  { %12824 = vst [vmem:[#allocation26_spill] sm:$0xff] %v10979_v2 }
 0x6be   :  { %5225 = vmatmul.mubr.bf16.vlgmr.msra.gmra.mxu1 %v10833_v0 }
 0x6bf   :  { %5275 = vmatpush1.bf16.msra.mxu1 %v10969_v25  ;;  %5306 = vmatprep.mubr.bf16.mxu1 %v10966_v10  ;;  %v10988_v25 = vld [vmem:[#allocation6 + $0x488] ss:$16 sps:$4 sm:$0xff]  }
 0x6c0   :  { %5276 = vmatprep.subr.bf16.mxu1 %v10973_v40  ;;  %12827 = vst [vmem:[#allocation60_spill] sm:$0xff] %v10988_v25  ;;  %v10991_v40 = vld [vmem:[#allocation6 + $0x46c] ss:$16 sps:$4 sm:$0xff]  }
 0x6c1   :  { %12828 = vst [vmem:[#allocation61_spill] sm:$0xff] %v10991_v40 }
 0x6c3   :  { %5277 = vmatpush1.bf16.msra.mxu1 %v10976_v63  ;;  %v10994_v63 = vld [vmem:[#allocation6 + $0x468] ss:$16 sps:$4 sm:$0xff]  }
 0x6c4   :  { %5278 = vmatprep.subr.bf16.mxu1 %v10979_v2  ;;  %12829 = vst [vmem:[#allocation62_spill] sm:$0xff] %v10994_v63  ;;  %v10997_v2 = vld [vmem:[#allocation6 + $0x44c] ss:$16 sps:$4 sm:$0xff]  }
 0x6c5   :  { %12830 = vst [vmem:[#allocation63_spill] sm:$0xff] %v10997_v2 }
 0x6c7   :  { %5279 = vmatpush1.bf16.msra.mxu1 %v10982_v12  ;;  %v11000_v12 = vld [vmem:[#allocation6 + $0x448] ss:$16 sps:$4 sm:$0xff]  }
 0x6c8   :  { %5280 = vmatprep.subr.bf16.mxu1 %v10985_v20  ;;  %12831 = vst [vmem:[#allocation64_spill] sm:$0xff] %v11000_v12  ;;  %v11003_v20 = vld [vmem:[#allocation6 + $0x42c] ss:$16 sps:$4 sm:$0xff]  }
 0x6c9   :  { %12832 = vst [vmem:[#allocation44_spill] sm:$0xff] %v11003_v20 }
 0x6cb   :  { %5281 = vmatpush1.bf16.msra.mxu1 %v10988_v25  ;;  %v11006_v25 = vld [vmem:[#allocation6 + $0x428] ss:$16 sps:$4 sm:$0xff]  }
 0x6cc   :  { %5282 = vmatprep.subr.bf16.mxu1 %v10991_v40  ;;  %12833 = vst [vmem:[#allocation57_spill] sm:$0xff] %v11006_v25  ;;  %v11009_v40 = vld [vmem:[#allocation6 + $0x40c] ss:$16 sps:$4 sm:$0xff]  }
 0x6cd   :  { %12834 = vst [vmem:[#allocation12_spill] sm:$0xff] %v11009_v40 }
 0x6cf   :  { %5283 = vmatpush1.bf16.msra.mxu1 %v10994_v63  ;;  %v11012_v63 = vld [vmem:[#allocation6 + $0x408] ss:$16 sps:$4 sm:$0xff]  }
 0x6d0   :  { %5284 = vmatprep.subr.bf16.mxu1 %v10997_v2  ;;  %12835 = vst [vmem:[#allocation65_spill] sm:$0xff] %v11012_v63  ;;  %v11015_v2 = vld [vmem:[#allocation6 + $0x5ec] ss:$16 sps:$4 sm:$0xff]  }
 0x6d1   :  { %12836 = vst [vmem:[#allocation66_spill] sm:$0xff] %v11015_v2 }
 0x6d3   :  { %5285 = vmatpush1.bf16.msra.mxu1 %v11000_v12 }
 0x6d4   :  { %5286 = vmatprep.subr.bf16.mxu1 %v11003_v20 }
 0x6d7   :  { %5287 = vmatpush1.bf16.msra.mxu1 %v11006_v25 }
 0x6d8   :  { %5288 = vmatprep.subr.bf16.mxu1 %v11009_v40 }
 0x6db   :  { %5289 = vmatpush1.bf16.msra.mxu1 %v11012_v63 }
 0x6dc   :  { %5290 = vmatprep.subr.bf16.mxu1 %v11015_v2 }
 0x6dd   :  { %v4768_v12 = vpop.f32.mrf.mxu0 }
 0x6de   :  { %v4769_v9 = vadd.f32 %v4768_v12, %v10901_v32  ;;  %v4809_v20 = vpop.f32.mrf.mxu1 }
 0x6df   :  { %5291 = vmatpush2.bf16.msra.mxu1 %v11019_v11  ;;  %v4770_v25 = vpop.f32.mrf.mxu0  ;;  %v11029_v11 = vld [vmem:[#allocation6 + $0x5ac] ss:$16 sps:$4 sm:$0xff]  }
 0x6e0   :  { %v4771_v15 = vadd.f32 %v4770_v25, %v10909_v36  ;;  %v4811_v40 = vpop.f32.mrf.mxu1  ;;  %5292 = vmatprep.subr.bf16.mxu1 %v11023_v7  ;;  %v4810_v43 = vadd.f32 %v4809_v20, %v4769_v9  ;;  %v12838_v36 = vmax.f32 %v10899_v33, %v10907_v55  ;;  %v7305_v33 = vld [vmem:[#allocation6 + $0x60] ss:$16 sps:$4 sm:$0xff]   ;;  %v7306_v55 = vld [vmem:[#allocation6 + $0x44] ss:$16 sps:$4 sm:$0xff]  }
 0x6e1   :  { %v4772_v63 = vpop.f32.mrf.mxu0 }
 0x6e2   :  { %v4812_v30 = vadd.f32 %v4811_v40, %v4771_v15  ;;  %v4813_v2 = vpop.f32.mrf.mxu1  ;;  %v7308_v40 = vld [vmem:[#allocation6 + $0x24] ss:$16 sps:$4 sm:$0xff]   ;;  %v7309_v63 = vld [vmem:[#allocation6 + $0x20] ss:$16 sps:$4 sm:$0xff]  }
 0x6e3   :  { %5293 = vmatpush2.bf16.msra.mxu1 %v11026_v51  ;;  %v4773_v32 = vpop.f32.mrf.mxu0 }
 0x6e4   :  { %v4817_v12 = vmax.f32 %v4810_v43, %v4812_v30  ;;  %v4814_v18 = vpop.f32.mrf.mxu1  ;;  %5294 = vmatprep.subr.bf16.mxu1 %v11029_v11  ;;  %v7298_v30 = vld [vmem:[#allocation6 + $0xc4] ss:$16 sps:$4 sm:$0xff]  }
 0x6e5   :  { %v7297_v18 = vld [vmem:[#allocation6 + $0xe0] ss:$16 sps:$4 sm:$0xff]   ;;  %v7304_v43 = vld [vmem:[#allocation6 + $0x64] ss:$16 sps:$4 sm:$0xff]  }
 0x6e6   :  { %v4818_v25 = vmax.f32 %v12838_v36, %v4817_v12  ;;  %v7310_v32 = vld [vmem:[#allocation6 + $0x4] ss:$16 sps:$4 sm:$0xff]   ;;  %v7311_v12 = vld [vmem:[#allocation6] ss:$16 sps:$4 sm:$0xff]  }
 0x6e7   :  { %5295 = vmatpush2.bf16.msra.mxu1 %v12763_v58  ;;  %v7299_v58 = vld [vmem:[#allocation6 + $0xc0] ss:$16 sps:$4 sm:$0xff]   ;;  %v7312_v36 = vld [vmem:[#allocation6 + $0x1e4] ss:$16 sps:$4 sm:$0xff]  }
 0x6e8   :  { %v4819_v9 = vadd.f32 %v10678_v54, %v4818_v25  ;;  %5296 = vmatprep.subr.bf16.mxu1 %v12765_v38  ;;  %v11044_v38 = vld [vmem:[#allocation2 + $0x6] sm:$0x3f]  ;;  %v7313_v25 = vld [vmem:[#allocation6 + $0x1e0] ss:$16 sps:$4 sm:$0xff]  }
 0x6ea   :  { %v4820_v15 = vmax.f32 %v4819_v9, 0.0  ;;  %v7314_v9 = vld [vmem:[#allocation6 + $0x1c4] ss:$16 sps:$4 sm:$0xff]  }
 0x6eb   :  { %5297 = vmatpush2.bf16.msra.mxu1 %v12767_v62  ;;  %v7300_v62 = vld [vmem:[#allocation6 + $0xa4] ss:$16 sps:$4 sm:$0xff]  }
 0x6ec   :  { %v4821_v2 = vpack.c.bf16 %v4820_v15, %v4820_v15  ;;  %5298 = vmatprep.subr.bf16.mxu1 %v12769_v44  ;;  %v11049_v44 = vrot.slane %v11044_v38, %v7615_v34  ;;  %v7315_v15 = vld [vmem:[#allocation6 + $0x1c0] ss:$16 sps:$4 sm:$0xff]  }
 0x6ee   :  { %6360 = vmatmul.mubr.bf16.vlgmr.msra.gmra.mxu0 %v4821_v2  ;;  %v7316_v2 = vld [vmem:[#allocation6 + $0x1a4] ss:$16 sps:$4 sm:$0xff]  }
 0x6ef   :  { %5070 = vmatpush1.bf16.msra.mxu0 %v7297_v18  ;;  %5299 = vmatpush2.bf16.msra.mxu1 %v12771_v6  ;;  %v7301_v6 = vld [vmem:[#allocation6 + $0xa0] ss:$16 sps:$4 sm:$0xff]  }
 0x6f0   :  { %5101 = vmatprep.mubr.bf16.mxu0 %v10696_v31  ;;  %5071 = vmatprep.subr.bf16.mxu0 %v7298_v30  ;;  %v7302_v31 = vld [vmem:[#allocation6 + $0x84] ss:$16 sps:$4 sm:$0xff]  }
 0x6f1   :  { %5300 = vmatprep.subr.bf16.mxu1 %v12773_v37  ;;  %v5443_v37 = vcombine.high %v11049_v44, %v11049_v44 }
 0x6f3   :  { %5072 = vmatpush1.bf16.msra.mxu0 %v7299_v58  ;;  %5301 = vmatpush2.bf16.msra.mxu1 %v12775_v56  ;;  %v7303_v56 = vld [vmem:[#allocation6 + $0x80] ss:$16 sps:$4 sm:$0xff]  }
 0x6f4   :  { %5073 = vmatprep.subr.bf16.mxu0 %v7300_v62  ;;  %5302 = vmatprep.subr.bf16.mxu1 %v12777_v21  ;;  %v11058_v21 = vrot.slane %v10949_v35, %v7615_v34  ;;  %v7307_v35 = vld [vmem:[#allocation6 + $0x40] ss:$16 sps:$4 sm:$0xff]  }
 0x6f7   :  { %5074 = vmatpush1.bf16.msra.mxu0 %v7301_v6  ;;  %5303 = vmatpush2.bf16.msra.mxu1 %v10363_v16 }
 0x6f8   :  { %5075 = vmatprep.subr.bf16.mxu0 %v7302_v31  ;;  %5304 = vmatprep.subr.bf16.mxu1 %v10368_v39  ;;  %v11065_v39 = vrot.slane %v5443_v37, %v7615_v34  ;;  %v7323_v37 = vld [vmem:[#allocation6 + $0x140] ss:$16 sps:$4 sm:$0xff]  }
 0x6fb   :  { %5076 = vmatpush1.bf16.msra.mxu0 %v7303_v56  ;;  %5305 = vmatpush2.bf16.msra.mxu1 %v12781_v50 }
 0x6fc   :  { %5077 = vmatprep.subr.bf16.mxu0 %v7304_v43  ;;  %5481 = vmatprep.subr.bf16.mxu1 %v10813_v28 }
 0x6fe   :  { %v11061_v16 = vpop.f32.mrf.mxu1  ;;  %5307 = vmatmul.mubr.bf16.vlgmr.msra.gmra.mxu1 %v11058_v21 }
 0x6ff   :  { %5078 = vmatpush1.bf16.msra.mxu0 %v7305_v33  ;;  %5482 = vmatpush1.bf16.msra.mxu1 %v7297_v18  ;;  %v7317_v18 = vld [vmem:[#allocation6 + $0x1a0] ss:$16 sps:$4 sm:$0xff]  }
 0x700   :  { %5513 = vmatprep.mubr.bf16.mxu1 %v11065_v39  ;;  %v6381_v50 = vpop.f32.mrf.mxu1  ;;  %5079 = vmatprep.subr.bf16.mxu0 %v7306_v55 }
 0x701   :  { %5483 = vmatprep.subr.bf16.mxu1 %v7298_v30  ;;  %v7318_v30 = vld [vmem:[#allocation6 + $0x184] ss:$16 sps:$4 sm:$0xff]   ;;  %v7327_v50 = vld [vmem:[#allocation6 + $0x100] ss:$16 sps:$4 sm:$0xff]  }
 0x702   :  { %v5011_v20 = vpop.f32.mrf.mxu1 }
 0x703   :  { %5080 = vmatpush1.bf16.msra.mxu0 %v7307_v35  ;;  %5484 = vmatpush1.bf16.msra.mxu1 %v7299_v58  ;;  %v7319_v58 = vld [vmem:[#allocation6 + $0x180] ss:$16 sps:$4 sm:$0xff]  }
 0x704   :  { %v6382_v28 = vpop.f32.mrf.mxu1  ;;  %5081 = vmatprep.subr.bf16.mxu0 %v7308_v40  ;;  %5485 = vmatprep.subr.bf16.mxu1 %v7300_v62  ;;  %v7320_v62 = vld [vmem:[#allocation6 + $0x164] ss:$16 sps:$4 sm:$0xff]   ;;  %v7329_v20 = vld [vmem:[#allocation6 + $0x4e0] ss:$16 sps:$4 sm:$0xff]  }
 0x705   :  { %v5428_v28 = vcombine.high %v11044_v38, %v11044_v38  ;;  %v7336_v38 = vld [vmem:[#allocation6 + $0x464] ss:$16 sps:$4 sm:$0xff]  }
 0x707   :  { %5082 = vmatpush1.bf16.msra.mxu0 %v7309_v63  ;;  %5486 = vmatpush1.bf16.msra.mxu1 %v7301_v6  ;;  %v7321_v6 = vld [vmem:[#allocation6 + $0x160] ss:$16 sps:$4 sm:$0xff]  }
 0x708   :  { %5083 = vmatprep.subr.bf16.mxu0 %v7310_v32  ;;  %5487 = vmatprep.subr.bf16.mxu1 %v7302_v31  ;;  %v7322_v31 = vld [vmem:[#allocation6 + $0x144] ss:$16 sps:$4 sm:$0xff]  }
 0x70b   :  { %5084 = vmatpush1.bf16.msra.mxu0 %v7311_v12  ;;  %5488 = vmatpush1.bf16.msra.mxu1 %v7303_v56  ;;  %v7324_v56 = vld [vmem:[#allocation6 + $0x124] ss:$16 sps:$4 sm:$0xff]  }
 0x70c   :  { %5085 = vmatprep.subr.bf16.mxu0 %v7312_v36  ;;  %5489 = vmatprep.subr.bf16.mxu1 %v7304_v43  ;;  %v7325_v43 = vld [vmem:[#allocation6 + $0x120] ss:$16 sps:$4 sm:$0xff]  }
 0x70f   :  { %5086 = vmatpush2.bf16.msra.mxu0 %v7313_v25  ;;  %5490 = vmatpush1.bf16.msra.mxu1 %v7305_v33  ;;  %v7326_v33 = vld [vmem:[#allocation6 + $0x104] ss:$16 sps:$4 sm:$0xff]  }
 0x710   :  { %5087 = vmatprep.subr.bf16.mxu0 %v7314_v9  ;;  %5491 = vmatprep.subr.bf16.mxu1 %v7306_v55  ;;  %v7328_v55 = vld [vmem:[#allocation6 + $0x4e4] ss:$16 sps:$4 sm:$0xff]  }
 0x713   :  { %5088 = vmatpush2.bf16.msra.mxu0 %v7315_v15  ;;  %5492 = vmatpush1.bf16.msra.mxu1 %v7307_v35  ;;  %v7330_v35 = vld [vmem:[#allocation6 + $0x4c4] ss:$16 sps:$4 sm:$0xff]  }
 0x714   :  { %5089 = vmatprep.subr.bf16.mxu0 %v7316_v2  ;;  %5493 = vmatprep.subr.bf16.mxu1 %v7308_v40  ;;  %v7331_v40 = vld [vmem:[#allocation6 + $0x4c0] ss:$16 sps:$4 sm:$0xff]  }
 0x717   :  { %5090 = vmatpush2.bf16.msra.mxu0 %v7317_v18  ;;  %5494 = vmatpush1.bf16.msra.mxu1 %v7309_v63  ;;  %v7332_v63 = vld [vmem:[#allocation6 + $0x4a4] ss:$16 sps:$4 sm:$0xff]  }
 0x718   :  { %5091 = vmatprep.subr.bf16.mxu0 %v7318_v30  ;;  %5495 = vmatprep.subr.bf16.mxu1 %v7310_v32  ;;  %v11073_v32 = vrot.slane %v5428_v28, %v7615_v34  ;;  %v7350_v28 = vld [vmem:[#allocation6 + $0x584] ss:$16 sps:$4 sm:$0xff]  }
 0x71b   :  { %5092 = vmatpush2.bf16.msra.mxu0 %v7319_v58  ;;  %5496 = vmatpush1.bf16.msra.mxu1 %v7311_v12  ;;  %v5444_v12 = vcombine.high %v11073_v32, %v11073_v32 }
 0x71c   :  { %5093 = vmatprep.subr.bf16.mxu0 %v7320_v62  ;;  %5497 = vmatprep.subr.bf16.mxu1 %v7312_v36  ;;  %v7335_v36 = vld [vmem:[#allocation6 + $0x480] ss:$16 sps:$4 sm:$0xff]  }
 0x71f   :  { %5094 = vmatpush2.bf16.msra.mxu0 %v7321_v6  ;;  %5498 = vmatpush2.bf16.msra.mxu1 %v7313_v25  ;;  %v11079_v25 = vrot.slane %v11049_v44, %v7615_v34 }
 0x720   :  { %5095 = vmatprep.subr.bf16.mxu0 %v7322_v31  ;;  %5499 = vmatprep.subr.bf16.mxu1 %v7314_v9 }
 0x723   :  { %5096 = vmatpush2.bf16.msra.mxu0 %v7323_v37  ;;  %5500 = vmatpush2.bf16.msra.mxu1 %v7315_v15  ;;  %v11084_v15 = vrot.slane %v5444_v12, %v7615_v34  ;;  %v7355_v12 = vld [vmem:[#allocation6 + $0x540] ss:$16 sps:$4 sm:$0xff]  }
 0x724   :  { %5097 = vmatprep.subr.bf16.mxu0 %v7324_v56  ;;  %5501 = vmatprep.subr.bf16.mxu1 %v7316_v2  ;;  %v7337_v2 = vld [vmem:[#allocation6 + $0x460] ss:$16 sps:$4 sm:$0xff]  }
 0x727   :  { %5098 = vmatpush2.bf16.msra.mxu0 %v7325_v43  ;;  %5502 = vmatpush2.bf16.msra.mxu1 %v7317_v18 }
 0x728   :  { %5099 = vmatprep.subr.bf16.mxu0 %v7326_v33  ;;  %5503 = vmatprep.subr.bf16.mxu1 %v7318_v30  ;;  %v7338_v30 = vld [vmem:[#allocation6 + $0x444] ss:$16 sps:$4 sm:$0xff]  }
 0x72b   :  { %5100 = vmatpush2.bf16.msra.mxu0 %v7327_v50  ;;  %5504 = vmatpush2.bf16.msra.mxu1 %v7319_v58  ;;  %v7339_v58 = vld [vmem:[#allocation6 + $0x440] ss:$16 sps:$4 sm:$0xff]  }
 0x72c   :  { %5151 = vmatprep.subr.bf16.mxu0 %v7328_v55  ;;  %5505 = vmatprep.subr.bf16.mxu1 %v7320_v62 }
 0x72e   :  { %5102 = vmatmul.mubr.bf16.vlgmr.msra.gmra.mxu0 %v10833_v0  ;;  %v7333_v0 = vld [vmem:[#allocation6 + $0x4a0] ss:$16 sps:$4 sm:$0xff]  }
 0x72f   :  { %5152 = vmatpush1.bf16.msra.mxu0 %v7329_v20  ;;  %5183 = vmatprep.mubr.bf16.mxu0 %v10966_v10  ;;  %v7334_v10 = vld [vmem:[#allocation6 + $0x484] ss:$16 sps:$4 sm:$0xff]  }
 0x730   :  { %5506 = vmatpush2.bf16.msra.mxu1 %v7321_v6  ;;  %5153 = vmatprep.subr.bf16.mxu0 %v7330_v35  ;;  %v7340_v6 = vld [vmem:[#allocation6 + $0x424] ss:$16 sps:$4 sm:$0xff]  }
 0x731   :  { %5507 = vmatprep.subr.bf16.mxu1 %v7322_v31  ;;  %v7341_v31 = vld [vmem:[#allocation6 + $0x420] ss:$16 sps:$4 sm:$0xff]  }
 0x733   :  { %5154 = vmatpush1.bf16.msra.mxu0 %v7331_v40 }
 0x734   :  { %5508 = vmatpush2.bf16.msra.mxu1 %v7323_v37  ;;  %5155 = vmatprep.subr.bf16.mxu0 %v7332_v63  ;;  %v7342_v37 = vld [vmem:[#allocation6 + $0x404] ss:$16 sps:$4 sm:$0xff]  }
 0x735   :  { %5509 = vmatprep.subr.bf16.mxu1 %v7324_v56  ;;  %v7343_v56 = vld [vmem:[#allocation6 + $0x400] ss:$16 sps:$4 sm:$0xff]  }
 0x737   :  { %5156 = vmatpush1.bf16.msra.mxu0 %v7333_v0 }
 0x738   :  { %5510 = vmatpush2.bf16.msra.mxu1 %v7325_v43  ;;  %5157 = vmatprep.subr.bf16.mxu0 %v7334_v10  ;;  %v7344_v43 = vld [vmem:[#allocation6 + $0x5e4] ss:$16 sps:$4 sm:$0xff]  }
 0x739   :  { %5511 = vmatprep.subr.bf16.mxu1 %v7326_v33  ;;  %v7345_v33 = vld [vmem:[#allocation6 + $0x5e0] ss:$16 sps:$4 sm:$0xff]  }
 0x73b   :  { %5158 = vmatpush1.bf16.msra.mxu0 %v7335_v36 }
 0x73c   :  { %5512 = vmatpush2.bf16.msra.mxu1 %v7327_v50  ;;  %5159 = vmatprep.subr.bf16.mxu0 %v7336_v38  ;;  %v7346_v50 = vld [vmem:[#allocation6 + $0x5c4] ss:$16 sps:$4 sm:$0xff]  }
 0x73d   :  { %5563 = vmatprep.subr.bf16.mxu1 %v7328_v55  ;;  %v7347_v55 = vld [vmem:[#allocation6 + $0x5c0] ss:$16 sps:$4 sm:$0xff]  }
 0x73e   :  { %v11081_v9 = vpop.f32.mrf.mxu1 }
 0x73f   :  { %5514 = vmatmul.mubr.bf16.vlgmr.msra.gmra.mxu1 %v11079_v25  ;;  %5160 = vmatpush1.bf16.msra.mxu0 %v7337_v2 }
 0x740   :  { %5564 = vmatpush1.bf16.msra.mxu1 %v7329_v20  ;;  %5595 = vmatprep.mubr.bf16.mxu1 %v11084_v15  ;;  %v11088_v18 = vpop.f32.mrf.mxu1  ;;  %v7348_v20 = vld [vmem:[#allocation6 + $0x5a4] ss:$16 sps:$4 sm:$0xff]  }
 0x741   :  { %5161 = vmatprep.subr.bf16.mxu0 %v7338_v30  ;;  %5565 = vmatprep.subr.bf16.mxu1 %v7330_v35  ;;  %v7349_v35 = vld [vmem:[#allocation6 + $0x5a0] ss:$16 sps:$4 sm:$0xff]  }
 0x742   :  { %v5148_v44 = vpop.f32.mrf.mxu1 }
 0x743   :  { %5162 = vmatpush1.bf16.msra.mxu0 %v7339_v58  ;;  %v7360_v44 = vld [vmem:[#allocation6 + $0x2ec] ss:$16 sps:$4 sm:$0xff]  }
 0x744   :  { %5566 = vmatpush1.bf16.msra.mxu1 %v7331_v40  ;;  %v5149_v62 = vpop.f32.mrf.mxu1  ;;  %5163 = vmatprep.subr.bf16.mxu0 %v7340_v6  ;;  %v7351_v40 = vld [vmem:[#allocation6 + $0x580] ss:$16 sps:$4 sm:$0xff]  }
 0x745   :  { %5567 = vmatprep.subr.bf16.mxu1 %v7332_v63  ;;  %v7352_v63 = vld [vmem:[#allocation6 + $0x564] ss:$16 sps:$4 sm:$0xff]   ;;  %v7362_v62 = vld [vmem:[#allocation6 + $0x2cc] ss:$16 sps:$4 sm:$0xff]  }
 0x747   :  { %5164 = vmatpush1.bf16.msra.mxu0 %v7341_v31 }
 0x748   :  { %5568 = vmatpush1.bf16.msra.mxu1 %v7333_v0  ;;  %5165 = vmatprep.subr.bf16.mxu0 %v7342_v37  ;;  %v7353_v0 = vld [vmem:[#allocation6 + $0x560] ss:$16 sps:$4 sm:$0xff]  }
 0x749   :  { %5569 = vmatprep.subr.bf16.mxu1 %v7334_v10  ;;  %v7354_v10 = vld [vmem:[#allocation6 + $0x544] ss:$16 sps:$4 sm:$0xff]  }
 0x74b   :  { %5166 = vmatpush1.bf16.msra.mxu0 %v7343_v56 }
 0x74c   :  { %5570 = vmatpush1.bf16.msra.mxu1 %v7335_v36  ;;  %5167 = vmatprep.subr.bf16.mxu0 %v7344_v43  ;;  %v7356_v36 = vld [vmem:[#allocation6 + $0x524] ss:$16 sps:$4 sm:$0xff]  }
 0x74d   :  { %5571 = vmatprep.subr.bf16.mxu1 %v7336_v38  ;;  %v7357_v38 = vld [vmem:[#allocation6 + $0x520] ss:$16 sps:$4 sm:$0xff]  }
 0x74f   :  { %5168 = vmatpush2.bf16.msra.mxu0 %v7345_v33 }
 0x750   :  { %5572 = vmatpush1.bf16.msra.mxu1 %v7337_v2  ;;  %5169 = vmatprep.subr.bf16.mxu0 %v7346_v50  ;;  %v7358_v2 = vld [vmem:[#allocation6 + $0x504] ss:$16 sps:$4 sm:$0xff]  }
 0x751   :  { %5573 = vmatprep.subr.bf16.mxu1 %v7338_v30  ;;  %v7359_v30 = vld [vmem:[#allocation6 + $0x500] ss:$16 sps:$4 sm:$0xff]  }
 0x753   :  { %5170 = vmatpush2.bf16.msra.mxu0 %v7347_v55 }
 0x754   :  { %5574 = vmatpush1.bf16.msra.mxu1 %v7339_v58  ;;  %5171 = vmatprep.subr.bf16.mxu0 %v7348_v20  ;;  %v7361_v58 = vld [vmem:[#allocation6 + $0x2e8] ss:$16 sps:$4 sm:$0xff]  }
 0x755   :  { %5575 = vmatprep.subr.bf16.mxu1 %v7340_v6  ;;  %v7363_v6 = vld [vmem:[#allocation6 + $0x2c8] ss:$16 sps:$4 sm:$0xff]  }
 0x757   :  { %5172 = vmatpush2.bf16.msra.mxu0 %v7349_v35 }
 0x758   :  { %5576 = vmatpush1.bf16.msra.mxu1 %v7341_v31  ;;  %5173 = vmatprep.subr.bf16.mxu0 %v7350_v28  ;;  %v7364_v31 = vld [vmem:[#allocation6 + $0x2ac] ss:$16 sps:$4 sm:$0xff]  }
 0x759   :  { %5577 = vmatprep.subr.bf16.mxu1 %v7342_v37  ;;  %v7365_v37 = vld [vmem:[#allocation6 + $0x2a8] ss:$16 sps:$4 sm:$0xff]  }
 0x75b   :  { %5174 = vmatpush2.bf16.msra.mxu0 %v7351_v40 }
 0x75c   :  { %5578 = vmatpush1.bf16.msra.mxu1 %v7343_v56  ;;  %5175 = vmatprep.subr.bf16.mxu0 %v7352_v63  ;;  %v7366_v56 = vld [vmem:[#allocation6 + $0x28c] ss:$16 sps:$4 sm:$0xff]  }
 0x75d   :  { %5579 = vmatprep.subr.bf16.mxu1 %v7344_v43  ;;  %v11094_v43 = vrot.slane %v11073_v32, %v7615_v34  ;;  %v7371_v32 = vld [vmem:[#allocation6 + $0x248] ss:$16 sps:$4 sm:$0xff]  }
 0x75f   :  { %5176 = vmatpush2.bf16.msra.mxu0 %v7353_v0 }
 0x760   :  { %5580 = vmatpush2.bf16.msra.mxu1 %v7345_v33  ;;  %5177 = vmatprep.subr.bf16.mxu0 %v7354_v10 }
 0x761   :  { %5581 = vmatprep.subr.bf16.mxu1 %v7346_v50  ;;  %v11100_v50 = vcombine.high %v11065_v39, %v11065_v39 }
 0x763   :  { %5178 = vmatpush2.bf16.msra.mxu0 %v7355_v12 }
 0x764   :  { %5582 = vmatpush2.bf16.msra.mxu1 %v7347_v55  ;;  %5179 = vmatprep.subr.bf16.mxu0 %v7356_v36  ;;  %v7369_v55 = vld [vmem:[#allocation6 + $0x268] ss:$16 sps:$4 sm:$0xff]  }
 0x765   :  { %5583 = vmatprep.subr.bf16.mxu1 %v7348_v20 }
 0x767   :  { %5180 = vmatpush2.bf16.msra.mxu0 %v7357_v38 }
 0x768   :  { %5584 = vmatpush2.bf16.msra.mxu1 %v7349_v35  ;;  %5181 = vmatprep.subr.bf16.mxu0 %v7358_v2  ;;  %v7370_v35 = vld [vmem:[#allocation6 + $0x24c] ss:$16 sps:$4 sm:$0xff]  }
 0x769   :  { %5585 = vmatprep.subr.bf16.mxu1 %v7350_v28 }
 0x76b   :  { %5182 = vmatpush2.bf16.msra.mxu0 %v7359_v30 }
 0x76c   :  { %5586 = vmatpush2.bf16.msra.mxu1 %v7351_v40  ;;  %5233 = vmatprep.subr.bf16.mxu0 %v7360_v44  ;;  %v7372_v40 = vld [vmem:[#allocation6 + $0x22c] ss:$16 sps:$4 sm:$0xff]  }
 0x76d   :  { %5587 = vmatprep.subr.bf16.mxu1 %v7352_v63  ;;  %v7373_v63 = vld [vmem:[#allocation6 + $0x228] ss:$16 sps:$4 sm:$0xff]  }
 0x76e   :  { %5184 = vmatmul.mubr.bf16.vlgmr.msra.gmra.mxu0 %v11058_v21  ;;  %v7367_v21 = vld [vmem:[#allocation6 + $0x288] ss:$16 sps:$4 sm:$0xff]  }
 0x76f   :  { %5234 = vmatpush1.bf16.msra.mxu0 %v7361_v58  ;;  %5265 = vmatprep.mubr.bf16.mxu0 %v10703_v46  ;;  %v7368_v46 = vld [vmem:[#allocation6 + $0x26c] ss:$16 sps:$4 sm:$0xff]  }
 0x770   :  { %5588 = vmatpush2.bf16.msra.mxu1 %v7353_v0  ;;  %5235 = vmatprep.subr.bf16.mxu0 %v7362_v62  ;;  %v7374_v0 = vld [vmem:[#allocation6 + $0x20c] ss:$16 sps:$4 sm:$0xff]  }
 0x771   :  { %5589 = vmatprep.subr.bf16.mxu1 %v7354_v10  ;;  %v7375_v10 = vld [vmem:[#allocation6 + $0x208] ss:$16 sps:$4 sm:$0xff]  }
 0x773   :  { %5236 = vmatpush1.bf16.msra.mxu0 %v7363_v6 }
 0x774   :  { %5590 = vmatpush2.bf16.msra.mxu1 %v7355_v12  ;;  %5237 = vmatprep.subr.bf16.mxu0 %v7364_v31  ;;  %v7376_v12 = vld [vmem:[#allocation6 + $0x3ec] ss:$16 sps:$4 sm:$0xff]  }
 0x775   :  { %5591 = vmatprep.subr.bf16.mxu1 %v7356_v36  ;;  %v7377_v36 = vld [vmem:[#allocation6 + $0x3e8] ss:$16 sps:$4 sm:$0xff]  }
 0x777   :  { %5238 = vmatpush1.bf16.msra.mxu0 %v7365_v37 }
 0x778   :  { %5592 = vmatpush2.bf16.msra.mxu1 %v7357_v38  ;;  %5239 = vmatprep.subr.bf16.mxu0 %v7366_v56  ;;  %v7378_v38 = vld [vmem:[#allocation6 + $0x3cc] ss:$16 sps:$4 sm:$0xff]  }
 0x779   :  { %5593 = vmatprep.subr.bf16.mxu1 %v7358_v2  ;;  %v7379_v2 = vld [vmem:[#allocation6 + $0x3c8] ss:$16 sps:$4 sm:$0xff]  }
 0x77b   :  { %5240 = vmatpush1.bf16.msra.mxu0 %v7367_v21 }
 0x77c   :  { %5594 = vmatpush2.bf16.msra.mxu1 %v7359_v30  ;;  %5241 = vmatprep.subr.bf16.mxu0 %v7368_v46  ;;  %v7380_v30 = vld [vmem:[#allocation6 + $0x3ac] ss:$16 sps:$4 sm:$0xff]  }
 0x77d   :  { %5645 = vmatprep.subr.bf16.mxu1 %v7360_v44  ;;  %v7381_v44 = vld [vmem:[#allocation6 + $0x3a8] ss:$16 sps:$4 sm:$0xff]  }
 0x77e   :  { %v11096_v33 = vpop.f32.mrf.mxu1 }
 0x77f   :  { %5596 = vmatmul.mubr.bf16.vlgmr.msra.gmra.mxu1 %v11094_v43  ;;  %5242 = vmatpush1.bf16.msra.mxu0 %v7369_v55 }
 0x780   :  { %5646 = vmatpush1.bf16.msra.mxu1 %v7361_v58  ;;  %5677 = vmatprep.mubr.bf16.mxu1 %v11100_v50  ;;  %v11104_v20 = vpop.f32.mrf.mxu1  ;;  %v7382_v58 = vld [vmem:[#allocation6 + $0x38c] ss:$16 sps:$4 sm:$0xff]  }
 0x781   :  { %5243 = vmatprep.subr.bf16.mxu0 %v7370_v35  ;;  %5647 = vmatprep.subr.bf16.mxu1 %v7362_v62  ;;  %v7383_v62 = vld [vmem:[#allocation6 + $0x388] ss:$16 sps:$4 sm:$0xff]  }
 0x782   :  { %v5230_v34 = vpop.f32.mrf.mxu1 }
 0x783   :  { %5244 = vmatpush1.bf16.msra.mxu0 %v7371_v32  ;;  %v12839_v34 = vmov 0.0  }
 0x784   :  { %5648 = vmatpush1.bf16.msra.mxu1 %v7363_v6  ;;  %v5231_v28 = vpop.f32.mrf.mxu1  ;;  %5245 = vmatprep.subr.bf16.mxu0 %v7372_v40  ;;  %v7384_v6 = vld [vmem:[#allocation6 + $0x36c] ss:$16 sps:$4 sm:$0xff]  }
 0x785   :  { %5649 = vmatprep.subr.bf16.mxu1 %v7364_v31  ;;  %v7385_v31 = vld [vmem:[#allocation6 + $0x368] ss:$16 sps:$4 sm:$0xff]  }
 0x787   :  { %5246 = vmatpush1.bf16.msra.mxu0 %v7373_v63 }
 0x788   :  { %5650 = vmatpush1.bf16.msra.mxu1 %v7365_v37  ;;  %5247 = vmatprep.subr.bf16.mxu0 %v7374_v0  ;;  %v7386_v37 = vld [vmem:[#allocation6 + $0x34c] ss:$16 sps:$4 sm:$0xff]  }
 0x789   :  { %5651 = vmatprep.subr.bf16.mxu1 %v7366_v56  ;;  %v7387_v56 = vld [vmem:[#allocation6 + $0x348] ss:$16 sps:$4 sm:$0xff]  }
 0x78b   :  { %5248 = vmatpush1.bf16.msra.mxu0 %v7375_v10 }
 0x78c   :  { %5652 = vmatpush1.bf16.msra.mxu1 %v7367_v21  ;;  %5249 = vmatprep.subr.bf16.mxu0 %v7376_v12  ;;  %v7388_v21 = vld [vmem:[#allocation6 + $0x32c] ss:$16 sps:$4 sm:$0xff]  }
 0x78d   :  { %5653 = vmatprep.subr.bf16.mxu1 %v7368_v46  ;;  %v7389_v46 = vld [vmem:[#allocation6 + $0x328] ss:$16 sps:$4 sm:$0xff]  }
 0x78f   :  { %5250 = vmatpush2.bf16.msra.mxu0 %v7377_v36 }
 0x790   :  { %5654 = vmatpush1.bf16.msra.mxu1 %v7369_v55  ;;  %5251 = vmatprep.subr.bf16.mxu0 %v7378_v38  ;;  %v7390_v55 = vld [vmem:[#allocation6 + $0x30c] ss:$16 sps:$4 sm:$0xff]  }
 0x791   :  { %5655 = vmatprep.subr.bf16.mxu1 %v7370_v35  ;;  %v7391_v35 = vld [vmem:[#allocation6 + $0x308] ss:$16 sps:$4 sm:$0xff]  }
 0x793   :  { %5252 = vmatpush2.bf16.msra.mxu0 %v7379_v2 }
 0x794   :  { %5656 = vmatpush1.bf16.msra.mxu1 %v7371_v32  ;;  %5253 = vmatprep.subr.bf16.mxu0 %v7380_v30 }
 0x795   :  { %5657 = vmatprep.subr.bf16.mxu1 %v7372_v40 }
 0x797   :  { %5254 = vmatpush2.bf16.msra.mxu0 %v7381_v44 }
 0x798   :  { %5658 = vmatpush1.bf16.msra.mxu1 %v7373_v63  ;;  %5255 = vmatprep.subr.bf16.mxu0 %v7382_v58 }
 0x799   :  { %5659 = vmatprep.subr.bf16.mxu1 %v7374_v0  ;;  %v11114_v0 = vcombine.high %v11079_v25, %v11079_v25 }
 0x79b   :  { %5256 = vmatpush2.bf16.msra.mxu0 %v7383_v62 }
 0x79c   :  { %5660 = vmatpush1.bf16.msra.mxu1 %v7375_v10  ;;  %5257 = vmatprep.subr.bf16.mxu0 %v7384_v6 }
 0x79d   :  { %5661 = vmatprep.subr.bf16.mxu1 %v7376_v12 }
 0x79f   :  { %5258 = vmatpush2.bf16.msra.mxu0 %v7385_v31 }
 0x7a0   :  { %5662 = vmatpush2.bf16.msra.mxu1 %v7377_v36  ;;  %5259 = vmatprep.subr.bf16.mxu0 %v7386_v37 }
 0x7a1   :  { %5663 = vmatprep.subr.bf16.mxu1 %v7378_v38  ;;  %v6896_v38 = vld [vmem:[%s11336_s5 + $0xb8] sm:$0xff]  }
 0x7a3   :  { %5260 = vmatpush2.bf16.msra.mxu0 %v7387_v56 }
 0x7a4   :  { %5664 = vmatpush2.bf16.msra.mxu1 %v7379_v2  ;;  %5261 = vmatprep.subr.bf16.mxu0 %v7388_v21  ;;  %v6897_v2 = vld [vmem:[%s11336_s5 + $0xb0] sm:$0xff]  }
 0x7a5   :  { %5665 = vmatprep.subr.bf16.mxu1 %v7380_v30  ;;  %v6898_v30 = vld [vmem:[%s11336_s5 + $0xa8] sm:$0xff]  }
 0x7a7   :  { %5262 = vmatpush2.bf16.msra.mxu0 %v7389_v46 }
 0x7a8   :  { %5666 = vmatpush2.bf16.msra.mxu1 %v7381_v44  ;;  %5263 = vmatprep.subr.bf16.mxu0 %v7390_v55  ;;  %v6899_v44 = vld [vmem:[%s11336_s5 + $0xa0] sm:$0xff]  }
 0x7a9   :  { %5667 = vmatprep.subr.bf16.mxu1 %v7382_v58 }
 0x7ab   :  { %5264 = vmatpush2.bf16.msra.mxu0 %v7391_v35 }
 0x7ac   :  { %5668 = vmatpush2.bf16.msra.mxu1 %v7383_v62  ;;  %6383 = vmatprep.subr.bf16.mxu0 %v12839_v34  ;;  %v6900_v62 = vld [vmem:[%s11336_s5 + $0x98] sm:$0xff]  }
 0x7ad   :  { %5669 = vmatprep.subr.bf16.mxu1 %v7384_v6 }
 0x7ae   :  { %5266 = vmatmul.mubr.bf16.vlgmr.msra.gmra.mxu0 %v10843_v57  ;;  %v11108_v32 = vpop.f32.mrf.mxu0 }
 0x7af   :  { %6399 = vmatprep.mubr.msk.bf16.mxu0 %vm7477_vm0, %v12839_v34  ;;  %6384 = vmatpush3.bf16.msra.mxu0 %v6896_v38 }
 0x7b0   :  { %5670 = vmatpush2.bf16.msra.mxu1 %v7385_v31  ;;  %v6361_v28 = vpop.f32.mrf.mxu0  ;;  %6385 = vmatprep.subr.bf16.mxu0 %v12839_v34 }
 0x7b1   :  { %5671 = vmatprep.subr.bf16.mxu1 %v7386_v37  ;;  %v6901_v37 = vld [vmem:[%s11336_s5 + $0x90] sm:$0xff]  }
 0x7b2   :  { %v4923_v40 = vpop.f32.mrf.mxu0 }
 0x7b3   :  { %6386 = vmatpush3.bf16.msra.mxu0 %v6897_v2 }
 0x7b4   :  { %5672 = vmatpush2.bf16.msra.mxu1 %v7387_v56  ;;  %v6362_v63 = vpop.f32.mrf.mxu0  ;;  %6387 = vmatprep.subr.bf16.mxu0 %v12839_v34 }
 0x7b5   :  { %5673 = vmatprep.subr.bf16.mxu1 %v7388_v21  ;;  %v6902_v21 = vld [vmem:[%s11336_s5 + $0x88] sm:$0xff]  }
 0x7b7   :  { %6388 = vmatpush3.bf16.msra.mxu0 %v6898_v30 }
 0x7b8   :  { %5674 = vmatpush2.bf16.msra.mxu1 %v7389_v46  ;;  %6389 = vmatprep.subr.bf16.mxu0 %v12839_v34  ;;  %v6903_v46 = vld [vmem:[%s11336_s5 + $0x80] sm:$0xff]  }
 0x7b9   :  { %5675 = vmatprep.subr.bf16.mxu1 %v7390_v55 }
 0x7bb   :  { %6390 = vmatpush3.bf16.msra.mxu0 %v6899_v44 }
 0x7bc   :  { %5676 = vmatpush2.bf16.msra.mxu1 %v7391_v35  ;;  %6391 = vmatprep.subr.bf16.mxu0 %v12839_v34 }
 0x7bd   :  { %6403 = vmatprep.subr.bf16.mxu1 %v12839_v34 }
 0x7be   :  { %v5308_v57 = vpop.f32.mrf.mxu1 }
 0x7bf   :  { %5678 = vmatmul.mubr.bf16.vlgmr.msra.gmra.mxu1 %v11114_v0  ;;  %6392 = vmatpush3.bf16.msra.mxu0 %v6900_v62 }
 0x7c0   :  { %v5310_v10 = vpop.f32.mrf.mxu1  ;;  %6419 = vmatprep.mubr.msk.bf16.mxu1 %vm7477_vm0, %v12839_v34  ;;  %6393 = vmatprep.subr.bf16.mxu0 %v12839_v34 }
 0x7c2   :  { %v5312_v12 = vpop.f32.mrf.mxu1 }
 0x7c3   :  { %6394 = vmatpush3.bf16.msra.mxu0 %v6901_v37 }
 0x7c4   :  { %v5313_v36 = vpop.f32.mrf.mxu1  ;;  %6395 = vmatprep.subr.bf16.mxu0 %v12839_v34 }
 0x7c7   :  { %6396 = vmatpush3.bf16.msra.mxu0 %v6902_v21 }
 0x7c8   :  { %6397 = vmatprep.subr.bf16.mxu0 %v12839_v34 }
 0x7cb   :  { %6398 = vmatpush3.bf16.msra.mxu0 %v6903_v46 }
 0x7cc   :  { %5522 = vmatprep.subr.bf16.mxu0 %v10698_v22 }
 0x7ee   :  { %v5103_v58 = vpop.f32.mrf.mxu0 }
 0x7ef   :  { %v5145_v63 = vadd.f32 %v11081_v9, %v5103_v58 }
 0x7f0   :  { %v5105_v6 = vpop.f32.mrf.mxu0 }
 0x7f1   :  { %v5147_v36 = vadd.f32 %v11088_v18, %v5105_v6 }
 0x7f2   :  { %v5107_v31 = vpop.f32.mrf.mxu0 }
 0x7f4   :  { %v5108_v56 = vpop.f32.mrf.mxu0 }
 0x7ff   :  { %v11152_v55 = vpop.f32.mrf.mxu1 }
 0x801   :  { %v11154_v35 = vpop.f32.mrf.mxu1 }
 0x803   :  { %v5519_v28 = vpop.f32.mrf.mxu1 }
 0x805   :  { %v5520_v40 = vpop.f32.mrf.mxu1 }
 0x82e   :  { %v5185_v12 = vpop.f32.mrf.mxu0 }
 0x82f   :  { %v5186_v38 = vadd.f32 %v5185_v12, %v5145_v63 }
 0x830   :  { %v5187_v2 = vpop.f32.mrf.mxu0 }
 0x831   :  { %v5188_v30 = vadd.f32 %v5187_v2, %v5147_v36 }
 0x832   :  { %v5189_v44 = vpop.f32.mrf.mxu0 }
 0x833   :  { %v5315_v62 = vmax.f32 %v5186_v38, %v5188_v30 }
 0x834   :  { %v5190_v31 = vpop.f32.mrf.mxu0 }
 0x835   :  { %v12871_v31 = vld [vmem:[#allocation14_spill] sm:$0xff] }
 0x83f   :  { %v11158_v37 = vpop.f32.mrf.mxu1 }
 0x841   :  { %v11160_v22 = vpop.f32.mrf.mxu1 }
 0x843   :  { %v5601_v56 = vpop.f32.mrf.mxu1 }
 0x844   :  { %v12872_v56 = vld [vmem:[#allocation15_spill] sm:$0xff] }
 0x845   :  { %v5602_v21 = vpop.f32.mrf.mxu1 }
 0x846   :  { %v12873_v21 = vld [vmem:[#allocation16_spill] sm:$0xff] }
 0x86e   :  { %v5267_v46 = vpop.f32.mrf.mxu0 }
 0x86f   :  { %v5268_v28 = vadd.f32 %v5267_v46, %v11096_v33  ;;  %v12874_v46 = vld [vmem:[#allocation17_spill] sm:$0xff] }
 0x870   :  { %v5269_v40 = vpop.f32.mrf.mxu0 }
 0x871   :  { %v5270_v9 = vadd.f32 %v5269_v40, %v11104_v20  ;;  %v5309_v18 = vadd.f32 %v5308_v57, %v5268_v28  ;;  %v12875_v28 = vld [vmem:[#allocation18_spill] sm:$0xff]  ;;  %v12876_v40 = vld [vmem:[#allocation19_spill] sm:$0xff] }
 0x872   :  { %v5271_v58 = vpop.f32.mrf.mxu0 }
 0x873   :  { %v5311_v6 = vadd.f32 %v5310_v10, %v5270_v9  ;;  %v12869_v10 = vld [vmem:[#allocation53_spill] sm:$0xff]  ;;  %v12877_v9 = vld [vmem:[#allocation20_spill] sm:$0xff] }
 0x874   :  { %v5272_v63 = vpop.f32.mrf.mxu0  ;;  %v12878_v58 = vld [vmem:[#allocation21_spill] sm:$0xff] }
 0x875   :  { %v5316_v12 = vmax.f32 %v5309_v18, %v5311_v6  ;;  %v12879_v18 = vld [vmem:[#allocation22_spill] sm:$0xff]  ;;  %v12880_v6 = vld [vmem:[#allocation24_spill] sm:$0xff]  ;;  %v12881_v63 = vld [vmem:[#allocation25_spill] sm:$0xff] }
 0x877   :  { %v5317_v36 = vmax.f32 %v5315_v62, %v5316_v12  ;;  %v12870_v62 = vld [vmem:[#allocation54_spill] sm:$0xff] }
 0x878   :  { %v12882_v12 = vld [vmem:[#allocation26_spill] sm:$0xff] }
 0x879   :  { %v5318_v38 = vadd.f32 %v10678_v54, %v5317_v36  ;;  %v12840_v54 = vld [vmem:[#allocation13_spill] sm:$0xff]  ;;  %v12883_v36 = vld [vmem:[#allocation58_spill] sm:$0xff] }
 0x87b   :  { %v5319_v2 = vmax.f32 %v5318_v38, 0.0  ;;  %v12884_v38 = vld [vmem:[#allocation59_spill] sm:$0xff] }
 0x87d   :  { %v5320_v30 = vpack.c.bf16 %v5319_v2, %v5319_v2  ;;  %v12885_v2 = vld [vmem:[#allocation60_spill] sm:$0xff] }
 0x87f   :  { %v11165_v44 = vpop.f32.mrf.mxu1  ;;  %6400 = vmatmul.mubr.bf16.vlgmr.msra.gmra.mxu0 %v5320_v30  ;;  %v12886_v30 = vld [vmem:[#allocation61_spill] sm:$0xff] }
 0x880   :  { %5523 = vmatpush1.bf16.msra.mxu0 %v10705_v24  ;;  %5554 = vmatprep.mubr.bf16.mxu0 %v11100_v50  ;;  %v12841_v24 = vld [vmem:[#allocation28_spill] sm:$0xff]  ;;  %v12867_v50 = vld [vmem:[#allocation50_spill] sm:$0xff] }
 0x881   :  { %v11169_v33 = vpop.f32.mrf.mxu1  ;;  %5524 = vmatprep.subr.bf16.mxu0 %v10709_v61  ;;  %v12842_v61 = vld [vmem:[#allocation29_spill] sm:$0xff] }
 0x883   :  { %v5683_v20 = vpop.f32.mrf.mxu1 }
 0x884   :  { %5525 = vmatpush1.bf16.msra.mxu0 %v10712_v8  ;;  %v12843_v8 = vld [vmem:[#allocation30_spill] sm:$0xff] }
 0x885   :  { %v5684_v57 = vpop.f32.mrf.mxu1  ;;  %5526 = vmatprep.subr.bf16.mxu0 %v10715_v49  ;;  %v12844_v49 = vld [vmem:[#allocation31_spill] sm:$0xff]  ;;  %v12887_v20 = vld [vmem:[#allocation62_spill] sm:$0xff] }
 0x886   :  { %v12889_v57 = vld [vmem:[#allocation64_spill] sm:$0xff] }
 0x888   :  { %5527 = vmatpush1.bf16.msra.mxu0 %v10718_v23  ;;  %v12845_v23 = vld [vmem:[#allocation32_spill] sm:$0xff] }
 0x889   :  { %5528 = vmatprep.subr.bf16.mxu0 %v10721_v53  ;;  %v12846_v53 = vld [vmem:[#allocation33_spill] sm:$0xff] }
 0x88c   :  { %5529 = vmatpush1.bf16.msra.mxu0 %v10724_v42  ;;  %v12847_v42 = vld [vmem:[#allocation34_spill] sm:$0xff] }
 0x88d   :  { %5530 = vmatprep.subr.bf16.mxu0 %v10727_v59  ;;  %v12848_v59 = vld [vmem:[#allocation35_spill] sm:$0xff] }
 0x890   :  { %5531 = vmatpush1.bf16.msra.mxu0 %v10733_v5  ;;  %v12849_v5 = vld [vmem:[#allocation36_spill] sm:$0xff] }
 0x891   :  { %5532 = vmatprep.subr.bf16.mxu0 %v10737_v47  ;;  %v12850_v47 = vld [vmem:[#allocation51_spill] sm:$0xff] }
 0x894   :  { %5533 = vmatpush1.bf16.msra.mxu0 %v10743_v41  ;;  %v12851_v41 = vld [vmem:[#allocation55_spill] sm:$0xff] }
 0x895   :  { %5534 = vmatprep.subr.bf16.mxu0 %v10747_v13  ;;  %v12852_v13 = vld [vmem:[#allocation56_spill] sm:$0xff] }
 0x898   :  { %5535 = vmatpush1.bf16.msra.mxu0 %v10753_v17  ;;  %v12853_v17 = vld [vmem:[#allocation27_spill] sm:$0xff] }
 0x899   :  { %5536 = vmatprep.subr.bf16.mxu0 %v10757_v60  ;;  %v12854_v60 = vld [vmem:[#allocation23_spill] sm:$0xff] }
 0x89c   :  { %5537 = vmatpush1.bf16.msra.mxu0 %v10763_v48  ;;  %v12855_v48 = vld [vmem:[#allocation39_spill] sm:$0xff] }
 0x89d   :  { %5538 = vmatprep.subr.bf16.mxu0 %v10767_v27  ;;  %v12856_v27 = vld [vmem:[#allocation43_spill] sm:$0xff] }
 0x8a0   :  { %5539 = vmatpush2.bf16.msra.mxu0 %v10775_v14  ;;  %v12857_v14 = vld [vmem:[#allocation37_spill] sm:$0xff] }
 0x8a1   :  { %5540 = vmatprep.subr.bf16.mxu0 %v10778_v4  ;;  %v12858_v4 = vld [vmem:[#allocation38_spill] sm:$0xff] }
 0x8a4   :  { %5541 = vmatpush2.bf16.msra.mxu0 %v10787_v19  ;;  %v12859_v19 = vld [vmem:[#allocation40_spill] sm:$0xff] }
 0x8a5   :  { %5542 = vmatprep.subr.bf16.mxu0 %v10790_v3  ;;  %v12860_v3 = vld [vmem:[#allocation41_spill] sm:$0xff] }
 0x8a8   :  { %5543 = vmatpush2.bf16.msra.mxu0 %v10797_v1  ;;  %v12861_v1 = vld [vmem:[#allocation42_spill] sm:$0xff] }
 0x8a9   :  { %5544 = vmatprep.subr.bf16.mxu0 %v10800_v52  ;;  %v12862_v52 = vld [vmem:[#allocation45_spill] sm:$0xff] }
 0x8ac   :  { %5545 = vmatpush2.bf16.msra.mxu0 %v10807_v29  ;;  %v12863_v29 = vld [vmem:[#allocation46_spill] sm:$0xff] }
 0x8ad   :  { %5546 = vmatprep.subr.bf16.mxu0 %v10810_v26  ;;  %v12864_v26 = vld [vmem:[#allocation47_spill] sm:$0xff] }
 0x8b0   :  { %5547 = vmatpush2.bf16.msra.mxu0 %v10816_v45  ;;  %v12865_v45 = vld [vmem:[#allocation48_spill] sm:$0xff] }
 0x8b1   :  { %5548 = vmatprep.subr.bf16.mxu0 %v12840_v54  ;;  %v12891_v54 = vld [vmem:[#allocation57_spill] sm:$0xff] }
 0x8b4   :  { %5549 = vmatpush2.bf16.msra.mxu0 %v12841_v24  ;;  %v12892_v24 = vld [vmem:[#allocation12_spill] sm:$0xff] }
 0x8b5   :  { %5550 = vmatprep.subr.bf16.mxu0 %v12842_v61  ;;  %v12893_v61 = vld [vmem:[#allocation65_spill] sm:$0xff] }
 0x8b8   :  { %5551 = vmatpush2.bf16.msra.mxu0 %v12843_v8  ;;  %v12894_v8 = vld [vmem:[#allocation66_spill] sm:$0xff] }
 0x8b9   :  { %5552 = vmatprep.subr.bf16.mxu0 %v12844_v49  ;;  %v12895_v49 = vld [vmem:[#allocation67_spill] sm:$0xff] }
 0x8bc   :  { %5553 = vmatpush2.bf16.msra.mxu0 %v12845_v23  ;;  %v7392_v23 = vld [vmem:[#allocation6 + $0x5a8] ss:$16 sps:$4 sm:$0xff]  }
 0x8bd   :  { %5604 = vmatprep.subr.bf16.mxu0 %v12846_v53  ;;  %v7393_v53 = vld [vmem:[#allocation6 + $0x58c] ss:$16 sps:$4 sm:$0xff]  }
 0x8bf   :  { %5555 = vmatmul.mubr.bf16.vlgmr.msra.gmra.mxu0 %v11114_v0  ;;  %v12868_v0 = vld [vmem:[#allocation52_spill] sm:$0xff] }
 0x8c0   :  { %5605 = vmatpush1.bf16.msra.mxu0 %v12847_v42  ;;  %5636 = vmatprep.mubr.bf16.mxu0 %v11065_v39  ;;  %v12866_v39 = vld [vmem:[#allocation49_spill] sm:$0xff] }
 0x8c1   :  { %5606 = vmatprep.subr.bf16.mxu0 %v12848_v59  ;;  %v7394_v42 = vld [vmem:[#allocation6 + $0x588] ss:$16 sps:$4 sm:$0xff]   ;;  %v7395_v59 = vld [vmem:[#allocation6 + $0x56c] ss:$16 sps:$4 sm:$0xff]  }
 0x8c4   :  { %5607 = vmatpush1.bf16.msra.mxu0 %v12849_v5  ;;  %v7396_v5 = vld [vmem:[#allocation6 + $0x568] ss:$16 sps:$4 sm:$0xff]  }
 0x8c5   :  { %5608 = vmatprep.subr.bf16.mxu0 %v12850_v47  ;;  %v7397_v47 = vld [vmem:[#allocation6 + $0x54c] ss:$16 sps:$4 sm:$0xff]  }
 0x8c8   :  { %5609 = vmatpush1.bf16.msra.mxu0 %v12851_v41  ;;  %v7398_v41 = vld [vmem:[#allocation6 + $0x548] ss:$16 sps:$4 sm:$0xff]  }
 0x8c9   :  { %5610 = vmatprep.subr.bf16.mxu0 %v12852_v13  ;;  %v7399_v13 = vld [vmem:[#allocation6 + $0x52c] ss:$16 sps:$4 sm:$0xff]  }
 0x8cc   :  { %5611 = vmatpush1.bf16.msra.mxu0 %v12853_v17  ;;  %v5009_v17 = vadd.f32 %v11061_v16, %v11108_v32  ;;  %v6905_v16 = vld [vmem:[%s11336_s5 + $0xf0] sm:$0xff]   ;;  %v6907_v32 = vld [vmem:[%s11336_s5 + $0xe0] sm:$0xff]  }
 0x8cd   :  { %5612 = vmatprep.subr.bf16.mxu0 %v12854_v60 }
 0x8d0   :  { %5613 = vmatpush1.bf16.msra.mxu0 %v12855_v48 }
 0x8d1   :  { %5614 = vmatprep.subr.bf16.mxu0 %v12856_v27 }
 0x8d4   :  { %5615 = vmatpush1.bf16.msra.mxu0 %v12857_v14 }
 0x8d5   :  { %5616 = vmatprep.subr.bf16.mxu0 %v12858_v4 }
 0x8d8   :  { %5617 = vmatpush1.bf16.msra.mxu0 %v12859_v19  ;;  %v6904_v19 = vld [vmem:[%s11336_s5 + $0xf8] sm:$0xff]  }
 0x8d9   :  { %5618 = vmatprep.subr.bf16.mxu0 %v12860_v3  ;;  %6404 = vmatpush3.bf16.msra.mxu1 %v6904_v19  ;;  %v6908_v3 = vld [vmem:[%s11336_s5 + $0xd8] sm:$0xff]  }
 0x8da   :  { %6405 = vmatprep.subr.bf16.mxu1 %v12839_v34 }
 0x8dc   :  { %5619 = vmatpush1.bf16.msra.mxu0 %v12861_v1 }
 0x8dd   :  { %5620 = vmatprep.subr.bf16.mxu0 %v12862_v52  ;;  %6406 = vmatpush3.bf16.msra.mxu1 %v6905_v16 }
 0x8de   :  { %6407 = vmatprep.subr.bf16.mxu1 %v12839_v34 }
 0x8e0   :  { %5621 = vmatpush2.bf16.msra.mxu0 %v12863_v29 }
 0x8e1   :  { %5622 = vmatprep.subr.bf16.mxu0 %v12864_v26  ;;  %v6909_v26 = vld [vmem:[%s11336_s5 + $0xd0] sm:$0xff]  }
 0x8e4   :  { %5623 = vmatpush2.bf16.msra.mxu0 %v12865_v45 }
 0x8e5   :  { %5624 = vmatprep.subr.bf16.mxu0 %v12866_v39 }
 0x8e8   :  { %5625 = vmatpush2.bf16.msra.mxu0 %v12867_v50 }
 0x8e9   :  { %5626 = vmatprep.subr.bf16.mxu0 %v12868_v0 }
 0x8ec   :  { %5627 = vmatpush2.bf16.msra.mxu0 %v12869_v10 }
 0x8ed   :  { %5628 = vmatprep.subr.bf16.mxu0 %v12870_v62 }
 0x8f0   :  { %5629 = vmatpush2.bf16.msra.mxu0 %v12871_v31 }
 0x8f1   :  { %5630 = vmatprep.subr.bf16.mxu0 %v12872_v56 }
 0x8f4   :  { %5631 = vmatpush2.bf16.msra.mxu0 %v12873_v21 }
 0x8f5   :  { %5632 = vmatprep.subr.bf16.mxu0 %v12874_v46 }
 0x8f8   :  { %5633 = vmatpush2.bf16.msra.mxu0 %v12875_v28 }
 0x8f9   :  { %5634 = vmatprep.subr.bf16.mxu0 %v12876_v40 }
 0x8fc   :  { %5635 = vmatpush2.bf16.msra.mxu0 %v12877_v9 }
 0x8fd   :  { %5686 = vmatprep.subr.bf16.mxu0 %v12878_v58 }
 0x8ff   :  { %5637 = vmatmul.mubr.bf16.vlgmr.msra.gmra.mxu0 %v11079_v25  ;;  %v12888_v25 = vld [vmem:[#allocation63_spill] sm:$0xff] }
 0x900   :  { %5687 = vmatpush1.bf16.msra.mxu0 %v12879_v18  ;;  %5718 = vmatprep.mubr.bf16.mxu0 %v11084_v15  ;;  %v12890_v15 = vld [vmem:[#allocation44_spill] sm:$0xff] }
 0x901   :  { %5688 = vmatprep.subr.bf16.mxu0 %v12880_v6 }
 0x904   :  { %5689 = vmatpush1.bf16.msra.mxu0 %v12881_v63 }
 0x905   :  { %5690 = vmatprep.subr.bf16.mxu0 %v12882_v12 }
 0x908   :  { %5691 = vmatpush1.bf16.msra.mxu0 %v12883_v36 }
 0x909   :  { %5692 = vmatprep.subr.bf16.mxu0 %v12884_v38 }
 0x90c   :  { %5693 = vmatpush1.bf16.msra.mxu0 %v12885_v2  ;;  %v7403_v2 = vld [vmem:[%s11335_s4] ss:$0 sm:$0xff] }
 0x90d   :  { %5694 = vmatprep.subr.bf16.mxu0 %v12886_v30 }
 0x910   :  { %5695 = vmatpush1.bf16.msra.mxu0 %v12887_v20 }
 0x911   :  { %5696 = vmatprep.subr.bf16.mxu0 %v12888_v25 }
 0x914   :  { %5697 = vmatpush1.bf16.msra.mxu0 %v12889_v57 }
 0x915   :  { %5698 = vmatprep.subr.bf16.mxu0 %v12890_v15  ;;  %v6295_v15 = vld [vmem:[%s11337_s6] ss:$0 sm:$0xff]  ;;  %s7478_s6 = smov [#allocation8]  }
 0x918   :  { %5699 = vmatpush1.bf16.msra.mxu0 %v12891_v54 }
 0x919   :  { %5700 = vmatprep.subr.bf16.mxu0 %v12892_v24 }
 0x91c   :  { %5701 = vmatpush1.bf16.msra.mxu0 %v12893_v61 }
 0x91d   :  { %5702 = vmatprep.subr.bf16.mxu0 %v12894_v8 }
 0x920   :  { %5703 = vmatpush2.bf16.msra.mxu0 %v12895_v49 }
 0x921   :  { %5704 = vmatprep.subr.bf16.mxu0 %v11023_v7  ;;  %v7400_v7 = vld [vmem:[#allocation6 + $0x528] ss:$16 sps:$4 sm:$0xff]  }
 0x924   :  { %5705 = vmatpush2.bf16.msra.mxu0 %v11026_v51  ;;  %v7401_v51 = vld [vmem:[#allocation6 + $0x50c] ss:$16 sps:$4 sm:$0xff]  }
 0x925   :  { %5706 = vmatprep.subr.bf16.mxu0 %v11029_v11  ;;  %v7402_v11 = vld [vmem:[#allocation6 + $0x508] ss:$16 sps:$4 sm:$0xff]  }
 0x928   :  { %5707 = vmatpush2.bf16.msra.mxu0 %v7392_v23 }
 0x929   :  { %5708 = vmatprep.subr.bf16.mxu0 %v7393_v53 }
 0x92c   :  { %5709 = vmatpush2.bf16.msra.mxu0 %v7394_v42 }
 0x92d   :  { %5710 = vmatprep.subr.bf16.mxu0 %v7395_v59 }
 0x930   :  { %5711 = vmatpush2.bf16.msra.mxu0 %v7396_v5 }
 0x931   :  { %5712 = vmatprep.subr.bf16.mxu0 %v7397_v47 }
 0x934   :  { %5713 = vmatpush2.bf16.msra.mxu0 %v7398_v41 }
 0x935   :  { %5714 = vmatprep.subr.bf16.mxu0 %v7399_v13 }
 0x938   :  { %5715 = vmatpush2.bf16.msra.mxu0 %v7400_v7 }
 0x939   :  { %5716 = vmatprep.subr.bf16.mxu0 %v7401_v51 }
 0x93c   :  { %5717 = vmatpush2.bf16.msra.mxu0 %v7402_v11 }
 0x93d   :  { %6423 = vmatprep.subr.bf16.mxu0 %v12839_v34 }
 0x93f   :  { %5719 = vmatmul.mubr.bf16.vlgmr.msra.gmra.mxu0 %v11094_v43  ;;  %v5419_v60 = vpop.f32.mrf.mxu0  ;;  %v6906_v43 = vld [vmem:[%s11336_s5 + $0xe8] sm:$0xff]  }
 0x940   :  { %v11262_v48 = vadd.f32 %v5419_v60, %v5009_v17  ;;  %6431 = vmatprep.mubr.msk.bf16.mxu0 %vm7477_vm0, %v12839_v34  ;;  %6408 = vmatpush3.bf16.msra.mxu1 %v6906_v43 }
 0x941   :  { %v6401_v27 = vpop.f32.mrf.mxu0  ;;  %6409 = vmatprep.subr.bf16.mxu1 %v12839_v34 }
 0x943   :  { %v5422_v14 = vpop.f32.mrf.mxu0 }
 0x944   :  { %6410 = vmatpush3.bf16.msra.mxu1 %v6907_v32 }
 0x945   :  { %v6402_v4 = vpop.f32.mrf.mxu0  ;;  %6411 = vmatprep.subr.bf16.mxu1 %v12839_v34 }
 0x948   :  { %6412 = vmatpush3.bf16.msra.mxu1 %v6908_v3 }
 0x949   :  { %6413 = vmatprep.subr.bf16.mxu1 %v12839_v34 }
 0x94c   :  { %6414 = vmatpush3.bf16.msra.mxu1 %v6909_v26 }
 0x94d   :  { %6415 = vmatprep.subr.bf16.mxu1 %v12839_v34 }
 0x97f   :  { %v5556_v1 = vpop.f32.mrf.mxu0 }
 0x980   :  { %v5557_v52 = vadd.f32 %v5556_v1, %v11152_v55  ;;  %v6910_v55 = vld [vmem:[%s11336_s5 + $0xc8] sm:$0xff]  }
 0x981   :  { %v5558_v29 = vpop.f32.mrf.mxu0  ;;  %6416 = vmatpush3.bf16.msra.mxu1 %v6910_v55 }
 0x982   :  { %v5559_v45 = vadd.f32 %v5558_v29, %v11154_v35  ;;  %v5598_v50 = vadd.f32 %v11158_v37, %v5557_v52  ;;  %6417 = vmatprep.subr.bf16.mxu1 %v12839_v34  ;;  %v6911_v35 = vld [vmem:[%s11336_s5 + $0xc0] sm:$0xff]   ;;  %v6912_v37 = vld [vmem:[%s11338_s7 + $0x18] sm:$0xff]  }
 0x983   :  { %v5560_v39 = vpop.f32.mrf.mxu0  ;;  %6424 = vmatpush3.bf16.msra.mxu0 %v6912_v37 }
 0x984   :  { %v5600_v0 = vadd.f32 %v11160_v22, %v5559_v45  ;;  %v6913_v22 = vld [vmem:[%s11338_s7 + $0x10] sm:$0xff]   ;;  %6425 = vmatprep.subr.bf16.mxu0 %v12839_v34 }
 0x985   :  { %v5561_v10 = vpop.f32.mrf.mxu0  ;;  %6418 = vmatpush3.bf16.msra.mxu1 %v6911_v35 }
 0x986   :  { %v5727_v62 = vmax.f32 %v5598_v50, %v5600_v0 }
 0x987   :  { %6426 = vmatpush3.bf16.msra.mxu0 %v6913_v22 }
 0x988   :  { %6427 = vmatprep.subr.bf16.mxu0 %v12839_v34 }
 0x9bf   :  { %v5638_v31 = vpop.f32.mrf.mxu0 }
 0x9c0   :  { %v5680_v40 = vadd.f32 %v11165_v44, %v5638_v31  ;;  %v6914_v44 = vld [vmem:[%s11338_s7 + $0x8] sm:$0xff]  }
 0x9c1   :  { %v5640_v56 = vpop.f32.mrf.mxu0  ;;  %6428 = vmatpush3.bf16.msra.mxu0 %v6914_v44 }
 0x9c2   :  { %v5682_v9 = vadd.f32 %v11169_v33, %v5640_v56  ;;  %6429 = vmatprep.subr.bf16.mxu0 %v12839_v34  ;;  %v6915_v33 = vld [vmem:[%s11338_s7] sm:$0xff]   ;;  %s5951_s7 = sshll.u32 %s7478_s6, 4  ;;  %s5952_s7 = int_to_ptr.vmem [resolvable:$true] %s5951_s7 }
 0x9c3   :  { %v5642_v21 = vpop.f32.mrf.mxu0  ;;  %v6296_v34 = vld [vmem:[%s11339_s8] ss:$0 sm:$0xff]  ;;  %s7444_s8 = scalar_lea.vmem %s5952_s7, 32  ;;  %p7449_p11 = scmp.lt.s32.totalorder %s5952_s7, %s5952_s7 }
 0x9c4   :  { %p7445_p10 = scmp.ne.s32.totalorder %s5952_s7, %s7444_s8  ;;  %p7450_p12 = scmp.lt.s32.totalorder %s7444_s8, %s7444_s8 }
 0x9c5   :  { %v5643_v46 = vpop.f32.mrf.mxu0  ;;  %6430 = vmatpush3.bf16.msra.mxu0 %v6915_v33 }
 0x9c6   :  { %p7451_p13 = por %p7450_p12, %p7449_p11 }
 0x9c8   :  { %p7452_p0 = pnand %p7451_p13, %p7445_p10 }
 0x9ff   :  { %v5720_v28 = vpop.f32.mrf.mxu0 }
 0xa00   :  { %v5721_v18 = vadd.f32 %v5720_v28, %v5680_v40 }
 0xa01   :  { %v5722_v58 = vpop.f32.mrf.mxu0 }
 0xa02   :  { %v5723_v6 = vadd.f32 %v5722_v58, %v5682_v9 }
 0xa03   :  { %v5724_v63 = vpop.f32.mrf.mxu0 }
 0xa04   :  { %v5728_v12 = vmax.f32 %v5721_v18, %v5723_v6 }
 0xa05   :  { %v5725_v36 = vpop.f32.mrf.mxu0 }
 0xa06   :  { %v5729_v38 = vmax.f32 %v5727_v62, %v5728_v12 }
 0xa08   :  { %v5730_v30 = vadd.f32 %v7403_v2, %v5729_v38 }
 0xa0a   :  { %v5731_v20 = vmax.f32 %v5730_v30, 0.0 }
 0xa0c   :  { %v5732_v25 = vpack.c.bf16 %v5731_v20, %v5731_v20 }
 0xa0e   :  { %6420 = vmatmul.mubr.bf16.vlgmr.msra.gmra.mxu1 %v5732_v25 }
 0xace   :  { %v5831_v57 = vpop.f32.mrf.mxu1 }
 0xacf   :  { %v5837_v54 = vadd.f32 %v5831_v57, %v11262_v48 }
 0xad0   :  { %v6421_v24 = vpop.f32.mrf.mxu1 }
 0xad1   :  { %v5845_v61 = vadd.f32 %v6295_v15, %v5837_v54 }
 0xad2   :  { %v5834_v8 = vpop.f32.mrf.mxu1 }
 0xad3   :  { %v5846_v49 = vmax.f32 %v5845_v61, 0.0 }
 0xad4   :  { %v6422_v23 = vpop.f32.mrf.mxu1 }
 0xad5   :  { %v5847_v53 = vpack.c.bf16 %v5846_v49, %v5846_v49 }
 0xad7   :  { %6432 = vmatmul.mubr.msk.bf16.vlgmr.msra.gmra.mxu0 %vm5887_vm1, %v5847_v53 }
 0xb97   :  { %v5925_v42 = vpop.f32.mrf.mxu0 }
 0xb98   :  { %v5926_v59 = vadd.f32 %v6296_v34, %v5925_v42 }
 0xb99   :  { %v6433_v5 = vpop.f32.mrf.mxu0 }
 0xb9a   :  { %v5932_v47 = vsel %vm5931_vm2, %v5926_v59, -inf }
 0xb9b   :  { %5933 = vmax.xlane.f32.xlu0 %v5932_v47  ;;  %v5928_v41 = vpop.f32.mrf.mxu0 }
 0xb9d   :  { %v6434_v13 = vpop.f32.mrf.mxu0 }
 0xc24   :  { %v5934_v7 = vpop.xlane.xlu0 %5933 }
 0xc25   :  { %v5935_v51 = vsub.f32 %v5926_v59, %v5934_v7 }
 0xc27   :  { %v5936_v11 = vmul.f32 1.442695, %v5935_v51 }
 0xc29   :  { %6916 = vpow2.f32 %v5936_v11 }
 0xc36   :  { %v6917_v17 = vpop.eup %6916 }
 0xc37   :  { %v5938_v60 = vsel %vm5931_vm2, %v6917_v17, 0.0 }
 0xc38   :  { %5939 = vadd.xlane.f32.xlu0 %v5938_v60 }
 0xcc1   :  { %v5940_v48 = vpop.xlane.xlu0 %5939 }
 0xcc2   :  { %6918 = vlog2.f32 %v5940_v48 }
 0xccf   :  { %v6919_v27 = vpop.eup %6918 }
 0xcd0   :  { %v5942_v14 = vmul.f32 0.6931472, %v6919_v27 }
 0xcd2   :  { %v5943_v4 = vsub.f32 %v5935_v51, %v5942_v14 }
 0xcd4   :  { %5944 = vst [vmem:[#allocation8] sm:$0x3] %v5943_v4 }
 0xcd5   :  { %7455 = shalt.err (!%p7452_p0)
}
 0xcd6   :  { %5954 = dma.vmem_to_hbm [thread:$0]  %s5952_s7, 32, %s11340_s9, [#allocation5]  }
 0xcd7   :  { %7468 = dma.done.wait [#allocation5], 32  }
 0xcd8   :  { %7469 = vsyncadd [#allocation5], 4294967264 }
 0xcd9   :  { %5958 = vsyncpa [#allocation4], 1 }
 0xcda   :  { %5959 = vsyncpa [#allocation7], 1 }
 0xcdb   :  { %5960 = vsyncpa [#allocation5], 1 }

</bundles_post_ra>
